<compile_context>
chip_gen: v7x
topology: tpu7x:2x2x1
jax: 0.10.0
libtpu: 0.0.40
codegen_flags: <defaults>
</compile_context>

<pallas_src>
import functools

import jax
import jax.numpy as jnp
from jax.experimental import pallas as pl
from jax.experimental.pallas import tpu as pltpu


# Scoped-VMEM limit for every pallas_call.  Per-generation defaults (16 MiB on
# v5e, 32 MiB on v6e/v7x) reject real-size tiles long before physical VMEM is
# exhausted; keep <= 64 MiB so the same value also fits v7x physical VMEM.
_VMEM_LIMIT_BYTES = 64 * 1024 * 1024


# ----------------------------------------------------------------------------
# small helpers
# ----------------------------------------------------------------------------
def _const_spec(shape):
    """BlockSpec for a weight that is fully resident (same block every step)."""
    zeros = (0,) * len(shape)
    return pl.BlockSpec(shape, lambda *args, _z=zeros: _z)


def _layernorm(x, g, b, eps=1e-5):
    mu = jnp.mean(x, axis=-1, keepdims=True)
    var = jnp.mean(jnp.square(x - mu), axis=-1, keepdims=True)
    return (x - mu) * jax.lax.rsqrt(var + eps) * g + b


def _rmsnorm(x, g, eps=1e-6):
    ms = jnp.mean(jnp.square(x), axis=-1, keepdims=True)
    return x * jax.lax.rsqrt(ms + eps) * g


# ----------------------------------------------------------------------------
# Fused conv stem: conv1(stride1) + GELU + conv2(stride2) + GELU + pos_emb,
# output already in (T, D) encoder layout.  conv2's stride-2 gather is done
# with strided sublane loads from a VMEM scratch ref (no selection matmuls).
# ----------------------------------------------------------------------------
def _conv_stem_kernel(x_ref, w1_ref, b1_ref, w2_ref, b2_ref, pos_ref, o_ref,
                      h1_scr):
    # x_ref: (T_in+2, C_mel) zero-padded mel, time-major, bf16
    # w1_ref: (3, C_mel, D) bf16 ; w2_ref: (3, D, D) bf16 ; biases (1, D) f32
    x = x_ref[...]
    t_pad = x.shape[0]
    t1 = t_pad - 2                      # conv1 output length (stride 1, pad 1)
    t2, d = o_ref.shape                 # conv2 output length (stride 2, pad 1)

    # ---- conv1 + GELU: taps are static shifted slices of the padded input ----
    acc1 = jnp.zeros((t1, d), jnp.float32)
    for k in range(3):
        acc1 = acc1 + jnp.dot(x[k:k + t1, :], w1_ref[k],
                              preferred_element_type=jnp.float32)
    h1 = jax.nn.gelu(acc1 + b1_ref[...], approximate=True)

    # ---- stage conv1 output in VMEM with a sublane-aligned zero pad block ----
    # scratch row (r + 8) holds h1[r]; rows 0..7 are the left zero padding so
    # conv2 tap k (input position 2*o + k - 1) is scratch row (2*o + k + 7).
    h1_scr[0:8, :] = jnp.zeros((8, d), jnp.float32)
    h1_scr[8:8 + t1, :] = h1

    # ---- conv2 (stride 2, pad 1) + GELU via strided sublane loads ----
    acc2 = jnp.zeros((t2, d), jnp.float32)
    for k in range(3):
        tap = h1_scr[pl.ds(7 + k, t2, stride=2), :].astype(jnp.bfloat16)
        acc2 = acc2 + jnp.dot(tap, w2_ref[k],
                              preferred_element_type=jnp.float32)
    h2 = jax.nn.gelu(acc2 + b2_ref[...], approximate=True)

    # fold in the positional embedding; output is (T, D) encoder layout, bf16
    o_ref[...] = (h2 + pos_ref[...]).astype(o_ref.dtype)


def conv_stem(p, x_mel):
    """x_mel: (BN, C_mel, M) PyTorch conv layout -> (BN, M_out, D) bf16."""
    bn, c_mel, m = x_mel.shape
    assert m % 2 == 0, "mel frame count must be even (Whisper uses 3000)"
    d = p["conv1_w"].shape[-1]
    t2 = (m - 1) // 2 + 1
    x_t = jnp.transpose(x_mel, (0, 2, 1)).astype(jnp.bfloat16)  # (BN, M, C_mel)
    x_t = jnp.pad(x_t, ((0, 0), (1, 1), (0, 0)))                # conv padding=1
    pos = p["pos_emb"][:t2]                                     # sliced embed_positions
    return pl.pallas_call(
        _conv_stem_kernel,
        out_shape=jax.ShapeDtypeStruct((bn, t2, d), jnp.bfloat16),
        grid=(bn,),
        in_specs=[
            pl.BlockSpec((None, m + 2, c_mel), lambda i: (i, 0, 0)),
            _const_spec((3, c_mel, d)),
            _const_spec((1, d)),
            _const_spec((3, d, d)),
            _const_spec((1, d)),
            _const_spec((t2, d)),
        ],
        out_specs=pl.BlockSpec((None, t2, d), lambda i: (i, 0, 0)),
        scratch_shapes=[pltpu.VMEM((m + 8, d), jnp.float32)],
        compiler_params=pltpu.CompilerParams(
            dimension_semantics=("parallel",),
            vmem_limit_bytes=_VMEM_LIMIT_BYTES),
    )(x_t, p["conv1_w"], p["conv1_b"], p["conv2_w"], p["conv2_b"], pos)


# ----------------------------------------------------------------------------
# Fused Whisper encoder layer, tiled over (batch, q-row tiles):
#   pre-LN attention block + pre-LN MLP block (+ optional fused final LN).
# K/V are computed for the full sequence; Q / attention / MLP only for this
# tile's rows so the second grid axis can be "parallel" (v7x dual TC).
# ----------------------------------------------------------------------------
def _encoder_layer_kernel(x_ref, ln1g_ref, ln1b_ref, wq_ref, bq_ref,
                          wkv_ref, bv_ref, wo_ref, bo_ref,
                          ln2g_ref, ln2b_ref, wf1_ref, bf1_ref,
                          wf2_ref, bf2_ref, lnfg_ref, lnfb_ref,
                          o_ref, attn_scr,
                          *, num_heads, q_tile, apply_final_ln):
    t, d = x_ref.shape
    dh = d // num_heads
    row0 = pl.multiple_of(pl.program_id(1) * q_tile, q_tile)

    # ---- K/V over the full sequence (shared by every q tile) ----
    x_full = x_ref[...].astype(jnp.float32)                       # (T, D)
    h_full = _layernorm(x_full, ln1g_ref[...], ln1b_ref[...]).astype(jnp.bfloat16)
    kv = jnp.dot(h_full, wkv_ref[...], preferred_element_type=jnp.float32)
    k = kv[:, :d].astype(jnp.bfloat16)                            # no k bias
    v = (kv[:, d:] + bv_ref[...]).astype(jnp.bfloat16)

    # ---- Q only for this tile's rows (scale + bias pre-folded into wq/bq) ----
    xq = x_ref[pl.ds(row0, q_tile), :].astype(jnp.float32)        # (Tq, D)
    hq = _layernorm(xq, ln1g_ref[...], ln1b_ref[...]).astype(jnp.bfloat16)
    q = jnp.dot(hq, wq_ref[...], preferred_element_type=jnp.float32) + bq_ref[...]

    # ---- per-head attention, deferred softmax normalization ----
    # TODO(synk): at real head counts / T=1500 convert to a kv-blocked
    # online-softmax (flash) fori_loop so only one score block stays live.
    for hi in range(num_heads):
        lo = hi * dh
        qh = q[:, lo:lo + dh].astype(jnp.bfloat16)
        kh = k[:, lo:lo + dh]
        vh = v[:, lo:lo + dh]
        s = jax.lax.dot_general(qh, kh, (((1,), (1,)), ((), ())),
                                preferred_element_type=jnp.float32)   # (Tq, T)
        s = s - jnp.max(s, axis=-1, keepdims=True)
        p = jnp.exp(s)
        l = jnp.sum(p, axis=-1, keepdims=True)                        # (Tq, 1)
        oh = jnp.dot(p.astype(jnp.bfloat16), vh,
                     preferred_element_type=jnp.float32)              # (Tq, dh)
        # normalize the small (Tq, dh) tile, not the (Tq, T) scores
        attn_scr[:, lo:lo + dh] = (oh * pl.reciprocal(l, approx=True)
                                   ).astype(attn_scr.dtype)

    # single full-D-contraction out-projection:  concat(heads) @ Wo
    attn = jnp.dot(attn_scr[...], wo_ref[...],
                   preferred_element_type=jnp.float32) + bo_ref[...]
    x1 = xq + attn

    # ---- MLP ----
    h2 = _layernorm(x1, ln2g_ref[...], ln2b_ref[...]).astype(jnp.bfloat16)
    m = jnp.dot(h2, wf1_ref[...], preferred_element_type=jnp.float32) + bf1_ref[...]
    m = jax.nn.gelu(m, approximate=True).astype(jnp.bfloat16)
    m = jnp.dot(m, wf2_ref[...], preferred_element_type=jnp.float32) + bf2_ref[...]
    y = x1 + m

    if apply_final_ln:                       # fused encoder-final LayerNorm
        y = _layernorm(y, lnfg_ref[...], lnfb_ref[...])
    o_ref[...] = y.astype(o_ref.dtype)


def encoder_layer(x, lp, num_heads, final_ln=None, q_tile=128):
    bn, t, d = x.shape
    f = lp["fc1_w"].shape[-1]
    tq = t if t <= q_tile else q_tile
    assert t % tq == 0 and tq % 8 == 0
    n_q = t // tq
    kern = functools.partial(_encoder_layer_kernel, num_heads=num_heads,
                             q_tile=tq, apply_final_ln=final_ln is not None)
    lnf_g, lnf_b = final_ln if final_ln is not None else (lp["ln1_g"], lp["ln1_b"])
    return pl.pallas_call(
        kern,
        out_shape=jax.ShapeDtypeStruct((bn, t, d), jnp.bfloat16),
        grid=(bn, n_q),
        in_specs=[
            pl.BlockSpec((None, t, d), lambda i, j: (i, 0, 0)),
            _const_spec((1, d)), _const_spec((1, d)),            # ln1
            _const_spec((d, d)), _const_spec((1, d)),            # wq (scaled), bq
            _const_spec((d, 2 * d)), _const_spec((1, d)),        # wkv, bv
            _const_spec((d, d)), _const_spec((1, d)),            # wo, bo
            _const_spec((1, d)), _const_spec((1, d)),            # ln2
            _const_spec((d, f)), _const_spec((1, f)),            # fc1
            _const_spec((f, d)), _const_spec((1, d)),            # fc2
            _const_spec((1, d)), _const_spec((1, d)),            # final LN (maybe unused)
        ],
        out_specs=pl.BlockSpec((None, tq, d), lambda i, j: (i, j, 0)),
        scratch_shapes=[pltpu.VMEM((tq, d), jnp.bfloat16)],      # concat(heads)
        compiler_params=pltpu.CompilerParams(
            dimension_semantics=("parallel", "parallel"),
            vmem_limit_bytes=_VMEM_LIMIT_BYTES),
    )(x, lp["ln1_g"], lp["ln1_b"], lp["wq"], lp["bq"], lp["wkv"], lp["bv"],
      lp["o_w"], lp["o_b"], lp["ln2_g"], lp["ln2_b"],
      lp["fc1_w"], lp["fc1_b"], lp["fc2_w"], lp["fc2_b"], lnf_g, lnf_b)


# ----------------------------------------------------------------------------
# Fused UltravoxProjector: RMSNorm -> linear1 -> FlippedSiluAndMul -> linear2
# -> RMSNorm, row-tiled ("parallel" grid).  The StackAudioFrames reshape is
# pure layout and stays in XLA.
# ----------------------------------------------------------------------------
def _projector_kernel(x_ref, lnpre_ref, w1_ref, w2_ref, lnpost_ref, o_ref):
    x = _rmsnorm(x_ref[...].astype(jnp.float32), lnpre_ref[...])
    h = jnp.dot(x.astype(jnp.bfloat16), w1_ref[...],
                preferred_element_type=jnp.float32)
    half = h.shape[-1] // 2
    a = h[:, :half]
    b = h[:, half:]
    h = (jax.nn.silu(b) * a).astype(jnp.bfloat16)   # FlippedSiluAndMul == silu(b)*a
    h = jnp.dot(h, w2_ref[...], preferred_element_type=jnp.float32)
    o_ref[...] = _rmsnorm(h, lnpost_ref[...])


def projector(p, audio_feats, stack_factor):
    bn, t, c = audio_feats.shape
    t_pad = -(-t // stack_factor) * stack_factor
    x = jnp.pad(audio_feats, ((0, 0), (0, t_pad - t), (0, 0)))
    ts = t_pad // stack_factor
    d_in = c * stack_factor
    x = x.reshape(bn * ts, d_in)                              # StackAudioFrames
    rows = bn * ts
    hp = p["lin1_w"].shape[-1]
    d_out = p["lin2_w"].shape[-1]
    rb = rows if rows <= 256 else 256
    assert rows % rb == 0 and rb % 8 == 0
    y = pl.pallas_call(
        _projector_kernel,
        out_shape=jax.ShapeDtypeStruct((rows, d_out), jnp.float32),
        grid=(rows // rb,),
        in_specs=[pl.BlockSpec((rb, d_in), lambda i: (i, 0)),
                  _const_spec((1, d_in)),
                  _const_spec((d_in, hp)),
                  _const_spec((hp // 2, d_out)),
                  _const_spec((1, d_out))],
        out_specs=pl.BlockSpec((rb, d_out), lambda i: (i, 0)),
        compiler_params=pltpu.CompilerParams(
            dimension_semantics=("parallel",),
            vmem_limit_bytes=_VMEM_LIMIT_BYTES),
    )(x, p["ln_pre_w"], p["lin1_w"], p["lin2_w"], p["ln_post_w"])
    return y.reshape(bn, ts, d_out)


# ----------------------------------------------------------------------------
# ModifiedWhisperEncoder.forward + multimodal merge
# ----------------------------------------------------------------------------
def whisper_encoder(cfg, p, input_features):
    x = conv_stem(p, input_features)                          # (BN, T_enc, D) bf16
    n_layers = len(p["layers"])
    for li, lp in enumerate(p["layers"]):
        final_ln = (p["lnf_g"], p["lnf_b"]) if li == n_layers - 1 else None
        x = encoder_layer(x, lp, cfg["num_heads"], final_ln=final_ln)
    return x                                                  # final LN fused in


def merge_multimodal_embeddings(input_ids, inputs_embeds, audio_embeddings,
                                placeholder_id):
    # Note: clips the index, so excess placeholders reuse the last audio
    # embedding instead of erroring like vLLM's merge helper.
    mask = input_ids == placeholder_id
    idx = jnp.clip(jnp.cumsum(mask) - 1, 0, audio_embeddings.shape[0] - 1)
    return jnp.where(mask[:, None], audio_embeddings[idx], inputs_embeds)


# ----------------------------------------------------------------------------
# Deterministic parameter construction (weights stored bf16, (in, out) layout,
# attention scale / q bias pre-folded, zero k bias dropped).
# ----------------------------------------------------------------------------
def make_params(key):
    cfg = dict(num_mel_bins=80, d_model=128, num_heads=4, num_layers=2,
               ffn_dim=256, max_source_positions=32, stack_factor=8,
               projector_hidden=256, text_hidden=128, vocab_size=128)
    keys = iter(jax.random.split(key, 64))
    bf = jnp.bfloat16

    def nrm(shape, scale=0.05, dtype=jnp.float32):
        return (scale * jax.random.normal(next(keys), shape,
                                          jnp.float32)).astype(dtype)

    d = cfg["d_model"]
    att_scale = float((d // cfg["num_heads"]) ** -0.5)
    p = {
        "conv1_w": nrm((3, cfg["num_mel_bins"], d), dtype=bf),   # (taps, in, out)
        "conv1_b": nrm((1, d)),
        "conv2_w": nrm((3, d, d), dtype=bf),
        "conv2_b": nrm((1, d)),
        "pos_emb": nrm((cfg["max_source_positions"], d)),
    }
    layers = []
    for _ in range(cfg["num_layers"]):
        q_w = nrm((d, d))
        k_w = nrm((d, d), dtype=bf)            # Whisper k_proj: no bias
        v_w = nrm((d, d), dtype=bf)
        q_b = nrm((1, d))
        v_b = nrm((1, d))
        layers.append(dict(
            ln1_g=1.0 + nrm((1, d)), ln1_b=nrm((1, d)),
            wq=(q_w * att_scale).astype(bf),   # attention scale folded in
            bq=q_b * att_scale,
            wkv=jnp.concatenate([k_w, v_w], axis=1),
            bv=v_b,
            o_w=nrm((d, d), dtype=bf), o_b=nrm((1, d)),
            ln2_g=1.0 + nrm((1, d)), ln2_b=nrm((1, d)),
            fc1_w=nrm((d, cfg["ffn_dim"]), dtype=bf), fc1_b=nrm((1, cfg["ffn_dim"])),
            fc2_w=nrm((cfg["ffn_dim"], d), dtype=bf), fc2_b=nrm((1, d)),
        ))
    p["layers"] = layers
    p["lnf_g"] = 1.0 + nrm((1, d))
    p["lnf_b"] = nrm((1, d))
    sd = d * cfg["stack_factor"]
    p["ln_pre_w"] = 1.0 + nrm((1, sd))
    p["lin1_w"] = nrm((sd, cfg["projector_hidden"]), dtype=bf)
    p["lin2_w"] = nrm((cfg["projector_hidden"] // 2, cfg["text_hidden"]), dtype=bf)
    p["ln_post_w"] = 1.0 + nrm((1, cfg["text_hidden"]))
    p["embed_tokens"] = nrm((cfg["vocab_size"], cfg["text_hidden"]))
    return cfg, p


# ----------------------------------------------------------------------------
if __name__ == "__main__":
    key = jax.random.PRNGKey(0)
    kp, ka = jax.random.split(key)
    cfg, params = make_params(kp)

    # audio_features: (B, N, 80, M) as documented in UltravoxModel.forward
    B, N, MEL, M = 1, 2, cfg["num_mel_bins"], 64
    audio_features = 0.1 * jax.random.normal(ka, (B, N, MEL, M), jnp.float32)

    # stand-in for _AUDIO_PLACEHOLDER_TOKEN in the toy vocab
    PLACEHOLDER = cfg["vocab_size"] - 1
    seq_len = 16
    ids = [(i % 7) + 1 for i in range(seq_len)]
    for pos in (1, 2, 3, 4, 8, 9, 10, 11):                    # 8 placeholder slots
        ids[pos] = PLACEHOLDER
    input_ids = jnp.array(ids, dtype=jnp.int32)

    @jax.jit
    def forward(params, audio_features, input_ids):
        # _process_audio_input: flatten_bn -> whisper encoder -> projector
        flattened = audio_features.reshape(B * N, MEL, M)
        enc = whisper_encoder(cfg, params, flattened)             # (BN, 32, 128) bf16
        audio_emb = projector(params, enc, cfg["stack_factor"])   # (BN, 4, 128) f32
        audio_flat = audio_emb.reshape(-1, audio_emb.shape[-1])
        # forward(): embed text tokens, merge audio embeddings at placeholders.
        inputs_embeds = params["embed_tokens"][input_ids]
        return merge_multimodal_embeddings(input_ids, inputs_embeds,
                                           audio_flat, PLACEHOLDER)

    # TODO(synk): language_model.model (decoder LLM), compute_logits and sample
    # are external vLLM components and are not reproduced here.
    merged = jax.block_until_ready(forward(params, audio_features, input_ids))
    assert merged.shape == (seq_len, cfg["text_hidden"])
    print("KERNEL_OK")
</pallas_src>

<mosaic_0001>
module attributes {stable_mosaic.version = 11 : i64} {
  func.func @_conv_stem_kernel(%arg0: i32, %arg1: memref<1x66x80xbf16, #tpu.memory_space<vmem>>, %arg2: memref<3x80x128xbf16, #tpu.memory_space<vmem>>, %arg3: memref<1x128xf32, #tpu.memory_space<vmem>>, %arg4: memref<3x128x128xbf16, #tpu.memory_space<vmem>>, %arg5: memref<1x128xf32, #tpu.memory_space<vmem>>, %arg6: memref<32x128xf32, #tpu.memory_space<vmem>>, %arg7: memref<1x32x128xbf16, #tpu.memory_space<vmem>>, %arg8: memref<72x128xf32, #tpu.memory_space<vmem>>) attributes {dimension_semantics = [#tpu.dimension_semantics<parallel>], iteration_bounds = array<i64: 2>, scalar_prefetch = 0 : i64, scratch_operands = 1 : i64, tpu.core_type = #tpu.core_type<tc>, window_params = [{transform_indices = @transform_0, window_bounds = array<i64: 1, 66, 80>}, {pipeline_mode = #tpu.pipeline_mode<synchronous>, transform_indices = @transform_1, window_bounds = array<i64: 3, 80, 128>}, {pipeline_mode = #tpu.pipeline_mode<synchronous>, transform_indices = @transform_2, window_bounds = array<i64: 1, 128>}, {pipeline_mode = #tpu.pipeline_mode<synchronous>, transform_indices = @transform_3, window_bounds = array<i64: 3, 128, 128>}, {pipeline_mode = #tpu.pipeline_mode<synchronous>, transform_indices = @transform_4, window_bounds = array<i64: 1, 128>}, {pipeline_mode = #tpu.pipeline_mode<synchronous>, transform_indices = @transform_5, window_bounds = array<i64: 32, 128>}, {transform_indices = @transform_6, window_bounds = array<i64: 1, 32, 128>}]} {
    %c0 = arith.constant 0 : index
    %c0_0 = arith.constant 0 : index
    %c0_1 = arith.constant 0 : index
    %0 = vector.load %arg1[%c0, %c0_0, %c0_1] : memref<1x66x80xbf16, #tpu.memory_space<vmem>>, vector<1x66x80xbf16>
    %1 = vector.shape_cast %0 : vector<1x66x80xbf16> to vector<66x80xbf16>
    %cst = arith.constant 0.000000e+00 : f32
    %2 = vector.broadcast %cst : f32 to vector<64x128xf32>
    %3 = vector.extract_strided_slice %1 {offsets = [0, 0], sizes = [64, 80], strides = [1, 1]} : vector<66x80xbf16> to vector<64x80xbf16>
    %c0_2 = arith.constant 0 : index
    %c0_3 = arith.constant 0 : index
    %c0_4 = arith.constant 0 : index
    %4 = vector.load %arg2[%c0_2, %c0_3, %c0_4] : memref<3x80x128xbf16, #tpu.memory_space<vmem>>, vector<1x80x128xbf16>
    %5 = vector.shape_cast %4 : vector<1x80x128xbf16> to vector<80x128xbf16>
    %cst_5 = arith.constant dense<0.000000e+00> : vector<64x128xf32>
    %6 = tpu.matmul %3, %5, %cst_5 {dimension_numbers = #tpu.dot_dimension_numbers<[1], [0], [0], [1], [0, 0, 1, 1], [], []>} : vector<64x80xbf16>, vector<80x128xbf16>, vector<64x128xf32> -> vector<64x128xf32>
    %7 = arith.addf %2, %6 : vector<64x128xf32>
    %8 = vector.extract_strided_slice %1 {offsets = [1, 0], sizes = [64, 80], strides = [1, 1]} : vector<66x80xbf16> to vector<64x80xbf16>
    %c1 = arith.constant 1 : index
    %c0_6 = arith.constant 0 : index
    %c0_7 = arith.constant 0 : index
    %9 = vector.load %arg2[%c1, %c0_6, %c0_7] : memref<3x80x128xbf16, #tpu.memory_space<vmem>>, vector<1x80x128xbf16>
    %10 = vector.shape_cast %9 : vector<1x80x128xbf16> to vector<80x128xbf16>
    %cst_8 = arith.constant dense<0.000000e+00> : vector<64x128xf32>
    %11 = tpu.matmul %8, %10, %cst_8 {dimension_numbers = #tpu.dot_dimension_numbers<[1], [0], [0], [1], [0, 0, 1, 1], [], []>} : vector<64x80xbf16>, vector<80x128xbf16>, vector<64x128xf32> -> vector<64x128xf32>
    %12 = arith.addf %7, %11 : vector<64x128xf32>
    %13 = vector.extract_strided_slice %1 {offsets = [2, 0], sizes = [64, 80], strides = [1, 1]} : vector<66x80xbf16> to vector<64x80xbf16>
    %c2 = arith.constant 2 : index
    %c0_9 = arith.constant 0 : index
    %c0_10 = arith.constant 0 : index
    %14 = vector.load %arg2[%c2, %c0_9, %c0_10] : memref<3x80x128xbf16, #tpu.memory_space<vmem>>, vector<1x80x128xbf16>
    %15 = vector.shape_cast %14 : vector<1x80x128xbf16> to vector<80x128xbf16>
    %cst_11 = arith.constant dense<0.000000e+00> : vector<64x128xf32>
    %16 = tpu.matmul %13, %15, %cst_11 {dimension_numbers = #tpu.dot_dimension_numbers<[1], [0], [0], [1], [0, 0, 1, 1], [], []>} : vector<64x80xbf16>, vector<80x128xbf16>, vector<64x128xf32> -> vector<64x128xf32>
    %17 = arith.addf %12, %16 : vector<64x128xf32>
    %c0_12 = arith.constant 0 : index
    %c0_13 = arith.constant 0 : index
    %18 = vector.load %arg3[%c0_12, %c0_13] : memref<1x128xf32, #tpu.memory_space<vmem>>, vector<1x128xf32>
    %19 = vector.broadcast %18 : vector<1x128xf32> to vector<64x128xf32>
    %20 = arith.addf %17, %19 : vector<64x128xf32>
    %21 = arith.mulf %20, %20 : vector<64x128xf32>
    %22 = arith.mulf %20, %21 : vector<64x128xf32>
    %cst_14 = arith.constant 4.471500e-02 : f32
    %23 = vector.broadcast %cst_14 : f32 to vector<64x128xf32>
    %24 = arith.mulf %23, %22 : vector<64x128xf32>
    %25 = arith.addf %20, %24 : vector<64x128xf32>
    %cst_15 = arith.constant 0.797884583 : f32
    %26 = vector.broadcast %cst_15 : f32 to vector<64x128xf32>
    %27 = arith.mulf %26, %25 : vector<64x128xf32>
    %28 = math.tanh %27 : vector<64x128xf32>
    %cst_16 = arith.constant 1.000000e+00 : f32
    %29 = vector.broadcast %cst_16 : f32 to vector<64x128xf32>
    %30 = arith.addf %29, %28 : vector<64x128xf32>
    %cst_17 = arith.constant 5.000000e-01 : f32
    %31 = vector.broadcast %cst_17 : f32 to vector<64x128xf32>
    %32 = arith.mulf %31, %30 : vector<64x128xf32>
    %33 = arith.mulf %20, %32 : vector<64x128xf32>
    %cst_18 = arith.constant 0.000000e+00 : f32
    %34 = vector.broadcast %cst_18 : f32 to vector<8x128xf32>
    %c0_19 = arith.constant 0 : index
    %c0_20 = arith.constant 0 : index
    %35 = vector.load %arg8[%c0_19, %c0_20] : memref<72x128xf32, #tpu.memory_space<vmem>>, vector<8x128xf32>
    tpu.vector_store %arg8[%c0_19, %c0_20], %34 {strides = array<i32>} : memref<72x128xf32, #tpu.memory_space<vmem>>, vector<8x128xf32>,
    %c8 = arith.constant 8 : index
    %c0_21 = arith.constant 0 : index
    %36 = vector.load %arg8[%c8, %c0_21] : memref<72x128xf32, #tpu.memory_space<vmem>>, vector<64x128xf32>
    tpu.vector_store %arg8[%c8, %c0_21], %33 {strides = array<i32>} : memref<72x128xf32, #tpu.memory_space<vmem>>, vector<64x128xf32>,
    %cst_22 = arith.constant 0.000000e+00 : f32
    %37 = vector.broadcast %cst_22 : f32 to vector<32x128xf32>
    %c7 = arith.constant 7 : index
    %c0_23 = arith.constant 0 : index
    %38 = tpu.strided_load %arg8[%c7, %c0_23] {strides = array<i32: 2, 1>} : memref<72x128xf32, #tpu.memory_space<vmem>>, vector<32x128xf32>
    %39 = arith.truncf %38 : vector<32x128xf32> to vector<32x128xbf16>
    %c0_24 = arith.constant 0 : index
    %c0_25 = arith.constant 0 : index
    %c0_26 = arith.constant 0 : index
    %40 = vector.load %arg4[%c0_24, %c0_25, %c0_26] : memref<3x128x128xbf16, #tpu.memory_space<vmem>>, vector<1x128x128xbf16>
    %41 = vector.shape_cast %40 : vector<1x128x128xbf16> to vector<128x128xbf16>
    %cst_27 = arith.constant dense<0.000000e+00> : vector<32x128xf32>
    %42 = tpu.matmul %39, %41, %cst_27 {dimension_numbers = #tpu.dot_dimension_numbers<[1], [0], [0], [1], [0, 0, 1, 1], [], []>} : vector<32x128xbf16>, vector<128x128xbf16>, vector<32x128xf32> -> vector<32x128xf32>
    %43 = arith.addf %37, %42 : vector<32x128xf32>
    %c8_28 = arith.constant 8 : index
    %c0_29 = arith.constant 0 : index
    %44 = tpu.strided_load %arg8[%c8_28, %c0_29] {strides = array<i32: 2, 1>} : memref<72x128xf32, #tpu.memory_space<vmem>>, vector<32x128xf32>
    %45 = arith.truncf %44 : vector<32x128xf32> to vector<32x128xbf16>
    %c1_30 = arith.constant 1 : index
    %c0_31 = arith.constant 0 : index
    %c0_32 = arith.constant 0 : index
    %46 = vector.load %arg4[%c1_30, %c0_31, %c0_32] : memref<3x128x128xbf16, #tpu.memory_space<vmem>>, vector<1x128x128xbf16>
    %47 = vector.shape_cast %46 : vector<1x128x128xbf16> to vector<128x128xbf16>
    %cst_33 = arith.constant dense<0.000000e+00> : vector<32x128xf32>
    %48 = tpu.matmul %45, %47, %cst_33 {dimension_numbers = #tpu.dot_dimension_numbers<[1], [0], [0], [1], [0, 0, 1, 1], [], []>} : vector<32x128xbf16>, vector<128x128xbf16>, vector<32x128xf32> -> vector<32x128xf32>
    %49 = arith.addf %43, %48 : vector<32x128xf32>
    %c9 = arith.constant 9 : index
    %c0_34 = arith.constant 0 : index
    %50 = tpu.strided_load %arg8[%c9, %c0_34] {strides = array<i32: 2, 1>} : memref<72x128xf32, #tpu.memory_space<vmem>>, vector<32x128xf32>
    %51 = arith.truncf %50 : vector<32x128xf32> to vector<32x128xbf16>
    %c2_35 = arith.constant 2 : index
    %c0_36 = arith.constant 0 : index
    %c0_37 = arith.constant 0 : index
    %52 = vector.load %arg4[%c2_35, %c0_36, %c0_37] : memref<3x128x128xbf16, #tpu.memory_space<vmem>>, vector<1x128x128xbf16>
    %53 = vector.shape_cast %52 : vector<1x128x128xbf16> to vector<128x128xbf16>
    %cst_38 = arith.constant dense<0.000000e+00> : vector<32x128xf32>
    %54 = tpu.matmul %51, %53, %cst_38 {dimension_numbers = #tpu.dot_dimension_numbers<[1], [0], [0], [1], [0, 0, 1, 1], [], []>} : vector<32x128xbf16>, vector<128x128xbf16>, vector<32x128xf32> -> vector<32x128xf32>
    %55 = arith.addf %49, %54 : vector<32x128xf32>
    %c0_39 = arith.constant 0 : index
    %c0_40 = arith.constant 0 : index
    %56 = vector.load %arg5[%c0_39, %c0_40] : memref<1x128xf32, #tpu.memory_space<vmem>>, vector<1x128xf32>
    %57 = vector.broadcast %56 : vector<1x128xf32> to vector<32x128xf32>
    %58 = arith.addf %55, %57 : vector<32x128xf32>
    %59 = arith.mulf %58, %58 : vector<32x128xf32>
    %60 = arith.mulf %58, %59 : vector<32x128xf32>
    %cst_41 = arith.constant 4.471500e-02 : f32
    %61 = vector.broadcast %cst_41 : f32 to vector<32x128xf32>
    %62 = arith.mulf %61, %60 : vector<32x128xf32>
    %63 = arith.addf %58, %62 : vector<32x128xf32>
    %cst_42 = arith.constant 0.797884583 : f32
    %64 = vector.broadcast %cst_42 : f32 to vector<32x128xf32>
    %65 = arith.mulf %64, %63 : vector<32x128xf32>
    %66 = math.tanh %65 : vector<32x128xf32>
    %cst_43 = arith.constant 1.000000e+00 : f32
    %67 = vector.broadcast %cst_43 : f32 to vector<32x128xf32>
    %68 = arith.addf %67, %66 : vector<32x128xf32>
    %cst_44 = arith.constant 5.000000e-01 : f32
    %69 = vector.broadcast %cst_44 : f32 to vector<32x128xf32>
    %70 = arith.mulf %69, %68 : vector<32x128xf32>
    %71 = arith.mulf %58, %70 : vector<32x128xf32>
    %c0_45 = arith.constant 0 : index
    %c0_46 = arith.constant 0 : index
    %72 = vector.load %arg6[%c0_45, %c0_46] : memref<32x128xf32, #tpu.memory_space<vmem>>, vector<32x128xf32>
    %73 = arith.addf %71, %72 : vector<32x128xf32>
    %74 = arith.truncf %73 : vector<32x128xf32> to vector<32x128xbf16>
    %c0_47 = arith.constant 0 : index
    %c0_48 = arith.constant 0 : index
    %c0_49 = arith.constant 0 : index
    %75 = vector.load %arg7[%c0_47, %c0_48, %c0_49] : memref<1x32x128xbf16, #tpu.memory_space<vmem>>, vector<1x32x128xbf16>
    %76 = vector.shape_cast %75 : vector<1x32x128xbf16> to vector<32x128xbf16>
    %77 = vector.shape_cast %74 : vector<32x128xbf16> to vector<1x32x128xbf16>
    tpu.vector_store %arg7[%c0_47, %c0_48, %c0_49], %77 {strides = array<i32>} : memref<1x32x128xbf16, #tpu.memory_space<vmem>>, vector<1x32x128xbf16>,
    return
  }
  func.func @transform_0(%arg0: i32) -> (i32, i32, i32) {
    %c0_i32 = arith.constant 0 : i32
    %c0_i32_0 = arith.constant 0 : i32
    %c0_i32_1 = arith.constant 0 : i32
    return %arg0, %c0_i32, %c0_i32_0 : i32, i32, i32
  }
  func.func @transform_1(%arg0: i32) -> (i32, i32, i32) {
    %c0_i32 = arith.constant 0 : i32
    %c0_i32_0 = arith.constant 0 : i32
    %c0_i32_1 = arith.constant 0 : i32
    %c0_i32_2 = arith.constant 0 : i32
    return %c0_i32, %c0_i32_0, %c0_i32_1 : i32, i32, i32
  }
  func.func @transform_2(%arg0: i32) -> (i32, i32) {
    %c0_i32 = arith.constant 0 : i32
    %c0_i32_0 = arith.constant 0 : i32
    %c0_i32_1 = arith.constant 0 : i32
    return %c0_i32, %c0_i32_0 : i32, i32
  }
  func.func @transform_3(%arg0: i32) -> (i32, i32, i32) {
    %c0_i32 = arith.constant 0 : i32
    %c0_i32_0 = arith.constant 0 : i32
    %c0_i32_1 = arith.constant 0 : i32
    %c0_i32_2 = arith.constant 0 : i32
    return %c0_i32, %c0_i32_0, %c0_i32_1 : i32, i32, i32
  }
  func.func @transform_4(%arg0: i32) -> (i32, i32) {
    %c0_i32 = arith.constant 0 : i32
    %c0_i32_0 = arith.constant 0 : i32
    %c0_i32_1 = arith.constant 0 : i32
    return %c0_i32, %c0_i32_0 : i32, i32
  }
  func.func @transform_5(%arg0: i32) -> (i32, i32) {
    %c0_i32 = arith.constant 0 : i32
    %c0_i32_0 = arith.constant 0 : i32
    %c0_i32_1 = arith.constant 0 : i32
    return %c0_i32, %c0_i32_0 : i32, i32
  }
  func.func @transform_6(%arg0: i32) -> (i32, i32, i32) {
    %c0_i32 = arith.constant 0 : i32
    %c0_i32_0 = arith.constant 0 : i32
    %c0_i32_1 = arith.constant 0 : i32
    return %arg0, %c0_i32, %c0_i32_0 : i32, i32, i32
  }
}

module attributes {stable_mosaic.version = 11 : i64} {
  func.func @_encoder_layer_kernel(%arg0: i32, %arg1: i32, %arg2: memref<1x32x128xbf16, #tpu.memory_space<vmem>>, %arg3: memref<1x128xf32, #tpu.memory_space<vmem>>, %arg4: memref<1x128xf32, #tpu.memory_space<vmem>>, %arg5: memref<128x128xbf16, #tpu.memory_space<vmem>>, %arg6: memref<1x128xf32, #tpu.memory_space<vmem>>, %arg7: memref<128x256xbf16, #tpu.memory_space<vmem>>, %arg8: memref<1x128xf32, #tpu.memory_space<vmem>>, %arg9: memref<128x128xbf16, #tpu.memory_space<vmem>>, %arg10: memref<1x128xf32, #tpu.memory_space<vmem>>, %arg11: memref<1x128xf32, #tpu.memory_space<vmem>>, %arg12: memref<1x128xf32, #tpu.memory_space<vmem>>, %arg13: memref<128x256xbf16, #tpu.memory_space<vmem>>, %arg14: memref<1x256xf32, #tpu.memory_space<vmem>>, %arg15: memref<256x128xbf16, #tpu.memory_space<vmem>>, %arg16: memref<1x128xf32, #tpu.memory_space<vmem>>, %arg17: memref<1x128xf32, #tpu.memory_space<vmem>>, %arg18: memref<1x128xf32, #tpu.memory_space<vmem>>, %arg19: memref<1x32x128xbf16, #tpu.memory_space<vmem>>, %arg20: memref<32x128xbf16, #tpu.memory_space<vmem>>) attributes {dimension_semantics = [#tpu.dimension_semantics<parallel>, #tpu.dimension_semantics<parallel>], iteration_bounds = array<i64: 2, 1>, scalar_prefetch = 0 : i64, scratch_operands = 1 : i64, tpu.core_type = #tpu.core_type<tc>, window_params = [{transform_indices = @transform_0, window_bounds = array<i64: 1, 32, 128>}, {pipeline_mode = #tpu.pipeline_mode<synchronous>, transform_indices = @transform_1, window_bounds = array<i64: 1, 128>}, {pipeline_mode = #tpu.pipeline_mode<synchronous>, transform_indices = @transform_2, window_bounds = array<i64: 1, 128>}, {pipeline_mode = #tpu.pipeline_mode<synchronous>, transform_indices = @transform_3, window_bounds = array<i64: 128, 128>}, {pipeline_mode = #tpu.pipeline_mode<synchronous>, transform_indices = @transform_4, window_bounds = array<i64: 1, 128>}, {pipeline_mode = #tpu.pipeline_mode<synchronous>, transform_indices = @transform_5, window_bounds = array<i64: 128, 256>}, {pipeline_mode = #tpu.pipeline_mode<synchronous>, transform_indices = @transform_6, window_bounds = array<i64: 1, 128>}, {pipeline_mode = #tpu.pipeline_mode<synchronous>, transform_indices = @transform_7, window_bounds = array<i64: 128, 128>}, {pipeline_mode = #tpu.pipeline_mode<synchronous>, transform_indices = @transform_8, window_bounds = array<i64: 1, 128>}, {pipeline_mode = #tpu.pipeline_mode<synchronous>, transform_indices = @transform_9, window_bounds = array<i64: 1, 128>}, {pipeline_mode = #tpu.pipeline_mode<synchronous>, transform_indices = @transform_10, window_bounds = array<i64: 1, 128>}, {pipeline_mode = #tpu.pipeline_mode<synchronous>, transform_indices = @transform_11, window_bounds = array<i64: 128, 256>}, {pipeline_mode = #tpu.pipeline_mode<synchronous>, transform_indices = @transform_12, window_bounds = array<i64: 1, 256>}, {pipeline_mode = #tpu.pipeline_mode<synchronous>, transform_indices = @transform_13, window_bounds = array<i64: 256, 128>}, {pipeline_mode = #tpu.pipeline_mode<synchronous>, transform_indices = @transform_14, window_bounds = array<i64: 1, 128>}, {pipeline_mode = #tpu.pipeline_mode<synchronous>, transform_indices = @transform_15, window_bounds = array<i64: 1, 128>}, {pipeline_mode = #tpu.pipeline_mode<synchronous>, transform_indices = @transform_16, window_bounds = array<i64: 1, 128>}, {transform_indices = @transform_17, window_bounds = array<i64: 1, 32, 128>}]} {
    %c32_i32 = arith.constant 32 : i32
    %0 = arith.muli %arg1, %c32_i32 : i32
    %1 = tpu.assume_multiple %0, 32 : i32
    %c0 = arith.constant 0 : index
    %c0_0 = arith.constant 0 : index
    %c0_1 = arith.constant 0 : index
    %2 = vector.load %arg2[%c0, %c0_0, %c0_1] : memref<1x32x128xbf16, #tpu.memory_space<vmem>>, vector<1x32x128xbf16>
    %3 = vector.shape_cast %2 : vector<1x32x128xbf16> to vector<32x128xbf16>
    %4 = arith.extf %3 : vector<32x128xbf16> to vector<32x128xf32>
    %c0_2 = arith.constant 0 : index
    %c0_3 = arith.constant 0 : index
    %5 = vector.load %arg3[%c0_2, %c0_3] : memref<1x128xf32, #tpu.memory_space<vmem>>, vector<1x128xf32>
    %c0_4 = arith.constant 0 : index
    %c0_5 = arith.constant 0 : index
    %6 = vector.load %arg4[%c0_4, %c0_5] : memref<1x128xf32, #tpu.memory_space<vmem>>, vector<1x128xf32>
    %cst = arith.constant dense<0.000000e+00> : vector<32xf32>
    %7 = vector.multi_reduction <add>, %4, %cst [1] : vector<32x128xf32> to vector<32xf32>
    %8 = vector.shape_cast %7 : vector<32xf32> to vector<32x1xf32>
    %cst_6 = arith.constant 1.280000e+02 : f32
    %9 = vector.broadcast %cst_6 : f32 to vector<32x1xf32>
    %10 = arith.divf %8, %9 : vector<32x1xf32>
    %11 = vector.broadcast %10 : vector<32x1xf32> to vector<32x128xf32>
    %12 = arith.subf %4, %11 : vector<32x128xf32>
    %13 = arith.mulf %12, %12 : vector<32x128xf32>
    %cst_7 = arith.constant dense<0.000000e+00> : vector<32xf32>
    %14 = vector.multi_reduction <add>, %13, %cst_7 [1] : vector<32x128xf32> to vector<32xf32>
    %15 = vector.shape_cast %14 : vector<32xf32> to vector<32x1xf32>
    %cst_8 = arith.constant 1.280000e+02 : f32
    %16 = vector.broadcast %cst_8 : f32 to vector<32x1xf32>
    %17 = arith.divf %15, %16 : vector<32x1xf32>
    %18 = vector.broadcast %10 : vector<32x1xf32> to vector<32x128xf32>
    %19 = arith.subf %4, %18 : vector<32x128xf32>
    %cst_9 = arith.constant 9.99999974E-6 : f32
    %20 = vector.broadcast %cst_9 : f32 to vector<32x1xf32>
    %21 = arith.addf %17, %20 : vector<32x1xf32>
    %22 = math.rsqrt %21 : vector<32x1xf32>
    %23 = vector.broadcast %22 : vector<32x1xf32> to vector<32x128xf32>
    %24 = arith.mulf %19, %23 : vector<32x128xf32>
    %25 = vector.broadcast %5 : vector<1x128xf32> to vector<32x128xf32>
    %26 = arith.mulf %24, %25 : vector<32x128xf32>
    %27 = vector.broadcast %6 : vector<1x128xf32> to vector<32x128xf32>
    %28 = arith.addf %26, %27 : vector<32x128xf32>
    %29 = arith.truncf %28 : vector<32x128xf32> to vector<32x128xbf16>
    %c0_10 = arith.constant 0 : index
    %c0_11 = arith.constant 0 : index
    %30 = vector.load %arg7[%c0_10, %c0_11] : memref<128x256xbf16, #tpu.memory_space<vmem>>, vector<128x256xbf16>
    %cst_12 = arith.constant dense<0.000000e+00> : vector<32x256xf32>
    %31 = tpu.matmul %29, %30, %cst_12 {dimension_numbers = #tpu.dot_dimension_numbers<[1], [0], [0], [1], [0, 0, 1, 1], [], []>} : vector<32x128xbf16>, vector<128x256xbf16>, vector<32x256xf32> -> vector<32x256xf32>
    %32 = vector.extract_strided_slice %31 {offsets = [0, 0], sizes = [32, 128], strides = [1, 1]} : vector<32x256xf32> to vector<32x128xf32>
    %33 = arith.truncf %32 : vector<32x128xf32> to vector<32x128xbf16>
    %34 = vector.extract_strided_slice %31 {offsets = [0, 128], sizes = [32, 128], strides = [1, 1]} : vector<32x256xf32> to vector<32x128xf32>
    %c0_13 = arith.constant 0 : index
    %c0_14 = arith.constant 0 : index
    %35 = vector.load %arg8[%c0_13, %c0_14] : memref<1x128xf32, #tpu.memory_space<vmem>>, vector<1x128xf32>
    %36 = vector.broadcast %35 : vector<1x128xf32> to vector<32x128xf32>
    %37 = arith.addf %34, %36 : vector<32x128xf32>
    %38 = arith.truncf %37 : vector<32x128xf32> to vector<32x128xbf16>
    %c0_15 = arith.constant 0 : index
    %39 = arith.index_cast %1 : i32 to index
    %c0_16 = arith.constant 0 : index
    %40 = vector.load %arg2[%c0_15, %39, %c0_16] : memref<1x32x128xbf16, #tpu.memory_space<vmem>>, vector<1x32x128xbf16>
    %41 = vector.shape_cast %40 : vector<1x32x128xbf16> to vector<32x128xbf16>
    %42 = arith.extf %41 : vector<32x128xbf16> to vector<32x128xf32>
    %c0_17 = arith.constant 0 : index
    %c0_18 = arith.constant 0 : index
    %43 = vector.load %arg3[%c0_17, %c0_18] : memref<1x128xf32, #tpu.memory_space<vmem>>, vector<1x128xf32>
    %c0_19 = arith.constant 0 : index
    %c0_20 = arith.constant 0 : index
    %44 = vector.load %arg4[%c0_19, %c0_20] : memref<1x128xf32, #tpu.memory_space<vmem>>, vector<1x128xf32>
    %cst_21 = arith.constant dense<0.000000e+00> : vector<32xf32>
    %45 = vector.multi_reduction <add>, %42, %cst_21 [1] : vector<32x128xf32> to vector<32xf32>
    %46 = vector.shape_cast %45 : vector<32xf32> to vector<32x1xf32>
    %cst_22 = arith.constant 1.280000e+02 : f32
    %47 = vector.broadcast %cst_22 : f32 to vector<32x1xf32>
    %48 = arith.divf %46, %47 : vector<32x1xf32>
    %49 = vector.broadcast %48 : vector<32x1xf32> to vector<32x128xf32>
    %50 = arith.subf %42, %49 : vector<32x128xf32>
    %51 = arith.mulf %50, %50 : vector<32x128xf32>
    %cst_23 = arith.constant dense<0.000000e+00> : vector<32xf32>
    %52 = vector.multi_reduction <add>, %51, %cst_23 [1] : vector<32x128xf32> to vector<32xf32>
    %53 = vector.shape_cast %52 : vector<32xf32> to vector<32x1xf32>
    %cst_24 = arith.constant 1.280000e+02 : f32
    %54 = vector.broadcast %cst_24 : f32 to vector<32x1xf32>
    %55 = arith.divf %53, %54 : vector<32x1xf32>
    %56 = vector.broadcast %48 : vector<32x1xf32> to vector<32x128xf32>
    %57 = arith.subf %42, %56 : vector<32x128xf32>
    %cst_25 = arith.constant 9.99999974E-6 : f32
    %58 = vector.broadcast %cst_25 : f32 to vector<32x1xf32>
    %59 = arith.addf %55, %58 : vector<32x1xf32>
    %60 = math.rsqrt %59 : vector<32x1xf32>
    %61 = vector.broadcast %60 : vector<32x1xf32> to vector<32x128xf32>
    %62 = arith.mulf %57, %61 : vector<32x128xf32>
    %63 = vector.broadcast %43 : vector<1x128xf32> to vector<32x128xf32>
    %64 = arith.mulf %62, %63 : vector<32x128xf32>
    %65 = vector.broadcast %44 : vector<1x128xf32> to vector<32x128xf32>
    %66 = arith.addf %64, %65 : vector<32x128xf32>
    %67 = arith.truncf %66 : vector<32x128xf32> to vector<32x128xbf16>
    %c0_26 = arith.constant 0 : index
    %c0_27 = arith.constant 0 : index
    %68 = vector.load %arg5[%c0_26, %c0_27] : memref<128x128xbf16, #tpu.memory_space<vmem>>, vector<128x128xbf16>
    %cst_28 = arith.constant dense<0.000000e+00> : vector<32x128xf32>
    %69 = tpu.matmul %67, %68, %cst_28 {dimension_numbers = #tpu.dot_dimension_numbers<[1], [0], [0], [1], [0, 0, 1, 1], [], []>} : vector<32x128xbf16>, vector<128x128xbf16>, vector<32x128xf32> -> vector<32x128xf32>
    %c0_29 = arith.constant 0 : index
    %c0_30 = arith.constant 0 : index
    %70 = vector.load %arg6[%c0_29, %c0_30] : memref<1x128xf32, #tpu.memory_space<vmem>>, vector<1x128xf32>
    %71 = vector.broadcast %70 : vector<1x128xf32> to vector<32x128xf32>
    %72 = arith.addf %69, %71 : vector<32x128xf32>
    %73 = vector.extract_strided_slice %72 {offsets = [0, 0], sizes = [32, 32], strides = [1, 1]} : vector<32x128xf32> to vector<32x32xf32>
    %74 = arith.truncf %73 : vector<32x32xf32> to vector<32x32xbf16>
    %75 = vector.extract_strided_slice %33 {offsets = [0, 0], sizes = [32, 32], strides = [1, 1]} : vector<32x128xbf16> to vector<32x32xbf16>
    %76 = vector.extract_strided_slice %38 {offsets = [0, 0], sizes = [32, 32], strides = [1, 1]} : vector<32x128xbf16> to vector<32x32xbf16>
    %cst_31 = arith.constant dense<0.000000e+00> : vector<32x32xf32>
    %77 = tpu.matmul %74, %75, %cst_31 {dimension_numbers = #tpu.dot_dimension_numbers<[1], [1], [0], [0], [0, 0, 1, 0], [], []>} : vector<32x32xbf16>, vector<32x32xbf16>, vector<32x32xf32> -> vector<32x32xf32>
    %cst_32 = arith.constant dense<0xFF800000> : vector<32xf32>
    %78 = vector.multi_reduction <maximumf>, %77, %cst_32 [1] : vector<32x32xf32> to vector<32xf32>
    %79 = vector.shape_cast %78 : vector<32xf32> to vector<32x1xf32>
    %80 = vector.broadcast %79 : vector<32x1xf32> to vector<32x32xf32>
    %81 = arith.subf %77, %80 : vector<32x32xf32>
    %82 = math.exp %81 : vector<32x32xf32>
    %cst_33 = arith.constant dense<0.000000e+00> : vector<32xf32>
    %83 = vector.multi_reduction <add>, %82, %cst_33 [1] : vector<32x32xf32> to vector<32xf32>
    %84 = vector.shape_cast %83 : vector<32xf32> to vector<32x1xf32>
    %85 = arith.truncf %82 : vector<32x32xf32> to vector<32x32xbf16>
    %cst_34 = arith.constant dense<0.000000e+00> : vector<32x32xf32>
    %86 = tpu.matmul %85, %76, %cst_34 {dimension_numbers = #tpu.dot_dimension_numbers<[1], [0], [0], [1], [0, 0, 1, 1], [], []>} : vector<32x32xbf16>, vector<32x32xbf16>, vector<32x32xf32> -> vector<32x32xf32>
    %87 = tpu.reciprocal %84 {approx = true} : vector<32x1xf32> -> vector<32x1xf32>
    %88 = vector.broadcast %87 : vector<32x1xf32> to vector<32x32xf32>
    %89 = arith.mulf %86, %88 : vector<32x32xf32>
    %90 = arith.truncf %89 : vector<32x32xf32> to vector<32x32xbf16>
    %c0_35 = arith.constant 0 : index
    %c0_36 = arith.constant 0 : index
    %91 = vector.load %arg20[%c0_35, %c0_36] : memref<32x128xbf16, #tpu.memory_space<vmem>>, vector<32x32xbf16>
    tpu.vector_store %arg20[%c0_35, %c0_36], %90 {strides = array<i32>} : memref<32x128xbf16, #tpu.memory_space<vmem>>, vector<32x32xbf16>,
    %92 = vector.extract_strided_slice %72 {offsets = [0, 32], sizes = [32, 32], strides = [1, 1]} : vector<32x128xf32> to vector<32x32xf32>
    %93 = arith.truncf %92 : vector<32x32xf32> to vector<32x32xbf16>
    %94 = vector.extract_strided_slice %33 {offsets = [0, 32], sizes = [32, 32], strides = [1, 1]} : vector<32x128xbf16> to vector<32x32xbf16>
    %95 = vector.extract_strided_slice %38 {offsets = [0, 32], sizes = [32, 32], strides = [1, 1]} : vector<32x128xbf16> to vector<32x32xbf16>
    %cst_37 = arith.constant dense<0.000000e+00> : vector<32x32xf32>
    %96 = tpu.matmul %93, %94, %cst_37 {dimension_numbers = #tpu.dot_dimension_numbers<[1], [1], [0], [0], [0, 0, 1, 0], [], []>} : vector<32x32xbf16>, vector<32x32xbf16>, vector<32x32xf32> -> vector<32x32xf32>
    %cst_38 = arith.constant dense<0xFF800000> : vector<32xf32>
    %97 = vector.multi_reduction <maximumf>, %96, %cst_38 [1] : vector<32x32xf32> to vector<32xf32>
    %98 = vector.shape_cast %97 : vector<32xf32> to vector<32x1xf32>
    %99 = vector.broadcast %98 : vector<32x1xf32> to vector<32x32xf32>
    %100 = arith.subf %96, %99 : vector<32x32xf32>
    %101 = math.exp %100 : vector<32x32xf32>
    %cst_39 = arith.constant dense<0.000000e+00> : vector<32xf32>
    %102 = vector.multi_reduction <add>, %101, %cst_39 [1] : vector<32x32xf32> to vector<32xf32>
    %103 = vector.shape_cast %102 : vector<32xf32> to vector<32x1xf32>
    %104 = arith.truncf %101 : vector<32x32xf32> to vector<32x32xbf16>
    %cst_40 = arith.constant dense<0.000000e+00> : vector<32x32xf32>
    %105 = tpu.matmul %104, %95, %cst_40 {dimension_numbers = #tpu.dot_dimension_numbers<[1], [0], [0], [1], [0, 0, 1, 1], [], []>} : vector<32x32xbf16>, vector<32x32xbf16>, vector<32x32xf32> -> vector<32x32xf32>
    %106 = tpu.reciprocal %103 {approx = true} : vector<32x1xf32> -> vector<32x1xf32>
    %107 = vector.broadcast %106 : vector<32x1xf32> to vector<32x32xf32>
    %108 = arith.mulf %105, %107 : vector<32x32xf32>
    %109 = arith.truncf %108 : vector<32x32xf32> to vector<32x32xbf16>
    %c0_41 = arith.constant 0 : index
    %c32 = arith.constant 32 : index
    %110 = vector.load %arg20[%c0_41, %c32] : memref<32x128xbf16, #tpu.memory_space<vmem>>, vector<32x32xbf16>
    tpu.vector_store %arg20[%c0_41, %c32], %109 {strides = array<i32>} : memref<32x128xbf16, #tpu.memory_space<vmem>>, vector<32x32xbf16>,
    %111 = vector.extract_strided_slice %72 {offsets = [0, 64], sizes = [32, 32], strides = [1, 1]} : vector<32x128xf32> to vector<32x32xf32>
    %112 = arith.truncf %111 : vector<32x32xf32> to vector<32x32xbf16>
    %113 = vector.extract_strided_slice %33 {offsets = [0, 64], sizes = [32, 32], strides = [1, 1]} : vector<32x128xbf16> to vector<32x32xbf16>
    %114 = vector.extract_strided_slice %38 {offsets = [0, 64], sizes = [32, 32], strides = [1, 1]} : vector<32x128xbf16> to vector<32x32xbf16>
    %cst_42 = arith.constant dense<0.000000e+00> : vector<32x32xf32>
    %115 = tpu.matmul %112, %113, %cst_42 {dimension_numbers = #tpu.dot_dimension_numbers<[1], [1], [0], [0], [0, 0, 1, 0], [], []>} : vector<32x32xbf16>, vector<32x32xbf16>, vector<32x32xf32> -> vector<32x32xf32>
    %cst_43 = arith.constant dense<0xFF800000> : vector<32xf32>
    %116 = vector.multi_reduction <maximumf>, %115, %cst_43 [1] : vector<32x32xf32> to vector<32xf32>
    %117 = vector.shape_cast %116 : vector<32xf32> to vector<32x1xf32>
    %118 = vector.broadcast %117 : vector<32x1xf32> to vector<32x32xf32>
    %119 = arith.subf %115, %118 : vector<32x32xf32>
    %120 = math.exp %119 : vector<32x32xf32>
    %cst_44 = arith.constant dense<0.000000e+00> : vector<32xf32>
    %121 = vector.multi_reduction <add>, %120, %cst_44 [1] : vector<32x32xf32> to vector<32xf32>
    %122 = vector.shape_cast %121 : vector<32xf32> to vector<32x1xf32>
    %123 = arith.truncf %120 : vector<32x32xf32> to vector<32x32xbf16>
    %cst_45 = arith.constant dense<0.000000e+00> : vector<32x32xf32>
    %124 = tpu.matmul %123, %114, %cst_45 {dimension_numbers = #tpu.dot_dimension_numbers<[1], [0], [0], [1], [0, 0, 1, 1], [], []>} : vector<32x32xbf16>, vector<32x32xbf16>, vector<32x32xf32> -> vector<32x32xf32>
    %125 = tpu.reciprocal %122 {approx = true} : vector<32x1xf32> -> vector<32x1xf32>
    %126 = vector.broadcast %125 : vector<32x1xf32> to vector<32x32xf32>
    %127 = arith.mulf %124, %126 : vector<32x32xf32>
    %128 = arith.truncf %127 : vector<32x32xf32> to vector<32x32xbf16>
    %c0_46 = arith.constant 0 : index
    %c64 = arith.constant 64 : index
    %129 = vector.load %arg20[%c0_46, %c64] : memref<32x128xbf16, #tpu.memory_space<vmem>>, vector<32x32xbf16>
    tpu.vector_store %arg20[%c0_46, %c64], %128 {strides = array<i32>} : memref<32x128xbf16, #tpu.memory_space<vmem>>, vector<32x32xbf16>,
    %130 = vector.extract_strided_slice %72 {offsets = [0, 96], sizes = [32, 32], strides = [1, 1]} : vector<32x128xf32> to vector<32x32xf32>
    %131 = arith.truncf %130 : vector<32x32xf32> to vector<32x32xbf16>
    %132 = vector.extract_strided_slice %33 {offsets = [0, 96], sizes = [32, 32], strides = [1, 1]} : vector<32x128xbf16> to vector<32x32xbf16>
    %133 = vector.extract_strided_slice %38 {offsets = [0, 96], sizes = [32, 32], strides = [1, 1]} : vector<32x128xbf16> to vector<32x32xbf16>
    %cst_47 = arith.constant dense<0.000000e+00> : vector<32x32xf32>
    %134 = tpu.matmul %131, %132, %cst_47 {dimension_numbers = #tpu.dot_dimension_numbers<[1], [1], [0], [0], [0, 0, 1, 0], [], []>} : vector<32x32xbf16>, vector<32x32xbf16>, vector<32x32xf32> -> vector<32x32xf32>
    %cst_48 = arith.constant dense<0xFF800000> : vector<32xf32>
    %135 = vector.multi_reduction <maximumf>, %134, %cst_48 [1] : vector<32x32xf32> to vector<32xf32>
    %136 = vector.shape_cast %135 : vector<32xf32> to vector<32x1xf32>
    %137 = vector.broadcast %136 : vector<32x1xf32> to vector<32x32xf32>
    %138 = arith.subf %134, %137 : vector<32x32xf32>
    %139 = math.exp %138 : vector<32x32xf32>
    %cst_49 = arith.constant dense<0.000000e+00> : vector<32xf32>
    %140 = vector.multi_reduction <add>, %139, %cst_49 [1] : vector<32x32xf32> to vector<32xf32>
    %141 = vector.shape_cast %140 : vector<32xf32> to vector<32x1xf32>
    %142 = arith.truncf %139 : vector<32x32xf32> to vector<32x32xbf16>
    %cst_50 = arith.constant dense<0.000000e+00> : vector<32x32xf32>
    %143 = tpu.matmul %142, %133, %cst_50 {dimension_numbers = #tpu.dot_dimension_numbers<[1], [0], [0], [1], [0, 0, 1, 1], [], []>} : vector<32x32xbf16>, vector<32x32xbf16>, vector<32x32xf32> -> vector<32x32xf32>
    %144 = tpu.reciprocal %141 {approx = true} : vector<32x1xf32> -> vector<32x1xf32>
    %145 = vector.broadcast %144 : vector<32x1xf32> to vector<32x32xf32>
    %146 = arith.mulf %143, %145 : vector<32x32xf32>
    %147 = arith.truncf %146 : vector<32x32xf32> to vector<32x32xbf16>
    %c0_51 = arith.constant 0 : index
    %c96 = arith.constant 96 : index
    %148 = vector.load %arg20[%c0_51, %c96] : memref<32x128xbf16, #tpu.memory_space<vmem>>, vector<32x32xbf16>
    tpu.vector_store %arg20[%c0_51, %c96], %147 {strides = array<i32>} : memref<32x128xbf16, #tpu.memory_space<vmem>>, vector<32x32xbf16>,
    %c0_52 = arith.constant 0 : index
    %c0_53 = arith.constant 0 : index
    %149 = vector.load %arg20[%c0_52, %c0_53] : memref<32x128xbf16, #tpu.memory_space<vmem>>, vector<32x128xbf16>
    %c0_54 = arith.constant 0 : index
    %c0_55 = arith.constant 0 : index
    %150 = vector.load %arg9[%c0_54, %c0_55] : memref<128x128xbf16, #tpu.memory_space<vmem>>, vector<128x128xbf16>
    %cst_56 = arith.constant dense<0.000000e+00> : vector<32x128xf32>
    %151 = tpu.matmul %149, %150, %cst_56 {dimension_numbers = #tpu.dot_dimension_numbers<[1], [0], [0], [1], [0, 0, 1, 1], [], []>} : vector<32x128xbf16>, vector<128x128xbf16>, vector<32x128xf32> -> vector<32x128xf32>
    %c0_57 = arith.constant 0 : index
    %c0_58 = arith.constant 0 : index
    %152 = vector.load %arg10[%c0_57, %c0_58] : memref<1x128xf32, #tpu.memory_space<vmem>>, vector<1x128xf32>
    %153 = vector.broadcast %152 : vector<1x128xf32> to vector<32x128xf32>
    %154 = arith.addf %151, %153 : vector<32x128xf32>
    %155 = arith.addf %42, %154 : vector<32x128xf32>
    %c0_59 = arith.constant 0 : index
    %c0_60 = arith.constant 0 : index
    %156 = vector.load %arg11[%c0_59, %c0_60] : memref<1x128xf32, #tpu.memory_space<vmem>>, vector<1x128xf32>
    %c0_61 = arith.constant 0 : index
    %c0_62 = arith.constant 0 : index
    %157 = vector.load %arg12[%c0_61, %c0_62] : memref<1x128xf32, #tpu.memory_space<vmem>>, vector<1x128xf32>
    %cst_63 = arith.constant dense<0.000000e+00> : vector<32xf32>
    %158 = vector.multi_reduction <add>, %155, %cst_63 [1] : vector<32x128xf32> to vector<32xf32>
    %159 = vector.shape_cast %158 : vector<32xf32> to vector<32x1xf32>
    %cst_64 = arith.constant 1.280000e+02 : f32
    %160 = vector.broadcast %cst_64 : f32 to vector<32x1xf32>
    %161 = arith.divf %159, %160 : vector<32x1xf32>
    %162 = vector.broadcast %161 : vector<32x1xf32> to vector<32x128xf32>
    %163 = arith.subf %155, %162 : vector<32x128xf32>
    %164 = arith.mulf %163, %163 : vector<32x128xf32>
    %cst_65 = arith.constant dense<0.000000e+00> : vector<32xf32>
    %165 = vector.multi_reduction <add>, %164, %cst_65 [1] : vector<32x128xf32> to vector<32xf32>
    %166 = vector.shape_cast %165 : vector<32xf32> to vector<32x1xf32>
    %cst_66 = arith.constant 1.280000e+02 : f32
    %167 = vector.broadcast %cst_66 : f32 to vector<32x1xf32>
    %168 = arith.divf %166, %167 : vector<32x1xf32>
    %169 = vector.broadcast %161 : vector<32x1xf32> to vector<32x128xf32>
    %170 = arith.subf %155, %169 : vector<32x128xf32>
    %cst_67 = arith.constant 9.99999974E-6 : f32
    %171 = vector.broadcast %cst_67 : f32 to vector<32x1xf32>
    %172 = arith.addf %168, %171 : vector<32x1xf32>
    %173 = math.rsqrt %172 : vector<32x1xf32>
    %174 = vector.broadcast %173 : vector<32x1xf32> to vector<32x128xf32>
    %175 = arith.mulf %170, %174 : vector<32x128xf32>
    %176 = vector.broadcast %156 : vector<1x128xf32> to vector<32x128xf32>
    %177 = arith.mulf %175, %176 : vector<32x128xf32>
    %178 = vector.broadcast %157 : vector<1x128xf32> to vector<32x128xf32>
    %179 = arith.addf %177, %178 : vector<32x128xf32>
    %180 = arith.truncf %179 : vector<32x128xf32> to vector<32x128xbf16>
    %c0_68 = arith.constant 0 : index
    %c0_69 = arith.constant 0 : index
    %181 = vector.load %arg13[%c0_68, %c0_69] : memref<128x256xbf16, #tpu.memory_space<vmem>>, vector<128x256xbf16>
    %cst_70 = arith.constant dense<0.000000e+00> : vector<32x256xf32>
    %182 = tpu.matmul %180, %181, %cst_70 {dimension_numbers = #tpu.dot_dimension_numbers<[1], [0], [0], [1], [0, 0, 1, 1], [], []>} : vector<32x128xbf16>, vector<128x256xbf16>, vector<32x256xf32> -> vector<32x256xf32>
    %c0_71 = arith.constant 0 : index
    %c0_72 = arith.constant 0 : index
    %183 = vector.load %arg14[%c0_71, %c0_72] : memref<1x256xf32, #tpu.memory_space<vmem>>, vector<1x256xf32>
    %184 = vector.broadcast %183 : vector<1x256xf32> to vector<32x256xf32>
    %185 = arith.addf %182, %184 : vector<32x256xf32>
    %186 = arith.mulf %185, %185 : vector<32x256xf32>
    %187 = arith.mulf %185, %186 : vector<32x256xf32>
    %cst_73 = arith.constant 4.471500e-02 : f32
    %188 = vector.broadcast %cst_73 : f32 to vector<32x256xf32>
    %189 = arith.mulf %188, %187 : vector<32x256xf32>
    %190 = arith.addf %185, %189 : vector<32x256xf32>
    %cst_74 = arith.constant 0.797884583 : f32
    %191 = vector.broadcast %cst_74 : f32 to vector<32x256xf32>
    %192 = arith.mulf %191, %190 : vector<32x256xf32>
    %193 = math.tanh %192 : vector<32x256xf32>
    %cst_75 = arith.constant 1.000000e+00 : f32
    %194 = vector.broadcast %cst_75 : f32 to vector<32x256xf32>
    %195 = arith.addf %194, %193 : vector<32x256xf32>
    %cst_76 = arith.constant 5.000000e-01 : f32
    %196 = vector.broadcast %cst_76 : f32 to vector<32x256xf32>
    %197 = arith.mulf %196, %195 : vector<32x256xf32>
    %198 = arith.mulf %185, %197 : vector<32x256xf32>
    %199 = arith.truncf %198 : vector<32x256xf32> to vector<32x256xbf16>
    %c0_77 = arith.constant 0 : index
    %c0_78 = arith.constant 0 : index
    %200 = vector.load %arg15[%c0_77, %c0_78] : memref<256x128xbf16, #tpu.memory_space<vmem>>, vector<256x128xbf16>
    %cst_79 = arith.constant dense<0.000000e+00> : vector<32x128xf32>
    %201 = tpu.matmul %199, %200, %cst_79 {dimension_numbers = #tpu.dot_dimension_numbers<[1], [0], [0], [1], [0, 0, 1, 1], [], []>} : vector<32x256xbf16>, vector<256x128xbf16>, vector<32x128xf32> -> vector<32x128xf32>
    %c0_80 = arith.constant 0 : index
    %c0_81 = arith.constant 0 : index
    %202 = vector.load %arg16[%c0_80, %c0_81] : memref<1x128xf32, #tpu.memory_space<vmem>>, vector<1x128xf32>
    %203 = vector.broadcast %202 : vector<1x128xf32> to vector<32x128xf32>
    %204 = arith.addf %201, %203 : vector<32x128xf32>
    %205 = arith.addf %155, %204 : vector<32x128xf32>
    %206 = arith.truncf %205 : vector<32x128xf32> to vector<32x128xbf16>
    %c0_82 = arith.constant 0 : index
    %c0_83 = arith.constant 0 : index
    %c0_84 = arith.constant 0 : index
    %207 = vector.load %arg19[%c0_82, %c0_83, %c0_84] : memref<1x32x128xbf16, #tpu.memory_space<vmem>>, vector<1x32x128xbf16>
    %208 = vector.shape_cast %207 : vector<1x32x128xbf16> to vector<32x128xbf16>
    %209 = vector.shape_cast %206 : vector<32x128xbf16> to vector<1x32x128xbf16>
    tpu.vector_store %arg19[%c0_82, %c0_83, %c0_84], %209 {strides = array<i32>} : memref<1x32x128xbf16, #tpu.memory_space<vmem>>, vector<1x32x128xbf16>,
    return
  }
  func.func @transform_0(%arg0: i32, %arg1: i32) -> (i32, i32, i32) {
    %c0_i32 = arith.constant 0 : i32
    %c0_i32_0 = arith.constant 0 : i32
    %c0_i32_1 = arith.constant 0 : i32
    return %arg0, %c0_i32, %c0_i32_0 : i32, i32, i32
  }
  func.func @transform_1(%arg0: i32, %arg1: i32) -> (i32, i32) {
    %c0_i32 = arith.constant 0 : i32
    %c0_i32_0 = arith.constant 0 : i32
    %c0_i32_1 = arith.constant 0 : i32
    return %c0_i32, %c0_i32_0 : i32, i32
  }
  func.func @transform_2(%arg0: i32, %arg1: i32) -> (i32, i32) {
    %c0_i32 = arith.constant 0 : i32
    %c0_i32_0 = arith.constant 0 : i32
    %c0_i32_1 = arith.constant 0 : i32
    return %c0_i32, %c0_i32_0 : i32, i32
  }
  func.func @transform_3(%arg0: i32, %arg1: i32) -> (i32, i32) {
    %c0_i32 = arith.constant 0 : i32
    %c0_i32_0 = arith.constant 0 : i32
    %c0_i32_1 = arith.constant 0 : i32
    return %c0_i32, %c0_i32_0 : i32, i32
  }
  func.func @transform_4(%arg0: i32, %arg1: i32) -> (i32, i32) {
    %c0_i32 = arith.constant 0 : i32
    %c0_i32_0 = arith.constant 0 : i32
    %c0_i32_1 = arith.constant 0 : i32
    return %c0_i32, %c0_i32_0 : i32, i32
  }
  func.func @transform_5(%arg0: i32, %arg1: i32) -> (i32, i32) {
    %c0_i32 = arith.constant 0 : i32
    %c0_i32_0 = arith.constant 0 : i32
    %c0_i32_1 = arith.constant 0 : i32
    return %c0_i32, %c0_i32_0 : i32, i32
  }
  func.func @transform_6(%arg0: i32, %arg1: i32) -> (i32, i32) {
    %c0_i32 = arith.constant 0 : i32
    %c0_i32_0 = arith.constant 0 : i32
    %c0_i32_1 = arith.constant 0 : i32
    return %c0_i32, %c0_i32_0 : i32, i32
  }
  func.func @transform_7(%arg0: i32, %arg1: i32) -> (i32, i32) {
    %c0_i32 = arith.constant 0 : i32
    %c0_i32_0 = arith.constant 0 : i32
    %c0_i32_1 = arith.constant 0 : i32
    return %c0_i32, %c0_i32_0 : i32, i32
  }
  func.func @transform_8(%arg0: i32, %arg1: i32) -> (i32, i32) {
    %c0_i32 = arith.constant 0 : i32
    %c0_i32_0 = arith.constant 0 : i32
    %c0_i32_1 = arith.constant 0 : i32
    return %c0_i32, %c0_i32_0 : i32, i32
  }
  func.func @transform_9(%arg0: i32, %arg1: i32) -> (i32, i32) {
    %c0_i32 = arith.constant 0 : i32
    %c0_i32_0 = arith.constant 0 : i32
    %c0_i32_1 = arith.constant 0 : i32
    return %c0_i32, %c0_i32_0 : i32, i32
  }
  func.func @transform_10(%arg0: i32, %arg1: i32) -> (i32, i32) {
    %c0_i32 = arith.constant 0 : i32
    %c0_i32_0 = arith.constant 0 : i32
    %c0_i32_1 = arith.constant 0 : i32
    return %c0_i32, %c0_i32_0 : i32, i32
  }
  func.func @transform_11(%arg0: i32, %arg1: i32) -> (i32, i32) {
    %c0_i32 = arith.constant 0 : i32
    %c0_i32_0 = arith.constant 0 : i32
    %c0_i32_1 = arith.constant 0 : i32
    return %c0_i32, %c0_i32_0 : i32, i32
  }
  func.func @transform_12(%arg0: i32, %arg1: i32) -> (i32, i32) {
    %c0_i32 = arith.constant 0 : i32
    %c0_i32_0 = arith.constant 0 : i32
    %c0_i32_1 = arith.constant 0 : i32
    return %c0_i32, %c0_i32_0 : i32, i32
  }
  func.func @transform_13(%arg0: i32, %arg1: i32) -> (i32, i32) {
    %c0_i32 = arith.constant 0 : i32
    %c0_i32_0 = arith.constant 0 : i32
    %c0_i32_1 = arith.constant 0 : i32
    return %c0_i32, %c0_i32_0 : i32, i32
  }
  func.func @transform_14(%arg0: i32, %arg1: i32) -> (i32, i32) {
    %c0_i32 = arith.constant 0 : i32
    %c0_i32_0 = arith.constant 0 : i32
    %c0_i32_1 = arith.constant 0 : i32
    return %c0_i32, %c0_i32_0 : i32, i32
  }
  func.func @transform_15(%arg0: i32, %arg1: i32) -> (i32, i32) {
    %c0_i32 = arith.constant 0 : i32
    %c0_i32_0 = arith.constant 0 : i32
    %c0_i32_1 = arith.constant 0 : i32
    return %c0_i32, %c0_i32_0 : i32, i32
  }
  func.func @transform_16(%arg0: i32, %arg1: i32) -> (i32, i32) {
    %c0_i32 = arith.constant 0 : i32
    %c0_i32_0 = arith.constant 0 : i32
    %c0_i32_1 = arith.constant 0 : i32
    return %c0_i32, %c0_i32_0 : i32, i32
  }
  func.func @transform_17(%arg0: i32, %arg1: i32) -> (i32, i32, i32) {
    %c0_i32 = arith.constant 0 : i32
    %c0_i32_0 = arith.constant 0 : i32
    return %arg0, %arg1, %c0_i32 : i32, i32, i32
  }
}

module attributes {stable_mosaic.version = 11 : i64} {
  func.func @_encoder_layer_kernel(%arg0: i32, %arg1: i32, %arg2: memref<1x32x128xbf16, #tpu.memory_space<vmem>>, %arg3: memref<1x128xf32, #tpu.memory_space<vmem>>, %arg4: memref<1x128xf32, #tpu.memory_space<vmem>>, %arg5: memref<128x128xbf16, #tpu.memory_space<vmem>>, %arg6: memref<1x128xf32, #tpu.memory_space<vmem>>, %arg7: memref<128x256xbf16, #tpu.memory_space<vmem>>, %arg8: memref<1x128xf32, #tpu.memory_space<vmem>>, %arg9: memref<128x128xbf16, #tpu.memory_space<vmem>>, %arg10: memref<1x128xf32, #tpu.memory_space<vmem>>, %arg11: memref<1x128xf32, #tpu.memory_space<vmem>>, %arg12: memref<1x128xf32, #tpu.memory_space<vmem>>, %arg13: memref<128x256xbf16, #tpu.memory_space<vmem>>, %arg14: memref<1x256xf32, #tpu.memory_space<vmem>>, %arg15: memref<256x128xbf16, #tpu.memory_space<vmem>>, %arg16: memref<1x128xf32, #tpu.memory_space<vmem>>, %arg17: memref<1x128xf32, #tpu.memory_space<vmem>>, %arg18: memref<1x128xf32, #tpu.memory_space<vmem>>, %arg19: memref<1x32x128xbf16, #tpu.memory_space<vmem>>, %arg20: memref<32x128xbf16, #tpu.memory_space<vmem>>) attributes {dimension_semantics = [#tpu.dimension_semantics<parallel>, #tpu.dimension_semantics<parallel>], iteration_bounds = array<i64: 2, 1>, scalar_prefetch = 0 : i64, scratch_operands = 1 : i64, tpu.core_type = #tpu.core_type<tc>, window_params = [{transform_indices = @transform_0, window_bounds = array<i64: 1, 32, 128>}, {pipeline_mode = #tpu.pipeline_mode<synchronous>, transform_indices = @transform_1, window_bounds = array<i64: 1, 128>}, {pipeline_mode = #tpu.pipeline_mode<synchronous>, transform_indices = @transform_2, window_bounds = array<i64: 1, 128>}, {pipeline_mode = #tpu.pipeline_mode<synchronous>, transform_indices = @transform_3, window_bounds = array<i64: 128, 128>}, {pipeline_mode = #tpu.pipeline_mode<synchronous>, transform_indices = @transform_4, window_bounds = array<i64: 1, 128>}, {pipeline_mode = #tpu.pipeline_mode<synchronous>, transform_indices = @transform_5, window_bounds = array<i64: 128, 256>}, {pipeline_mode = #tpu.pipeline_mode<synchronous>, transform_indices = @transform_6, window_bounds = array<i64: 1, 128>}, {pipeline_mode = #tpu.pipeline_mode<synchronous>, transform_indices = @transform_7, window_bounds = array<i64: 128, 128>}, {pipeline_mode = #tpu.pipeline_mode<synchronous>, transform_indices = @transform_8, window_bounds = array<i64: 1, 128>}, {pipeline_mode = #tpu.pipeline_mode<synchronous>, transform_indices = @transform_9, window_bounds = array<i64: 1, 128>}, {pipeline_mode = #tpu.pipeline_mode<synchronous>, transform_indices = @transform_10, window_bounds = array<i64: 1, 128>}, {pipeline_mode = #tpu.pipeline_mode<synchronous>, transform_indices = @transform_11, window_bounds = array<i64: 128, 256>}, {pipeline_mode = #tpu.pipeline_mode<synchronous>, transform_indices = @transform_12, window_bounds = array<i64: 1, 256>}, {pipeline_mode = #tpu.pipeline_mode<synchronous>, transform_indices = @transform_13, window_bounds = array<i64: 256, 128>}, {pipeline_mode = #tpu.pipeline_mode<synchronous>, transform_indices = @transform_14, window_bounds = array<i64: 1, 128>}, {pipeline_mode = #tpu.pipeline_mode<synchronous>, transform_indices = @transform_15, window_bounds = array<i64: 1, 128>}, {pipeline_mode = #tpu.pipeline_mode<synchronous>, transform_indices = @transform_16, window_bounds = array<i64: 1, 128>}, {transform_indices = @transform_17, window_bounds = array<i64: 1, 32, 128>}]} {
    %c32_i32 = arith.constant 32 : i32
    %0 = arith.muli %arg1, %c32_i32 : i32
    %1 = tpu.assume_multiple %0, 32 : i32
    %c0 = arith.constant 0 : index
    %c0_0 = arith.constant 0 : index
    %c0_1 = arith.constant 0 : index
    %2 = vector.load %arg2[%c0, %c0_0, %c0_1] : memref<1x32x128xbf16, #tpu.memory_space<vmem>>, vector<1x32x128xbf16>
    %3 = vector.shape_cast %2 : vector<1x32x128xbf16> to vector<32x128xbf16>
    %4 = arith.extf %3 : vector<32x128xbf16> to vector<32x128xf32>
    %c0_2 = arith.constant 0 : index
    %c0_3 = arith.constant 0 : index
    %5 = vector.load %arg3[%c0_2, %c0_3] : memref<1x128xf32, #tpu.memory_space<vmem>>, vector<1x128xf32>
    %c0_4 = arith.constant 0 : index
    %c0_5 = arith.constant 0 : index
    %6 = vector.load %arg4[%c0_4, %c0_5] : memref<1x128xf32, #tpu.memory_space<vmem>>, vector<1x128xf32>
    %cst = arith.constant dense<0.000000e+00> : vector<32xf32>
    %7 = vector.multi_reduction <add>, %4, %cst [1] : vector<32x128xf32> to vector<32xf32>
    %8 = vector.shape_cast %7 : vector<32xf32> to vector<32x1xf32>
    %cst_6 = arith.constant 1.280000e+02 : f32
    %9 = vector.broadcast %cst_6 : f32 to vector<32x1xf32>
    %10 = arith.divf %8, %9 : vector<32x1xf32>
    %11 = vector.broadcast %10 : vector<32x1xf32> to vector<32x128xf32>
    %12 = arith.subf %4, %11 : vector<32x128xf32>
    %13 = arith.mulf %12, %12 : vector<32x128xf32>
    %cst_7 = arith.constant dense<0.000000e+00> : vector<32xf32>
    %14 = vector.multi_reduction <add>, %13, %cst_7 [1] : vector<32x128xf32> to vector<32xf32>
    %15 = vector.shape_cast %14 : vector<32xf32> to vector<32x1xf32>
    %cst_8 = arith.constant 1.280000e+02 : f32
    %16 = vector.broadcast %cst_8 : f32 to vector<32x1xf32>
    %17 = arith.divf %15, %16 : vector<32x1xf32>
    %18 = vector.broadcast %10 : vector<32x1xf32> to vector<32x128xf32>
    %19 = arith.subf %4, %18 : vector<32x128xf32>
    %cst_9 = arith.constant 9.99999974E-6 : f32
    %20 = vector.broadcast %cst_9 : f32 to vector<32x1xf32>
    %21 = arith.addf %17, %20 : vector<32x1xf32>
    %22 = math.rsqrt %21 : vector<32x1xf32>
    %23 = vector.broadcast %22 : vector<32x1xf32> to vector<32x128xf32>
    %24 = arith.mulf %19, %23 : vector<32x128xf32>
    %25 = vector.broadcast %5 : vector<1x128xf32> to vector<32x128xf32>
    %26 = arith.mulf %24, %25 : vector<32x128xf32>
    %27 = vector.broadcast %6 : vector<1x128xf32> to vector<32x128xf32>
    %28 = arith.addf %26, %27 : vector<32x128xf32>
    %29 = arith.truncf %28 : vector<32x128xf32> to vector<32x128xbf16>
    %c0_10 = arith.constant 0 : index
    %c0_11 = arith.constant 0 : index
    %30 = vector.load %arg7[%c0_10, %c0_11] : memref<128x256xbf16, #tpu.memory_space<vmem>>, vector<128x256xbf16>
    %cst_12 = arith.constant dense<0.000000e+00> : vector<32x256xf32>
    %31 = tpu.matmul %29, %30, %cst_12 {dimension_numbers = #tpu.dot_dimension_numbers<[1], [0], [0], [1], [0, 0, 1, 1], [], []>} : vector<32x128xbf16>, vector<128x256xbf16>, vector<32x256xf32> -> vector<32x256xf32>
    %32 = vector.extract_strided_slice %31 {offsets = [0, 0], sizes = [32, 128], strides = [1, 1]} : vector<32x256xf32> to vector<32x128xf32>
    %33 = arith.truncf %32 : vector<32x128xf32> to vector<32x128xbf16>
    %34 = vector.extract_strided_slice %31 {offsets = [0, 128], sizes = [32, 128], strides = [1, 1]} : vector<32x256xf32> to vector<32x128xf32>
    %c0_13 = arith.constant 0 : index
    %c0_14 = arith.constant 0 : index
    %35 = vector.load %arg8[%c0_13, %c0_14] : memref<1x128xf32, #tpu.memory_space<vmem>>, vector<1x128xf32>
    %36 = vector.broadcast %35 : vector<1x128xf32> to vector<32x128xf32>
    %37 = arith.addf %34, %36 : vector<32x128xf32>
    %38 = arith.truncf %37 : vector<32x128xf32> to vector<32x128xbf16>
    %c0_15 = arith.constant 0 : index
    %39 = arith.index_cast %1 : i32 to index
    %c0_16 = arith.constant 0 : index
    %40 = vector.load %arg2[%c0_15, %39, %c0_16] : memref<1x32x128xbf16, #tpu.memory_space<vmem>>, vector<1x32x128xbf16>
    %41 = vector.shape_cast %40 : vector<1x32x128xbf16> to vector<32x128xbf16>
    %42 = arith.extf %41 : vector<32x128xbf16> to vector<32x128xf32>
    %c0_17 = arith.constant 0 : index
    %c0_18 = arith.constant 0 : index
    %43 = vector.load %arg3[%c0_17, %c0_18] : memref<1x128xf32, #tpu.memory_space<vmem>>, vector<1x128xf32>
    %c0_19 = arith.constant 0 : index
    %c0_20 = arith.constant 0 : index
    %44 = vector.load %arg4[%c0_19, %c0_20] : memref<1x128xf32, #tpu.memory_space<vmem>>, vector<1x128xf32>
    %cst_21 = arith.constant dense<0.000000e+00> : vector<32xf32>
    %45 = vector.multi_reduction <add>, %42, %cst_21 [1] : vector<32x128xf32> to vector<32xf32>
    %46 = vector.shape_cast %45 : vector<32xf32> to vector<32x1xf32>
    %cst_22 = arith.constant 1.280000e+02 : f32
    %47 = vector.broadcast %cst_22 : f32 to vector<32x1xf32>
    %48 = arith.divf %46, %47 : vector<32x1xf32>
    %49 = vector.broadcast %48 : vector<32x1xf32> to vector<32x128xf32>
    %50 = arith.subf %42, %49 : vector<32x128xf32>
    %51 = arith.mulf %50, %50 : vector<32x128xf32>
    %cst_23 = arith.constant dense<0.000000e+00> : vector<32xf32>
    %52 = vector.multi_reduction <add>, %51, %cst_23 [1] : vector<32x128xf32> to vector<32xf32>
    %53 = vector.shape_cast %52 : vector<32xf32> to vector<32x1xf32>
    %cst_24 = arith.constant 1.280000e+02 : f32
    %54 = vector.broadcast %cst_24 : f32 to vector<32x1xf32>
    %55 = arith.divf %53, %54 : vector<32x1xf32>
    %56 = vector.broadcast %48 : vector<32x1xf32> to vector<32x128xf32>
    %57 = arith.subf %42, %56 : vector<32x128xf32>
    %cst_25 = arith.constant 9.99999974E-6 : f32
    %58 = vector.broadcast %cst_25 : f32 to vector<32x1xf32>
    %59 = arith.addf %55, %58 : vector<32x1xf32>
    %60 = math.rsqrt %59 : vector<32x1xf32>
    %61 = vector.broadcast %60 : vector<32x1xf32> to vector<32x128xf32>
    %62 = arith.mulf %57, %61 : vector<32x128xf32>
    %63 = vector.broadcast %43 : vector<1x128xf32> to vector<32x128xf32>
    %64 = arith.mulf %62, %63 : vector<32x128xf32>
    %65 = vector.broadcast %44 : vector<1x128xf32> to vector<32x128xf32>
    %66 = arith.addf %64, %65 : vector<32x128xf32>
    %67 = arith.truncf %66 : vector<32x128xf32> to vector<32x128xbf16>
    %c0_26 = arith.constant 0 : index
    %c0_27 = arith.constant 0 : index
    %68 = vector.load %arg5[%c0_26, %c0_27] : memref<128x128xbf16, #tpu.memory_space<vmem>>, vector<128x128xbf16>
    %cst_28 = arith.constant dense<0.000000e+00> : vector<32x128xf32>
    %69 = tpu.matmul %67, %68, %cst_28 {dimension_numbers = #tpu.dot_dimension_numbers<[1], [0], [0], [1], [0, 0, 1, 1], [], []>} : vector<32x128xbf16>, vector<128x128xbf16>, vector<32x128xf32> -> vector<32x128xf32>
    %c0_29 = arith.constant 0 : index
    %c0_30 = arith.constant 0 : index
    %70 = vector.load %arg6[%c0_29, %c0_30] : memref<1x128xf32, #tpu.memory_space<vmem>>, vector<1x128xf32>
    %71 = vector.broadcast %70 : vector<1x128xf32> to vector<32x128xf32>
    %72 = arith.addf %69, %71 : vector<32x128xf32>
    %73 = vector.extract_strided_slice %72 {offsets = [0, 0], sizes = [32, 32], strides = [1, 1]} : vector<32x128xf32> to vector<32x32xf32>
    %74 = arith.truncf %73 : vector<32x32xf32> to vector<32x32xbf16>
    %75 = vector.extract_strided_slice %33 {offsets = [0, 0], sizes = [32, 32], strides = [1, 1]} : vector<32x128xbf16> to vector<32x32xbf16>
    %76 = vector.extract_strided_slice %38 {offsets = [0, 0], sizes = [32, 32], strides = [1, 1]} : vector<32x128xbf16> to vector<32x32xbf16>
    %cst_31 = arith.constant dense<0.000000e+00> : vector<32x32xf32>
    %77 = tpu.matmul %74, %75, %cst_31 {dimension_numbers = #tpu.dot_dimension_numbers<[1], [1], [0], [0], [0, 0, 1, 0], [], []>} : vector<32x32xbf16>, vector<32x32xbf16>, vector<32x32xf32> -> vector<32x32xf32>
    %cst_32 = arith.constant dense<0xFF800000> : vector<32xf32>
    %78 = vector.multi_reduction <maximumf>, %77, %cst_32 [1] : vector<32x32xf32> to vector<32xf32>
    %79 = vector.shape_cast %78 : vector<32xf32> to vector<32x1xf32>
    %80 = vector.broadcast %79 : vector<32x1xf32> to vector<32x32xf32>
    %81 = arith.subf %77, %80 : vector<32x32xf32>
    %82 = math.exp %81 : vector<32x32xf32>
    %cst_33 = arith.constant dense<0.000000e+00> : vector<32xf32>
    %83 = vector.multi_reduction <add>, %82, %cst_33 [1] : vector<32x32xf32> to vector<32xf32>
    %84 = vector.shape_cast %83 : vector<32xf32> to vector<32x1xf32>
    %85 = arith.truncf %82 : vector<32x32xf32> to vector<32x32xbf16>
    %cst_34 = arith.constant dense<0.000000e+00> : vector<32x32xf32>
    %86 = tpu.matmul %85, %76, %cst_34 {dimension_numbers = #tpu.dot_dimension_numbers<[1], [0], [0], [1], [0, 0, 1, 1], [], []>} : vector<32x32xbf16>, vector<32x32xbf16>, vector<32x32xf32> -> vector<32x32xf32>
    %87 = tpu.reciprocal %84 {approx = true} : vector<32x1xf32> -> vector<32x1xf32>
    %88 = vector.broadcast %87 : vector<32x1xf32> to vector<32x32xf32>
    %89 = arith.mulf %86, %88 : vector<32x32xf32>
    %90 = arith.truncf %89 : vector<32x32xf32> to vector<32x32xbf16>
    %c0_35 = arith.constant 0 : index
    %c0_36 = arith.constant 0 : index
    %91 = vector.load %arg20[%c0_35, %c0_36] : memref<32x128xbf16, #tpu.memory_space<vmem>>, vector<32x32xbf16>
    tpu.vector_store %arg20[%c0_35, %c0_36], %90 {strides = array<i32>} : memref<32x128xbf16, #tpu.memory_space<vmem>>, vector<32x32xbf16>,
    %92 = vector.extract_strided_slice %72 {offsets = [0, 32], sizes = [32, 32], strides = [1, 1]} : vector<32x128xf32> to vector<32x32xf32>
    %93 = arith.truncf %92 : vector<32x32xf32> to vector<32x32xbf16>
    %94 = vector.extract_strided_slice %33 {offsets = [0, 32], sizes = [32, 32], strides = [1, 1]} : vector<32x128xbf16> to vector<32x32xbf16>
    %95 = vector.extract_strided_slice %38 {offsets = [0, 32], sizes = [32, 32], strides = [1, 1]} : vector<32x128xbf16> to vector<32x32xbf16>
    %cst_37 = arith.constant dense<0.000000e+00> : vector<32x32xf32>
    %96 = tpu.matmul %93, %94, %cst_37 {dimension_numbers = #tpu.dot_dimension_numbers<[1], [1], [0], [0], [0, 0, 1, 0], [], []>} : vector<32x32xbf16>, vector<32x32xbf16>, vector<32x32xf32> -> vector<32x32xf32>
    %cst_38 = arith.constant dense<0xFF800000> : vector<32xf32>
    %97 = vector.multi_reduction <maximumf>, %96, %cst_38 [1] : vector<32x32xf32> to vector<32xf32>
    %98 = vector.shape_cast %97 : vector<32xf32> to vector<32x1xf32>
    %99 = vector.broadcast %98 : vector<32x1xf32> to vector<32x32xf32>
    %100 = arith.subf %96, %99 : vector<32x32xf32>
    %101 = math.exp %100 : vector<32x32xf32>
    %cst_39 = arith.constant dense<0.000000e+00> : vector<32xf32>
    %102 = vector.multi_reduction <add>, %101, %cst_39 [1] : vector<32x32xf32> to vector<32xf32>
    %103 = vector.shape_cast %102 : vector<32xf32> to vector<32x1xf32>
    %104 = arith.truncf %101 : vector<32x32xf32> to vector<32x32xbf16>
    %cst_40 = arith.constant dense<0.000000e+00> : vector<32x32xf32>
    %105 = tpu.matmul %104, %95, %cst_40 {dimension_numbers = #tpu.dot_dimension_numbers<[1], [0], [0], [1], [0, 0, 1, 1], [], []>} : vector<32x32xbf16>, vector<32x32xbf16>, vector<32x32xf32> -> vector<32x32xf32>
    %106 = tpu.reciprocal %103 {approx = true} : vector<32x1xf32> -> vector<32x1xf32>
    %107 = vector.broadcast %106 : vector<32x1xf32> to vector<32x32xf32>
    %108 = arith.mulf %105, %107 : vector<32x32xf32>
    %109 = arith.truncf %108 : vector<32x32xf32> to vector<32x32xbf16>
    %c0_41 = arith.constant 0 : index
    %c32 = arith.constant 32 : index
    %110 = vector.load %arg20[%c0_41, %c32] : memref<32x128xbf16, #tpu.memory_space<vmem>>, vector<32x32xbf16>
    tpu.vector_store %arg20[%c0_41, %c32], %109 {strides = array<i32>} : memref<32x128xbf16, #tpu.memory_space<vmem>>, vector<32x32xbf16>,
    %111 = vector.extract_strided_slice %72 {offsets = [0, 64], sizes = [32, 32], strides = [1, 1]} : vector<32x128xf32> to vector<32x32xf32>
    %112 = arith.truncf %111 : vector<32x32xf32> to vector<32x32xbf16>
    %113 = vector.extract_strided_slice %33 {offsets = [0, 64], sizes = [32, 32], strides = [1, 1]} : vector<32x128xbf16> to vector<32x32xbf16>
    %114 = vector.extract_strided_slice %38 {offsets = [0, 64], sizes = [32, 32], strides = [1, 1]} : vector<32x128xbf16> to vector<32x32xbf16>
    %cst_42 = arith.constant dense<0.000000e+00> : vector<32x32xf32>
    %115 = tpu.matmul %112, %113, %cst_42 {dimension_numbers = #tpu.dot_dimension_numbers<[1], [1], [0], [0], [0, 0, 1, 0], [], []>} : vector<32x32xbf16>, vector<32x32xbf16>, vector<32x32xf32> -> vector<32x32xf32>
    %cst_43 = arith.constant dense<0xFF800000> : vector<32xf32>
    %116 = vector.multi_reduction <maximumf>, %115, %cst_43 [1] : vector<32x32xf32> to vector<32xf32>
    %117 = vector.shape_cast %116 : vector<32xf32> to vector<32x1xf32>
    %118 = vector.broadcast %117 : vector<32x1xf32> to vector<32x32xf32>
    %119 = arith.subf %115, %118 : vector<32x32xf32>
    %120 = math.exp %119 : vector<32x32xf32>
    %cst_44 = arith.constant dense<0.000000e+00> : vector<32xf32>
    %121 = vector.multi_reduction <add>, %120, %cst_44 [1] : vector<32x32xf32> to vector<32xf32>
    %122 = vector.shape_cast %121 : vector<32xf32> to vector<32x1xf32>
    %123 = arith.truncf %120 : vector<32x32xf32> to vector<32x32xbf16>
    %cst_45 = arith.constant dense<0.000000e+00> : vector<32x32xf32>
    %124 = tpu.matmul %123, %114, %cst_45 {dimension_numbers = #tpu.dot_dimension_numbers<[1], [0], [0], [1], [0, 0, 1, 1], [], []>} : vector<32x32xbf16>, vector<32x32xbf16>, vector<32x32xf32> -> vector<32x32xf32>
    %125 = tpu.reciprocal %122 {approx = true} : vector<32x1xf32> -> vector<32x1xf32>
    %126 = vector.broadcast %125 : vector<32x1xf32> to vector<32x32xf32>
    %127 = arith.mulf %124, %126 : vector<32x32xf32>
    %128 = arith.truncf %127 : vector<32x32xf32> to vector<32x32xbf16>
    %c0_46 = arith.constant 0 : index
    %c64 = arith.constant 64 : index
    %129 = vector.load %arg20[%c0_46, %c64] : memref<32x128xbf16, #tpu.memory_space<vmem>>, vector<32x32xbf16>
    tpu.vector_store %arg20[%c0_46, %c64], %128 {strides = array<i32>} : memref<32x128xbf16, #tpu.memory_space<vmem>>, vector<32x32xbf16>,
    %130 = vector.extract_strided_slice %72 {offsets = [0, 96], sizes = [32, 32], strides = [1, 1]} : vector<32x128xf32> to vector<32x32xf32>
    %131 = arith.truncf %130 : vector<32x32xf32> to vector<32x32xbf16>
    %132 = vector.extract_strided_slice %33 {offsets = [0, 96], sizes = [32, 32], strides = [1, 1]} : vector<32x128xbf16> to vector<32x32xbf16>
    %133 = vector.extract_strided_slice %38 {offsets = [0, 96], sizes = [32, 32], strides = [1, 1]} : vector<32x128xbf16> to vector<32x32xbf16>
    %cst_47 = arith.constant dense<0.000000e+00> : vector<32x32xf32>
    %134 = tpu.matmul %131, %132, %cst_47 {dimension_numbers = #tpu.dot_dimension_numbers<[1], [1], [0], [0], [0, 0, 1, 0], [], []>} : vector<32x32xbf16>, vector<32x32xbf16>, vector<32x32xf32> -> vector<32x32xf32>
    %cst_48 = arith.constant dense<0xFF800000> : vector<32xf32>
    %135 = vector.multi_reduction <maximumf>, %134, %cst_48 [1] : vector<32x32xf32> to vector<32xf32>
    %136 = vector.shape_cast %135 : vector<32xf32> to vector<32x1xf32>
    %137 = vector.broadcast %136 : vector<32x1xf32> to vector<32x32xf32>
    %138 = arith.subf %134, %137 : vector<32x32xf32>
    %139 = math.exp %138 : vector<32x32xf32>
    %cst_49 = arith.constant dense<0.000000e+00> : vector<32xf32>
    %140 = vector.multi_reduction <add>, %139, %cst_49 [1] : vector<32x32xf32> to vector<32xf32>
    %141 = vector.shape_cast %140 : vector<32xf32> to vector<32x1xf32>
    %142 = arith.truncf %139 : vector<32x32xf32> to vector<32x32xbf16>
    %cst_50 = arith.constant dense<0.000000e+00> : vector<32x32xf32>
    %143 = tpu.matmul %142, %133, %cst_50 {dimension_numbers = #tpu.dot_dimension_numbers<[1], [0], [0], [1], [0, 0, 1, 1], [], []>} : vector<32x32xbf16>, vector<32x32xbf16>, vector<32x32xf32> -> vector<32x32xf32>
    %144 = tpu.reciprocal %141 {approx = true} : vector<32x1xf32> -> vector<32x1xf32>
    %145 = vector.broadcast %144 : vector<32x1xf32> to vector<32x32xf32>
    %146 = arith.mulf %143, %145 : vector<32x32xf32>
    %147 = arith.truncf %146 : vector<32x32xf32> to vector<32x32xbf16>
    %c0_51 = arith.constant 0 : index
    %c96 = arith.constant 96 : index
    %148 = vector.load %arg20[%c0_51, %c96] : memref<32x128xbf16, #tpu.memory_space<vmem>>, vector<32x32xbf16>
    tpu.vector_store %arg20[%c0_51, %c96], %147 {strides = array<i32>} : memref<32x128xbf16, #tpu.memory_space<vmem>>, vector<32x32xbf16>,
    %c0_52 = arith.constant 0 : index
    %c0_53 = arith.constant 0 : index
    %149 = vector.load %arg20[%c0_52, %c0_53] : memref<32x128xbf16, #tpu.memory_space<vmem>>, vector<32x128xbf16>
    %c0_54 = arith.constant 0 : index
    %c0_55 = arith.constant 0 : index
    %150 = vector.load %arg9[%c0_54, %c0_55] : memref<128x128xbf16, #tpu.memory_space<vmem>>, vector<128x128xbf16>
    %cst_56 = arith.constant dense<0.000000e+00> : vector<32x128xf32>
    %151 = tpu.matmul %149, %150, %cst_56 {dimension_numbers = #tpu.dot_dimension_numbers<[1], [0], [0], [1], [0, 0, 1, 1], [], []>} : vector<32x128xbf16>, vector<128x128xbf16>, vector<32x128xf32> -> vector<32x128xf32>
    %c0_57 = arith.constant 0 : index
    %c0_58 = arith.constant 0 : index
    %152 = vector.load %arg10[%c0_57, %c0_58] : memref<1x128xf32, #tpu.memory_space<vmem>>, vector<1x128xf32>
    %153 = vector.broadcast %152 : vector<1x128xf32> to vector<32x128xf32>
    %154 = arith.addf %151, %153 : vector<32x128xf32>
    %155 = arith.addf %42, %154 : vector<32x128xf32>
    %c0_59 = arith.constant 0 : index
    %c0_60 = arith.constant 0 : index
    %156 = vector.load %arg11[%c0_59, %c0_60] : memref<1x128xf32, #tpu.memory_space<vmem>>, vector<1x128xf32>
    %c0_61 = arith.constant 0 : index
    %c0_62 = arith.constant 0 : index
    %157 = vector.load %arg12[%c0_61, %c0_62] : memref<1x128xf32, #tpu.memory_space<vmem>>, vector<1x128xf32>
    %cst_63 = arith.constant dense<0.000000e+00> : vector<32xf32>
    %158 = vector.multi_reduction <add>, %155, %cst_63 [1] : vector<32x128xf32> to vector<32xf32>
    %159 = vector.shape_cast %158 : vector<32xf32> to vector<32x1xf32>
    %cst_64 = arith.constant 1.280000e+02 : f32
    %160 = vector.broadcast %cst_64 : f32 to vector<32x1xf32>
    %161 = arith.divf %159, %160 : vector<32x1xf32>
    %162 = vector.broadcast %161 : vector<32x1xf32> to vector<32x128xf32>
    %163 = arith.subf %155, %162 : vector<32x128xf32>
    %164 = arith.mulf %163, %163 : vector<32x128xf32>
    %cst_65 = arith.constant dense<0.000000e+00> : vector<32xf32>
    %165 = vector.multi_reduction <add>, %164, %cst_65 [1] : vector<32x128xf32> to vector<32xf32>
    %166 = vector.shape_cast %165 : vector<32xf32> to vector<32x1xf32>
    %cst_66 = arith.constant 1.280000e+02 : f32
    %167 = vector.broadcast %cst_66 : f32 to vector<32x1xf32>
    %168 = arith.divf %166, %167 : vector<32x1xf32>
    %169 = vector.broadcast %161 : vector<32x1xf32> to vector<32x128xf32>
    %170 = arith.subf %155, %169 : vector<32x128xf32>
    %cst_67 = arith.constant 9.99999974E-6 : f32
    %171 = vector.broadcast %cst_67 : f32 to vector<32x1xf32>
    %172 = arith.addf %168, %171 : vector<32x1xf32>
    %173 = math.rsqrt %172 : vector<32x1xf32>
    %174 = vector.broadcast %173 : vector<32x1xf32> to vector<32x128xf32>
    %175 = arith.mulf %170, %174 : vector<32x128xf32>
    %176 = vector.broadcast %156 : vector<1x128xf32> to vector<32x128xf32>
    %177 = arith.mulf %175, %176 : vector<32x128xf32>
    %178 = vector.broadcast %157 : vector<1x128xf32> to vector<32x128xf32>
    %179 = arith.addf %177, %178 : vector<32x128xf32>
    %180 = arith.truncf %179 : vector<32x128xf32> to vector<32x128xbf16>
    %c0_68 = arith.constant 0 : index
    %c0_69 = arith.constant 0 : index
    %181 = vector.load %arg13[%c0_68, %c0_69] : memref<128x256xbf16, #tpu.memory_space<vmem>>, vector<128x256xbf16>
    %cst_70 = arith.constant dense<0.000000e+00> : vector<32x256xf32>
    %182 = tpu.matmul %180, %181, %cst_70 {dimension_numbers = #tpu.dot_dimension_numbers<[1], [0], [0], [1], [0, 0, 1, 1], [], []>} : vector<32x128xbf16>, vector<128x256xbf16>, vector<32x256xf32> -> vector<32x256xf32>
    %c0_71 = arith.constant 0 : index
    %c0_72 = arith.constant 0 : index
    %183 = vector.load %arg14[%c0_71, %c0_72] : memref<1x256xf32, #tpu.memory_space<vmem>>, vector<1x256xf32>
    %184 = vector.broadcast %183 : vector<1x256xf32> to vector<32x256xf32>
    %185 = arith.addf %182, %184 : vector<32x256xf32>
    %186 = arith.mulf %185, %185 : vector<32x256xf32>
    %187 = arith.mulf %185, %186 : vector<32x256xf32>
    %cst_73 = arith.constant 4.471500e-02 : f32
    %188 = vector.broadcast %cst_73 : f32 to vector<32x256xf32>
    %189 = arith.mulf %188, %187 : vector<32x256xf32>
    %190 = arith.addf %185, %189 : vector<32x256xf32>
    %cst_74 = arith.constant 0.797884583 : f32
    %191 = vector.broadcast %cst_74 : f32 to vector<32x256xf32>
    %192 = arith.mulf %191, %190 : vector<32x256xf32>
    %193 = math.tanh %192 : vector<32x256xf32>
    %cst_75 = arith.constant 1.000000e+00 : f32
    %194 = vector.broadcast %cst_75 : f32 to vector<32x256xf32>
    %195 = arith.addf %194, %193 : vector<32x256xf32>
    %cst_76 = arith.constant 5.000000e-01 : f32
    %196 = vector.broadcast %cst_76 : f32 to vector<32x256xf32>
    %197 = arith.mulf %196, %195 : vector<32x256xf32>
    %198 = arith.mulf %185, %197 : vector<32x256xf32>
    %199 = arith.truncf %198 : vector<32x256xf32> to vector<32x256xbf16>
    %c0_77 = arith.constant 0 : index
    %c0_78 = arith.constant 0 : index
    %200 = vector.load %arg15[%c0_77, %c0_78] : memref<256x128xbf16, #tpu.memory_space<vmem>>, vector<256x128xbf16>
    %cst_79 = arith.constant dense<0.000000e+00> : vector<32x128xf32>
    %201 = tpu.matmul %199, %200, %cst_79 {dimension_numbers = #tpu.dot_dimension_numbers<[1], [0], [0], [1], [0, 0, 1, 1], [], []>} : vector<32x256xbf16>, vector<256x128xbf16>, vector<32x128xf32> -> vector<32x128xf32>
    %c0_80 = arith.constant 0 : index
    %c0_81 = arith.constant 0 : index
    %202 = vector.load %arg16[%c0_80, %c0_81] : memref<1x128xf32, #tpu.memory_space<vmem>>, vector<1x128xf32>
    %203 = vector.broadcast %202 : vector<1x128xf32> to vector<32x128xf32>
    %204 = arith.addf %201, %203 : vector<32x128xf32>
    %205 = arith.addf %155, %204 : vector<32x128xf32>
    %c0_82 = arith.constant 0 : index
    %c0_83 = arith.constant 0 : index
    %206 = vector.load %arg17[%c0_82, %c0_83] : memref<1x128xf32, #tpu.memory_space<vmem>>, vector<1x128xf32>
    %c0_84 = arith.constant 0 : index
    %c0_85 = arith.constant 0 : index
    %207 = vector.load %arg18[%c0_84, %c0_85] : memref<1x128xf32, #tpu.memory_space<vmem>>, vector<1x128xf32>
    %cst_86 = arith.constant dense<0.000000e+00> : vector<32xf32>
    %208 = vector.multi_reduction <add>, %205, %cst_86 [1] : vector<32x128xf32> to vector<32xf32>
    %209 = vector.shape_cast %208 : vector<32xf32> to vector<32x1xf32>
    %cst_87 = arith.constant 1.280000e+02 : f32
    %210 = vector.broadcast %cst_87 : f32 to vector<32x1xf32>
    %211 = arith.divf %209, %210 : vector<32x1xf32>
    %212 = vector.broadcast %211 : vector<32x1xf32> to vector<32x128xf32>
    %213 = arith.subf %205, %212 : vector<32x128xf32>
    %214 = arith.mulf %213, %213 : vector<32x128xf32>
    %cst_88 = arith.constant dense<0.000000e+00> : vector<32xf32>
    %215 = vector.multi_reduction <add>, %214, %cst_88 [1] : vector<32x128xf32> to vector<32xf32>
    %216 = vector.shape_cast %215 : vector<32xf32> to vector<32x1xf32>
    %cst_89 = arith.constant 1.280000e+02 : f32
    %217 = vector.broadcast %cst_89 : f32 to vector<32x1xf32>
    %218 = arith.divf %216, %217 : vector<32x1xf32>
    %219 = vector.broadcast %211 : vector<32x1xf32> to vector<32x128xf32>
    %220 = arith.subf %205, %219 : vector<32x128xf32>
    %cst_90 = arith.constant 9.99999974E-6 : f32
    %221 = vector.broadcast %cst_90 : f32 to vector<32x1xf32>
    %222 = arith.addf %218, %221 : vector<32x1xf32>
    %223 = math.rsqrt %222 : vector<32x1xf32>
    %224 = vector.broadcast %223 : vector<32x1xf32> to vector<32x128xf32>
    %225 = arith.mulf %220, %224 : vector<32x128xf32>
    %226 = vector.broadcast %206 : vector<1x128xf32> to vector<32x128xf32>
    %227 = arith.mulf %225, %226 : vector<32x128xf32>
    %228 = vector.broadcast %207 : vector<1x128xf32> to vector<32x128xf32>
    %229 = arith.addf %227, %228 : vector<32x128xf32>
    %230 = arith.truncf %229 : vector<32x128xf32> to vector<32x128xbf16>
    %c0_91 = arith.constant 0 : index
    %c0_92 = arith.constant 0 : index
    %c0_93 = arith.constant 0 : index
    %231 = vector.load %arg19[%c0_91, %c0_92, %c0_93] : memref<1x32x128xbf16, #tpu.memory_space<vmem>>, vector<1x32x128xbf16>
    %232 = vector.shape_cast %231 : vector<1x32x128xbf16> to vector<32x128xbf16>
    %233 = vector.shape_cast %230 : vector<32x128xbf16> to vector<1x32x128xbf16>
    tpu.vector_store %arg19[%c0_91, %c0_92, %c0_93], %233 {strides = array<i32>} : memref<1x32x128xbf16, #tpu.memory_space<vmem>>, vector<1x32x128xbf16>,
    return
  }
  func.func @transform_0(%arg0: i32, %arg1: i32) -> (i32, i32, i32) {
    %c0_i32 = arith.constant 0 : i32
    %c0_i32_0 = arith.constant 0 : i32
    %c0_i32_1 = arith.constant 0 : i32
    return %arg0, %c0_i32, %c0_i32_0 : i32, i32, i32
  }
  func.func @transform_1(%arg0: i32, %arg1: i32) -> (i32, i32) {
    %c0_i32 = arith.constant 0 : i32
    %c0_i32_0 = arith.constant 0 : i32
    %c0_i32_1 = arith.constant 0 : i32
    return %c0_i32, %c0_i32_0 : i32, i32
  }
  func.func @transform_2(%arg0: i32, %arg1: i32) -> (i32, i32) {
    %c0_i32 = arith.constant 0 : i32
    %c0_i32_0 = arith.constant 0 : i32
    %c0_i32_1 = arith.constant 0 : i32
    return %c0_i32, %c0_i32_0 : i32, i32
  }
  func.func @transform_3(%arg0: i32, %arg1: i32) -> (i32, i32) {
    %c0_i32 = arith.constant 0 : i32
    %c0_i32_0 = arith.constant 0 : i32
    %c0_i32_1 = arith.constant 0 : i32
    return %c0_i32, %c0_i32_0 : i32, i32
  }
  func.func @transform_4(%arg0: i32, %arg1: i32) -> (i32, i32) {
    %c0_i32 = arith.constant 0 : i32
    %c0_i32_0 = arith.constant 0 : i32
    %c0_i32_1 = arith.constant 0 : i32
    return %c0_i32, %c0_i32_0 : i32, i32
  }
  func.func @transform_5(%arg0: i32, %arg1: i32) -> (i32, i32) {
    %c0_i32 = arith.constant 0 : i32
    %c0_i32_0 = arith.constant 0 : i32
    %c0_i32_1 = arith.constant 0 : i32
    return %c0_i32, %c0_i32_0 : i32, i32
  }
  func.func @transform_6(%arg0: i32, %arg1: i32) -> (i32, i32) {
    %c0_i32 = arith.constant 0 : i32
    %c0_i32_0 = arith.constant 0 : i32
    %c0_i32_1 = arith.constant 0 : i32
    return %c0_i32, %c0_i32_0 : i32, i32
  }
  func.func @transform_7(%arg0: i32, %arg1: i32) -> (i32, i32) {
    %c0_i32 = arith.constant 0 : i32
    %c0_i32_0 = arith.constant 0 : i32
    %c0_i32_1 = arith.constant 0 : i32
    return %c0_i32, %c0_i32_0 : i32, i32
  }
  func.func @transform_8(%arg0: i32, %arg1: i32) -> (i32, i32) {
    %c0_i32 = arith.constant 0 : i32
    %c0_i32_0 = arith.constant 0 : i32
    %c0_i32_1 = arith.constant 0 : i32
    return %c0_i32, %c0_i32_0 : i32, i32
  }
  func.func @transform_9(%arg0: i32, %arg1: i32) -> (i32, i32) {
    %c0_i32 = arith.constant 0 : i32
    %c0_i32_0 = arith.constant 0 : i32
    %c0_i32_1 = arith.constant 0 : i32
    return %c0_i32, %c0_i32_0 : i32, i32
  }
  func.func @transform_10(%arg0: i32, %arg1: i32) -> (i32, i32) {
    %c0_i32 = arith.constant 0 : i32
    %c0_i32_0 = arith.constant 0 : i32
    %c0_i32_1 = arith.constant 0 : i32
    return %c0_i32, %c0_i32_0 : i32, i32
  }
  func.func @transform_11(%arg0: i32, %arg1: i32) -> (i32, i32) {
    %c0_i32 = arith.constant 0 : i32
    %c0_i32_0 = arith.constant 0 : i32
    %c0_i32_1 = arith.constant 0 : i32
    return %c0_i32, %c0_i32_0 : i32, i32
  }
  func.func @transform_12(%arg0: i32, %arg1: i32) -> (i32, i32) {
    %c0_i32 = arith.constant 0 : i32
    %c0_i32_0 = arith.constant 0 : i32
    %c0_i32_1 = arith.constant 0 : i32
    return %c0_i32, %c0_i32_0 : i32, i32
  }
  func.func @transform_13(%arg0: i32, %arg1: i32) -> (i32, i32) {
    %c0_i32 = arith.constant 0 : i32
    %c0_i32_0 = arith.constant 0 : i32
    %c0_i32_1 = arith.constant 0 : i32
    return %c0_i32, %c0_i32_0 : i32, i32
  }
  func.func @transform_14(%arg0: i32, %arg1: i32) -> (i32, i32) {
    %c0_i32 = arith.constant 0 : i32
    %c0_i32_0 = arith.constant 0 : i32
    %c0_i32_1 = arith.constant 0 : i32
    return %c0_i32, %c0_i32_0 : i32, i32
  }
  func.func @transform_15(%arg0: i32, %arg1: i32) -> (i32, i32) {
    %c0_i32 = arith.constant 0 : i32
    %c0_i32_0 = arith.constant 0 : i32
    %c0_i32_1 = arith.constant 0 : i32
    return %c0_i32, %c0_i32_0 : i32, i32
  }
  func.func @transform_16(%arg0: i32, %arg1: i32) -> (i32, i32) {
    %c0_i32 = arith.constant 0 : i32
    %c0_i32_0 = arith.constant 0 : i32
    %c0_i32_1 = arith.constant 0 : i32
    return %c0_i32, %c0_i32_0 : i32, i32
  }
  func.func @transform_17(%arg0: i32, %arg1: i32) -> (i32, i32, i32) {
    %c0_i32 = arith.constant 0 : i32
    %c0_i32_0 = arith.constant 0 : i32
    return %arg0, %arg1, %c0_i32 : i32, i32, i32
  }
}

module attributes {stable_mosaic.version = 11 : i64} {
  func.func @_projector_kernel(%arg0: i32, %arg1: memref<8x1024xbf16, #tpu.memory_space<vmem>>, %arg2: memref<1x1024xf32, #tpu.memory_space<vmem>>, %arg3: memref<1024x256xbf16, #tpu.memory_space<vmem>>, %arg4: memref<128x128xbf16, #tpu.memory_space<vmem>>, %arg5: memref<1x128xf32, #tpu.memory_space<vmem>>, %arg6: memref<8x128xf32, #tpu.memory_space<vmem>>) attributes {dimension_semantics = [#tpu.dimension_semantics<parallel>], iteration_bounds = array<i64: 1>, scalar_prefetch = 0 : i64, scratch_operands = 0 : i64, tpu.core_type = #tpu.core_type<tc>, window_params = [{transform_indices = @transform_0, window_bounds = array<i64: 8, 1024>}, {pipeline_mode = #tpu.pipeline_mode<synchronous>, transform_indices = @transform_1, window_bounds = array<i64: 1, 1024>}, {pipeline_mode = #tpu.pipeline_mode<synchronous>, transform_indices = @transform_2, window_bounds = array<i64: 1024, 256>}, {pipeline_mode = #tpu.pipeline_mode<synchronous>, transform_indices = @transform_3, window_bounds = array<i64: 128, 128>}, {pipeline_mode = #tpu.pipeline_mode<synchronous>, transform_indices = @transform_4, window_bounds = array<i64: 1, 128>}, {transform_indices = @transform_5, window_bounds = array<i64: 8, 128>}]} {
    %c0 = arith.constant 0 : index
    %c0_0 = arith.constant 0 : index
    %0 = vector.load %arg1[%c0, %c0_0] : memref<8x1024xbf16, #tpu.memory_space<vmem>>, vector<8x1024xbf16>
    %1 = arith.extf %0 : vector<8x1024xbf16> to vector<8x1024xf32>
    %c0_1 = arith.constant 0 : index
    %c0_2 = arith.constant 0 : index
    %2 = vector.load %arg2[%c0_1, %c0_2] : memref<1x1024xf32, #tpu.memory_space<vmem>>, vector<1x1024xf32>
    %3 = arith.mulf %1, %1 : vector<8x1024xf32>
    %cst = arith.constant dense<0.000000e+00> : vector<8xf32>
    %4 = vector.multi_reduction <add>, %3, %cst [1] : vector<8x1024xf32> to vector<8xf32>
    %5 = vector.shape_cast %4 : vector<8xf32> to vector<8x1xf32>
    %cst_3 = arith.constant 1.024000e+03 : f32
    %6 = vector.broadcast %cst_3 : f32 to vector<8x1xf32>
    %7 = arith.divf %5, %6 : vector<8x1xf32>
    %cst_4 = arith.constant 9.99999997E-7 : f32
    %8 = vector.broadcast %cst_4 : f32 to vector<8x1xf32>
    %9 = arith.addf %7, %8 : vector<8x1xf32>
    %10 = math.rsqrt %9 : vector<8x1xf32>
    %11 = vector.broadcast %10 : vector<8x1xf32> to vector<8x1024xf32>
    %12 = arith.mulf %1, %11 : vector<8x1024xf32>
    %13 = vector.broadcast %2 : vector<1x1024xf32> to vector<8x1024xf32>
    %14 = arith.mulf %12, %13 : vector<8x1024xf32>
    %15 = arith.truncf %14 : vector<8x1024xf32> to vector<8x1024xbf16>
    %c0_5 = arith.constant 0 : index
    %c0_6 = arith.constant 0 : index
    %16 = vector.load %arg3[%c0_5, %c0_6] : memref<1024x256xbf16, #tpu.memory_space<vmem>>, vector<1024x256xbf16>
    %cst_7 = arith.constant dense<0.000000e+00> : vector<8x256xf32>
    %17 = tpu.matmul %15, %16, %cst_7 {dimension_numbers = #tpu.dot_dimension_numbers<[1], [0], [0], [1], [0, 0, 1, 1], [], []>} : vector<8x1024xbf16>, vector<1024x256xbf16>, vector<8x256xf32> -> vector<8x256xf32>
    %18 = vector.extract_strided_slice %17 {offsets = [0, 0], sizes = [8, 128], strides = [1, 1]} : vector<8x256xf32> to vector<8x128xf32>
    %19 = vector.extract_strided_slice %17 {offsets = [0, 128], sizes = [8, 128], strides = [1, 1]} : vector<8x256xf32> to vector<8x128xf32>
    %20 = arith.negf %19 : vector<8x128xf32>
    %21 = math.exp %20 : vector<8x128xf32>
    %cst_8 = arith.constant 1.000000e+00 : f32
    %22 = vector.broadcast %cst_8 : f32 to vector<8x128xf32>
    %23 = arith.addf %22, %21 : vector<8x128xf32>
    %24 = arith.divf %22, %23 : vector<8x128xf32>
    %25 = arith.mulf %19, %24 : vector<8x128xf32>
    %26 = arith.mulf %25, %18 : vector<8x128xf32>
    %27 = arith.truncf %26 : vector<8x128xf32> to vector<8x128xbf16>
    %c0_9 = arith.constant 0 : index
    %c0_10 = arith.constant 0 : index
    %28 = vector.load %arg4[%c0_9, %c0_10] : memref<128x128xbf16, #tpu.memory_space<vmem>>, vector<128x128xbf16>
    %cst_11 = arith.constant dense<0.000000e+00> : vector<8x128xf32>
    %29 = tpu.matmul %27, %28, %cst_11 {dimension_numbers = #tpu.dot_dimension_numbers<[1], [0], [0], [1], [0, 0, 1, 1], [], []>} : vector<8x128xbf16>, vector<128x128xbf16>, vector<8x128xf32> -> vector<8x128xf32>
    %c0_12 = arith.constant 0 : index
    %c0_13 = arith.constant 0 : index
    %30 = vector.load %arg5[%c0_12, %c0_13] : memref<1x128xf32, #tpu.memory_space<vmem>>, vector<1x128xf32>
    %31 = arith.mulf %29, %29 : vector<8x128xf32>
    %cst_14 = arith.constant dense<0.000000e+00> : vector<8xf32>
    %32 = vector.multi_reduction <add>, %31, %cst_14 [1] : vector<8x128xf32> to vector<8xf32>
    %33 = vector.shape_cast %32 : vector<8xf32> to vector<8x1xf32>
    %cst_15 = arith.constant 1.280000e+02 : f32
    %34 = vector.broadcast %cst_15 : f32 to vector<8x1xf32>
    %35 = arith.divf %33, %34 : vector<8x1xf32>
    %cst_16 = arith.constant 9.99999997E-7 : f32
    %36 = vector.broadcast %cst_16 : f32 to vector<8x1xf32>
    %37 = arith.addf %35, %36 : vector<8x1xf32>
    %38 = math.rsqrt %37 : vector<8x1xf32>
    %39 = vector.broadcast %38 : vector<8x1xf32> to vector<8x128xf32>
    %40 = arith.mulf %29, %39 : vector<8x128xf32>
    %41 = vector.broadcast %30 : vector<1x128xf32> to vector<8x128xf32>
    %42 = arith.mulf %40, %41 : vector<8x128xf32>
    %c0_17 = arith.constant 0 : index
    %c0_18 = arith.constant 0 : index
    %43 = vector.load %arg6[%c0_17, %c0_18] : memref<8x128xf32, #tpu.memory_space<vmem>>, vector<8x128xf32>
    tpu.vector_store %arg6[%c0_17, %c0_18], %42 {strides = array<i32>} : memref<8x128xf32, #tpu.memory_space<vmem>>, vector<8x128xf32>,
    return
  }
  func.func @transform_0(%arg0: i32) -> (i32, i32) {
    %c0_i32 = arith.constant 0 : i32
    %c0_i32_0 = arith.constant 0 : i32
    return %arg0, %c0_i32 : i32, i32
  }
  func.func @transform_1(%arg0: i32) -> (i32, i32) {
    %c0_i32 = arith.constant 0 : i32
    %c0_i32_0 = arith.constant 0 : i32
    %c0_i32_1 = arith.constant 0 : i32
    return %c0_i32, %c0_i32_0 : i32, i32
  }
  func.func @transform_2(%arg0: i32) -> (i32, i32) {
    %c0_i32 = arith.constant 0 : i32
    %c0_i32_0 = arith.constant 0 : i32
    %c0_i32_1 = arith.constant 0 : i32
    return %c0_i32, %c0_i32_0 : i32, i32
  }
  func.func @transform_3(%arg0: i32) -> (i32, i32) {
    %c0_i32 = arith.constant 0 : i32
    %c0_i32_0 = arith.constant 0 : i32
    %c0_i32_1 = arith.constant 0 : i32
    return %c0_i32, %c0_i32_0 : i32, i32
  }
  func.func @transform_4(%arg0: i32) -> (i32, i32) {
    %c0_i32 = arith.constant 0 : i32
    %c0_i32_0 = arith.constant 0 : i32
    %c0_i32_1 = arith.constant 0 : i32
    return %c0_i32, %c0_i32_0 : i32, i32
  }
  func.func @transform_5(%arg0: i32) -> (i32, i32) {
    %c0_i32 = arith.constant 0 : i32
    %c0_i32_0 = arith.constant 0 : i32
    return %arg0, %c0_i32 : i32, i32
  }
}

</mosaic_0001>

<bundles_post_ra>
// kernel: forward.4
= control target key start
LH: loop header
LB: loop body
LE: loop exit
PB: predicated region body
PF: predicated region fallthrough
CT: control target
= control target key end

     0   :  { %11 = vsyncpa [#allocation4], 0  ;;  %s2637_s0 = inlined_call_operand.hbm [shape: bf16[2,66,80], index: 0, kind: input, shape index: {}]   ;;  %s2638_s1 = inlined_call_operand.hbm [shape: bf16[3,80,128], index: 1, kind: input, shape index: {}]   ;;  %s2639_s2 = inlined_call_operand.hbm [shape: f32[1,128], index: 2, kind: input, shape index: {}]   ;;  %s2640_s3 = inlined_call_operand.hbm [shape: bf16[3,128,128], index: 3, kind: input, shape index: {}]   ;;  %s2641_s4 = inlined_call_operand.hbm [shape: f32[1,128], index: 4, kind: input, shape index: {}]   ;;  %s2642_s5 = inlined_call_operand.hbm [shape: f32[32,128], index: 5, kind: input, shape index: {}]   ;;  %s2643_s6 = inlined_call_operand.hbm [shape: bf16[2,32,128], index: 6, kind: output, shape index: {}]  }
   0x1   :  { %13 = vsyncpa [#allocation4 + $0x1], 0 }
   0x2   :  { %14 = vsyncpa [#allocation7], 0 }
   0x3   :  { %15 = vsyncpa [#allocation10], 0 }
   0x4   :  { %16 = vsyncpa [#allocation13], 0 }
   0x5   :  { %17 = vsyncpa [#allocation5], 0 }
   0x6   :  { %19 = vsyncpa [#allocation5 + $0x1], 0  ;;  %s2226_s21 = smov 0   ;;  %s2228_s22 = smov 0  }
   0x7   :  { %s2230_s23 = smov 0   ;;  %s2232_s24 = smov 0  }
   0x8 LB: > { %s2177_s25 = smov [#allocation6]   ;;  %s2247_s27 = sadd.s32 4294967295, %s2175_s24   ;;  %s2175_s24 = sphi %s2232_s24, %s2672_s24   ;;  %s2171_s23 = sphi %s2230_s23, %s2671_s23   ;;  %s2167_s22 = sphi %s2228_s22, %s2670_s22   ;;  %s2163_s21 = sphi %s2226_s21, %s2669_s21  }
   0x9   : > { %s199_s26 = sshll.u32 %s2177_s25, 4  ;;  %p1459_p0 = scmp.ge.s32.totalorder %s2175_s24, 1  ;;  %s2252_s26 = int_to_ptr.vmem [resolvable:$true] %s199_s26 }
   0xa   : > { %p2644_p1 = scmp.eq.s32.totalorder %s2247_s27, 0  ;;  %p187_p2 = scmp.lt.s32.totalorder %s2175_s24, 3 }
   0xb   : > { %s2178_s29 = smov [#allocation9]   ;;  %s2179_s8 = smov [#allocation8]  }
   0xc   : > { %p2254_p3 = pnand %p1459_p0, %p187_p2  ;;  %s223_s30 = sshll.u32 %s2178_s29, 4  ;;  %s2267_s30 = int_to_ptr.vmem [resolvable:$true] %s223_s30 }
   0xd   : > { %s213_s9 = sshll.u32 %s2179_s8, 4  ;;  %s1927_s12 = scalar_lea.hbm %s2638_s1, 1920  ;;  %s2269_s9 = int_to_ptr.vmem [resolvable:$true] %s213_s9 }
   0xe   : > { %s2649_s28 = scalar_select %p2254_p3, 1, 0 }
   0xf   : > { %p1779_p5 = pneg %p2254_p3  ;;  %p1928_p7 = scmp.ne.s32.totalorder %s2638_s1, %s1927_s12 }
  0x10   : > { %p1934_p11 = scmp.lt.u32.totalorder %s1927_s12, %s2638_s1 }
  0x11   : > { %p2263_p6 = pnand %p1779_p5, %p2644_p1 }
  0x13   : > { %p2279_p8 = pneg %p2263_p6 }
  0x15   : > { %p1930_p9 = pnand %p2279_p8, %p1928_p7 }
  0x17   : > { %p1931_p10 = pneg %p1930_p9 }
  0x19   : > { %p1936_p12 = pnand %p1934_p11, %p1931_p10 }
  0x1b   : > { %1939 = shalt.err (!%p1936_p12)
}
  0x1c   : > { %s1940_s18 = scalar_lea.vmem %s2252_s26, 1920  ;;  %p1948_p5 = scmp.lt.s32.totalorder %s2252_s26, %s2252_s26 }
  0x1d   : > { %p1941_p13 = scmp.ne.s32.totalorder %s2252_s26, %s1940_s18  ;;  %p1949_p4 = scmp.lt.s32.totalorder %s1940_s18, %s1940_s18 }
  0x1f   : > { %p1943_p0 = pnand %p1941_p13, %p2279_p8  ;;  %p1950_p7 = por %p1949_p4, %p1948_p5 }
  0x21   : > { %p1944_p2 = pneg %p1943_p0 }
  0x23   : > { %p1951_p9 = pnand %p1950_p7, %p1944_p2 }
  0x25   : > { %1954 = shalt.err (!%p1951_p9)
}
  0x26   : > { %s2646_s19 = smov 64   ;;  %s2647_s20 = smov 4  }
  0x27   : > { %1782 = dma.hbm_to_vmem [thread:$0]  (!%p2263_p6), %s2638_s1, 1920, %s2252_s26, [#allocation7], %s2646_s19, %s2646_s19, %s2647_s20  }
  0x28   : > { %s1955_s11 = scalar_lea.hbm %s2640_s3, 3072 }
  0x29   : > { %p1956_p4 = scmp.ne.s32.totalorder %s2640_s3, %s1955_s11  ;;  %p1962_p12 = scmp.lt.u32.totalorder %s1955_s11, %s2640_s3 }
  0x2b   : > { %p1958_p10 = pnand %p1956_p4, %p2279_p8 }
  0x2d   : > { %p1959_p11 = pneg %p1958_p10 }
  0x2f   : > { %p1964_p13 = pnand %p1962_p12, %p1959_p11 }
  0x31   : > { %1967 = shalt.err (!%p1964_p13)
}
  0x32   : > { %s1968_s26 = scalar_lea.vmem %s2267_s30, 3072  ;;  %p1976_p7 = scmp.lt.s32.totalorder %s2267_s30, %s2267_s30 }
  0x33   : > { %p1969_p0 = scmp.ne.s32.totalorder %s2267_s30, %s1968_s26  ;;  %p1977_p9 = scmp.lt.s32.totalorder %s1968_s26, %s1968_s26 }
  0x35   : > { %p1971_p2 = pnand %p1969_p0, %p2279_p8  ;;  %p1978_p4 = por %p1977_p9, %p1976_p7 }
  0x37   : > { %p1972_p5 = pneg %p1971_p2 }
  0x39   : > { %p1979_p10 = pnand %p1978_p4, %p1972_p5 }
  0x3b   : > { %1982 = shalt.err (!%p1979_p10)
}
  0x3c   : > { %1788 = dma.hbm_to_vmem [thread:$0]  (!%p2263_p6), %s2640_s3, 3072, %s2267_s30, [#allocation10], %s2646_s19, %s2646_s19, %s2647_s20  }
  0x3d   : > { %s1983_s8 = scalar_lea.hbm %s2639_s2, 16 }
  0x3e   : > { %p1984_p11 = scmp.ne.s32.totalorder %s2639_s2, %s1983_s8  ;;  %p1990_p0 = scmp.lt.u32.totalorder %s1983_s8, %s2639_s2 }
  0x40   : > { %p1986_p12 = pnand %p1984_p11, %p2279_p8 }
  0x42   : > { %p1987_p13 = pneg %p1986_p12 }
  0x44   : > { %p1992_p2 = pnand %p1990_p0, %p1987_p13 }
  0x46   : > { %1995 = shalt.err (!%p1992_p2)
}
  0x47   : > { %s1996_s30 = scalar_lea.vmem %s2269_s9, 16  ;;  %s2003_s14 = scalar_lea.vmem %s2269_s9, 32 }
  0x48   : > { %p1997_p5 = scmp.ne.s32.totalorder %s2269_s9, %s1996_s30  ;;  %p2004_p4 = scmp.lt.s32.totalorder %s2269_s9, %s2269_s9 }
  0x49   : > { %p2005_p10 = scmp.lt.s32.totalorder %s2003_s14, %s1996_s30 }
  0x4a   : > { %p1999_p7 = pnand %p1997_p5, %p2279_p8 }
  0x4b   : > { %p2006_p11 = por %p2005_p10, %p2004_p4 }
  0x4c   : > { %p2000_p9 = pneg %p1999_p7 }
  0x4e   : > { %p2007_p12 = pnand %p2006_p11, %p2000_p9 }
  0x50   : > { %2010 = shalt.err (!%p2007_p12)
}
  0x51   : > { %1785 = dma.hbm_to_vmem [thread:$0]  (!%p2263_p6), %s2639_s2, 16, %s2269_s9, [#allocation7]  }
  0x52   : > { %s2182_s17 = smov [#allocation11]   ;;  %s2183_s25 = smov [#allocation12]  }
  0x53   : > { %s237_s18 = sshll.u32 %s2182_s17, 4  ;;  %s247_s29 = sshll.u32 %s2183_s25, 4  ;;  %s238_s18 = int_to_ptr.vmem [resolvable:$true] %s237_s18  ;;  %s248_s29 = int_to_ptr.vmem [resolvable:$true] %s247_s29 }
  0x54   : > { %s2011_s11 = scalar_lea.hbm %s2641_s4, 16 }
  0x55   : > { %p2012_p13 = scmp.ne.s32.totalorder %s2641_s4, %s2011_s11  ;;  %p2018_p5 = scmp.lt.u32.totalorder %s2011_s11, %s2641_s4 }
  0x57   : > { %p2014_p0 = pnand %p2012_p13, %p2279_p8 }
  0x59   : > { %p2015_p2 = pneg %p2014_p0 }
  0x5b   : > { %p2020_p7 = pnand %p2018_p5, %p2015_p2 }
  0x5d   : > { %2023 = shalt.err (!%p2020_p7)
}
  0x5e   : > { %s2024_s9 = scalar_lea.vmem %s238_s18, 16  ;;  %s2031_s16 = scalar_lea.vmem %s238_s18, 32 }
  0x5f   : > { %p2025_p9 = scmp.ne.s32.totalorder %s238_s18, %s2024_s9  ;;  %p2032_p11 = scmp.lt.s32.totalorder %s238_s18, %s238_s18 }
  0x60   : > { %p2033_p12 = scmp.lt.s32.totalorder %s2031_s16, %s2024_s9 }
  0x61   : > { %p2027_p4 = pnand %p2025_p9, %p2279_p8 }
  0x62   : > { %p2034_p1 = por %p2033_p12, %p2032_p11 }
  0x63   : > { %p2028_p10 = pneg %p2027_p4 }
  0x65   : > { %p2035_p3 = pnand %p2034_p1, %p2028_p10 }
  0x67   : > { %2038 = shalt.err (!%p2035_p3)
}
  0x68   : > { %1791 = dma.hbm_to_vmem [thread:$0]  (!%p2263_p6), %s2641_s4, 16, %s238_s18, [#allocation10]  }
  0x69   : > { %s2039_s10 = scalar_lea.hbm %s2642_s5, 512 }
  0x6a   : > { %p2040_p13 = scmp.ne.s32.totalorder %s2642_s5, %s2039_s10  ;;  %p2046_p3 = scmp.lt.u32.totalorder %s2039_s10, %s2642_s5 }
  0x6c   : > { %p2042_p0 = pnand %p2040_p13, %p2279_p8 }
  0x6e   : > { %p2043_p1 = pneg %p2042_p0 }
  0x70   : > { %p2048_p2 = pnand %p2046_p3, %p2043_p1 }
  0x72   : > { %2051 = shalt.err (!%p2048_p2)
}
  0x73   : > { %s2052_s14 = scalar_lea.vmem %s248_s29, 512  ;;  %p2060_p4 = scmp.lt.s32.totalorder %s248_s29, %s248_s29 }
  0x74   : > { %p2053_p5 = scmp.ne.s32.totalorder %s248_s29, %s2052_s14  ;;  %p2061_p10 = scmp.lt.s32.totalorder %s2052_s14, %s2052_s14 }
  0x76   : > { %p2055_p7 = pnand %p2053_p5, %p2279_p8  ;;  %p2062_p11 = por %p2061_p10, %p2060_p4 }
  0x78   : > { %p2056_p9 = pneg %p2055_p7 }
  0x7a   : > { %p2063_p12 = pnand %p2062_p11, %p2056_p9 }
  0x7c   : > { %2066 = shalt.err (!%p2063_p12)
}
  0x7d   : > { %s2184_s18 = smov 128   ;;  %s2185_s15 = smov 8  }
  0x7e   : > { %1794 = dma.hbm_to_vmem [thread:$0]  (!%p2263_p6), %s2642_s5, 512, %s248_s29, [#allocation13], %s2184_s18, %s2184_s18, %s2185_s15  }
  0x7f   : > { %s1458_s26 = sadd.s32 4294967294, %s2175_s24   ;;  %s2391_s17 = sadd.s32 1, %s2175_s24  }
  0x80   : > { %s32_s25 = sadd.s32 1, %s2171_s23  ;;  %s29_s8 = ssub.s32 %s2175_s24, %s2391_s17 }
  0x81   : > { %p39_p8 = scmp.ne.s32.totalorder %s2171_s23, %s2167_s22  ;;  %p30_p13 = scmp.eq.s32.totalorder %s29_s8, 0 }
  0x82   : > { %p40_p0 = scmp.eq.s32.totalorder %s2175_s24, 0  ;;  %p45_p1 = scmp.ne.s32.totalorder %s2167_s22, %s2163_s21 }
  0x83   : > { %p174_p3 = scmp.eq.s32.totalorder %s2247_s27, 1  ;;  %p2652_p5 = scmp.eq.s32.totalorder %s2247_s27, 0 }
  0x84   : > { %s2403_s10 = scalar_select %p30_p13, %s2171_s23, %s32_s25  }
  0x85   : > { %p41_p2 = por %p40_p0, %p39_p8  ;;  %p2407_p7 = por %p2652_p5, %p45_p1 }
  0x86   : > { %p2411_p6 = por %p174_p3, %p39_p8  ;;  %p180_p9 = scmp.eq.s32.totalorder %s1458_s26, 1 }
  0x87   : > { %p1808_p4 = scmp.lt.s32.totalorder %s2175_s24, 2  ;;  %s261_s11 = sand.u32 1, %s2171_s23  }
  0x88   : > { %s2654_s29 = scalar_select %p2411_p6, 1, 0 }
  0x89   : > { %p2417_p10 = por %p180_p9, %p45_p1  ;;  %s1752_s13 = smul.u32 36, %s261_s11 }
  0x8a   : > { %p2421_p11 = pnand %p1808_p4, %p41_p2  ;;  %s1753_s14 = smul.u32 576, %s2175_s24 }
  0x8b   : > { %s2655_s12 = scalar_select %p2417_p10, 1, 0 }
  0x8c   : > { %s2429_s9 = scalar_lea.hbm %s2637_s0, %s1753_s14  ;;  %s265_s16 = scalar_lea.vmem [#allocation3], %s1752_s13 }
  0x8d   : > { %s272_s26 = sshll.u32 %s265_s16, 4  ;;  %s2433_s25 = scalar_lea.sflag [#allocation4], %s261_s11  ;;  %s2431_s26 = int_to_ptr.vmem [resolvable:$true] %s272_s26 }
  0x8e   : > { %s2067_s8 = scalar_lea.hbm %s2429_s9, 576  ;;  %p2069_p8 = pneg %p2421_p11 }
  0x8f   : > { %p2068_p12 = scmp.ne.s32.totalorder %s2429_s9, %s2067_s8  ;;  %s2072_s15 = scalar_lea.hbm %s2637_s0, 1152 }
  0x90   : > { %p2073_p1 = scmp.lt.u32.totalorder %s2429_s9, %s2637_s0  ;;  %p2074_p3 = scmp.lt.u32.totalorder %s2072_s15, %s2067_s8 }
  0x91   : > { %p2070_p13 = pnand %p2069_p8, %p2068_p12  ;;  %p2076_p5 = scmp.lt.u32.totalorder %s2067_s8, %s2429_s9 }
  0x92   : > { %p2075_p2 = por %p2074_p3, %p2073_p1 }
  0x93   : > { %p2071_p0 = pneg %p2070_p13 }
  0x94   : > { %p2077_p9 = por %p2076_p5, %p2075_p2 }
  0x96   : > { %p2078_p4 = pnand %p2077_p9, %p2071_p0 }
  0x98   : > { %2081 = shalt.err (!%p2078_p4)
}
  0x99   : > { %s2082_s11 = scalar_lea.vmem %s2431_s26, 576  ;;  %s2186_s13 = smov [#allocation3]  }
  0x9a   : > { %p2083_p12 = scmp.ne.s32.totalorder %s2431_s26, %s2082_s11  ;;  %s2087_s16 = sshll.u32 %s2186_s13, 4  ;;  %s2088_s16 = int_to_ptr.vmem [resolvable:$false] %s2087_s16 }
  0x9b   : > { %s2089_s19 = scalar_lea.vmem %s2088_s16, 1152  ;;  %p2090_p6 = scmp.lt.s32.totalorder %s2431_s26, %s2088_s16 }
  0x9c   : > { %p2085_p13 = pnand %p2083_p12, %p2069_p8  ;;  %p2091_p1 = scmp.lt.s32.totalorder %s2089_s19, %s2082_s11 }
  0x9e   : > { %p2086_p10 = pneg %p2085_p13  ;;  %p2092_p3 = por %p2091_p1, %p2090_p6 }
  0xa0   : > { %p2093_p2 = pnand %p2092_p3, %p2086_p10 }
  0xa2   : > { %2096 = shalt.err (!%p2093_p2)
}
  0xa3   : > { %s2657_s20 = smov 4   ;;  %s2658_s8 = smov 64  }
  0xa4   : > { %1798 = dma.hbm_to_vmem [thread:$0]  (!%p2421_p11), %s2429_s9, 576, %s2431_s26, %s2433_s25, %s2658_s8, %s2658_s8, %s2657_s20  }
  0xa5   : > { %p2659_p8 = scmp.ne.s32.totalorder %s2649_s28, 0 }
  0xa6   : > { %s2467_s14 = sand.u32 (!%p2659_p8), 1, %s2167_s22  }
  0xa7   : > { %284 = sbr.rel (%p2659_p8) target bundleno = 787 (0x313), region = 44  ;;  %s287_s15 = scalar_lea.sflag (!%p2659_p8), [#allocation4], %s2467_s14 }
  0xa8   : > { %s1754_s18 = smul.u32 (!%p2659_p8), 36, %s2467_s14 }
  0xaa   : > { %s2471_s11 = scalar_lea.vmem (!%p2659_p8), [#allocation3], %s1754_s18 }
  0xae   : > { %2142 = dma.done.wait (%p2407_p7), %s287_s15, 576  }
  0xaf   : > { %2144 = vsyncadd (%p2407_p7), %s287_s15, 4294966720  ;;  %p2660_p6 = scmp.eq.s32.totalorder %s2247_s27, 0 }
  0xb1   : > { %2146 = dma.done.wait (%p2660_p6), [#allocation7], 1936   ;;  %p2661_p10 = pmov %p2660_p6 }
  0xb2   : > { %p2662_p11 = pmov %p2660_p6 }
  0xb3   : > { %2148 = vsyncadd (%p2661_p10), [#allocation7], 4294965360 }
  0xb4   : > { %2150 = dma.done.wait (%p2662_p11), [#allocation10], 3088   ;;  %p2663_p0 = pmov %p2660_p6 }
  0xb6   : > { %2152 = vsyncadd (%p2663_p0), [#allocation10], 4294964208  ;;  %p2664_p5 = pmov %p2663_p0 }
  0xb7   : > { %p2665_p9 = pmov %p2663_p0 }
  0xb8   : > { %2154 = dma.done.wait (%p2664_p5), [#allocation13], 512  }
  0xb9   : > { %2156 = vsyncadd (%p2665_p9), [#allocation13], 4294966784  ;;  %v1859_v0 = vld [vmem:[#allocation6] sm:$0xff]   ;;  %v1860_v1 = vld [vmem:[#allocation6 + $0x8] sm:$0xff]   ;;  %vm393_vm0 = vsmask.f32 7424 }
  0xba   : > { %1632 = vmatprep.subr.bf16.mxu0 %v1859_v0  ;;  %v1861_v2 = vld [vmem:[#allocation6 + $0x10] sm:$0xff]   ;;  %v1864_v3 = vld [vmem:[#allocation6 + $0x28] sm:$0xff]   ;;  %v2490_v4 = vld [vmem:[%s2471_s11] sm:$0xff]   ;;  %vm460_vm1 = vcmask 654336   ;;  %vm652_vm2 = vcmask 1046528   ;;  %v2187_v61 = vmov 0.0  }
  0xbb   : > { %1633 = vmatpush3.bf16.msra.mxu0 %v1859_v0  ;;  %v1862_v5 = vld [vmem:[#allocation6 + $0x18] sm:$0xff]   ;;  %1614 = vmatprep.subr.bf16.mxu1 %v1864_v3  ;;  %v1867_v6 = vld [vmem:[#allocation6 + $0x30] sm:$0xff]   ;;  %v395_v7 = vshrl.u32 %v2490_v4, 16  ;;  %v397_v8 = vshll.u32 %v2490_v4, 16  ;;  %v2497_v9 = vld [vmem:[%s2471_s11 + $0x8] sm:$0xff]   ;;  %v653_v26 = vrot.slane %v2490_v4, 1 }
  0xbc   : > { %1634 = vmatprep.subr.bf16.mxu0 %v1860_v1  ;;  %1615 = vmatpush3.bf16.msra.mxu1 %v1864_v3  ;;  %v1870_v10 = vld [vmem:[#allocation6 + $0x38] sm:$0xff]   ;;  %v1863_v12 = vld [vmem:[#allocation6 + $0x20] sm:$0xff]   ;;  %v402_v13 = vshll.u32 %v2497_v9, 16  ;;  %v1873_v16 = vld [vmem:[%s2471_s11 + $0x10] sm:$0xff]   ;;  %v406_v19 = vshrl.u32 %v2497_v9, 16  ;;  %v654_v30 = vrot.slane %v2497_v9, 1 }
  0xbd   : > { %1642 = vmatprep.mubr.msk.bf16.mxu0 %vm460_vm1, %v2490_v4  ;;  %1616 = vmatprep.subr.bf16.mxu1 %v1867_v6  ;;  %v399_v11 = vrot.slane %v397_v8, 1  ;;  %v1872_v14 = vld [vmem:[#allocation6 + $0x40] sm:$0xff]   ;;  %v1866_v18 = vld [vmem:[#allocation6 + $0x50] sm:$0xff]   ;;  %v410_v22 = vshll.u32 %v1873_v16, 16  ;;  %v1876_v23 = vld [vmem:[#allocation6 + $0x48] sm:$0xff]   ;;  %v414_v27 = vshrl.u32 %v1873_v16, 16 }
  0xbe   : > { %v404_v17 = vrot.slane %v402_v13, 1  ;;  %v1874_v20 = vld [vmem:[%s2471_s11 + $0x18] sm:$0xff]   ;;  %v1878_v31 = vld [vmem:[%s2471_s11 + $0x20] ss:$0 sps:$4 sm:$0x11]   ;;  %v656_v32 = vrot.slane %v1873_v16, 1  ;;  %v655_v43 = vsel %vm652_vm2, %v653_v26, %v654_v30 }
  0xbf   : > { %1635 = vmatpush3.bf16.msra.mxu0 %v1860_v1  ;;  %v400_v15 = vor.u32 %v399_v11, %v395_v7  ;;  %v1869_v24 = vld [vmem:[#allocation6 + $0x58] sm:$0xff]   ;;  %v412_v25 = vrot.slane %v410_v22, 1  ;;  %v418_v28 = vshll.u32 %v1874_v20, 16  ;;  %v1871_v35 = vld [vmem:[#allocation6 + $0x60] sm:$0xff]   ;;  %v422_v36 = vshrl.u32 %v1874_v20, 16  ;;  %v1875_v42 = vld [vmem:[#allocation6 + $0x68] sm:$0xff]  }
  0xc0   : > { %1636 = vmatprep.subr.bf16.mxu0 %v1861_v2  ;;  %1617 = vmatpush3.bf16.msra.mxu1 %v1867_v6  ;;  %v408_v29 = vor.u32 %v406_v19, %v404_v17  ;;  %v426_v37 = vshll.u32 %v1878_v31, 16  ;;  %v658_v40 = vrot.slane %v1874_v20, 1  ;;  %v1877_v45 = vld [vmem:[#allocation6 + $0x70] sm:$0xff]   ;;  %v657_v47 = vsel %vm652_vm2, %v654_v30, %v656_v32  ;;  %v1879_v51 = vld [vmem:[#allocation9] sm:$0xff]   ;;  %v1881_v53 = vld [vmem:[#allocation9 + $0x8] sm:$0xff]   ;;  %864 = vst [vmem:[#allocation2] sm:$0xff] %v2187_v61 }
  0xc1   : > { %1618 = vmatprep.subr.bf16.mxu1 %v1870_v10  ;;  %v405_v21 = vsel %vm393_vm0, %v400_v15, %v404_v17  ;;  %v416_v33 = vor.u32 %v414_v27, %v412_v25  ;;  %v420_v34 = vrot.slane %v418_v28, 1  ;;  %v660_v49 = vrot.slane %v1878_v31, 1  ;;  %v1880_v52 = vld [vmem:[#allocation9 + $0x40] sm:$0xff]   ;;  %v1882_v54 = vld [vmem:[#allocation9 + $0x48] sm:$0xff]   ;;  %v1883_v55 = vld [vmem:[#allocation9 + $0x10] sm:$0xff]   ;;  %s1473_s28 = sshll.u32 %s2467_s14, 4 }
  0xc2   : > { %1624 = vmatprep.mubr.msk.bf16.mxu1 %vm460_vm1, %v405_v21  ;;  %v413_v38 = vsel %vm393_vm0, %v408_v29, %v412_v25  ;;  %v428_v39 = vrot.slane %v426_v37, 1  ;;  %v659_v48 = vsel %vm652_vm2, %v656_v32, %v658_v40  ;;  %v1884_v56 = vld [vmem:[#allocation9 + $0x50] sm:$0xff]   ;;  %v1885_v57 = vld [vmem:[#allocation9 + $0x18] sm:$0xff]   ;;  %v1887_v59 = vld [vmem:[#allocation9 + $0x20] sm:$0xff]   ;;  %s1545_s7 = sshll.u32 %s2247_s27, 8  ;;  %s338_s30 = scalar_lea.vmem [#allocation14], %s1473_s28 }
  0xc3   : > { %1637 = vmatpush3.bf16.msra.mxu0 %v1861_v2  ;;  %v421_v41 = vsel %vm393_vm0, %v416_v33, %v420_v34  ;;  %v424_v44 = vor.u32 %v422_v36, %v420_v34  ;;  %v661_v50 = vsel %vm652_vm2, %v658_v40, %v660_v49  ;;  %v1886_v58 = vld [vmem:[#allocation9 + $0x58] sm:$0xff]   ;;  %v1888_v60 = vld [vmem:[#allocation9 + $0x60] sm:$0xff]   ;;  %v1889_v62 = vld [vmem:[#allocation9 + $0x28] sm:$0xff]   ;;  %s1337_s9 = sshll.u32 %s338_s30, 4  ;;  %s2591_s13 = scalar_lea.hbm %s2643_s6, %s1545_s7  ;;  %s2593_s9 = int_to_ptr.vmem [resolvable:$true] %s1337_s9 }
  0xc4   : > { %1638 = vmatprep.subr.bf16.mxu0 %v1862_v5  ;;  %1619 = vmatpush3.bf16.msra.mxu1 %v1870_v10  ;;  %v1890_v63 = vld [vmem:[#allocation9 + $0x68] sm:$0xff]   ;;  %v1891_v0 = vld [vmem:[#allocation9 + $0x30] sm:$0xff]   ;;  %v1893_v2 = vld [vmem:[#allocation9 + $0x38] sm:$0xff]   ;;  %s1324_s27 = scalar_lea.sflag [#allocation5], %s2467_s14  ;;  %s2097_s16 = scalar_lea.vmem %s2593_s9, 256 }
  0xc5   : > { %1620 = vmatprep.subr.bf16.mxu1 %v1872_v14  ;;  %v429_v46 = vsel %vm393_vm0, %v424_v44, %v428_v39  ;;  %v1892_v1 = vld [vmem:[#allocation9 + $0x70] sm:$0xff]   ;;  %v1894_v3 = vld [vmem:[#allocation9 + $0x78] sm:$0xff]   ;;  %v2526_v4 = vld [vmem:[#allocation9 + $0x80] sm:$0xff]   ;;  %p2098_p7 = scmp.ne.s32.totalorder %s2593_s9, %s2097_s16  ;;  %p2666_p4 = scmp.ne.s32.totalorder %s2654_s29, 0 }
  0xc6   : > { %s2188_s19 = smov [#allocation14]  }
  0xc7   : > { %1639 = vmatpush3.bf16.msra.mxu0 %v1862_v5  ;;  %p2099_p12 = pnand %p2098_p7, %p2666_p4  ;;  %s2101_s20 = sshll.u32 %s2188_s19, 4  ;;  %s2102_s20 = int_to_ptr.vmem [resolvable:$false] %s2101_s20 }
  0xc8   : > { %1640 = vmatprep.subr.bf16.mxu0 %v1863_v12  ;;  %1621 = vmatpush3.bf16.msra.mxu1 %v1872_v14  ;;  %v1506_v14 = vld [vmem:[#allocation8] ss:$0 sm:$0xff]  ;;  %s2103_s8 = scalar_lea.vmem %s2102_s20, 512  ;;  %p2104_p1 = scmp.lt.s32.totalorder %s2593_s9, %s2102_s20 }
  0xc9   : > { %1622 = vmatprep.subr.bf16.mxu1 %v1876_v23  ;;  %p2100_p13 = pneg %p2099_p12  ;;  %p2105_p3 = scmp.lt.s32.totalorder %s2103_s8, %s2097_s16 }
  0xcb   : > { %1641 = vmatpush3.bf16.msra.mxu0 %v1863_v12  ;;  %p2106_p2 = por %p2105_p3, %p2104_p1 }
  0xcc   : > { %1650 = vmatprep.subr.bf16.mxu0 %v1866_v18  ;;  %1623 = vmatpush3.bf16.msra.mxu1 %v1876_v23 }
  0xcd   : > { %1688 = vmatprep.subr.bf16.mxu1 %v1879_v51  ;;  %p2107_p8 = pnand %p2106_p2, %p2100_p13 }
  0xce   : > { %1643 = vmatmul.mubr.msk.bf16.vlgmr.msra.gmra.mrb[0].mxu0 %vm460_vm1, %v2497_v9 }
  0xcf   : > { %1651 = vmatpush3.bf16.msra.mxu0 %v1866_v18  ;;  %1646 = vmatprep.mubr.msk.bf16.mxu0 %vm460_vm1, %v1873_v16 }
  0xd0   : > { %1652 = vmatprep.subr.bf16.mxu0 %v1869_v24  ;;  %1625 = vmatmul.mubr.msk.bf16.vlgmr.msra.gmra.mrb[0].mxu1 %vm460_vm1, %v413_v38 }
  0xd1   : > { %1628 = vmatprep.mubr.msk.bf16.mxu1 %vm460_vm1, %v421_v41  ;;  %1689 = vmatpush3.bf16.msra.mxu1 %v1879_v51 }
  0xd2   : > { %1690 = vmatprep.subr.bf16.mxu1 %v1881_v53 }
  0xd3   : > { %1653 = vmatpush3.bf16.msra.mxu0 %v1869_v24 }
  0xd4   : > { %1654 = vmatprep.subr.bf16.mxu0 %v1871_v35 }
  0xd5   : > { %1691 = vmatpush3.bf16.msra.mxu1 %v1881_v53 }
  0xd6   : > { %1647 = vmatmul.mubr.msk.bf16.gmra.mrb[4].mxu0 %vm460_vm1, %v1874_v20  ;;  %1692 = vmatprep.subr.bf16.mxu1 %v1883_v55 }
  0xd7   : > { %1655 = vmatpush3.bf16.msra.mxu0 %v1871_v35  ;;  %1660 = vmatprep.mubr.msk.bf16.mxu0 %vm460_vm1, %v655_v43 }
  0xd8   : > { %1656 = vmatprep.subr.bf16.mxu0 %v1875_v42  ;;  %1629 = vmatmul.mubr.msk.bf16.gmra.mrb[4].mxu1 %vm460_vm1, %v429_v46 }
  0xd9   : > { %1693 = vmatpush3.bf16.msra.mxu1 %v1883_v55 }
  0xda   : > { %1694 = vmatprep.subr.bf16.mxu1 %v1885_v57 }
  0xdb   : > { %1657 = vmatpush3.bf16.msra.mxu0 %v1875_v42 }
  0xdc   : > { %1658 = vmatprep.subr.bf16.mxu0 %v1877_v45 }
  0xdd   : > { %1695 = vmatpush3.bf16.msra.mxu1 %v1885_v57 }
  0xde   : > { %1696 = vmatprep.subr.bf16.mxu1 %v1887_v59 }
  0xdf   : > { %1659 = vmatpush3.bf16.msra.mxu0 %v1877_v45 }
  0xe0   : > { %1668 = vmatprep.subr.bf16.mxu0 %v1880_v52 }
  0xe1   : > { %1697 = vmatpush3.bf16.msra.mxu1 %v1887_v59 }
  0xe2   : > { %1661 = vmatmul.mubr.msk.bf16.vlgmr.msra.gmra.mrb[0].mxu0 %vm460_vm1, %v657_v47  ;;  %1698 = vmatprep.subr.bf16.mxu1 %v1889_v62 }
  0xe3   : > { %1664 = vmatprep.mubr.msk.bf16.mxu0 %vm460_vm1, %v659_v48  ;;  %1669 = vmatpush3.bf16.msra.mxu0 %v1880_v52 }
  0xe4   : > { %1670 = vmatprep.subr.bf16.mxu0 %v1882_v54 }
  0xe5   : > { %1699 = vmatpush3.bf16.msra.mxu1 %v1889_v62 }
  0xe6   : > { %1700 = vmatprep.subr.bf16.mxu1 %v1891_v0 }
  0xe7   : > { %1671 = vmatpush3.bf16.msra.mxu0 %v1882_v54 }
  0xe8   : > { %1672 = vmatprep.subr.bf16.mxu0 %v1884_v56 }
  0xe9   : > { %1701 = vmatpush3.bf16.msra.mxu1 %v1891_v0 }
  0xea   : > { %1665 = vmatmul.mubr.msk.bf16.gmra.mrb[4].mxu0 %vm460_vm1, %v661_v50  ;;  %1702 = vmatprep.subr.bf16.mxu1 %v1893_v2 }
  0xeb   : > { %1673 = vmatpush3.bf16.msra.mxu0 %v1884_v56 }
  0xec   : > { %1674 = vmatprep.subr.bf16.mxu0 %v1886_v58 }
  0xed   : > { %1703 = vmatpush3.bf16.msra.mxu1 %v1893_v2 }
  0xee   : > { %1708 = vmatprep.subr.bf16.mxu1 %v2526_v4 }
  0xef   : > { %1675 = vmatpush3.bf16.msra.mxu0 %v1886_v58 }
  0xf0   : > { %1676 = vmatprep.subr.bf16.mxu0 %v1888_v60 }
  0xf3   : > { %1677 = vmatpush3.bf16.msra.mxu0 %v1888_v60 }
  0xf4   : > { %1678 = vmatprep.subr.bf16.mxu0 %v1890_v63 }
  0xf7   : > { %1679 = vmatpush3.bf16.msra.mxu0 %v1890_v63 }
  0xf8   : > { %1680 = vmatprep.subr.bf16.mxu0 %v1892_v1 }
  0xfb   : > { %1681 = vmatpush3.bf16.msra.mxu0 %v1892_v1 }
  0xfc   : > { %1682 = vmatprep.subr.bf16.mxu0 %v1894_v3 }
  0xff   : > { %1683 = vmatpush3.bf16.msra.mxu0 %v1894_v3 }
 0x1a3   : > { %v1626_v5 = vpop.f32.mrb[0].mxu1 }
 0x1a4   : > { %v507_v6 = vpop.f32.mrb[1].mxu1 }
 0x1a5   : > { %v1627_v7 = vpop.f32.mrb[2].mxu1 }
 0x1a6   : > { %v510_v8 = vpop.f32.mrb[3].mxu1 }
 0x1ab   : > { %v1630_v9 = vpop.f32.mrb[4].mxu1 }
 0x1ac   : > { %v523_v10 = vpop.f32.mrb[5].mxu1 }
 0x1ad   : > { %v1631_v11 = vpop.f32.mrb[6].mxu1 }
 0x1ae   : > { %v526_v12 = vpop.f32.mrb[7].mxu1 }
 0x1b5   : > { %v1662_v13 = vpop.f32.mrb[0].mxu0 }
 0x1b6   : > { %v1728_v15 = vadd.f32 %v1662_v13, %v1626_v5  ;;  %v738_v16 = vpop.f32.mrb[1].mxu0 }
 0x1b7   : > { %v1729_v17 = vadd.f32 %v738_v16, %v507_v6  ;;  %v1663_v18 = vpop.f32.mrb[2].mxu0 }
 0x1b8   : > { %v2529_v19 = vadd.f32 %v1728_v15, %v1506_v14  ;;  %v1730_v20 = vadd.f32 %v1663_v18, %v1627_v7  ;;  %v741_v21 = vpop.f32.mrb[3].mxu0 }
 0x1b9   : > { %v2531_v22 = vadd.f32 %v1729_v17, %v1506_v14  ;;  %v1731_v23 = vadd.f32 %v741_v21, %v510_v8 }
 0x1ba   : > { %v794_v24 = vmul.f32 %v2529_v19, %v2529_v19  ;;  %v2535_v25 = vadd.f32 %v1730_v20, %v1506_v14 }
 0x1bb   : > { %v792_v26 = vmul.f32 %v2531_v22, %v2531_v22  ;;  %v2539_v27 = vadd.f32 %v1731_v23, %v1506_v14 }
 0x1bc   : > { %v802_v28 = vmul.f32 %v794_v24, %v2529_v19  ;;  %v795_v29 = vmul.f32 %v2535_v25, %v2535_v25 }
 0x1bd   : > { %v800_v30 = vmul.f32 %v792_v26, %v2531_v22  ;;  %v793_v31 = vmul.f32 %v2539_v27, %v2539_v27  ;;  %v1666_v32 = vpop.f32.mrb[4].mxu0 }
 0x1be   : > { %v810_v33 = vmul.f32 0.044715, %v802_v28  ;;  %v803_v34 = vmul.f32 %v795_v29, %v2535_v25  ;;  %v1732_v35 = vadd.f32 %v1666_v32, %v1630_v9  ;;  %v754_v36 = vpop.f32.mrb[5].mxu0 }
 0x1bf   : > { %v808_v37 = vmul.f32 0.044715, %v800_v30  ;;  %v801_v38 = vmul.f32 %v793_v31, %v2539_v27  ;;  %v1733_v39 = vadd.f32 %v754_v36, %v523_v10  ;;  %v1667_v40 = vpop.f32.mrb[6].mxu0 }
 0x1c0   : > { %v818_v41 = vadd.f32 %v810_v33, %v2529_v19  ;;  %v811_v42 = vmul.f32 0.044715, %v803_v34  ;;  %v2550_v43 = vadd.f32 %v1732_v35, %v1506_v14  ;;  %v1734_v44 = vadd.f32 %v1667_v40, %v1631_v11  ;;  %v757_v45 = vpop.f32.mrb[7].mxu0 }
 0x1c1   : > { %v816_v46 = vadd.f32 %v808_v37, %v2531_v22  ;;  %v809_v47 = vmul.f32 0.044715, %v801_v38  ;;  %v2553_v48 = vadd.f32 %v1733_v39, %v1506_v14  ;;  %v1735_v49 = vadd.f32 %v757_v45, %v526_v12 }
 0x1c2   : > { %v826_v50 = vmul.f32 0.7978846, %v818_v41  ;;  %v819_v51 = vadd.f32 %v811_v42, %v2535_v25  ;;  %v798_v52 = vmul.f32 %v2550_v43, %v2550_v43  ;;  %v2558_v53 = vadd.f32 %v1734_v44, %v1506_v14 }
 0x1c3   : > { %v824_v54 = vmul.f32 0.7978846, %v816_v46  ;;  %v817_v55 = vadd.f32 %v809_v47, %v2539_v27  ;;  %v796_v56 = vmul.f32 %v2553_v48, %v2553_v48  ;;  %v2563_v57 = vadd.f32 %v1735_v49, %v1506_v14 }
 0x1c4   : > { %1903 = vtanh.f32 %v826_v50  ;;  %v827_v58 = vmul.f32 0.7978846, %v819_v51  ;;  %v806_v59 = vmul.f32 %v798_v52, %v2550_v43  ;;  %v799_v60 = vmul.f32 %v2558_v53, %v2558_v53 }
 0x1c5   : > { %1905 = vtanh.f32 %v824_v54  ;;  %v825_v61 = vmul.f32 0.7978846, %v817_v55  ;;  %v804_v62 = vmul.f32 %v796_v56, %v2553_v48  ;;  %v797_v63 = vmul.f32 %v2563_v57, %v2563_v57 }
 0x1c6   : > { %1907 = vtanh.f32 %v827_v58  ;;  %v814_v0 = vmul.f32 0.044715, %v806_v59  ;;  %v807_v1 = vmul.f32 %v799_v60, %v2558_v53 }
 0x1c7   : > { %1909 = vtanh.f32 %v825_v61  ;;  %v812_v2 = vmul.f32 0.044715, %v804_v62  ;;  %v805_v3 = vmul.f32 %v797_v63, %v2563_v57  ;;  %v1896_v62 = vld [vmem:[#allocation9 + $0x88] sm:$0xff]   ;;  %v1897_v63 = vld [vmem:[#allocation9 + $0x90] sm:$0xff]  }
 0x1c8   : > { %v822_v5 = vadd.f32 %v814_v0, %v2550_v43  ;;  %v815_v6 = vmul.f32 0.044715, %v807_v1  ;;  %v1898_v0 = vld [vmem:[#allocation9 + $0x98] sm:$0xff]   ;;  %v1899_v1 = vld [vmem:[#allocation9 + $0xa0] sm:$0xff]  }
 0x1c9   : > { %v820_v7 = vadd.f32 %v812_v2, %v2553_v48  ;;  %v813_v8 = vmul.f32 0.044715, %v805_v3  ;;  %v1900_v2 = vld [vmem:[#allocation9 + $0xa8] sm:$0xff]   ;;  %v1901_v3 = vld [vmem:[#allocation9 + $0xb0] sm:$0xff]  }
 0x1ca   : > { %v830_v9 = vmul.f32 0.7978846, %v822_v5  ;;  %v823_v10 = vadd.f32 %v815_v6, %v2558_v53  ;;  %v1902_v5 = vld [vmem:[#allocation9 + $0xb8] sm:$0xff]  }
 0x1cb   : > { %v828_v11 = vmul.f32 0.7978846, %v820_v7  ;;  %v821_v12 = vadd.f32 %v813_v8, %v2563_v57 }
 0x1cc   : > { %1911 = vtanh.f32 %v830_v9  ;;  %v831_v13 = vmul.f32 0.7978846, %v823_v10 }
 0x1cd   : > { %1913 = vtanh.f32 %v828_v11  ;;  %v829_v14 = vmul.f32 0.7978846, %v821_v12 }
 0x1ce   : > { %v1904_v15 = vpop.eup %1903  ;;  %1915 = vtanh.f32 %v831_v13  ;;  %v1531_v13 = vld [vmem:[#allocation11] ss:$0 sm:$0xff] }
 0x1cf   : > { %v1906_v16 = vpop.eup %1905  ;;  %v842_v17 = vadd.f32 1.0, %v1904_v15  ;;  %1917 = vtanh.f32 %v829_v14 }
 0x1d0   : > { %v1908_v18 = vpop.eup %1907  ;;  %v840_v20 = vadd.f32 1.0, %v1906_v16 }
 0x1d1   : > { %v1910_v21 = vpop.eup %1909  ;;  %v850_v23 = vmul.f32 0.5, %v842_v17  ;;  %v843_v24 = vadd.f32 1.0, %v1908_v18 }
 0x1d2   : > { %v848_v26 = vmul.f32 0.5, %v840_v20  ;;  %v841_v28 = vadd.f32 1.0, %v1910_v21 }
 0x1d3   : > { %v858_v29 = vmul.f32 %v850_v23, %v2529_v19  ;;  %v851_v30 = vmul.f32 0.5, %v843_v24 }
 0x1d4   : > { %v856_v31 = vmul.f32 %v848_v26, %v2531_v22  ;;  %v849_v32 = vmul.f32 0.5, %v841_v28 }
 0x1d5   : > { %867 = vst [vmem:[#allocation2 + $0x18] sm:$0xff] %v858_v29  ;;  %v859_v33 = vmul.f32 %v851_v30, %v2535_v25 }
 0x1d6   : > { %v1912_v34 = vpop.eup %1911  ;;  %865 = vst [vmem:[#allocation2 + $0x8] sm:$0xff] %v856_v31  ;;  %v857_v35 = vmul.f32 %v849_v32, %v2539_v27 }
 0x1d7   : > { %v1914_v36 = vpop.eup %1913  ;;  %868 = vst [vmem:[#allocation2 + $0x20] sm:$0xff] %v859_v33  ;;  %v846_v37 = vadd.f32 1.0, %v1912_v34 }
 0x1d8   : > { %v1916_v38 = vpop.eup %1915  ;;  %866 = vst [vmem:[#allocation2 + $0x10] sm:$0xff] %v857_v35  ;;  %v844_v39 = vadd.f32 1.0, %v1914_v36 }
 0x1d9   : > { %v1918_v40 = vpop.eup %1917  ;;  %v854_v41 = vmul.f32 0.5, %v846_v37  ;;  %v847_v19 = vadd.f32 1.0, %v1916_v38 }
 0x1da   : > { %v852_v42 = vmul.f32 0.5, %v844_v39  ;;  %v845_v44 = vadd.f32 1.0, %v1918_v40 }
 0x1db   : > { %v862_v22 = vmul.f32 %v854_v41, %v2550_v43  ;;  %v855_v45 = vmul.f32 0.5, %v847_v19 }
 0x1dc   : > { %v860_v25 = vmul.f32 %v852_v42, %v2553_v48  ;;  %v853_v46 = vmul.f32 0.5, %v845_v44 }
 0x1dd   : > { %871 = vst [vmem:[#allocation2 + $0x38] sm:$0xff] %v862_v22  ;;  %v863_v27 = vmul.f32 %v855_v45, %v2558_v53 }
 0x1de   : > { %869 = vst [vmem:[#allocation2 + $0x28] sm:$0xff] %v860_v25  ;;  %v861_v47 = vmul.f32 %v853_v46, %v2563_v57  ;;  %v902_v49 = vld [vmem:[#allocation2 + $0x18] ss:$2 sm:$0xff]  ;;  %v1123_v48 = vld [vmem:[#allocation2 + $0x19] ss:$2 sm:$0xff] }
 0x1df   : > { %872 = vst [vmem:[#allocation2 + $0x40] sm:$0xff] %v863_v27  ;;  %v900_v50 = vld [vmem:[#allocation2 + $0x8] ss:$2 sm:$0xff]  ;;  %v874_v51 = vld [vmem:[#allocation2 + $0x7] ss:$2 sm:$0xff] }
 0x1e0   : > { %v876_v52 = vld [vmem:[#allocation2 + $0x17] ss:$2 sm:$0xff]  ;;  %870 = vst [vmem:[#allocation2 + $0x30] sm:$0xff] %v861_v47  ;;  %v907_v54 = vpack.c.bf16 %v902_v49, %v900_v50 }
 0x1e1   : > { %v881_v55 = vpack.c.bf16 %v876_v52, %v874_v51  ;;  %v1121_v56 = vld [vmem:[#allocation2 + $0x9] ss:$2 sm:$0xff] }
 0x1e2   : > { %1684 = vmatprep.mubr.bf16.mxu0 %v907_v54  ;;  %v1128_v57 = vpack.c.bf16 %v1123_v48, %v1121_v56 }
 0x1e3   : > { %1704 = vmatprep.mubr.bf16.mxu1 %v881_v55 }
 0x1e6   : > { %v906_v43 = vld [vmem:[#allocation2 + $0x38] ss:$2 sm:$0xff]  ;;  %v1127_v6 = vld [vmem:[#allocation2 + $0x39] ss:$2 sm:$0xff] }
 0x1e7   : > { %v904_v58 = vld [vmem:[#allocation2 + $0x28] ss:$2 sm:$0xff]  ;;  %v878_v59 = vld [vmem:[#allocation2 + $0x27] ss:$2 sm:$0xff]  ;;  %v880_v60 = vld [vmem:[#allocation2 + $0x37] ss:$2 sm:$0xff] }
 0x1e8   : > { %v908_v53 = vpack.c.bf16 %v906_v43, %v904_v58  ;;  %v882_v61 = vpack.c.bf16 %v880_v60, %v878_v59  ;;  %v1297_v59 = vld [vmem:[#allocation12 + $0x10] sm:$0xff] }
 0x1ea   : > { %1685 = vmatmul.mubr.bf16.vlgmr.msra.gmra.mrb[8].mxu0 %v908_v53  ;;  %1705 = vmatmul.mubr.bf16.vlgmr.msra.gmra.mrb[8].mxu1 %v882_v61  ;;  %v1298_v53 = vld [vmem:[#allocation12 + $0x18] sm:$0xff] }
 0x1eb   : > { %1709 = vmatpush3.bf16.msra.mxu1 %v2526_v4  ;;  %1724 = vmatprep.mubr.bf16.mxu1 %v1128_v57  ;;  %v1125_v4 = vld [vmem:[#allocation2 + $0x29] ss:$2 sm:$0xff] }
 0x1ec   : > { %1710 = vmatprep.subr.bf16.mxu1 %v1896_v62  ;;  %v1129_v7 = vpack.c.bf16 %v1127_v6, %v1125_v4 }
 0x1ef   : > { %1711 = vmatpush3.bf16.msra.mxu1 %v1896_v62  ;;  %v1295_v62 = vld [vmem:[#allocation12] sm:$0xff] }
 0x1f0   : > { %1712 = vmatprep.subr.bf16.mxu1 %v1897_v63 }
 0x1f3   : > { %1713 = vmatpush3.bf16.msra.mxu1 %v1897_v63  ;;  %v1296_v63 = vld [vmem:[#allocation12 + $0x8] sm:$0xff] }
 0x1f4   : > { %1714 = vmatprep.subr.bf16.mxu1 %v1898_v0 }
 0x1f7   : > { %1715 = vmatpush3.bf16.msra.mxu1 %v1898_v0 }
 0x1f8   : > { %1716 = vmatprep.subr.bf16.mxu1 %v1899_v1 }
 0x1fb   : > { %1717 = vmatpush3.bf16.msra.mxu1 %v1899_v1 }
 0x1fc   : > { %1718 = vmatprep.subr.bf16.mxu1 %v1900_v2 }
 0x1ff   : > { %1719 = vmatpush3.bf16.msra.mxu1 %v1900_v2 }
 0x200   : > { %1720 = vmatprep.subr.bf16.mxu1 %v1901_v3 }
 0x203   : > { %1721 = vmatpush3.bf16.msra.mxu1 %v1901_v3 }
 0x204   : > { %1722 = vmatprep.subr.bf16.mxu1 %v1902_v5 }
 0x207   : > { %1723 = vmatpush3.bf16.msra.mxu1 %v1902_v5 }
 0x20a   : > { %1725 = vmatmul.mubr.bf16.vlgmr.msra.gmra.mrb[8].mxu1 %v1129_v7 }
 0x2bd   : > { %v1686_v8 = vpop.f32.mrb[8].mxu0 }
 0x2be   : > { %v1008_v9 = vpop.f32.mrb[9].mxu0 }
 0x2bf   : > { %v1687_v10 = vpop.f32.mrb[10].mxu0 }
 0x2c0   : > { %v1011_v11 = vpop.f32.mrb[11].mxu0 }
 0x2dd   : > { %v1726_v12 = vpop.f32.mrb[8].mxu1 }
 0x2de   : > { %v1736_v14 = vadd.f32 %v1726_v12, %v1686_v8  ;;  %v1229_v15 = vpop.f32.mrb[9].mxu1 }
 0x2df   : > { %v1737_v16 = vadd.f32 %v1229_v15, %v1008_v9  ;;  %v1727_v17 = vpop.f32.mrb[10].mxu1 }
 0x2e0   : > { %v1257_v18 = vadd.f32 %v1736_v14, %v1531_v13  ;;  %v1738_v20 = vadd.f32 %v1727_v17, %v1687_v10  ;;  %v1232_v21 = vpop.f32.mrb[11].mxu1 }
 0x2e1   : > { %v1255_v23 = vadd.f32 %v1737_v16, %v1531_v13  ;;  %v1739_v24 = vadd.f32 %v1232_v21, %v1011_v11 }
 0x2e2   : > { %v1261_v26 = vmul.f32 %v1257_v18, %v1257_v18  ;;  %v1258_v28 = vadd.f32 %v1738_v20, %v1531_v13 }
 0x2e3   : > { %v1259_v29 = vmul.f32 %v1255_v23, %v1255_v23  ;;  %v1256_v30 = vadd.f32 %v1739_v24, %v1531_v13 }
 0x2e4   : > { %v1265_v31 = vmul.f32 %v1261_v26, %v1257_v18  ;;  %v1262_v32 = vmul.f32 %v1258_v28, %v1258_v28 }
 0x2e5   : > { %v1263_v33 = vmul.f32 %v1259_v29, %v1255_v23  ;;  %v1260_v34 = vmul.f32 %v1256_v30, %v1256_v30 }
 0x2e6   : > { %v1269_v35 = vmul.f32 0.044715, %v1265_v31  ;;  %v1266_v36 = vmul.f32 %v1262_v32, %v1258_v28 }
 0x2e7   : > { %v1267_v37 = vmul.f32 0.044715, %v1263_v33  ;;  %v1264_v38 = vmul.f32 %v1260_v34, %v1256_v30 }
 0x2e8   : > { %v1273_v39 = vadd.f32 %v1269_v35, %v1257_v18  ;;  %v1270_v40 = vmul.f32 0.044715, %v1266_v36 }
 0x2e9   : > { %v1271_v41 = vadd.f32 %v1267_v37, %v1255_v23  ;;  %v1268_v19 = vmul.f32 0.044715, %v1264_v38 }
 0x2ea   : > { %v1277_v42 = vmul.f32 0.7978846, %v1273_v39  ;;  %v1274_v44 = vadd.f32 %v1270_v40, %v1258_v28 }
 0x2eb   : > { %v1275_v22 = vmul.f32 0.7978846, %v1271_v41  ;;  %v1272_v45 = vadd.f32 %v1268_v19, %v1256_v30 }
 0x2ec   : > { %1919 = vtanh.f32 %v1277_v42  ;;  %v1278_v25 = vmul.f32 0.7978846, %v1274_v44 }
 0x2ed   : > { %1921 = vtanh.f32 %v1275_v22  ;;  %v1276_v46 = vmul.f32 0.7978846, %v1272_v45 }
 0x2ee   : > { %1923 = vtanh.f32 %v1278_v25 }
 0x2ef   : > { %1925 = vtanh.f32 %v1276_v46 }
 0x2f6   : > { %v1920_v27 = vpop.eup %1919 }
 0x2f7   : > { %v1922_v47 = vpop.eup %1921  ;;  %v1285_v49 = vadd.f32 1.0, %v1920_v27 }
 0x2f8   : > { %v1924_v50 = vpop.eup %1923  ;;  %v1283_v51 = vadd.f32 1.0, %v1922_v47 }
 0x2f9   : > { %v1926_v52 = vpop.eup %1925  ;;  %v1289_v54 = vmul.f32 0.5, %v1285_v49  ;;  %v1286_v55 = vadd.f32 1.0, %v1924_v50 }
 0x2fa   : > { %v1287_v43 = vmul.f32 0.5, %v1283_v51  ;;  %v1284_v56 = vadd.f32 1.0, %v1926_v52 }
 0x2fb   : > { %v1293_v48 = vmul.f32 %v1289_v54, %v1257_v18  ;;  %v1290_v58 = vmul.f32 0.5, %v1286_v55 }
 0x2fc   : > { %v1291_v60 = vmul.f32 %v1287_v43, %v1255_v23  ;;  %v1288_v61 = vmul.f32 0.5, %v1284_v56 }
 0x2fd   : > { %v1294_v57 = vmul.f32 %v1290_v58, %v1258_v28  ;;  %v1301_v1 = vadd.f32 %v1297_v59, %v1293_v48 }
 0x2fe   : > { %v1292_v0 = vmul.f32 %v1288_v61, %v1256_v30  ;;  %v1299_v3 = vadd.f32 %v1295_v62, %v1291_v60 }
 0x2ff   : > { %v1302_v2 = vadd.f32 %v1298_v53, %v1294_v57 }
 0x300   : > { %v1300_v5 = vadd.f32 %v1296_v63, %v1292_v0 }
 0x301   : > { %v1554_v4 = vpack.c.bf16 %v1302_v2, %v1301_v1 }
 0x302   : > { %v1549_v6 = vpack.c.bf16 %v1300_v5, %v1299_v3 }
 0x303   : > { %1556 = vst [vmem:[%s338_s30 + $0x8] sm:$0xff] %v1554_v4  }
 0x304   : > { %1550 = vst [vmem:[%s338_s30] sm:$0xff] %v1549_v6  }
 0x305   : > { %2110 = shalt.err (!%p2107_p8)
}
 0x306   : > { %s2111_s18 = scalar_lea.hbm %s2591_s13, 256  ;;  %s2115_s28 = scalar_lea.hbm %s2643_s6, 512 }
 0x307   : > { %p2112_p6 = scmp.ne.s32.totalorder %s2591_s13, %s2111_s18  ;;  %p2116_p0 = scmp.lt.u32.totalorder %s2591_s13, %s2643_s6 }
 0x308   : > { %p2117_p5 = scmp.lt.u32.totalorder %s2115_s28, %s2111_s18  ;;  %p2119_p7 = scmp.lt.u32.totalorder %s2111_s18, %s2591_s13 }
 0x309   : > { %p2113_p10 = pnand %p2112_p6, %p2666_p4 }
 0x30a   : > { %p2118_p9 = por %p2117_p5, %p2116_p0 }
 0x30b   : > { %p2114_p11 = pneg %p2113_p10 }
 0x30c   : > { %p2120_p12 = por %p2119_p7, %p2118_p9 }
 0x30e   : > { %p2121_p13 = pnand %p2120_p12, %p2114_p11 }
 0x310   : > { %2124 = shalt.err (!%p2121_p13)
}
 0x311   : > { %s2189_s26 = smov 64   ;;  %s2190_s25 = smov 4  }
 0x312   : > { %1777 = dma.vmem_to_hbm [thread:$0]  (%p2666_p4), %s2593_s9, 256, %s2591_s13, %s1324_s27, %s2189_s26, %s2189_s26, %s2190_s25  }
 0x313 PF: > { %s1352_s16 = sand.u32 1, %s2163_s21   ;;  %p2667_p1 = scmp.ne.s32.totalorder %s2655_s12, 0 }
 0x314   : > { %p2668_p3 = scmp.ge.s32.totalorder %s2175_s24, 2  ;;  %s1353_s19 = scalar_lea.sflag [#allocation5], %s1352_s16 }
 0x316   : > { %p1800_p2 = pnand %p2668_p3, %p2667_p1 }
 0x318   : > { %2158 = dma.done.wait (!%p1800_p2), %s1353_s19, 256  }
 0x319   : > { %2160 = vsyncadd (!%p1800_p2), %s1353_s19, 4294967040  ;;  %p22_p8 = scmp.ge.s32.totalorder %s2391_s17, 4   ;;  %s2669_s21 = smov %s2167_s22 }
 0x31a   : > { %s2670_s22 = smov %s2171_s23  ;;  %s2671_s23 = smov %s2403_s10 }
 0x31b   : > { %s2672_s24 = smov %s2391_s17  ;;  %24 = sbr.rel (!%p22_p8) target bundleno = 8 (0x8), region = 125 }
 0x322   :  { %1358 = vsyncpa [#allocation4], 1 }
 0x323   :  { %1360 = vsyncpa [#allocation4 + $0x1], 1 }
 0x324   :  { %1361 = vsyncpa [#allocation7], 1 }
 0x325   :  { %1362 = vsyncpa [#allocation10], 1 }
 0x326   :  { %1363 = vsyncpa [#allocation13], 1 }
 0x327   :  { %1364 = vsyncpa [#allocation5], 1 }
 0x328   :  { %1366 = vsyncpa [#allocation5 + $0x1], 1 }

// kernel: forward.7
= control target key start
LH: loop header
LB: loop body
LE: loop exit
PB: predicated region body
PF: predicated region fallthrough
CT: control target
= control target key end

     0   :  { %10 = vsyncpa [#allocation3], 0  ;;  %s1985_s0 = inlined_call_operand.hbm [shape: bf16[8,1024], index: 0, kind: input, shape index: {}]   ;;  %s1986_s1 = inlined_call_operand.hbm [shape: f32[1,1024], index: 1, kind: input, shape index: {}]   ;;  %s1987_s2 = inlined_call_operand.hbm [shape: bf16[1024,256], index: 2, kind: input, shape index: {}]   ;;  %s1988_s3 = inlined_call_operand.hbm [shape: bf16[128,128], index: 3, kind: input, shape index: {}]   ;;  %s1989_s4 = inlined_call_operand.hbm [shape: f32[1,128], index: 4, kind: input, shape index: {}]   ;;  %s1990_s5 = inlined_call_operand.hbm [shape: f32[8,128], index: 5, kind: output, shape index: {}]  }
   0x1   :  { %11 = vsyncpa [#allocation6], 0 }
   0x2   :  { %12 = vsyncpa [#allocation9], 0 }
   0x3   :  { %13 = vsyncpa [#allocation4], 0  ;;  %s1799_s18 = smov [#allocation5]   ;;  %s1800_s20 = smov [#allocation8]  }
   0x4   :  { %s30_s19 = sshll.u32 %s1799_s18, 4  ;;  %s51_s21 = sshll.u32 %s1800_s20, 4  ;;  %s31_s19 = int_to_ptr.vmem [resolvable:$true] %s30_s19  ;;  %s1841_s21 = int_to_ptr.vmem [resolvable:$true] %s51_s21 }
   0x5   :  { %s1659_s24 = scalar_lea.hbm %s1986_s1, 128 }
   0x6   :  { %p1660_p0 = scmp.ne.s32.totalorder %s1986_s1, %s1659_s24  ;;  %p1663_p1 = scmp.lt.u32.totalorder %s1659_s24, %s1986_s1 }
   0x8   :  { %p1665_p2 = pnand %p1663_p1, %p1660_p0 }
   0xa   :  { %1668 = shalt.err (!%p1665_p2)
}
   0xb   :  { %s1669_s29 = scalar_lea.vmem %s31_s19, 128  ;;  %p1674_p4 = scmp.lt.s32.totalorder %s31_s19, %s31_s19 }
   0xc   :  { %p1670_p3 = scmp.ne.s32.totalorder %s31_s19, %s1669_s29  ;;  %p1675_p5 = scmp.lt.s32.totalorder %s1669_s29, %s1669_s29 }
   0xe   :  { %p1676_p6 = por %p1675_p5, %p1674_p4 }
  0x10   :  { %p1677_p7 = pnand %p1676_p6, %p1670_p3 }
  0x12   :  { %1680 = shalt.err (!%p1677_p7)
}
  0x13   :  { %33 = dma.hbm_to_vmem [thread:$0]  %s1986_s1, 128, %s31_s19, [#allocation6]  }
  0x14   :  { %s1681_s9 = scalar_lea.hbm %s1988_s3, 1024 }
  0x15   :  { %p1682_p8 = scmp.ne.s32.totalorder %s1988_s3, %s1681_s9  ;;  %p1685_p9 = scmp.lt.u32.totalorder %s1681_s9, %s1988_s3 }
  0x17   :  { %p1687_p10 = pnand %p1685_p9, %p1682_p8 }
  0x19   :  { %1690 = shalt.err (!%p1687_p10)
}
  0x1a   :  { %s1691_s14 = scalar_lea.vmem %s1841_s21, 1024  ;;  %p1696_p12 = scmp.lt.s32.totalorder %s1841_s21, %s1841_s21 }
  0x1b   :  { %p1692_p11 = scmp.ne.s32.totalorder %s1841_s21, %s1691_s14  ;;  %p1697_p13 = scmp.lt.s32.totalorder %s1691_s14, %s1691_s14 }
  0x1d   :  { %p1698_p0 = por %p1697_p13, %p1696_p12 }
  0x1f   :  { %p1699_p1 = pnand %p1698_p0, %p1692_p11 }
  0x21   :  { %1702 = shalt.err (!%p1699_p1)
}
  0x22   :  { %s1801_s1 = smov 64   ;;  %s1802_s15 = smov 4  }
  0x23   :  { %57 = dma.hbm_to_vmem [thread:$0]  %s1988_s3, 1024, %s1841_s21, [#allocation9], %s1801_s1, %s1801_s1, %s1802_s15  }
  0x24   :  { %s1803_s18 = smov [#allocation2]   ;;  %s1804_s20 = smov [#allocation7]  }
  0x25   :  { %s20_s19 = sshll.u32 %s1803_s18, 4  ;;  %s39_s22 = sshll.u32 %s1804_s20, 4  ;;  %s21_s19 = int_to_ptr.vmem [resolvable:$true] %s20_s19  ;;  %s1872_s22 = int_to_ptr.vmem [resolvable:$true] %s39_s22 }
  0x26   :  { %s1703_s25 = scalar_lea.hbm %s1985_s0, 512 }
  0x27   :  { %p1704_p2 = scmp.ne.s32.totalorder %s1985_s0, %s1703_s25  ;;  %p1707_p3 = scmp.lt.u32.totalorder %s1703_s25, %s1985_s0 }
  0x29   :  { %p1709_p4 = pnand %p1707_p3, %p1704_p2 }
  0x2b   :  { %1712 = shalt.err (!%p1709_p4)
}
  0x2c   :  { %s1713_s3 = scalar_lea.vmem %s21_s19, 512  ;;  %p1718_p6 = scmp.lt.s32.totalorder %s21_s19, %s21_s19 }
  0x2d   :  { %p1714_p5 = scmp.ne.s32.totalorder %s21_s19, %s1713_s3  ;;  %p1719_p7 = scmp.lt.s32.totalorder %s1713_s3, %s1713_s3 }
  0x2f   :  { %p1720_p8 = por %p1719_p7, %p1718_p6 }
  0x31   :  { %p1721_p9 = pnand %p1720_p8, %p1714_p5 }
  0x33   :  { %1724 = shalt.err (!%p1721_p9)
}
  0x34   :  { %23 = dma.hbm_to_vmem [thread:$0]  %s1985_s0, 512, %s21_s19, [#allocation3]  }
  0x35   :  { %s1725_s8 = scalar_lea.hbm %s1987_s2, 16384 }
  0x36   :  { %p1726_p10 = scmp.ne.s32.totalorder %s1987_s2, %s1725_s8  ;;  %p1729_p11 = scmp.lt.u32.totalorder %s1725_s8, %s1987_s2 }
  0x38   :  { %p1731_p12 = pnand %p1729_p11, %p1726_p10 }
  0x3a   :  { %1734 = shalt.err (!%p1731_p12)
}
  0x3b   :  { %s1735_s13 = scalar_lea.vmem %s1872_s22, 16384  ;;  %p1740_p0 = scmp.lt.s32.totalorder %s1872_s22, %s1872_s22 }
  0x3c   :  { %p1736_p13 = scmp.ne.s32.totalorder %s1872_s22, %s1735_s13  ;;  %p1741_p1 = scmp.lt.s32.totalorder %s1735_s13, %s1735_s13 }
  0x3e   :  { %p1742_p2 = por %p1741_p1, %p1740_p0 }
  0x40   :  { %p1743_p3 = pnand %p1742_p2, %p1736_p13 }
  0x42   :  { %1746 = shalt.err (!%p1743_p3)
}
  0x43   :  { %s1805_s0 = smov 128   ;;  %s1806_s14 = smov 8  }
  0x44   :  { %45 = dma.hbm_to_vmem [thread:$0]  %s1987_s2, 16384, %s1872_s22, [#allocation6], %s1805_s0, %s1805_s0, %s1806_s14  }
  0x45   :  { %s1807_s16 = smov [#allocation10]   ;;  %s1747_s20 = scalar_lea.hbm %s1989_s4, 16 }
  0x46   :  { %s64_s17 = sshll.u32 %s1807_s16, 4  ;;  %p1748_p4 = scmp.ne.s32.totalorder %s1989_s4, %s1747_s20  ;;  %s65_s17 = int_to_ptr.vmem [resolvable:$true] %s64_s17 }
  0x47   :  { %p1751_p5 = scmp.lt.u32.totalorder %s1747_s20, %s1989_s4 }
  0x49   :  { %p1753_p6 = pnand %p1751_p5, %p1748_p4 }
  0x4b   :  { %1756 = shalt.err (!%p1753_p6)
}
  0x4c   :  { %s1757_s27 = scalar_lea.vmem %s65_s17, 16  ;;  %s1761_s2 = scalar_lea.vmem %s65_s17, 32 }
  0x4d   :  { %p1758_p7 = scmp.ne.s32.totalorder %s65_s17, %s1757_s27  ;;  %p1762_p8 = scmp.lt.s32.totalorder %s65_s17, %s65_s17 }
  0x4e   :  { %p1763_p9 = scmp.lt.s32.totalorder %s1761_s2, %s1757_s27 }
  0x50   :  { %p1764_p10 = por %p1763_p9, %p1762_p8 }
  0x52   :  { %p1765_p11 = pnand %p1764_p10, %p1758_p7 }
  0x54   :  { %1768 = shalt.err (!%p1765_p11)
}
  0x55   :  { %67 = dma.hbm_to_vmem [thread:$0]  %s1989_s4, 16, %s65_s17, [#allocation9]  }
  0x56   :  { %1791 = dma.done.wait [#allocation3], 512  }
  0x57   :  { %1792 = vsyncadd [#allocation3], 4294966784 }
  0x58   :  { %1793 = dma.done.wait [#allocation6], 16512  }
  0x59   :  { %1794 = vsyncadd [#allocation6], 4294950784 }
  0x5a   :  { %1795 = dma.done.wait [#allocation9], 1040  }
  0x5b   :  { %1796 = vsyncadd [#allocation9], 4294966256  ;;  %v84_v0 = vld [vmem:[#allocation2] sm:$0xff]  ;;  %v85_v1 = vld [vmem:[#allocation2 + $0x8] sm:$0xff]  ;;  %vm1809_vm0 = vmmov 0   ;;  %s1810_s4 = smov [#allocation11]  }
  0x5c   :  { %v86_v2 = vld [vmem:[#allocation2 + $0x10] sm:$0xff]  ;;  %v1915_v3 = vunpack.c.l.bf16 %v84_v0  ;;  %v1917_v4 = vunpack.c.h.bf16 %v84_v0  ;;  %v1919_v5 = vunpack.c.l.bf16 %v85_v1  ;;  %v1921_v6 = vunpack.c.h.bf16 %v85_v1  ;;  %v87_v7 = vld [vmem:[#allocation2 + $0x18] sm:$0xff]  ;;  %s1251_s29 = sshll.u32 %s1810_s4, 4  ;;  %s1252_s29 = int_to_ptr.vmem [resolvable:$true] %s1251_s29 }
  0x5d   :  { %v1451_v8 = vld [vmem:[#allocation7 + $0x4] ss:$8 sps:$4 sm:$0xff]   ;;  %v1923_v9 = vunpack.c.l.bf16 %v86_v2  ;;  %v1455_v14 = vld [vmem:[#allocation7] ss:$8 sps:$4 sm:$0xff]   ;;  %v1457_v16 = vld [vmem:[#allocation7 + $0x14] ss:$8 sps:$4 sm:$0xff]   ;;  %v1931_v17 = vunpack.c.h.bf16 %v86_v2  ;;  %v1935_v23 = vunpack.c.l.bf16 %v87_v7  ;;  %v1939_v29 = vunpack.c.h.bf16 %v87_v7  ;;  %p1774_p13 = scmp.lt.s32.totalorder %s1252_s29, %s1252_s29 }
  0x5e   :  { %v97_v10 = vmul.f32 %v1915_v3, %v1915_v3  ;;  %v98_v11 = vmul.f32 %v1917_v4, %v1917_v4  ;;  %v99_v12 = vmul.f32 %v1919_v5, %v1919_v5  ;;  %v1453_v13 = vld [vmem:[#allocation7 + $0x204] ss:$8 sps:$4 sm:$0xff]   ;;  %v1456_v15 = vld [vmem:[#allocation7 + $0x200] ss:$8 sps:$4 sm:$0xff]   ;;  %951 = vmatprep.subr.bf16.mxu1 %v1451_v8  ;;  %v100_v18 = vmul.f32 %v1921_v6, %v1921_v6  ;;  %v1459_v20 = vld [vmem:[#allocation7 + $0x214] ss:$8 sps:$4 sm:$0xff]  }
  0x5f   :  { %1033 = vmatprep.subr.bf16.mxu0 %v1453_v13  ;;  %952 = vmatpush1.bf16.msra.mxu1 %v1455_v14  ;;  %v1461_v21 = vld [vmem:[#allocation7 + $0x10] ss:$8 sps:$4 sm:$0xff]   ;;  %v101_v24 = vmul.f32 %v1923_v9, %v1923_v9  ;;  %v1463_v26 = vld [vmem:[#allocation7 + $0x24] ss:$8 sps:$4 sm:$0xff]   ;;  %v1467_v28 = vld [vmem:[#allocation7 + $0x20] ss:$8 sps:$4 sm:$0xff]   ;;  %v102_v30 = vmul.f32 %v1931_v17, %v1931_v17  ;;  %v103_v34 = vmul.f32 %v1935_v23, %v1935_v23  ;;  %v127_v13 = vlaneseq }
  0x60   :  { %v105_v19 = vadd.f32 %v98_v11, %v97_v10  ;;  %1034 = vmatpush1.bf16.msra.mxu0 %v1456_v15  ;;  %953 = vmatprep.subr.bf16.mxu1 %v1457_v16  ;;  %v1462_v22 = vld [vmem:[#allocation7 + $0x210] ss:$8 sps:$4 sm:$0xff]   ;;  %v1465_v27 = vld [vmem:[#allocation7 + $0x224] ss:$8 sps:$4 sm:$0xff]   ;;  %v1468_v32 = vld [vmem:[#allocation7 + $0x220] ss:$8 sps:$4 sm:$0xff]   ;;  %v104_v37 = vmul.f32 %v1939_v29, %v1939_v29 }
  0x61   :  { %1035 = vmatprep.subr.bf16.mxu0 %v1459_v20  ;;  %v1469_v33 = vld [vmem:[#allocation7 + $0x34] ss:$8 sps:$4 sm:$0xff]   ;;  %v1473_v39 = vld [vmem:[#allocation7 + $0x30] ss:$8 sps:$4 sm:$0xff]   ;;  %v1475_v41 = vld [vmem:[#allocation7 + $0x44] ss:$8 sps:$4 sm:$0xff]  }
  0x62   :  { %v106_v25 = vadd.f32 %v105_v19, %v99_v12  ;;  %v1471_v36 = vld [vmem:[#allocation7 + $0x234] ss:$8 sps:$4 sm:$0xff]   ;;  %v1474_v40 = vld [vmem:[#allocation7 + $0x230] ss:$8 sps:$4 sm:$0xff]   ;;  %v1477_v43 = vld [vmem:[#allocation7 + $0x244] ss:$8 sps:$4 sm:$0xff]  }
  0x63   :  { %954 = vmatpush1.bf16.msra.mxu1 %v1461_v21  ;;  %v1479_v44 = vld [vmem:[#allocation7 + $0x40] ss:$8 sps:$4 sm:$0xff]   ;;  %v1481_v47 = vld [vmem:[#allocation7 + $0x54] ss:$8 sps:$4 sm:$0xff]   ;;  %v1485_v49 = vld [vmem:[#allocation7 + $0x50] ss:$8 sps:$4 sm:$0xff]  }
  0x64   :  { %v107_v31 = vadd.f32 %v106_v25, %v100_v18  ;;  %1036 = vmatpush1.bf16.msra.mxu0 %v1462_v22  ;;  %955 = vmatprep.subr.bf16.mxu1 %v1463_v26  ;;  %v1480_v46 = vld [vmem:[#allocation7 + $0x240] ss:$8 sps:$4 sm:$0xff]   ;;  %v1483_v48 = vld [vmem:[#allocation7 + $0x254] ss:$8 sps:$4 sm:$0xff]   ;;  %v1486_v50 = vld [vmem:[#allocation7 + $0x250] ss:$8 sps:$4 sm:$0xff]  }
  0x65   :  { %1037 = vmatprep.subr.bf16.mxu0 %v1465_v27  ;;  %v1487_v51 = vld [vmem:[#allocation7 + $0x64] ss:$8 sps:$4 sm:$0xff]   ;;  %v1491_v53 = vld [vmem:[#allocation7 + $0x60] ss:$8 sps:$4 sm:$0xff]   ;;  %v1493_v55 = vld [vmem:[#allocation7 + $0x74] ss:$8 sps:$4 sm:$0xff]  }
  0x66   :  { %v108_v35 = vadd.f32 %v107_v31, %v101_v24  ;;  %v1489_v52 = vld [vmem:[#allocation7 + $0x264] ss:$8 sps:$4 sm:$0xff]   ;;  %v1492_v54 = vld [vmem:[#allocation7 + $0x260] ss:$8 sps:$4 sm:$0xff]   ;;  %v1495_v56 = vld [vmem:[#allocation7 + $0x274] ss:$8 sps:$4 sm:$0xff]  }
  0x67   :  { %956 = vmatpush1.bf16.msra.mxu1 %v1467_v28  ;;  %v1497_v57 = vld [vmem:[#allocation7 + $0x70] ss:$8 sps:$4 sm:$0xff]   ;;  %v1499_v59 = vld [vmem:[#allocation7 + $0x84] ss:$8 sps:$4 sm:$0xff]   ;;  %v1503_v61 = vld [vmem:[#allocation7 + $0x80] ss:$8 sps:$4 sm:$0xff]  }
  0x68   :  { %v109_v38 = vadd.f32 %v108_v35, %v102_v30  ;;  %1038 = vmatpush1.bf16.msra.mxu0 %v1468_v32  ;;  %957 = vmatprep.subr.bf16.mxu1 %v1469_v33  ;;  %v1498_v58 = vld [vmem:[#allocation7 + $0x270] ss:$8 sps:$4 sm:$0xff]   ;;  %v1501_v60 = vld [vmem:[#allocation7 + $0x284] ss:$8 sps:$4 sm:$0xff]   ;;  %v1504_v62 = vld [vmem:[#allocation7 + $0x280] ss:$8 sps:$4 sm:$0xff]  }
  0x69   :  { %1039 = vmatprep.subr.bf16.mxu0 %v1471_v36  ;;  %v1505_v63 = vld [vmem:[#allocation7 + $0x94] ss:$8 sps:$4 sm:$0xff]   ;;  %v1509_v1 = vld [vmem:[#allocation7 + $0x90] ss:$8 sps:$4 sm:$0xff]   ;;  %v1511_v7 = vld [vmem:[#allocation7 + $0xa4] ss:$8 sps:$4 sm:$0xff]  }
  0x6a   :  { %v110_v42 = vadd.f32 %v109_v38, %v103_v34  ;;  %v1507_v0 = vld [vmem:[#allocation7 + $0x294] ss:$8 sps:$4 sm:$0xff]   ;;  %v1510_v2 = vld [vmem:[#allocation7 + $0x290] ss:$8 sps:$4 sm:$0xff]   ;;  %v1513_v8 = vld [vmem:[#allocation7 + $0x2a4] ss:$8 sps:$4 sm:$0xff]  }
  0x6b   :  { %958 = vmatpush1.bf16.msra.mxu1 %v1473_v39  ;;  %v1515_v10 = vld [vmem:[#allocation7 + $0xa0] ss:$8 sps:$4 sm:$0xff]   ;;  %v1517_v12 = vld [vmem:[#allocation7 + $0xb4] ss:$8 sps:$4 sm:$0xff]   ;;  %v1521_v15 = vld [vmem:[#allocation7 + $0xb0] ss:$8 sps:$4 sm:$0xff]  }
  0x6c   :  { %v111_v45 = vadd.f32 %v110_v42, %v104_v37  ;;  %1040 = vmatpush1.bf16.msra.mxu0 %v1474_v40  ;;  %959 = vmatprep.subr.bf16.mxu1 %v1475_v41  ;;  %v1516_v11 = vld [vmem:[#allocation7 + $0x2a0] ss:$8 sps:$4 sm:$0xff]   ;;  %v1519_v14 = vld [vmem:[#allocation7 + $0x2b4] ss:$8 sps:$4 sm:$0xff]   ;;  %v1522_v16 = vld [vmem:[#allocation7 + $0x2b0] ss:$8 sps:$4 sm:$0xff]  }
  0x6d   :  { %1041 = vmatprep.subr.bf16.mxu0 %v1477_v43  ;;  %v1523_v18 = vld [vmem:[#allocation7 + $0xc4] ss:$8 sps:$4 sm:$0xff]   ;;  %v1947_v19 = vshrl.u32 %v127_v13, 7  ;;  %v96_v21 = vld [vmem:[#allocation5] sm:$0xff]  ;;  %v1527_v22 = vld [vmem:[#allocation7 + $0xc0] ss:$8 sps:$4 sm:$0xff]  }
  0x6e   :  { %112 = vadd.xlane.f32.xlu0 %v111_v45  ;;  %v1525_v20 = vld [vmem:[#allocation7 + $0x2c4] ss:$8 sps:$4 sm:$0xff]   ;;  %v1528_v24 = vld [vmem:[#allocation7 + $0x2c0] ss:$8 sps:$4 sm:$0xff]   ;;  %v1529_v25 = vld [vmem:[#allocation7 + $0xd4] ss:$8 sps:$4 sm:$0xff]  }
  0x6f   :  { %960 = vmatpush1.bf16.msra.mxu1 %v1479_v44  ;;  %v137_v26 = vsub.s32 2, %v1947_v19  ;;  %v1531_v27 = vld [vmem:[#allocation7 + $0x2d4] ss:$8 sps:$4 sm:$0xff]   ;;  %v153_v28 = vsub.s32 6, %v1947_v19  ;;  %v1533_v32 = vld [vmem:[#allocation7 + $0xd0] ss:$8 sps:$4 sm:$0xff]  }
  0x70   :  { %1042 = vmatpush1.bf16.msra.mxu0 %v1480_v46  ;;  %961 = vmatprep.subr.bf16.mxu1 %v1481_v47  ;;  %v1534_v33 = vld [vmem:[#allocation7 + $0x2d0] ss:$8 sps:$4 sm:$0xff]   ;;  %v1535_v34 = vld [vmem:[#allocation7 + $0xe4] ss:$8 sps:$4 sm:$0xff]   ;;  %v1539_v36 = vld [vmem:[#allocation7 + $0xe0] ss:$8 sps:$4 sm:$0xff]  }
  0x71   :  { %1043 = vmatprep.subr.bf16.mxu0 %v1483_v48  ;;  %v138_v30 = vrot.slane %v96_v21, %v137_v26  ;;  %v154_v31 = vrot.slane %v96_v21, %v153_v28  ;;  %v1537_v35 = vld [vmem:[#allocation7 + $0x2e4] ss:$8 sps:$4 sm:$0xff]   ;;  %v1540_v37 = vld [vmem:[#allocation7 + $0x2e0] ss:$8 sps:$4 sm:$0xff]   ;;  %v1541_v38 = vld [vmem:[#allocation7 + $0xf4] ss:$8 sps:$4 sm:$0xff]  }
  0x72   :  { %v1543_v39 = vld [vmem:[#allocation7 + $0x2f4] ss:$8 sps:$4 sm:$0xff]   ;;  %v1545_v40 = vld [vmem:[#allocation7 + $0xf0] ss:$8 sps:$4 sm:$0xff]   ;;  %v1549_v42 = vld [vmem:[#allocation7 + $0x104] ss:$8 sps:$4 sm:$0xff]  }
  0x73   :  { %962 = vmatpush1.bf16.msra.mxu1 %v1485_v49  ;;  %v1546_v41 = vld [vmem:[#allocation7 + $0x2f0] ss:$8 sps:$4 sm:$0xff]   ;;  %v1552_v43 = vld [vmem:[#allocation7 + $0x304] ss:$8 sps:$4 sm:$0xff]   ;;  %v133_v47 = vsub.s32 1, %v1947_v19  ;;  %v149_v48 = vsub.s32 5, %v1947_v19 }
  0x74   :  { %1044 = vmatpush1.bf16.msra.mxu0 %v1486_v50  ;;  %963 = vmatprep.subr.bf16.mxu1 %v1487_v51  ;;  %v129_v49 = vsub.s32 0, %v1947_v19  ;;  %v145_v50 = vsub.s32 4, %v1947_v19  ;;  %v141_v51 = vsub.s32 3, %v1947_v19  ;;  %v1562_v26 = vld [vmem:[#allocation7 + $0x320] ss:$8 sps:$4 sm:$0xff]   ;;  %s1769_s3 = scalar_lea.vmem %s1252_s29, 128 }
  0x75   :  { %1045 = vmatprep.subr.bf16.mxu0 %v1489_v52  ;;  %v157_v52 = vsub.s32 7, %v1947_v19  ;;  %v1570_v28 = vld [vmem:[#allocation7 + $0x334] ss:$8 sps:$4 sm:$0xff]   ;;  %p1770_p12 = scmp.ne.s32.totalorder %s1252_s29, %s1769_s3  ;;  %p1775_p0 = scmp.lt.s32.totalorder %s1769_s3, %s1769_s3 }
  0x77   :  { %964 = vmatpush1.bf16.msra.mxu1 %v1491_v53  ;;  %v134_v53 = vrot.slane %v96_v21, %v133_v47  ;;  %v1592_v47 = vld [vmem:[#allocation7 + $0x370] ss:$8 sps:$4 sm:$0xff]   ;;  %p1776_p1 = por %p1775_p0, %p1774_p13 }
  0x78   :  { %1046 = vmatpush1.bf16.msra.mxu0 %v1492_v54  ;;  %965 = vmatprep.subr.bf16.mxu1 %v1493_v55  ;;  %v150_v54 = vrot.slane %v96_v21, %v149_v48  ;;  %v130_v55 = vrot.slane %v96_v21, %v129_v49  ;;  %v1597_v48 = vld [vmem:[#allocation7 + $0x184] ss:$8 sps:$4 sm:$0xff]  }
  0x79   :  { %1047 = vmatprep.subr.bf16.mxu0 %v1495_v56  ;;  %v146_v56 = vrot.slane %v96_v21, %v145_v50  ;;  %v1600_v49 = vld [vmem:[#allocation7 + $0x384] ss:$8 sps:$4 sm:$0xff]   ;;  %v1595_v50 = vld [vmem:[#allocation7 + $0x180] ss:$8 sps:$4 sm:$0xff]   ;;  %p1777_p2 = pnand %p1776_p1, %p1770_p12 }
  0x7b   :  { %966 = vmatpush1.bf16.msra.mxu1 %v1497_v57 }
  0x7c   :  { %1048 = vmatpush1.bf16.msra.mxu0 %v1498_v58  ;;  %967 = vmatprep.subr.bf16.mxu1 %v1499_v59  ;;  %v142_v58 = vrot.slane %v96_v21, %v141_v51  ;;  %v158_v59 = vrot.slane %v96_v21, %v157_v52  ;;  %v1556_v21 = vld [vmem:[#allocation7 + $0x310] ss:$8 sps:$4 sm:$0xff]   ;;  %v1598_v51 = vld [vmem:[#allocation7 + $0x380] ss:$8 sps:$4 sm:$0xff]   ;;  %v1603_v52 = vld [vmem:[#allocation7 + $0x194] ss:$8 sps:$4 sm:$0xff]  }
  0x7d   :  { %1049 = vmatprep.subr.bf16.mxu0 %v1501_v60 }
  0x7f   :  { %968 = vmatpush1.bf16.msra.mxu1 %v1503_v61 }
  0x80   :  { %1050 = vmatpush1.bf16.msra.mxu0 %v1504_v62  ;;  %969 = vmatprep.subr.bf16.mxu1 %v1505_v63 }
  0x81   :  { %1051 = vmatprep.subr.bf16.mxu0 %v1507_v0 }
  0x83   :  { %970 = vmatpush1.bf16.msra.mxu1 %v1509_v1 }
  0x84   :  { %1052 = vmatpush1.bf16.msra.mxu0 %v1510_v2  ;;  %971 = vmatprep.subr.bf16.mxu1 %v1511_v7 }
  0x85   :  { %1053 = vmatprep.subr.bf16.mxu0 %v1513_v8 }
  0x87   :  { %972 = vmatpush1.bf16.msra.mxu1 %v1515_v10 }
  0x88   :  { %1054 = vmatpush1.bf16.msra.mxu0 %v1516_v11  ;;  %973 = vmatprep.subr.bf16.mxu1 %v1517_v12 }
  0x89   :  { %1055 = vmatprep.subr.bf16.mxu0 %v1519_v14 }
  0x8b   :  { %974 = vmatpush1.bf16.msra.mxu1 %v1521_v15 }
  0x8c   :  { %1056 = vmatpush1.bf16.msra.mxu0 %v1522_v16  ;;  %975 = vmatprep.subr.bf16.mxu1 %v1523_v18 }
  0x8d   :  { %1057 = vmatprep.subr.bf16.mxu0 %v1525_v20  ;;  %v1553_v20 = vld [vmem:[#allocation7 + $0x110] ss:$8 sps:$4 sm:$0xff]  }
  0x8f   :  { %976 = vmatpush1.bf16.msra.mxu1 %v1527_v22  ;;  %v1561_v22 = vld [vmem:[#allocation7 + $0x124] ss:$8 sps:$4 sm:$0xff]  }
  0x90   :  { %1058 = vmatpush1.bf16.msra.mxu0 %v1528_v24  ;;  %977 = vmatprep.subr.bf16.mxu1 %v1529_v25  ;;  %v1564_v24 = vld [vmem:[#allocation7 + $0x324] ss:$8 sps:$4 sm:$0xff]   ;;  %v1559_v25 = vld [vmem:[#allocation7 + $0x120] ss:$8 sps:$4 sm:$0xff]  }
  0x91   :  { %1059 = vmatprep.subr.bf16.mxu0 %v1531_v27  ;;  %v1567_v27 = vld [vmem:[#allocation7 + $0x134] ss:$8 sps:$4 sm:$0xff]  }
  0x93   :  { %978 = vmatpush1.bf16.msra.mxu1 %v1533_v32  ;;  %v1573_v32 = vld [vmem:[#allocation7 + $0x144] ss:$8 sps:$4 sm:$0xff]  }
  0x94   :  { %1060 = vmatpush1.bf16.msra.mxu0 %v1534_v33  ;;  %979 = vmatprep.subr.bf16.mxu1 %v1535_v34  ;;  %v1576_v33 = vld [vmem:[#allocation7 + $0x344] ss:$8 sps:$4 sm:$0xff]   ;;  %v1571_v34 = vld [vmem:[#allocation7 + $0x140] ss:$8 sps:$4 sm:$0xff]  }
  0x95   :  { %1061 = vmatprep.subr.bf16.mxu0 %v1537_v35  ;;  %v1574_v35 = vld [vmem:[#allocation7 + $0x340] ss:$8 sps:$4 sm:$0xff]  }
  0x97   :  { %980 = vmatpush1.bf16.msra.mxu1 %v1539_v36  ;;  %v1579_v36 = vld [vmem:[#allocation7 + $0x154] ss:$8 sps:$4 sm:$0xff]  }
  0x98   :  { %1062 = vmatpush1.bf16.msra.mxu0 %v1540_v37  ;;  %981 = vmatprep.subr.bf16.mxu1 %v1541_v38  ;;  %v1582_v37 = vld [vmem:[#allocation7 + $0x354] ss:$8 sps:$4 sm:$0xff]   ;;  %v1577_v38 = vld [vmem:[#allocation7 + $0x150] ss:$8 sps:$4 sm:$0xff]  }
  0x99   :  { %1063 = vmatprep.subr.bf16.mxu0 %v1543_v39  ;;  %v1580_v39 = vld [vmem:[#allocation7 + $0x350] ss:$8 sps:$4 sm:$0xff]  }
  0x9b   :  { %982 = vmatpush1.bf16.msra.mxu1 %v1545_v40  ;;  %v1585_v40 = vld [vmem:[#allocation7 + $0x164] ss:$8 sps:$4 sm:$0xff]  }
  0x9c   :  { %1064 = vmatpush1.bf16.msra.mxu0 %v1546_v41  ;;  %992 = vmatprep.subr.bf16.mxu1 %v1549_v42  ;;  %v1588_v41 = vld [vmem:[#allocation7 + $0x364] ss:$8 sps:$4 sm:$0xff]   ;;  %v1583_v42 = vld [vmem:[#allocation7 + $0x160] ss:$8 sps:$4 sm:$0xff]  }
  0x9d   :  { %1074 = vmatprep.subr.bf16.mxu0 %v1552_v43  ;;  %v1586_v43 = vld [vmem:[#allocation7 + $0x360] ss:$8 sps:$4 sm:$0xff]  }
  0xfb   :  { %v113_v44 = vpop.xlane.xlu0 %112 }
  0xfc   :  { %v115_v45 = vmul.f32 0.0009765625, %v113_v44  ;;  %v1591_v44 = vld [vmem:[#allocation7 + $0x174] ss:$8 sps:$4 sm:$0xff]  }
  0xfe   :  { %v116_v46 = vadd.f32 1e-06, %v115_v45  ;;  %v1594_v45 = vld [vmem:[#allocation7 + $0x374] ss:$8 sps:$4 sm:$0xff]  }
 0x100   :  { %1651 = vrsqrt.f32 %v116_v46  ;;  %v1589_v46 = vld [vmem:[#allocation7 + $0x170] ss:$8 sps:$4 sm:$0xff]  }
 0x10a   :  { %v1652_v57 = vpop.eup %1651 }
 0x10b   :  { %v119_v60 = vmul.f32 %v1652_v57, %v1917_v4  ;;  %v123_v61 = vmul.f32 %v1652_v57, %v1931_v17  ;;  %v118_v62 = vmul.f32 %v1652_v57, %v1915_v3  ;;  %v122_v63 = vmul.f32 %v1652_v57, %v1923_v9  ;;  %v1547_v9 = vld [vmem:[#allocation7 + $0x100] ss:$8 sps:$4 sm:$0xff]  }
 0x10c   :  { %v121_v0 = vmul.f32 %v1652_v57, %v1921_v6  ;;  %v125_v1 = vmul.f32 %v1652_v57, %v1939_v29  ;;  %v120_v2 = vmul.f32 %v1652_v57, %v1919_v5  ;;  %v124_v7 = vmul.f32 %v1652_v57, %v1935_v23  ;;  %v1550_v6 = vld [vmem:[#allocation7 + $0x300] ss:$8 sps:$4 sm:$0xff]   ;;  %v1555_v5 = vld [vmem:[#allocation7 + $0x114] ss:$8 sps:$4 sm:$0xff]   ;;  %v1612_v57 = vld [vmem:[#allocation7 + $0x3a4] ss:$8 sps:$4 sm:$0xff]  }
 0x10d   :  { %v168_v8 = vmul.f32 %v134_v53, %v119_v60  ;;  %v172_v10 = vmul.f32 %v150_v54, %v123_v61  ;;  %v167_v11 = vmul.f32 %v130_v55, %v118_v62  ;;  %v171_v12 = vmul.f32 %v146_v56, %v122_v63  ;;  %v1558_v23 = vld [vmem:[#allocation7 + $0x314] ss:$8 sps:$4 sm:$0xff]   ;;  %v1601_v54 = vld [vmem:[#allocation7 + $0x190] ss:$8 sps:$4 sm:$0xff]   ;;  %v1609_v56 = vld [vmem:[#allocation7 + $0x1a4] ss:$8 sps:$4 sm:$0xff]  }
 0x10e   :  { %v170_v13 = vmul.f32 %v142_v58, %v121_v0  ;;  %v174_v4 = vmul.f32 %v158_v59, %v125_v1  ;;  %v1965_v14 = vmul.f32 %v138_v30, %v120_v2  ;;  %v1967_v17 = vmul.f32 %v154_v31, %v124_v7  ;;  %v1565_v30 = vld [vmem:[#allocation7 + $0x130] ss:$8 sps:$4 sm:$0xff]   ;;  %v1606_v53 = vld [vmem:[#allocation7 + $0x394] ss:$8 sps:$4 sm:$0xff]   ;;  %v1607_v58 = vld [vmem:[#allocation7 + $0x1a0] ss:$8 sps:$4 sm:$0xff]  }
 0x10f   :  { %v176_v3 = vpack.c.bf16 %v168_v8, %v168_v8  ;;  %v180_v15 = vpack.c.bf16 %v172_v10, %v172_v10  ;;  %v175_v16 = vpack.c.bf16 %v167_v11, %v167_v11  ;;  %v179_v29 = vpack.c.bf16 %v171_v12, %v171_v12  ;;  %v1568_v31 = vld [vmem:[#allocation7 + $0x330] ss:$8 sps:$4 sm:$0xff]   ;;  %v1610_v59 = vld [vmem:[#allocation7 + $0x3a0] ss:$8 sps:$4 sm:$0xff]   ;;  %v1615_v60 = vld [vmem:[#allocation7 + $0x1b4] ss:$8 sps:$4 sm:$0xff]  }
 0x110   :  { %v178_v18 = vpack.c.bf16 %v170_v13, %v170_v13  ;;  %v182_v19 = vpack.c.bf16 %v174_v4, %v174_v4  ;;  %v1604_v55 = vld [vmem:[#allocation7 + $0x390] ss:$8 sps:$4 sm:$0xff]   ;;  %v1618_v61 = vld [vmem:[#allocation7 + $0x3b4] ss:$8 sps:$4 sm:$0xff]   ;;  %v1621_v0 = vld [vmem:[#allocation7 + $0x1c4] ss:$8 sps:$4 sm:$0xff]  }
 0x111   :  { %983 = vmatprep.mubr.bf16.mxu1 %v176_v3  ;;  %1065 = vmatprep.mubr.bf16.mxu0 %v180_v15  ;;  %v1613_v62 = vld [vmem:[#allocation7 + $0x1b0] ss:$8 sps:$4 sm:$0xff]   ;;  %v1624_v1 = vld [vmem:[#allocation7 + $0x3c4] ss:$8 sps:$4 sm:$0xff]   ;;  %v1619_v2 = vld [vmem:[#allocation7 + $0x1c0] ss:$8 sps:$4 sm:$0xff]  }
 0x112   :  { %984 = vmatmul.mubr.bf16.vlgmr.msra.gmra.mrb[0].mxu1 %v175_v16  ;;  %1066 = vmatmul.mubr.bf16.vlgmr.msra.gmra.mrb[0].mxu0 %v179_v29  ;;  %v1616_v63 = vld [vmem:[#allocation7 + $0x3b0] ss:$8 sps:$4 sm:$0xff]   ;;  %v1622_v7 = vld [vmem:[#allocation7 + $0x3c0] ss:$8 sps:$4 sm:$0xff]   ;;  %v1627_v8 = vld [vmem:[#allocation7 + $0x1d4] ss:$8 sps:$4 sm:$0xff]  }
 0x113   :  { %993 = vmatpush1.bf16.msra.mxu1 %v1547_v9  ;;  %1075 = vmatpush1.bf16.msra.mxu0 %v1550_v6  ;;  %v1630_v10 = vld [vmem:[#allocation7 + $0x3d4] ss:$8 sps:$4 sm:$0xff]   ;;  %v1625_v11 = vld [vmem:[#allocation7 + $0x1d0] ss:$8 sps:$4 sm:$0xff]   ;;  %v1633_v13 = vld [vmem:[#allocation7 + $0x1e4] ss:$8 sps:$4 sm:$0xff]  }
 0x114   :  { %1024 = vmatprep.mubr.bf16.mxu1 %v178_v18  ;;  %1106 = vmatprep.mubr.bf16.mxu0 %v182_v19  ;;  %v1628_v12 = vld [vmem:[#allocation7 + $0x3d0] ss:$8 sps:$4 sm:$0xff]   ;;  %v1636_v4 = vld [vmem:[#allocation7 + $0x3e4] ss:$8 sps:$4 sm:$0xff]   ;;  %v1631_v3 = vld [vmem:[#allocation7 + $0x1e0] ss:$8 sps:$4 sm:$0xff]  }
 0x115   :  { %994 = vmatprep.subr.bf16.mxu1 %v1555_v5  ;;  %1076 = vmatprep.subr.bf16.mxu0 %v1558_v23  ;;  %v1634_v9 = vld [vmem:[#allocation7 + $0x3e0] ss:$8 sps:$4 sm:$0xff]   ;;  %v1639_v15 = vld [vmem:[#allocation7 + $0x1f4] ss:$8 sps:$4 sm:$0xff]   ;;  %v1637_v16 = vld [vmem:[#allocation7 + $0x1f0] ss:$8 sps:$4 sm:$0xff]   ;;  %v177_v5 = vpack.c.bf16 %v1965_v14, %v1965_v14  ;;  %v181_v23 = vpack.c.bf16 %v1967_v17, %v1967_v17 }
 0x116   :  { %v1642_v6 = vld [vmem:[#allocation7 + $0x3f4] ss:$8 sps:$4 sm:$0xff]   ;;  %v1640_v29 = vld [vmem:[#allocation7 + $0x3f0] ss:$8 sps:$4 sm:$0xff]   ;;  %v1643_v18 = vld [vmem:[#allocation8] sm:$0xff]   ;;  %v1808_v19 = vmov 0.0  }
 0x117   :  { %995 = vmatpush1.bf16.msra.mxu1 %v1553_v20  ;;  %1077 = vmatpush1.bf16.msra.mxu0 %v1556_v21  ;;  %v1644_v20 = vld [vmem:[#allocation8 + $0x8] sm:$0xff]   ;;  %v1645_v21 = vld [vmem:[#allocation8 + $0x10] sm:$0xff]   ;;  %v1647_v14 = vld [vmem:[#allocation8 + $0x20] sm:$0xff]  }
 0x118   :  { %996 = vmatprep.subr.bf16.mxu1 %v1561_v22  ;;  %1078 = vmatprep.subr.bf16.mxu0 %v1564_v24  ;;  %v1646_v22 = vld [vmem:[#allocation8 + $0x18] sm:$0xff]   ;;  %v1648_v17 = vld [vmem:[#allocation8 + $0x28] sm:$0xff]   ;;  %v1649_v24 = vld [vmem:[#allocation8 + $0x30] sm:$0xff]  }
 0x11b   :  { %997 = vmatpush1.bf16.msra.mxu1 %v1559_v25  ;;  %1079 = vmatpush1.bf16.msra.mxu0 %v1562_v26  ;;  %v1650_v25 = vld [vmem:[#allocation8 + $0x38] sm:$0xff]  }
 0x11c   :  { %998 = vmatprep.subr.bf16.mxu1 %v1567_v27  ;;  %1080 = vmatprep.subr.bf16.mxu0 %v1570_v28 }
 0x11f   :  { %999 = vmatpush1.bf16.msra.mxu1 %v1565_v30  ;;  %1081 = vmatpush1.bf16.msra.mxu0 %v1568_v31 }
 0x120   :  { %1000 = vmatprep.subr.bf16.mxu1 %v1573_v32  ;;  %1082 = vmatprep.subr.bf16.mxu0 %v1576_v33 }
 0x123   :  { %1001 = vmatpush1.bf16.msra.mxu1 %v1571_v34  ;;  %1083 = vmatpush1.bf16.msra.mxu0 %v1574_v35 }
 0x124   :  { %1002 = vmatprep.subr.bf16.mxu1 %v1579_v36  ;;  %1084 = vmatprep.subr.bf16.mxu0 %v1582_v37 }
 0x127   :  { %1003 = vmatpush1.bf16.msra.mxu1 %v1577_v38  ;;  %1085 = vmatpush1.bf16.msra.mxu0 %v1580_v39 }
 0x128   :  { %1004 = vmatprep.subr.bf16.mxu1 %v1585_v40  ;;  %1086 = vmatprep.subr.bf16.mxu0 %v1588_v41 }
 0x12b   :  { %1005 = vmatpush1.bf16.msra.mxu1 %v1583_v42  ;;  %1087 = vmatpush1.bf16.msra.mxu0 %v1586_v43 }
 0x12c   :  { %1006 = vmatprep.subr.bf16.mxu1 %v1591_v44  ;;  %1088 = vmatprep.subr.bf16.mxu0 %v1594_v45 }
 0x12f   :  { %1007 = vmatpush1.bf16.msra.mxu1 %v1589_v46  ;;  %1089 = vmatpush1.bf16.msra.mxu0 %v1592_v47 }
 0x130   :  { %1008 = vmatprep.subr.bf16.mxu1 %v1597_v48  ;;  %1090 = vmatprep.subr.bf16.mxu0 %v1600_v49 }
 0x133   :  { %1009 = vmatpush1.bf16.msra.mxu1 %v1595_v50  ;;  %1091 = vmatpush1.bf16.msra.mxu0 %v1598_v51 }
 0x134   :  { %1010 = vmatprep.subr.bf16.mxu1 %v1603_v52  ;;  %1092 = vmatprep.subr.bf16.mxu0 %v1606_v53  ;;  %v1399_v53 = vld [vmem:[#allocation10] ss:$0 sm:$0xff] }
 0x137   :  { %1011 = vmatpush1.bf16.msra.mxu1 %v1601_v54  ;;  %1093 = vmatpush1.bf16.msra.mxu0 %v1604_v55 }
 0x138   :  { %1012 = vmatprep.subr.bf16.mxu1 %v1609_v56  ;;  %1094 = vmatprep.subr.bf16.mxu0 %v1612_v57 }
 0x13b   :  { %1013 = vmatpush1.bf16.msra.mxu1 %v1607_v58  ;;  %1095 = vmatpush1.bf16.msra.mxu0 %v1610_v59 }
 0x13c   :  { %1014 = vmatprep.subr.bf16.mxu1 %v1615_v60  ;;  %1096 = vmatprep.subr.bf16.mxu0 %v1618_v61 }
 0x13f   :  { %1015 = vmatpush1.bf16.msra.mxu1 %v1613_v62  ;;  %1097 = vmatpush1.bf16.msra.mxu0 %v1616_v63 }
 0x140   :  { %1016 = vmatprep.subr.bf16.mxu1 %v1621_v0  ;;  %1098 = vmatprep.subr.bf16.mxu0 %v1624_v1 }
 0x143   :  { %1017 = vmatpush1.bf16.msra.mxu1 %v1619_v2  ;;  %1099 = vmatpush1.bf16.msra.mxu0 %v1622_v7 }
 0x144   :  { %1018 = vmatprep.subr.bf16.mxu1 %v1627_v8  ;;  %1100 = vmatprep.subr.bf16.mxu0 %v1630_v10 }
 0x147   :  { %1019 = vmatpush1.bf16.msra.mxu1 %v1625_v11  ;;  %1101 = vmatpush1.bf16.msra.mxu0 %v1628_v12 }
 0x148   :  { %1020 = vmatprep.subr.bf16.mxu1 %v1633_v13  ;;  %1102 = vmatprep.subr.bf16.mxu0 %v1636_v4 }
 0x14b   :  { %1021 = vmatpush1.bf16.msra.mxu1 %v1631_v3  ;;  %1103 = vmatpush1.bf16.msra.mxu0 %v1634_v9 }
 0x14c   :  { %1022 = vmatprep.subr.bf16.mxu1 %v1639_v15  ;;  %1104 = vmatprep.subr.bf16.mxu0 %v1642_v6 }
 0x14f   :  { %1023 = vmatpush1.bf16.msra.mxu1 %v1637_v16  ;;  %1105 = vmatpush1.bf16.msra.mxu0 %v1640_v29 }
 0x150   :  { %1409 = vmatprep.subr.bf16.mxu1 %v1808_v19 }
 0x152   :  { %1025 = vmatmul.mubr.bf16.vlgmr.msra.gmra.mrb[0].mxu1 %v177_v5  ;;  %1107 = vmatmul.mubr.bf16.vlgmr.msra.gmra.mrb[0].mxu0 %v181_v23 }
 0x153   :  { %1410 = vmatpush3.bf16.msra.mxu1 %v1643_v18  ;;  %1425 = vmatprep.mubr.msk.bf16.mxu1 %vm1809_vm0, %v1808_v19 }
 0x154   :  { %1411 = vmatprep.subr.bf16.mxu1 %v1808_v19 }
 0x157   :  { %1412 = vmatpush3.bf16.msra.mxu1 %v1644_v20 }
 0x158   :  { %1413 = vmatprep.subr.bf16.mxu1 %v1808_v19 }
 0x15b   :  { %1414 = vmatpush3.bf16.msra.mxu1 %v1645_v21 }
 0x15c   :  { %1415 = vmatprep.subr.bf16.mxu1 %v1808_v19 }
 0x15f   :  { %1416 = vmatpush3.bf16.msra.mxu1 %v1646_v22 }
 0x160   :  { %1417 = vmatprep.subr.bf16.mxu1 %v1808_v19 }
 0x163   :  { %1418 = vmatpush3.bf16.msra.mxu1 %v1647_v14 }
 0x164   :  { %1419 = vmatprep.subr.bf16.mxu1 %v1808_v19 }
 0x167   :  { %1420 = vmatpush3.bf16.msra.mxu1 %v1648_v17 }
 0x168   :  { %1421 = vmatprep.subr.bf16.mxu1 %v1808_v19 }
 0x16b   :  { %1422 = vmatpush3.bf16.msra.mxu1 %v1649_v24 }
 0x16c   :  { %1423 = vmatprep.subr.bf16.mxu1 %v1808_v19 }
 0x16f   :  { %1424 = vmatpush3.bf16.msra.mxu1 %v1650_v25 }
 0x225   :  { %v1026_v26 = vpop.f32.mrb[0].mxu1  ;;  %v1108_v27 = vpop.f32.mrb[0].mxu0 }
 0x226   :  { %v1429_v28 = vadd.f32 %v1108_v27, %v1026_v26  ;;  %v1028_v30 = vpop.f32.mrb[1].mxu1  ;;  %v1110_v31 = vpop.f32.mrb[1].mxu0 }
 0x227   :  { %v1430_v32 = vadd.f32 %v1110_v31, %v1028_v30  ;;  %v1030_v33 = vpop.f32.mrb[2].mxu1  ;;  %v1112_v34 = vpop.f32.mrb[2].mxu0 }
 0x228   :  { %v1031_v35 = vpop.f32.mrb[3].mxu1  ;;  %v1113_v36 = vpop.f32.mrb[3].mxu0 }
 0x229   :  { %v1390_v37 = vmul.f32 -1.442695, %v1430_v32 }
 0x22b   :  { %1653 = vpow2.f32 %v1390_v37 }
 0x235   :  { %v1654_v38 = vpop.eup %1653 }
 0x236   :  { %v1118_v39 = vadd.f32 1.0, %v1654_v38 }
 0x238   :  { %1655 = vrcp.f32 %v1118_v39 }
 0x242   :  { %v1656_v40 = vpop.eup %1655 }
 0x243   :  { %v1121_v41 = vmul.f32 %v1656_v40, %v1430_v32 }
 0x245   :  { %v1122_v42 = vmul.f32 %v1429_v28, %v1121_v41 }
 0x247   :  { %v1123_v43 = vpack.c.bf16 %v1122_v42, %v1122_v42 }
 0x249   :  { %1426 = vmatmul.mubr.bf16.vlgmr.msra.gmra.mrb[4].mxu1 %v1123_v43 }
 0x31c   :  { %v1222_v44 = vpop.f32.mrb[4].mxu1 }
 0x31d   :  { %v1427_v45 = vpop.f32.mrb[5].mxu1  ;;  %v1229_v46 = vmul.f32 %v1222_v44, %v1222_v44 }
 0x31e   :  { %v1225_v47 = vpop.f32.mrb[6].mxu1 }
 0x31f   :  { %1230 = vadd.xlane.f32.xlu0 %v1229_v46  ;;  %v1428_v48 = vpop.f32.mrb[7].mxu1 }
 0x3ac   :  { %v1231_v49 = vpop.xlane.xlu0 %1230 }
 0x3ad   :  { %v1233_v50 = vmul.f32 0.0078125, %v1231_v49 }
 0x3af   :  { %v1234_v51 = vadd.f32 1e-06, %v1233_v50 }
 0x3b1   :  { %1657 = vrsqrt.f32 %v1234_v51 }
 0x3bb   :  { %v1658_v52 = vpop.eup %1657 }
 0x3bc   :  { %v1236_v54 = vmul.f32 %v1658_v52, %v1222_v44 }
 0x3be   :  { %v1243_v55 = vmul.f32 %v1399_v53, %v1236_v54 }
 0x3c0   :  { %1244 = vst [vmem:[#allocation11] sm:$0xff] %v1243_v55 }
 0x3c1   :  { %1780 = shalt.err (!%p1777_p2)
}
 0x3c2   :  { %s1781_s6 = scalar_lea.hbm %s1990_s5, 128 }
 0x3c3   :  { %p1782_p3 = scmp.ne.s32.totalorder %s1990_s5, %s1781_s6  ;;  %p1785_p4 = scmp.lt.u32.totalorder %s1781_s6, %s1990_s5 }
 0x3c5   :  { %p1787_p5 = pnand %p1785_p4, %p1782_p3 }
 0x3c7   :  { %1790 = shalt.err (!%p1787_p5)
}
 0x3c8   :  { %1254 = dma.vmem_to_hbm [thread:$0]  %s1252_s29, 128, %s1990_s5, [#allocation4]  }
 0x3c9   :  { %1797 = dma.done.wait [#allocation4], 128  }
 0x3ca   :  { %1798 = vsyncadd [#allocation4], 4294967168 }
 0x3cb   :  { %1258 = vsyncpa [#allocation3], 1 }
 0x3cc   :  { %1259 = vsyncpa [#allocation6], 1 }
 0x3cd   :  { %1260 = vsyncpa [#allocation9], 1 }
 0x3ce   :  { %1261 = vsyncpa [#allocation4], 1 }

// kernel: forward.5
= control target key start
LH: loop header
LB: loop body
LE: loop exit
PB: predicated region body
PF: predicated region fallthrough
CT: control target
= control target key end

     0   :  { %s5282_s0 = inlined_call_operand.hbm [shape: bf16[2,32,128], index: 0, kind: input, shape index: {}]   ;;  %s5283_s1 = inlined_call_operand.hbm [shape: f32[1,128], index: 1, kind: input, shape index: {}, may-alias: {1,15}]   ;;  %s5284_s2 = inlined_call_operand.hbm [shape: f32[1,128], index: 2, kind: input, shape index: {}, may-alias: {2,16}]   ;;  %s5285_s3 = inlined_call_operand.hbm [shape: bf16[128,128], index: 3, kind: input, shape index: {}]   ;;  %s5286_s4 = inlined_call_operand.hbm [shape: f32[1,128], index: 4, kind: input, shape index: {}]   ;;  %s5287_s5 = inlined_call_operand.hbm [shape: bf16[128,256], index: 5, kind: input, shape index: {}]   ;;  %s5288_s6 = inlined_call_operand.hbm [shape: f32[1,128], index: 6, kind: input, shape index: {}]   ;;  %s5289_s7 = inlined_call_operand.hbm [shape: bf16[128,128], index: 7, kind: input, shape index: {}]   ;;  %s5290_s8 = inlined_call_operand.hbm [shape: f32[1,128], index: 8, kind: input, shape index: {}]   ;;  %s5291_s9 = inlined_call_operand.hbm [shape: f32[1,128], index: 9, kind: input, shape index: {}]   ;;  %s5292_s10 = inlined_call_operand.hbm [shape: f32[1,128], index: 10, kind: input, shape index: {}]   ;;  %s5293_s11 = inlined_call_operand.hbm [shape: bf16[128,256], index: 11, kind: input, shape index: {}]   ;;  %s5294_s12 = inlined_call_operand.hbm [shape: f32[1,256], index: 12, kind: input, shape index: {}]   ;;  %s5295_s13 = inlined_call_operand.hbm [shape: bf16[256,128], index: 13, kind: input, shape index: {}]   ;;  %s5296_s14 = inlined_call_operand.hbm [shape: f32[1,128], index: 14, kind: input, shape index: {}]   ;;  %s5297_s15 = inlined_call_operand.hbm [shape: f32[1,128], index: 15, kind: input, shape index: {}, may-alias: {1,15}]   ;;  %s5298_s16 = inlined_call_operand.hbm [shape: f32[1,128], index: 16, kind: input, shape index: {}, may-alias: {2,16}]   ;;  %s5299_s17 = inlined_call_operand.hbm [shape: bf16[2,32,128], index: 17, kind: output, shape index: {}]  }
   0x1   :  { %5325 = sst [smem:[#allocation49_spill]] %s5282_s0 }
   0x2   :  { %5326 = sst [smem:[#allocation50_spill]] %s5283_s1 }
   0x3   :  { %5327 = sst [smem:[#allocation51_spill]] %s5284_s2 }
   0x4   :  { %5328 = sst [smem:[#allocation52_spill]] %s5285_s3 }
   0x5   :  { %5329 = sst [smem:[#allocation53_spill]] %s5286_s4 }
   0x6   :  { %5330 = sst [smem:[#allocation54_spill]] %s5287_s5 }
   0x7   :  { %5331 = sst [smem:[#allocation55_spill]] %s5298_s16 }
   0x8   :  { %5332 = sst [smem:[#allocation56_spill]] %s5299_s17 }
   0x9   :  { %22 = vsyncpa [#allocation4], 0 }
   0xa   :  { %24 = vsyncpa [#allocation4 + $0x1], 0 }
   0xb   :  { %25 = vsyncpa [#allocation7], 0 }
   0xc   :  { %26 = vsyncpa [#allocation10], 0 }
   0xd   :  { %27 = vsyncpa [#allocation13], 0 }
   0xe   :  { %28 = vsyncpa [#allocation16], 0 }
   0xf   :  { %29 = vsyncpa [#allocation19], 0 }
  0x10   :  { %30 = vsyncpa [#allocation22], 0 }
  0x11   :  { %31 = vsyncpa [#allocation25], 0 }
  0x12   :  { %32 = vsyncpa [#allocation28], 0 }
  0x13   :  { %33 = vsyncpa [#allocation5], 0 }
  0x14   :  { %35 = vsyncpa [#allocation5 + $0x1], 0  ;;  %s4349_s24 = smov 0   ;;  %s4351_s25 = smov 0  }
  0x15   :  { %s4353_s26 = smov 0   ;;  %s4355_s27 = smov 0  }
  0x16   :  { %s4357_s28 = smov 0   ;;  %s4359_s29 = smov 0  }
  0x17 LB: > { %5333 = sst [smem:[#allocation41_spill]] %s4210_s24  ;;  %s5302_s0 = sadd.s32 4294967295, %s4230_s29   ;;  %s4230_s29 = sphi %s4359_s29, %s41_s29   ;;  %s4226_s28 = sphi %s4357_s28, %s5384_s28   ;;  %s4222_s27 = sphi %s4355_s27, %s5382_s27   ;;  %s4218_s26 = sphi %s4353_s26, %s5383_s26   ;;  %s4214_s25 = sphi %s4351_s25, %s5381_s25   ;;  %s4210_s24 = sphi %s4349_s24, %s5380_s24  }
  0x18   : > { %5334 = sst [smem:[#allocation42_spill]] %s4214_s25  ;;  %p2858_p0 = scmp.ge.s32.totalorder %s4230_s29, 1 }
  0x19   : > { %5335 = sst [smem:[#allocation43_spill]] %s4218_s26  ;;  %p4383_p1 = scmp.eq.s32.totalorder %s5302_s0, 0 }
  0x1a   : > { %5336 = sst [smem:[#allocation44_spill]] %s4222_s27  ;;  %p448_p2 = scmp.lt.s32.totalorder %s4230_s29, 3 }
  0x1b   : > { %5337 = sst [smem:[#allocation45_spill]] %s4226_s28  ;;  %s4232_s19 = smov [#allocation6]  }
  0x1c   : > { %5338 = sst [smem:[#allocation46_spill]] %s4230_s29  ;;  %p4388_p3 = pnand %p2858_p0, %p448_p2 }
  0x1d   : > { %s5339_s30 = scalar_select %p4383_p1, 1, 0 }
  0x1e   : > { %s5341_s18 = scalar_select %p4388_p3, 1, 0 }
  0x1f   : > { %5340 = sst [smem:[#allocation47_spill]] %s5339_s30  ;;  %s461_s1 = sshll.u32 %s4232_s19, 4  ;;  %s462_s1 = int_to_ptr.vmem [resolvable:$true] %s461_s1 }
  0x20   : > { %5342 = sst [smem:[#allocation48_spill]] %s5341_s18  ;;  %p3290_p5 = pneg %p4388_p3 }
  0x21   : > { %s4233_s20 = smov [#allocation9]   ;;  %s4234_s23 = smov [#allocation12]  }
  0x22   : > { %s482_s21 = sshll.u32 %s4233_s20, 4  ;;  %p4397_p6 = pnand %p3290_p5, %p4383_p1  ;;  %s4401_s21 = int_to_ptr.vmem [resolvable:$true] %s482_s21 }
  0x23   : > { %s4403_s0 = sshll.u32 %s4234_s23, 4  ;;  %s5344_s19 = sld [smem:[#allocation50_spill]]  ;;  %s507_s0 = int_to_ptr.vmem [resolvable:$true] %s4403_s0 }
  0x24   : > { %p4413_p8 = pneg %p4397_p6 }
  0x29   : > { %s3638_s24 = scalar_lea.hbm %s5344_s19, 16 }
  0x2a   : > { %p3639_p7 = scmp.ne.s32.totalorder %s5344_s19, %s3638_s24  ;;  %p3645_p11 = scmp.lt.u32.totalorder %s3638_s24, %s5344_s19 }
  0x2c   : > { %p3641_p9 = pnand %p4413_p8, %p3639_p7 }
  0x2e   : > { %p3642_p10 = pneg %p3641_p9 }
  0x30   : > { %p3647_p12 = pnand %p3645_p11, %p3642_p10 }
  0x32   : > { %3650 = shalt.err (!%p3647_p12)
}
  0x33   : > { %s3651_s17 = scalar_lea.vmem %s462_s1, 16  ;;  %s3658_s25 = scalar_lea.vmem %s462_s1, 32 }
  0x34   : > { %p3652_p13 = scmp.ne.s32.totalorder %s462_s1, %s3651_s17  ;;  %p3659_p5 = scmp.lt.s32.totalorder %s462_s1, %s462_s1 }
  0x35   : > { %p3660_p4 = scmp.lt.s32.totalorder %s3658_s25, %s3651_s17 }
  0x36   : > { %p3654_p0 = pnand %p3652_p13, %p4413_p8 }
  0x37   : > { %p3661_p3 = por %p3660_p4, %p3659_p5 }
  0x38   : > { %p3655_p2 = pneg %p3654_p0 }
  0x3a   : > { %p3662_p1 = pnand %p3661_p3, %p3655_p2 }
  0x3c   : > { %3665 = shalt.err (!%p3662_p1)
}
  0x3d   : > { %3293 = dma.hbm_to_vmem [thread:$0]  (!%p4397_p6), %s5344_s19, 16, %s462_s1, [#allocation7]  }
  0x3e   : > { %s5346_s3 = sld [smem:[#allocation52_spill]] }
  0x44   : > { %s3666_s23 = scalar_lea.hbm %s5346_s3, 1024 }
  0x45   : > { %p3667_p7 = scmp.ne.s32.totalorder %s5346_s3, %s3666_s23  ;;  %p3673_p1 = scmp.lt.u32.totalorder %s3666_s23, %s5346_s3 }
  0x47   : > { %p3669_p9 = pnand %p3667_p7, %p4413_p8 }
  0x49   : > { %p3670_p4 = pneg %p3669_p9 }
  0x4b   : > { %p3675_p3 = pnand %p3673_p1, %p3670_p4 }
  0x4d   : > { %3678 = shalt.err (!%p3675_p3)
}
  0x4e   : > { %s3679_s1 = scalar_lea.vmem %s4401_s21, 1024  ;;  %p3687_p13 = scmp.lt.s32.totalorder %s4401_s21, %s4401_s21 }
  0x4f   : > { %p3680_p10 = scmp.ne.s32.totalorder %s4401_s21, %s3679_s1  ;;  %p3688_p0 = scmp.lt.s32.totalorder %s3679_s1, %s3679_s1 }
  0x51   : > { %p3682_p11 = pnand %p3680_p10, %p4413_p8  ;;  %p3689_p2 = por %p3688_p0, %p3687_p13 }
  0x53   : > { %p3683_p12 = pneg %p3682_p11 }
  0x55   : > { %p3690_p5 = pnand %p3689_p2, %p3683_p12 }
  0x57   : > { %3693 = shalt.err (!%p3690_p5)
}
  0x58   : > { %s5314_s26 = smov 64   ;;  %s5316_s28 = smov 4  }
  0x59   : > { %3299 = dma.hbm_to_vmem [thread:$0]  (!%p4397_p6), %s5346_s3, 1024, %s4401_s21, [#allocation10], %s5314_s26, %s5314_s26, %s5316_s28  }
  0x5a   : > { %s5347_s5 = sld [smem:[#allocation54_spill]] }
  0x60   : > { %s3694_s23 = scalar_lea.hbm %s5347_s5, 2048 }
  0x61   : > { %p3695_p7 = scmp.ne.s32.totalorder %s5347_s5, %s3694_s23  ;;  %p3701_p1 = scmp.lt.u32.totalorder %s3694_s23, %s5347_s5 }
  0x63   : > { %p3697_p9 = pnand %p3695_p7, %p4413_p8 }
  0x65   : > { %p3698_p4 = pneg %p3697_p9 }
  0x67   : > { %p3703_p3 = pnand %p3701_p1, %p3698_p4 }
  0x69   : > { %3706 = shalt.err (!%p3703_p3)
}
  0x6a   : > { %s3707_s27 = scalar_lea.vmem %s507_s0, 2048  ;;  %p3715_p13 = scmp.lt.s32.totalorder %s507_s0, %s507_s0 }
  0x6b   : > { %p3708_p10 = scmp.ne.s32.totalorder %s507_s0, %s3707_s27  ;;  %p3716_p0 = scmp.lt.s32.totalorder %s3707_s27, %s3707_s27 }
  0x6d   : > { %p3710_p11 = pnand %p3708_p10, %p4413_p8  ;;  %p3717_p2 = por %p3716_p0, %p3715_p13 }
  0x6f   : > { %p3711_p12 = pneg %p3710_p11 }
  0x71   : > { %p3718_p5 = pnand %p3717_p2, %p3711_p12 }
  0x73   : > { %3721 = shalt.err (!%p3718_p5)
}
  0x74   : > { %s5322_s21 = smov 128   ;;  %s4238_s18 = smov 8  }
  0x75   : > { %3305 = dma.hbm_to_vmem [thread:$0]  (!%p4397_p6), %s5347_s5, 2048, %s507_s0, [#allocation13], %s5322_s21, %s5322_s21, %s4238_s18  }
  0x76   : > { %s4239_s30 = smov [#allocation15]   ;;  %s4240_s17 = smov [#allocation18]  }
  0x77   : > { %s530_s23 = sshll.u32 %s4239_s30, 4  ;;  %s555_s25 = sshll.u32 %s4240_s17, 4  ;;  %s531_s23 = int_to_ptr.vmem [resolvable:$true] %s530_s23  ;;  %s556_s25 = int_to_ptr.vmem [resolvable:$true] %s555_s25 }
  0x78   : > { %s3722_s26 = scalar_lea.hbm %s5289_s7, 1024 }
  0x79   : > { %p3723_p7 = scmp.ne.s32.totalorder %s5289_s7, %s3722_s26  ;;  %p3729_p1 = scmp.lt.u32.totalorder %s3722_s26, %s5289_s7 }
  0x7b   : > { %p3725_p9 = pnand %p3723_p7, %p4413_p8 }
  0x7d   : > { %p3726_p4 = pneg %p3725_p9 }
  0x7f   : > { %p3731_p3 = pnand %p3729_p1, %p3726_p4 }
  0x81   : > { %3734 = shalt.err (!%p3731_p3)
}
  0x82   : > { %s3735_s0 = scalar_lea.vmem %s531_s23, 1024  ;;  %p3743_p13 = scmp.lt.s32.totalorder %s531_s23, %s531_s23 }
  0x83   : > { %p3736_p10 = scmp.ne.s32.totalorder %s531_s23, %s3735_s0  ;;  %p3744_p0 = scmp.lt.s32.totalorder %s3735_s0, %s3735_s0 }
  0x85   : > { %p3738_p11 = pnand %p3736_p10, %p4413_p8  ;;  %p3745_p2 = por %p3744_p0, %p3743_p13 }
  0x87   : > { %p3739_p12 = pneg %p3738_p11 }
  0x89   : > { %p3746_p5 = pnand %p3745_p2, %p3739_p12 }
  0x8b   : > { %3749 = shalt.err (!%p3746_p5)
}
  0x8c   : > { %s5348_s3 = smov 4   ;;  %s5349_s28 = smov 64  }
  0x8d   : > { %3311 = dma.hbm_to_vmem [thread:$0]  (!%p4397_p6), %s5289_s7, 1024, %s531_s23, [#allocation16], %s5349_s28, %s5349_s28, %s5348_s3  }
  0x8e   : > { %s3750_s24 = scalar_lea.hbm %s5291_s9, 16 }
  0x8f   : > { %p3751_p7 = scmp.ne.s32.totalorder %s5291_s9, %s3750_s24  ;;  %p3757_p1 = scmp.lt.u32.totalorder %s3750_s24, %s5291_s9 }
  0x91   : > { %p3753_p9 = pnand %p3751_p7, %p4413_p8 }
  0x93   : > { %p3754_p4 = pneg %p3753_p9 }
  0x95   : > { %p3759_p3 = pnand %p3757_p1, %p3754_p4 }
  0x97   : > { %3762 = shalt.err (!%p3759_p3)
}
  0x98   : > { %s3763_s0 = scalar_lea.vmem %s556_s25, 16  ;;  %s3770_s23 = scalar_lea.vmem %s556_s25, 32 }
  0x99   : > { %p3764_p10 = scmp.ne.s32.totalorder %s556_s25, %s3763_s0  ;;  %p3771_p13 = scmp.lt.s32.totalorder %s556_s25, %s556_s25 }
  0x9a   : > { %p3772_p0 = scmp.lt.s32.totalorder %s3770_s23, %s3763_s0 }
  0x9b   : > { %p3766_p11 = pnand %p3764_p10, %p4413_p8 }
  0x9c   : > { %p3773_p2 = por %p3772_p0, %p3771_p13 }
  0x9d   : > { %p3767_p12 = pneg %p3766_p11 }
  0x9f   : > { %p3774_p5 = pnand %p3773_p2, %p3767_p12 }
  0xa1   : > { %3777 = shalt.err (!%p3774_p5)
}
  0xa2   : > { %3317 = dma.hbm_to_vmem [thread:$0]  (!%p4397_p6), %s5291_s9, 16, %s556_s25, [#allocation19]  }
  0xa3   : > { %s4241_s26 = smov [#allocation21]   ;;  %s4242_s24 = smov [#allocation24]  }
  0xa4   : > { %s576_s19 = sshll.u32 %s4241_s26, 4  ;;  %s600_s30 = sshll.u32 %s4242_s24, 4  ;;  %s577_s19 = int_to_ptr.vmem [resolvable:$true] %s576_s19  ;;  %s601_s30 = int_to_ptr.vmem [resolvable:$true] %s600_s30 }
  0xa5   : > { %s3778_s27 = scalar_lea.hbm %s5293_s11, 2048 }
  0xa6   : > { %p3779_p7 = scmp.ne.s32.totalorder %s5293_s11, %s3778_s27  ;;  %p3785_p1 = scmp.lt.u32.totalorder %s3778_s27, %s5293_s11 }
  0xa8   : > { %p3781_p9 = pnand %p3779_p7, %p4413_p8 }
  0xaa   : > { %p3782_p4 = pneg %p3781_p9 }
  0xac   : > { %p3787_p3 = pnand %p3785_p1, %p3782_p4 }
  0xae   : > { %3790 = shalt.err (!%p3787_p3)
}
  0xaf   : > { %s3791_s25 = scalar_lea.vmem %s577_s19, 2048  ;;  %p3799_p13 = scmp.lt.s32.totalorder %s577_s19, %s577_s19 }
  0xb0   : > { %p3792_p10 = scmp.ne.s32.totalorder %s577_s19, %s3791_s25  ;;  %p3800_p0 = scmp.lt.s32.totalorder %s3791_s25, %s3791_s25 }
  0xb2   : > { %p3794_p11 = pnand %p3792_p10, %p4413_p8  ;;  %p3801_p2 = por %p3800_p0, %p3799_p13 }
  0xb4   : > { %p3795_p12 = pneg %p3794_p11 }
  0xb6   : > { %p3802_p5 = pnand %p3801_p2, %p3795_p12 }
  0xb8   : > { %3805 = shalt.err (!%p3802_p5)
}
  0xb9   : > { %s5350_s29 = smov 128   ;;  %s3806_s1 = scalar_lea.hbm %s5295_s13, 2048 }
  0xba   : > { %3323 = dma.hbm_to_vmem [thread:$0]  (!%p4397_p6), %s5293_s11, 2048, %s577_s19, [#allocation22], %s5350_s29, %s5350_s29, %s4238_s18  }
  0xbb   : > { %p3807_p7 = scmp.ne.s32.totalorder %s5295_s13, %s3806_s1  ;;  %p3813_p1 = scmp.lt.u32.totalorder %s3806_s1, %s5295_s13 }
  0xbd   : > { %p3809_p9 = pnand %p3807_p7, %p4413_p8 }
  0xbf   : > { %p3810_p4 = pneg %p3809_p9 }
  0xc1   : > { %p3815_p3 = pnand %p3813_p1, %p3810_p4 }
  0xc3   : > { %3818 = shalt.err (!%p3815_p3)
}
  0xc4   : > { %s3819_s25 = scalar_lea.vmem %s601_s30, 2048  ;;  %p3827_p13 = scmp.lt.s32.totalorder %s601_s30, %s601_s30 }
  0xc5   : > { %p3820_p10 = scmp.ne.s32.totalorder %s601_s30, %s3819_s25  ;;  %p3828_p0 = scmp.lt.s32.totalorder %s3819_s25, %s3819_s25 }
  0xc7   : > { %p3822_p11 = pnand %p3820_p10, %p4413_p8  ;;  %p3829_p2 = por %p3828_p0, %p3827_p13 }
  0xc9   : > { %p3823_p12 = pneg %p3822_p11 }
  0xcb   : > { %p3830_p5 = pnand %p3829_p2, %p3823_p12 }
  0xcd   : > { %3833 = shalt.err (!%p3830_p5)
}
  0xce   : > { %3329 = dma.hbm_to_vmem [thread:$0]  (!%p4397_p6), %s5295_s13, 2048, %s601_s30, [#allocation25], %s5349_s28, %s5349_s28, %s5348_s3  }
  0xcf   : > { %s4243_s29 = smov [#allocation27]   ;;  %s4244_s26 = smov [#allocation8]  }
  0xd0   : > { %s625_s21 = sshll.u32 %s4243_s29, 4  ;;  %s472_s24 = sshll.u32 %s4244_s26, 4  ;;  %s626_s21 = int_to_ptr.vmem [resolvable:$true] %s625_s21  ;;  %s473_s24 = int_to_ptr.vmem [resolvable:$true] %s472_s24 }
  0xd1   : > { %s3834_s27 = scalar_lea.hbm %s5297_s15, 16 }
  0xd2   : > { %p3835_p7 = scmp.ne.s32.totalorder %s5297_s15, %s3834_s27  ;;  %p3841_p1 = scmp.lt.u32.totalorder %s3834_s27, %s5297_s15 }
  0xd4   : > { %p3837_p9 = pnand %p3835_p7, %p4413_p8 }
  0xd6   : > { %p3838_p4 = pneg %p3837_p9 }
  0xd8   : > { %p3843_p3 = pnand %p3841_p1, %p3838_p4 }
  0xda   : > { %3846 = shalt.err (!%p3843_p3)
}
  0xdb   : > { %s3847_s30 = scalar_lea.vmem %s626_s21, 16  ;;  %s3854_s18 = scalar_lea.vmem %s626_s21, 32 }
  0xdc   : > { %p3848_p10 = scmp.ne.s32.totalorder %s626_s21, %s3847_s30  ;;  %p3855_p13 = scmp.lt.s32.totalorder %s626_s21, %s626_s21 }
  0xdd   : > { %p3856_p0 = scmp.lt.s32.totalorder %s3854_s18, %s3847_s30 }
  0xde   : > { %p3850_p11 = pnand %p3848_p10, %p4413_p8 }
  0xdf   : > { %p3857_p2 = por %p3856_p0, %p3855_p13 }
  0xe0   : > { %p3851_p12 = pneg %p3850_p11 }
  0xe2   : > { %p3858_p5 = pnand %p3857_p2, %p3851_p12 }
  0xe4   : > { %3861 = shalt.err (!%p3858_p5)
}
  0xe5   : > { %3335 = dma.hbm_to_vmem [thread:$0]  (!%p4397_p6), %s5297_s15, 16, %s626_s21, [#allocation28]  }
  0xe6   : > { %s5351_s2 = sld [smem:[#allocation51_spill]] }
  0xec   : > { %s3862_s1 = scalar_lea.hbm %s5351_s2, 16 }
  0xed   : > { %p3863_p7 = scmp.ne.s32.totalorder %s5351_s2, %s3862_s1  ;;  %p3869_p1 = scmp.lt.u32.totalorder %s3862_s1, %s5351_s2 }
  0xef   : > { %p3865_p9 = pnand %p3863_p7, %p4413_p8 }
  0xf1   : > { %p3866_p4 = pneg %p3865_p9 }
  0xf3   : > { %p3871_p3 = pnand %p3869_p1, %p3866_p4 }
  0xf5   : > { %3874 = shalt.err (!%p3871_p3)
}
  0xf6   : > { %s3875_s25 = scalar_lea.vmem %s473_s24, 16  ;;  %s3882_s21 = scalar_lea.vmem %s473_s24, 32 }
  0xf7   : > { %p3876_p10 = scmp.ne.s32.totalorder %s473_s24, %s3875_s25  ;;  %p3883_p13 = scmp.lt.s32.totalorder %s473_s24, %s473_s24 }
  0xf8   : > { %p3884_p0 = scmp.lt.s32.totalorder %s3882_s21, %s3875_s25 }
  0xf9   : > { %p3878_p11 = pnand %p3876_p10, %p4413_p8 }
  0xfa   : > { %p3885_p2 = por %p3884_p0, %p3883_p13 }
  0xfb   : > { %p3879_p12 = pneg %p3878_p11 }
  0xfd   : > { %p3886_p5 = pnand %p3885_p2, %p3879_p12 }
  0xff   : > { %3889 = shalt.err (!%p3886_p5)
}
 0x100   : > { %3296 = dma.hbm_to_vmem [thread:$0]  (!%p4397_p6), %s5351_s2, 16, %s473_s24, [#allocation7]  }
 0x101   : > { %s4245_s19 = smov [#allocation11]   ;;  %s4246_s26 = smov [#allocation14]  }
 0x102   : > { %s496_s29 = sshll.u32 %s4245_s19, 4  ;;  %s520_s17 = sshll.u32 %s4246_s26, 4  ;;  %s497_s29 = int_to_ptr.vmem [resolvable:$true] %s496_s29  ;;  %s521_s17 = int_to_ptr.vmem [resolvable:$true] %s520_s17 }
 0x103   : > { %s5352_s4 = sld [smem:[#allocation53_spill]] }
 0x109   : > { %s3890_s0 = scalar_lea.hbm %s5352_s4, 16 }
 0x10a   : > { %p3891_p7 = scmp.ne.s32.totalorder %s5352_s4, %s3890_s0  ;;  %p3897_p1 = scmp.lt.u32.totalorder %s3890_s0, %s5352_s4 }
 0x10c   : > { %p3893_p9 = pnand %p3891_p7, %p4413_p8 }
 0x10e   : > { %p3894_p4 = pneg %p3893_p9 }
 0x110   : > { %p3899_p3 = pnand %p3897_p1, %p3894_p4 }
 0x112   : > { %3902 = shalt.err (!%p3899_p3)
}
 0x113   : > { %s3903_s24 = scalar_lea.vmem %s497_s29, 16  ;;  %s3910_s30 = scalar_lea.vmem %s497_s29, 32 }
 0x114   : > { %p3904_p10 = scmp.ne.s32.totalorder %s497_s29, %s3903_s24  ;;  %p3911_p13 = scmp.lt.s32.totalorder %s497_s29, %s497_s29 }
 0x115   : > { %p3912_p0 = scmp.lt.s32.totalorder %s3910_s30, %s3903_s24 }
 0x116   : > { %p3906_p11 = pnand %p3904_p10, %p4413_p8 }
 0x117   : > { %p3913_p2 = por %p3912_p0, %p3911_p13 }
 0x118   : > { %p3907_p12 = pneg %p3906_p11 }
 0x11a   : > { %p3914_p5 = pnand %p3913_p2, %p3907_p12 }
 0x11c   : > { %3917 = shalt.err (!%p3914_p5)
}
 0x11d   : > { %3302 = dma.hbm_to_vmem [thread:$0]  (!%p4397_p6), %s5352_s4, 16, %s497_s29, [#allocation10]  }
 0x11e   : > { %s3918_s27 = scalar_lea.hbm %s5288_s6, 16 }
 0x11f   : > { %p3919_p7 = scmp.ne.s32.totalorder %s5288_s6, %s3918_s27  ;;  %p3925_p1 = scmp.lt.u32.totalorder %s3918_s27, %s5288_s6 }
 0x121   : > { %p3921_p9 = pnand %p3919_p7, %p4413_p8 }
 0x123   : > { %p3922_p4 = pneg %p3921_p9 }
 0x125   : > { %p3927_p3 = pnand %p3925_p1, %p3922_p4 }
 0x127   : > { %3930 = shalt.err (!%p3927_p3)
}
 0x128   : > { %s3931_s21 = scalar_lea.vmem %s521_s17, 16  ;;  %s3938_s29 = scalar_lea.vmem %s521_s17, 32 }
 0x129   : > { %p3932_p10 = scmp.ne.s32.totalorder %s521_s17, %s3931_s21  ;;  %p3939_p13 = scmp.lt.s32.totalorder %s521_s17, %s521_s17 }
 0x12a   : > { %p3940_p0 = scmp.lt.s32.totalorder %s3938_s29, %s3931_s21 }
 0x12b   : > { %p3934_p11 = pnand %p3932_p10, %p4413_p8 }
 0x12c   : > { %p3941_p2 = por %p3940_p0, %p3939_p13 }
 0x12d   : > { %p3935_p12 = pneg %p3934_p11 }
 0x12f   : > { %p3942_p5 = pnand %p3941_p2, %p3935_p12 }
 0x131   : > { %3945 = shalt.err (!%p3942_p5)
}
 0x132   : > { %3308 = dma.hbm_to_vmem [thread:$0]  (!%p4397_p6), %s5288_s6, 16, %s521_s17, [#allocation13]  }
 0x133   : > { %s4247_s18 = smov [#allocation17]   ;;  %s4248_s26 = smov [#allocation20]  }
 0x134   : > { %s544_s19 = sshll.u32 %s4247_s18, 4  ;;  %s566_s1 = sshll.u32 %s4248_s26, 4  ;;  %s545_s19 = int_to_ptr.vmem [resolvable:$true] %s544_s19  ;;  %s567_s1 = int_to_ptr.vmem [resolvable:$true] %s566_s1 }
 0x135   : > { %s3946_s23 = scalar_lea.hbm %s5290_s8, 16 }
 0x136   : > { %p3947_p7 = scmp.ne.s32.totalorder %s5290_s8, %s3946_s23  ;;  %p3953_p1 = scmp.lt.u32.totalorder %s3946_s23, %s5290_s8 }
 0x138   : > { %p3949_p9 = pnand %p3947_p7, %p4413_p8 }
 0x13a   : > { %p3950_p4 = pneg %p3949_p9 }
 0x13c   : > { %p3955_p3 = pnand %p3953_p1, %p3950_p4 }
 0x13e   : > { %3958 = shalt.err (!%p3955_p3)
}
 0x13f   : > { %s3959_s17 = scalar_lea.vmem %s545_s19, 16  ;;  %s3966_s24 = scalar_lea.vmem %s545_s19, 32 }
 0x140   : > { %p3960_p10 = scmp.ne.s32.totalorder %s545_s19, %s3959_s17  ;;  %p3967_p13 = scmp.lt.s32.totalorder %s545_s19, %s545_s19 }
 0x141   : > { %p3968_p0 = scmp.lt.s32.totalorder %s3966_s24, %s3959_s17 }
 0x142   : > { %p3962_p11 = pnand %p3960_p10, %p4413_p8 }
 0x143   : > { %p3969_p2 = por %p3968_p0, %p3967_p13 }
 0x144   : > { %p3963_p12 = pneg %p3962_p11 }
 0x146   : > { %p3970_p5 = pnand %p3969_p2, %p3963_p12 }
 0x148   : > { %3973 = shalt.err (!%p3970_p5)
}
 0x149   : > { %3314 = dma.hbm_to_vmem [thread:$0]  (!%p4397_p6), %s5290_s8, 16, %s545_s19, [#allocation16]  }
 0x14a   : > { %s3974_s0 = scalar_lea.hbm %s5292_s10, 16 }
 0x14b   : > { %p3975_p7 = scmp.ne.s32.totalorder %s5292_s10, %s3974_s0  ;;  %p3981_p1 = scmp.lt.u32.totalorder %s3974_s0, %s5292_s10 }
 0x14d   : > { %p3977_p9 = pnand %p3975_p7, %p4413_p8 }
 0x14f   : > { %p3978_p4 = pneg %p3977_p9 }
 0x151   : > { %p3983_p3 = pnand %p3981_p1, %p3978_p4 }
 0x153   : > { %3986 = shalt.err (!%p3983_p3)
}
 0x154   : > { %s3987_s29 = scalar_lea.vmem %s567_s1, 16  ;;  %s3994_s19 = scalar_lea.vmem %s567_s1, 32 }
 0x155   : > { %p3988_p10 = scmp.ne.s32.totalorder %s567_s1, %s3987_s29  ;;  %p3995_p13 = scmp.lt.s32.totalorder %s567_s1, %s567_s1 }
 0x156   : > { %p3996_p0 = scmp.lt.s32.totalorder %s3994_s19, %s3987_s29 }
 0x157   : > { %p3990_p11 = pnand %p3988_p10, %p4413_p8 }
 0x158   : > { %p3997_p2 = por %p3996_p0, %p3995_p13 }
 0x159   : > { %p3991_p12 = pneg %p3990_p11 }
 0x15b   : > { %p3998_p5 = pnand %p3997_p2, %p3991_p12 }
 0x15d   : > { %4001 = shalt.err (!%p3998_p5)
}
 0x15e   : > { %3320 = dma.hbm_to_vmem [thread:$0]  (!%p4397_p6), %s5292_s10, 16, %s567_s1, [#allocation19]  }
 0x15f   : > { %s4249_s30 = smov [#allocation23]   ;;  %s4250_s26 = smov [#allocation26]  }
 0x160   : > { %s590_s18 = sshll.u32 %s4249_s30, 4  ;;  %s614_s27 = sshll.u32 %s4250_s26, 4  ;;  %s591_s18 = int_to_ptr.vmem [resolvable:$true] %s590_s18  ;;  %s615_s27 = int_to_ptr.vmem [resolvable:$true] %s614_s27 }
 0x161   : > { %s4002_s16 = scalar_lea.hbm %s5294_s12, 32 }
 0x162   : > { %p4003_p7 = scmp.ne.s32.totalorder %s5294_s12, %s4002_s16  ;;  %p4009_p1 = scmp.lt.u32.totalorder %s4002_s16, %s5294_s12 }
 0x164   : > { %p4005_p9 = pnand %p4003_p7, %p4413_p8 }
 0x166   : > { %p4006_p4 = pneg %p4005_p9 }
 0x168   : > { %p4011_p3 = pnand %p4009_p1, %p4006_p4 }
 0x16a   : > { %4014 = shalt.err (!%p4011_p3)
}
 0x16b   : > { %s4015_s1 = scalar_lea.vmem %s591_s18, 32  ;;  %p4023_p13 = scmp.lt.s32.totalorder %s591_s18, %s591_s18 }
 0x16c   : > { %p4016_p10 = scmp.ne.s32.totalorder %s591_s18, %s4015_s1  ;;  %p4024_p0 = scmp.lt.s32.totalorder %s4015_s1, %s4015_s1 }
 0x16e   : > { %p4018_p11 = pnand %p4016_p10, %p4413_p8  ;;  %p4025_p2 = por %p4024_p0, %p4023_p13 }
 0x170   : > { %p4019_p12 = pneg %p4018_p11 }
 0x172   : > { %p4026_p5 = pnand %p4025_p2, %p4019_p12 }
 0x174   : > { %4029 = shalt.err (!%p4026_p5)
}
 0x175   : > { %3326 = dma.hbm_to_vmem [thread:$0]  (!%p4397_p6), %s5294_s12, 32, %s591_s18, [#allocation22]  }
 0x176   : > { %s4030_s0 = scalar_lea.hbm %s5296_s14, 16 }
 0x177   : > { %p4031_p7 = scmp.ne.s32.totalorder %s5296_s14, %s4030_s0  ;;  %p4037_p1 = scmp.lt.u32.totalorder %s4030_s0, %s5296_s14 }
 0x179   : > { %p4033_p9 = pnand %p4031_p7, %p4413_p8 }
 0x17b   : > { %p4034_p4 = pneg %p4033_p9 }
 0x17d   : > { %p4039_p3 = pnand %p4037_p1, %p4034_p4 }
 0x17f   : > { %4042 = shalt.err (!%p4039_p3)
}
 0x180   : > { %s4043_s29 = scalar_lea.vmem %s615_s27, 16  ;;  %s4050_s18 = scalar_lea.vmem %s615_s27, 32 }
 0x181   : > { %p4044_p10 = scmp.ne.s32.totalorder %s615_s27, %s4043_s29  ;;  %p4051_p13 = scmp.lt.s32.totalorder %s615_s27, %s615_s27 }
 0x182   : > { %p4052_p0 = scmp.lt.s32.totalorder %s4050_s18, %s4043_s29 }
 0x183   : > { %p4046_p11 = pnand %p4044_p10, %p4413_p8 }
 0x184   : > { %p4053_p2 = por %p4052_p0, %p4051_p13 }
 0x185   : > { %p4047_p12 = pneg %p4046_p11 }
 0x187   : > { %p4054_p5 = pnand %p4053_p2, %p4047_p12 }
 0x189   : > { %4057 = shalt.err (!%p4054_p5)
}
 0x18a   : > { %3332 = dma.hbm_to_vmem [thread:$0]  (!%p4397_p6), %s5296_s14, 16, %s615_s27, [#allocation25]  }
 0x18b   : > { %s4251_s17 = smov [#allocation29]   ;;  %s5353_s0 = sld [smem:[#allocation55_spill]] }
 0x18c   : > { %s636_s24 = sshll.u32 %s4251_s17, 4  ;;  %s637_s24 = int_to_ptr.vmem [resolvable:$true] %s636_s24 }
 0x191   : > { %s4058_s23 = scalar_lea.hbm %s5353_s0, 16 }
 0x192   : > { %p4059_p7 = scmp.ne.s32.totalorder %s5353_s0, %s4058_s23  ;;  %p4065_p1 = scmp.lt.u32.totalorder %s4058_s23, %s5353_s0 }
 0x194   : > { %p4061_p9 = pnand %p4059_p7, %p4413_p8 }
 0x196   : > { %p4062_p4 = pneg %p4061_p9 }
 0x198   : > { %p4067_p3 = pnand %p4065_p1, %p4062_p4 }
 0x19a   : > { %4070 = shalt.err (!%p4067_p3)
}
 0x19b   : > { %s4071_s27 = scalar_lea.vmem %s637_s24, 16  ;;  %s4078_s18 = scalar_lea.vmem %s637_s24, 32 }
 0x19c   : > { %p4072_p10 = scmp.ne.s32.totalorder %s637_s24, %s4071_s27  ;;  %p4079_p13 = scmp.lt.s32.totalorder %s637_s24, %s637_s24 }
 0x19d   : > { %p4080_p0 = scmp.lt.s32.totalorder %s4078_s18, %s4071_s27 }
 0x19e   : > { %p4074_p11 = pnand %p4072_p10, %p4413_p8 }
 0x19f   : > { %p4081_p2 = por %p4080_p0, %p4079_p13 }
 0x1a0   : > { %p4075_p12 = pneg %p4074_p11 }
 0x1a2   : > { %p4082_p5 = pnand %p4081_p2, %p4075_p12 }
 0x1a4   : > { %4085 = shalt.err (!%p4082_p5)
}
 0x1a5   : > { %s5354_s17 = sld [smem:[#allocation46_spill]]  ;;  %s5355_s30 = sld [smem:[#allocation45_spill]] }
 0x1a6   : > { %s5356_s26 = sld [smem:[#allocation43_spill]]  ;;  %s5357_s23 = sld [smem:[#allocation42_spill]] }
 0x1a7   : > { %s5358_s20 = sld [smem:[#allocation41_spill]]  ;;  %s5359_s16 = sld [smem:[#allocation47_spill]] }
 0x1a8   : > { %3338 = dma.hbm_to_vmem [thread:$0]  (!%p4397_p6), %s5353_s0, 16, %s637_s24, [#allocation28]  }
 0x1a9   : > { %s5366_s2 = sld [smem:[#allocation49_spill]] }
 0x1ab   : > { %s2857_s25 = sadd.s32 4294967294, %s5354_s17   ;;  %s53_s21 = sadd.s32 1, %s5355_s30 }
 0x1ac   : > { %p55_p8 = scmp.ge.s32.totalorder %s53_s21, 2  ;;  %s60_s22 = sadd.s32 1, %s5356_s26 }
 0x1ad   : > { %p67_p7 = scmp.ne.s32.totalorder %s5356_s26, %s5357_s23  ;;  %p68_p9 = scmp.eq.s32.totalorder %s5354_s17, 0 }
 0x1ae   : > { %s5386_s21 = smov (%p55_p8, %s53_s21), 0  ;;  %p73_p1 = scmp.ne.s32.totalorder %s5357_s23, %s5358_s20 }
 0x1af   : > { %p4728_p4 = por %p68_p9, %p67_p7  ;;  %s57_s24 = ssub.s32 %s5355_s30, %s5386_s21 }
 0x1b0   : > { %s5361_s27 = sadd.s32 4294967295, %s5354_s17   ;;  %p58_p3 = scmp.eq.s32.totalorder %s57_s24, 0 }
 0x1b1   : > { %p435_p6 = scmp.eq.s32.totalorder %s5361_s27, 1  ;;  %p5362_p10 = scmp.ne.s32.totalorder %s5359_s16, 0 }
 0x1b2   : > { %p441_p13 = scmp.eq.s32.totalorder %s2857_s25, 1  ;;  %p3363_p2 = scmp.lt.s32.totalorder %s5354_s17, 2 }
 0x1b3   : > { %p4740_p11 = por %p5362_p10, %p73_p1  ;;  %p4744_p12 = por %p435_p6, %p67_p7 }
 0x1b4   : > { %s4749_s1 = scalar_select %p58_p3, %s5356_s26, %s60_s22  }
 0x1b5   : > { %s5364_s19 = scalar_select %p4744_p12, 1, 0 }
 0x1b6   : > { %p4751_p0 = por %p441_p13, %p73_p1  ;;  %s647_s23 = sand.u32 1, %s5356_s26  }
 0x1b7   : > { %s2995_s20 = sshll.u32 %s5355_s30, 8  ;;  %s2876_s24 = sshll.u32 %s647_s23, 4 }
 0x1b8   : > { %s5365_s0 = scalar_select %p4751_p0, 1, 0 }
 0x1b9   : > { %s4761_s4 = scalar_lea.hbm %s5366_s2, %s2995_s20  ;;  %s651_s25 = scalar_lea.vmem [#allocation3], %s2876_s24 }
 0x1ba   : > { %s658_s22 = sshll.u32 %s651_s25, 4  ;;  %p4765_p5 = pnand %p3363_p2, %p4728_p4  ;;  %s4769_s22 = int_to_ptr.vmem [resolvable:$true] %s658_s22 }
 0x1bb   : > { %s4771_s17 = scalar_lea.sflag [#allocation4], %s647_s23  ;;  %s4086_s30 = scalar_lea.hbm %s4761_s4, 256 }
 0x1bc   : > { %p4087_p8 = scmp.ne.s32.totalorder %s4761_s4, %s4086_s30  ;;  %p4088_p7 = pneg %p4765_p5 }
 0x1bd   : > { %s4091_s20 = scalar_lea.hbm %s5366_s2, 512  ;;  %p4092_p4 = scmp.lt.u32.totalorder %s4761_s4, %s5366_s2 }
 0x1be   : > { %p4089_p9 = pnand %p4088_p7, %p4087_p8  ;;  %p4093_p6 = scmp.lt.u32.totalorder %s4091_s20, %s4086_s30 }
 0x1bf   : > { %p4095_p10 = scmp.lt.u32.totalorder %s4086_s30, %s4761_s4 }
 0x1c0   : > { %p4090_p1 = pneg %p4089_p9  ;;  %p4094_p3 = por %p4093_p6, %p4092_p4 }
 0x1c2   : > { %p4096_p13 = por %p4095_p10, %p4094_p3 }
 0x1c4   : > { %p4097_p2 = pnand %p4096_p13, %p4090_p1 }
 0x1c6   : > { %4100 = shalt.err (!%p4097_p2)
}
 0x1c7   : > { %s4101_s23 = scalar_lea.vmem %s4769_s22, 256  ;;  %s4252_s27 = smov [#allocation3]  }
 0x1c8   : > { %p4102_p8 = scmp.ne.s32.totalorder %s4769_s22, %s4101_s23  ;;  %s4106_s25 = sshll.u32 %s4252_s27, 4  ;;  %s4107_s25 = int_to_ptr.vmem [resolvable:$false] %s4106_s25 }
 0x1c9   : > { %s4108_s26 = scalar_lea.vmem %s4107_s25, 512  ;;  %p4109_p12 = scmp.lt.s32.totalorder %s4769_s22, %s4107_s25 }
 0x1ca   : > { %p4104_p9 = pnand %p4102_p8, %p4088_p7  ;;  %p4110_p4 = scmp.lt.s32.totalorder %s4108_s26, %s4101_s23 }
 0x1cc   : > { %p4105_p0 = pneg %p4104_p9  ;;  %p4111_p6 = por %p4110_p4, %p4109_p12 }
 0x1ce   : > { %p4112_p3 = pnand %p4111_p6, %p4105_p0 }
 0x1d0   : > { %4115 = shalt.err (!%p4112_p3)
}
 0x1d1   : > { %3342 = dma.hbm_to_vmem [thread:$0]  (!%p4765_p5), %s4761_s4, 256, %s4769_s22, %s4771_s17, %s5349_s28, %s5349_s28, %s5348_s3  }
 0x1d2   : > { %s5368_s30 = sld [smem:[#allocation48_spill]] }
 0x1d8   : > { %p5369_p7 = scmp.ne.s32.totalorder %s5368_s30, 0 }
 0x1d9   : > { %s5370_s29 = sld [smem:[#allocation42_spill]] (!%p5369_p7) }
 0x1da   : > { %670 = sbr.rel (%p5369_p7) target bundleno = 3614 (0xe1e), region = 88 }
 0x1df   : > { %s4805_s20 = sand.u32 (!%p5369_p7), 1, %s5370_s29  }
 0x1e0   : > { %s2880_s24 = sshll.u32 (!%p5369_p7), %s4805_s20, 4  ;;  %s673_s16 = scalar_lea.sflag (!%p5369_p7), [#allocation4], %s4805_s20 }
 0x1e1   : > { %s676_s5 = scalar_lea.vmem [#allocation3], %s2880_s24 }
 0x1e2   : > { %4169 = dma.done.wait (%p4740_p11), %s673_s16, 256  }
 0x1e3   : > { %4171 = vsyncadd (%p4740_p11), %s673_s16, 4294967040  ;;  %s5371_s4 = sld [smem:[#allocation47_spill]] }
 0x1e9   : > { %p5372_p12 = scmp.ne.s32.totalorder %s5371_s4, 0 }
 0x1eb   : > { %4173 = dma.done.wait (%p5372_p12), [#allocation7], 32  }
 0x1ec   : > { %4175 = vsyncadd (%p5372_p12), [#allocation7], 4294967264 }
 0x1ed   : > { %4177 = dma.done.wait (%p5372_p12), [#allocation10], 1040  }
 0x1ee   : > { %4179 = vsyncadd (%p5372_p12), [#allocation10], 4294966256 }
 0x1ef   : > { %4181 = dma.done.wait (%p5372_p12), [#allocation13], 2064  }
 0x1f0   : > { %4183 = vsyncadd (%p5372_p12), [#allocation13], 4294965232 }
 0x1f1   : > { %4185 = dma.done.wait (%p5372_p12), [#allocation16], 1040  }
 0x1f2   : > { %4187 = vsyncadd (%p5372_p12), [#allocation16], 4294966256 }
 0x1f3   : > { %4189 = dma.done.wait (%p5372_p12), [#allocation19], 32  }
 0x1f4   : > { %4191 = vsyncadd (%p5372_p12), [#allocation19], 4294967264 }
 0x1f5   : > { %4193 = dma.done.wait (%p5372_p12), [#allocation22], 2080  }
 0x1f6   : > { %4195 = vsyncadd (%p5372_p12), [#allocation22], 4294965216 }
 0x1f7   : > { %4197 = dma.done.wait (%p5372_p12), [#allocation25], 2064  }
 0x1f8   : > { %4199 = vsyncadd (%p5372_p12), [#allocation25], 4294965232 }
 0x1f9   : > { %4201 = dma.done.wait (%p5372_p12), [#allocation28], 32  }
 0x1fa   : > { %4203 = vsyncadd (%p5372_p12), [#allocation28], 4294967264  ;;  %v3002_v0 = vld [vmem:[%s676_s5] sm:$0xff]   ;;  %v3027_v1 = vld [vmem:[%s676_s5 + $0x8] sm:$0xff]   ;;  %v4253_v59 = vmov 0   ;;  %vm1223_vm0 = vcmask 261120  }
 0x1fb   : > { %v4847_v2 = vunpack.c.l.bf16 %v3002_v0  ;;  %v4849_v3 = vunpack.c.l.bf16 %v3027_v1  ;;  %v4853_v4 = vunpack.c.h.bf16 %v3002_v0  ;;  %v4855_v5 = vunpack.c.h.bf16 %v3027_v1  ;;  %v3454_v6 = vld [vmem:[#allocation12 + $0x4] ss:$8 sps:$4 sm:$0xff]   ;;  %v3456_v7 = vld [vmem:[#allocation12] ss:$8 sps:$4 sm:$0xff]   ;;  %v3457_v8 = vld [vmem:[#allocation12 + $0x14] ss:$8 sps:$4 sm:$0xff]   ;;  %999 = vmatprep.mubr.bf16.mxu0 %v4253_v59 }
 0x1fc   : > { %967 = vmatprep.subr.bf16.mxu0 %v3454_v6  ;;  %v3459_v41 = vld [vmem:[#allocation12 + $0x10] ss:$8 sps:$4 sm:$0xff]   ;;  %v3460_v42 = vld [vmem:[#allocation12 + $0x24] ss:$8 sps:$4 sm:$0xff]   ;;  %v3462_v43 = vld [vmem:[#allocation12 + $0x20] ss:$8 sps:$4 sm:$0xff]  }
 0x1fd   : > { %804 = vadd.xlane.f32.xlu0 %v4847_v2  ;;  %808 = vadd.xlane.f32.xlu1 %v4849_v3  ;;  %v3463_v44 = vld [vmem:[#allocation12 + $0x34] ss:$8 sps:$4 sm:$0xff]   ;;  %v3466_v46 = vld [vmem:[#allocation12 + $0x30] ss:$8 sps:$4 sm:$0xff]   ;;  %v3467_v47 = vld [vmem:[#allocation12 + $0x44] ss:$8 sps:$4 sm:$0xff]  }
 0x1fe   : > { %968 = vmatpush1.bf16.msra.mxu0 %v3456_v7  ;;  %v3465_v45 = vld [vmem:[#allocation9] sm:$0xff]   ;;  %v3469_v48 = vld [vmem:[#allocation9 + $0x8] sm:$0xff]   ;;  %v3473_v51 = vld [vmem:[#allocation9 + $0x10] sm:$0xff]   ;;  %s4254_s3 = smov 96   ;;  %s4255_s28 = smov 64   ;;  %vm1582_vm1 = vcmask 523520  }
 0x1ff   : > { %969 = vmatprep.subr.bf16.mxu0 %v3457_v8  ;;  %3110 = vmatprep.subr.bf16.mxu1 %v3465_v45  ;;  %v3470_v49 = vld [vmem:[#allocation12 + $0x40] ss:$8 sps:$4 sm:$0xff]   ;;  %v3471_v50 = vld [vmem:[#allocation12 + $0x54] ss:$8 sps:$4 sm:$0xff]   ;;  %v3474_v52 = vld [vmem:[#allocation12 + $0x50] ss:$8 sps:$4 sm:$0xff]  }
 0x200   : > { %3111 = vmatpush3.bf16.msra.mxu1 %v3465_v45  ;;  %v3475_v53 = vld [vmem:[#allocation12 + $0x64] ss:$8 sps:$4 sm:$0xff]   ;;  %v3477_v54 = vld [vmem:[#allocation9 + $0x18] sm:$0xff]   ;;  %v3478_v55 = vld [vmem:[#allocation12 + $0x60] ss:$8 sps:$4 sm:$0xff]   ;;  %s4256_s18 = smov 32  }
 0x201   : > { %806 = vadd.xlane.f32.xlu0 %v4853_v4  ;;  %810 = vadd.xlane.f32.xlu1 %v4855_v5  ;;  %v3479_v56 = vld [vmem:[#allocation12 + $0x74] ss:$8 sps:$4 sm:$0xff]   ;;  %v3482_v58 = vld [vmem:[#allocation12 + $0x70] ss:$8 sps:$4 sm:$0xff]   ;;  %v3483_v60 = vld [vmem:[#allocation9 + $0x28] sm:$0xff]   ;;  %vm1771_vm2 = vcmask 785920  }
 0x202   : > { %970 = vmatpush1.bf16.msra.mxu0 %v3459_v41  ;;  %3112 = vmatprep.subr.bf16.mxu1 %v3469_v48  ;;  %v3481_v57 = vld [vmem:[#allocation9 + $0x20] sm:$0xff]   ;;  %v3484_v61 = vld [vmem:[#allocation9 + $0x30] sm:$0xff]   ;;  %v3485_v62 = vld [vmem:[#allocation9 + $0x38] sm:$0xff]   ;;  %vm1960_vm3 = vcmask 1048320   ;;  %s5373_s22 = sld [smem:[#allocation44_spill]]  ;;  %s790_s17 = scalar_lea.vmem [#allocation30], %s2880_s24 }
 0x203   : > { %971 = vmatprep.subr.bf16.mxu0 %v3460_v42  ;;  %v2899_v42 = vld [vmem:[#allocation8] ss:$0 sm:$0xff]  ;;  %s2618_s27 = sshll.u32 %s790_s17, 4  ;;  %s5374_s30 = sld [smem:[#allocation56_spill]]  ;;  %s5231_s27 = int_to_ptr.vmem [resolvable:$true] %s2618_s27 }
 0x204   : > { %3113 = vmatpush3.bf16.msra.mxu1 %v3469_v48  ;;  %s2603_s24 = scalar_lea.sflag [#allocation5], %s4805_s20  ;;  %s4116_s16 = scalar_lea.vmem %s5231_s27, 256 }
 0x205   : > { %1047 = vadd.xlane.f32.xlu0 %v4847_v2  ;;  %1049 = vadd.xlane.f32.xlu1 %v4853_v4  ;;  %p4117_p11 = scmp.ne.s32.totalorder %s5231_s27, %s4116_s16  ;;  %p5375_p0 = scmp.ne.s32.totalorder %s5364_s19, 0 }
 0x206   : > { %972 = vmatpush1.bf16.msra.mxu0 %v3462_v43  ;;  %3114 = vmatprep.subr.bf16.mxu1 %v3473_v51  ;;  %s4257_s5 = smov [#allocation30]  }
 0x207   : > { %973 = vmatprep.subr.bf16.mxu0 %v3463_v44  ;;  %p4118_p5 = pnand %p4117_p11, %p5375_p0  ;;  %s4120_s4 = sshll.u32 %s4257_s5, 4  ;;  %s4121_s4 = int_to_ptr.vmem [resolvable:$false] %s4120_s4 }
 0x208   : > { %3115 = vmatpush3.bf16.msra.mxu1 %v3473_v51  ;;  %s3000_s23 = sshll.u32 %s5373_s22, 8  ;;  %p4123_p10 = scmp.lt.s32.totalorder %s5231_s27, %s4121_s4 }
 0x209   : > { %1051 = vadd.xlane.f32.xlu0 %v4849_v3  ;;  %1053 = vadd.xlane.f32.xlu1 %v4855_v5  ;;  %s5229_s29 = scalar_lea.hbm %s5374_s30, %s3000_s23  ;;  %p4119_p1 = pneg %p4118_p5 }
 0x20a   : > { %974 = vmatpush1.bf16.msra.mxu0 %v3466_v46  ;;  %3116 = vmatprep.subr.bf16.mxu1 %v3477_v54 }
 0x20b   : > { %975 = vmatprep.subr.bf16.mxu0 %v3467_v47 }
 0x20c   : > { %3117 = vmatpush3.bf16.msra.mxu1 %v3477_v54 }
 0x20d   : > { %3118 = vmatprep.subr.bf16.mxu1 %v3481_v57 }
 0x20e   : > { %976 = vmatpush1.bf16.msra.mxu0 %v3470_v49 }
 0x20f   : > { %977 = vmatprep.subr.bf16.mxu0 %v3471_v50 }
 0x210   : > { %3119 = vmatpush3.bf16.msra.mxu1 %v3481_v57 }
 0x211   : > { %3120 = vmatprep.subr.bf16.mxu1 %v3483_v60 }
 0x212   : > { %978 = vmatpush1.bf16.msra.mxu0 %v3474_v52 }
 0x213   : > { %979 = vmatprep.subr.bf16.mxu0 %v3475_v53 }
 0x214   : > { %3121 = vmatpush3.bf16.msra.mxu1 %v3483_v60 }
 0x215   : > { %3122 = vmatprep.subr.bf16.mxu1 %v3484_v61 }
 0x216   : > { %980 = vmatpush1.bf16.msra.mxu0 %v3478_v55 }
 0x217   : > { %981 = vmatprep.subr.bf16.mxu0 %v3479_v56 }
 0x218   : > { %3123 = vmatpush3.bf16.msra.mxu1 %v3484_v61 }
 0x219   : > { %3124 = vmatprep.subr.bf16.mxu1 %v3485_v62 }
 0x21a   : > { %982 = vmatpush1.bf16.msra.mxu0 %v3482_v58 }
 0x21c   : > { %3125 = vmatpush3.bf16.msra.mxu1 %v3485_v62 }
 0x28a   : > { %v805_v9 = vpop.xlane.xlu0 %804  ;;  %v809_v10 = vpop.xlane.xlu1 %808 }
 0x28b   : > { %v813_v11 = vmul.f32 0.0078125, %v805_v9  ;;  %v815_v12 = vmul.f32 0.0078125, %v809_v10 }
 0x28d   : > { %v4864_v13 = vsub.f32 %v4847_v2, %v813_v11  ;;  %v4867_v14 = vsub.f32 %v4849_v3, %v815_v12 }
 0x28e   : > { %v807_v15 = vpop.xlane.xlu0 %806  ;;  %v811_v16 = vpop.xlane.xlu1 %810 }
 0x28f   : > { %v814_v17 = vmul.f32 0.0078125, %v807_v15  ;;  %v821_v18 = vmul.f32 %v4864_v13, %v4864_v13  ;;  %v816_v19 = vmul.f32 0.0078125, %v811_v16  ;;  %v823_v22 = vmul.f32 %v4867_v14, %v4867_v14 }
 0x291   : > { %v4872_v20 = vsub.f32 %v4853_v4, %v814_v17  ;;  %825 = vadd.xlane.f32.xlu0 %v821_v18  ;;  %v4875_v21 = vsub.f32 %v4855_v5, %v816_v19 }
 0x292   : > { %v1048_v23 = vpop.xlane.xlu0 %1047  ;;  %v1050_v24 = vpop.xlane.xlu1 %1049 }
 0x293   : > { %v1055_v25 = vmul.f32 0.0078125, %v1048_v23  ;;  %v822_v26 = vmul.f32 %v4872_v20, %v4872_v20  ;;  %v1056_v27 = vmul.f32 0.0078125, %v1050_v24  ;;  %v824_v30 = vmul.f32 %v4875_v21, %v4875_v21 }
 0x295   : > { %v4882_v28 = vsub.f32 %v4847_v2, %v1055_v25  ;;  %829 = vadd.xlane.f32.xlu0 %v823_v22  ;;  %827 = vadd.xlane.f32.xlu1 %v822_v26  ;;  %v4885_v29 = vsub.f32 %v4853_v4, %v1056_v27 }
 0x296   : > { %v1052_v31 = vpop.xlane.xlu0 %1051  ;;  %v1054_v32 = vpop.xlane.xlu1 %1053 }
 0x297   : > { %v1057_v33 = vmul.f32 0.0078125, %v1052_v31  ;;  %v1063_v34 = vmul.f32 %v4882_v28, %v4882_v28  ;;  %v1058_v35 = vmul.f32 0.0078125, %v1054_v32  ;;  %v1064_v38 = vmul.f32 %v4885_v29, %v4885_v29 }
 0x299   : > { %v4892_v36 = vsub.f32 %v4849_v3, %v1057_v33  ;;  %831 = vadd.xlane.f32.xlu1 %v824_v30  ;;  %1067 = vadd.xlane.f32.xlu0 %v1063_v34  ;;  %v4895_v37 = vsub.f32 %v4855_v5, %v1058_v35  ;;  %v2898_v34 = vld [vmem:[#allocation6] ss:$0 sm:$0xff] }
 0x29b   : > { %v1065_v39 = vmul.f32 %v4892_v36, %v4892_v36  ;;  %v1066_v40 = vmul.f32 %v4895_v37, %v4895_v37 }
 0x29d   : > { %1069 = vadd.xlane.f32.xlu1 %v1064_v38  ;;  %1071 = vadd.xlane.f32.xlu0 %v1065_v39 }
 0x2a1   : > { %1073 = vadd.xlane.f32.xlu1 %v1066_v40 }
 0x31e   : > { %v826_v63 = vpop.xlane.xlu0 %825 }
 0x31f   : > { %v833_v0 = vmul.f32 0.0078125, %v826_v63 }
 0x321   : > { %v837_v1 = vadd.f32 1e-05, %v833_v0 }
 0x322   : > { %v828_v6 = vpop.xlane.xlu1 %827  ;;  %v830_v7 = vpop.xlane.xlu0 %829 }
 0x323   : > { %3534 = vrsqrt.f32 %v837_v1  ;;  %v834_v8 = vmul.f32 0.0078125, %v828_v6  ;;  %v835_v9 = vmul.f32 0.0078125, %v830_v7 }
 0x325   : > { %v838_v10 = vadd.f32 1e-05, %v834_v8  ;;  %v839_v11 = vadd.f32 1e-05, %v835_v9  ;;  %v2916_v9 = vld [vmem:[#allocation14] ss:$0 sm:$0xff] }
 0x326   : > { %v832_v12 = vpop.xlane.xlu1 %831  ;;  %v1068_v15 = vpop.xlane.xlu0 %1067 }
 0x327   : > { %3536 = vrsqrt.f32 %v838_v10  ;;  %v836_v16 = vmul.f32 0.0078125, %v832_v12  ;;  %v1075_v17 = vmul.f32 0.0078125, %v1068_v15 }
 0x328   : > { %3538 = vrsqrt.f32 %v839_v11 }
 0x329   : > { %v840_v18 = vadd.f32 1e-05, %v836_v16  ;;  %v1079_v19 = vadd.f32 1e-05, %v1075_v17 }
 0x32a   : > { %v1070_v22 = vpop.xlane.xlu1 %1069  ;;  %v1072_v23 = vpop.xlane.xlu0 %1071 }
 0x32b   : > { %3540 = vrsqrt.f32 %v840_v18  ;;  %v1076_v24 = vmul.f32 0.0078125, %v1070_v22  ;;  %v1077_v25 = vmul.f32 0.0078125, %v1072_v23 }
 0x32c   : > { %3542 = vrsqrt.f32 %v1079_v19 }
 0x32d   : > { %v3535_v26 = vpop.eup %3534  ;;  %v1080_v27 = vadd.f32 1e-05, %v1076_v24  ;;  %v1081_v30 = vadd.f32 1e-05, %v1077_v25 }
 0x32e   : > { %v1074_v31 = vpop.xlane.xlu1 %1073  ;;  %v845_v32 = vmul.f32 %v3535_v26, %v4864_v13 }
 0x32f   : > { %3544 = vrsqrt.f32 %v1080_v27  ;;  %v1078_v33 = vmul.f32 0.0078125, %v1074_v31 }
 0x330   : > { %3546 = vrsqrt.f32 %v1081_v30  ;;  %v855_v41 = vmul.f32 %v2898_v34, %v845_v32  ;;  %v2917_v30 = vld [vmem:[#allocation11] ss:$0 sm:$0xff] }
 0x331   : > { %v3537_v35 = vpop.eup %3536  ;;  %v1082_v38 = vadd.f32 1e-05, %v1078_v33 }
 0x332   : > { %v3539_v39 = vpop.eup %3538  ;;  %v846_v40 = vmul.f32 %v3537_v35, %v4872_v20  ;;  %v865_v47 = vadd.f32 %v2899_v42, %v855_v41 }
 0x333   : > { %3548 = vrsqrt.f32 %v1082_v38  ;;  %v847_v45 = vmul.f32 %v3539_v39, %v4867_v14 }
 0x334   : > { %v856_v43 = vmul.f32 %v2898_v34, %v846_v40 }
 0x335   : > { %v3541_v44 = vpop.eup %3540  ;;  %v857_v53 = vmul.f32 %v2898_v34, %v847_v45 }
 0x336   : > { %v3543_v46 = vpop.eup %3542  ;;  %v866_v48 = vadd.f32 %v2899_v42, %v856_v43  ;;  %v848_v13 = vmul.f32 %v3541_v44, %v4875_v21 }
 0x337   : > { %v1087_v49 = vmul.f32 %v3543_v46, %v4882_v28  ;;  %v867_v60 = vadd.f32 %v2899_v42, %v857_v53 }
 0x338   : > { %v869_v50 = vpack.c.bf16 %v866_v48, %v865_v47  ;;  %v858_v51 = vmul.f32 %v2898_v34, %v848_v13 }
 0x339   : > { %v3545_v52 = vpop.eup %3544  ;;  %v1091_v55 = vmul.f32 %v2898_v34, %v1087_v49 }
 0x33a   : > { %v3547_v54 = vpop.eup %3546  ;;  %1000 = vmatmul.mubr.bf16.vlgmr.msra.gmra.mrb[0].mxu0 %v869_v50  ;;  %v1088_v20 = vmul.f32 %v3545_v52, %v4885_v29  ;;  %v868_v56 = vadd.f32 %v2899_v42, %v858_v51 }
 0x33b   : > { %1009 = vmatprep.mubr.bf16.mxu0 %v4253_v59  ;;  %v1089_v14 = vmul.f32 %v3547_v54, %v4892_v36  ;;  %v1095_v21 = vadd.f32 %v2899_v42, %v1091_v55 }
 0x33c   : > { %v1092_v57 = vmul.f32 %v2898_v34, %v1088_v20  ;;  %v870_v63 = vpack.c.bf16 %v868_v56, %v867_v60 }
 0x33d   : > { %v3549_v58 = vpop.eup %3548  ;;  %v1093_v62 = vmul.f32 %v2898_v34, %v1089_v14 }
 0x33e   : > { %v1096_v61 = vadd.f32 %v2899_v42, %v1092_v57  ;;  %v1090_v28 = vmul.f32 %v3549_v58, %v4895_v37 }
 0x33f   : > { %v1097_v29 = vadd.f32 %v2899_v42, %v1093_v62 }
 0x340   : > { %v1099_v0 = vpack.c.bf16 %v1096_v61, %v1095_v21  ;;  %v1094_v1 = vmul.f32 %v2898_v34, %v1090_v28 }
 0x342   : > { %1010 = vmatmul.mubr.bf16.gmra.mrb[4].mxu0 %v870_v63  ;;  %3126 = vmatprep.mubr.bf16.mxu1 %v1099_v0  ;;  %v1098_v6 = vadd.f32 %v2899_v42, %v1094_v1 }
 0x344   : > { %v1100_v7 = vpack.c.bf16 %v1098_v6, %v1097_v29 }
 0x346   : > { %3127 = vmatmul.mubr.bf16.vlgmr.msra.gmra.mrb[0].mxu1 %v1100_v7 }
 0x40d   : > { %v1001_v8 = vpop.f32.mrb[0].mxu0 }
 0x40e   : > { %v1003_v36 = vpop.f32.mrb[1].mxu0 }
 0x40f   : > { %v1005_v10 = vpop.f32.mrb[2].mxu0  ;;  %v1029_v15 = vadd.f32 %v2916_v9, %v1003_v36 }
 0x410   : > { %v4913_v11 = vpack.c.bf16 %v1005_v10, %v1001_v8  ;;  %v1007_v12 = vpop.f32.mrb[3].mxu0 }
 0x411   : > { %v1030_v37 = vadd.f32 %v2916_v9, %v1007_v12 }
 0x412   : > { %3214 = vmatprep.subr.msk.bf16.mxu0 %vm1223_vm0, %v4913_v11  ;;  %v1231_v16 = vsel %vm1223_vm0, %v4913_v11, 0 }
 0x413   : > { %v4919_v17 = vpack.c.bf16 %v1030_v37, %v1029_v15  ;;  %3131 = vmatpush3.bf16.xpose.msra.mxu0 %v1231_v16 }
 0x415   : > { %v1011_v18 = vpop.f32.mrb[4].mxu0  ;;  %3138 = vmatprep.subr.bf16.mxu1 %v4919_v17 }
 0x416   : > { %v1013_v19 = vpop.f32.mrb[5].mxu0  ;;  %3139 = vmatpush3.bf16.msra.mxu1 %v4919_v17 }
 0x417   : > { %v1015_v22 = vpop.f32.mrb[6].mxu0  ;;  %v1031_v25 = vadd.f32 %v2916_v9, %v1013_v19 }
 0x418   : > { %v4923_v23 = vpack.c.bf16 %v1015_v22, %v1011_v18  ;;  %v1017_v24 = vpop.f32.mrb[7].mxu0 }
 0x419   : > { %v1032_v26 = vadd.f32 %v2916_v9, %v1017_v24  ;;  %v3128_v27 = vpop.f32.mrb[0].mxu1 }
 0x41a   : > { %v1206_v31 = vpop.f32.mrb[1].mxu1  ;;  %3215 = vmatprep.subr.msk.bf16.mxu0 %vm1223_vm0, %v4923_v23  ;;  %v1234_v32 = vsel %vm1223_vm0, %v4923_v23, 0  ;;  %v1215_v35 = vadd.f32 %v3128_v27, %v2917_v30 }
 0x41b   : > { %v4929_v33 = vpack.c.bf16 %v1032_v26, %v1031_v25  ;;  %v3129_v34 = vpop.f32.mrb[2].mxu1  ;;  %3133 = vmatpush3.bf16.xpose.msra.mxu0 %v1234_v32  ;;  %v1207_v40 = vadd.f32 %v2917_v30, %v1206_v31 }
 0x41c   : > { %v1218_v38 = vadd.f32 %v3129_v34, %v2917_v30  ;;  %v1209_v39 = vpop.f32.mrb[3].mxu1 }
 0x41d   : > { %v1210_v41 = vadd.f32 %v2917_v30, %v1209_v39  ;;  %3140 = vmatprep.subr.bf16.mxu1 %v4929_v33 }
 0x41e   : > { %v4932_v42 = vpack.c.bf16 %v1218_v38, %v1215_v35  ;;  %3141 = vmatpush3.bf16.msra.mxu1 %v4929_v33 }
 0x41f   : > { %v4935_v43 = vpack.c.bf16 %v1210_v41, %v1207_v40 }
 0x421   : > { %3134 = vmatprep.mubr.msk.bf16.mxu0 %vm1223_vm0, %v4935_v43 }
 0x422   : > { %3135 = vmatmul.mubr.msk.bf16.vlgmr.msra.gmra.mrb[8].mxu0 %vm1223_vm0, %v4932_v42 }
 0x4f5   : > { %v3136_v44 = vpop.f32.mrb[8].mxu0 }
 0x4f6   : > { %v1270_v45 = vpop.f32.mrb[9].mxu0  ;;  %v1291_v46 = vsel %vm1223_vm0, %v3136_v44, -inf }
 0x4f7   : > { %1292 = vmax.xlane.f32.xlu0 %v1291_v46  ;;  %v3137_v47 = vpop.f32.mrb[10].mxu0  ;;  %v1285_v49 = vsel %vm1223_vm0, %v1270_v45, -inf }
 0x4f8   : > { %v1273_v48 = vpop.f32.mrb[11].mxu0  ;;  %v1294_v50 = vsel %vm1223_vm0, %v3137_v47, -inf }
 0x4f9   : > { %v1288_v13 = vsel %vm1223_vm0, %v1273_v48, -inf }
 0x4fa   : > { %1289 = vmax.xlane.f32.xlu1 %v1288_v13 }
 0x4fb   : > { %1286 = vmax.xlane.f32.xlu0 %v1285_v49 }
 0x4fe   : > { %1295 = vmax.xlane.f32.xlu1 %v1294_v50 }
 0x50f   : > { %1400 = vrot.lane.b32.xlu1 %v4923_v23, %s4254_s3 }
 0x511   : > { %1398 = vrot.lane.b32.xlu0 %v4913_v11, %s4254_s3 }
 0x513   : > { %1392 = vrot.lane.b32.xlu1 %v4935_v43, %s4254_s3 }
 0x515   : > { %1394 = vrot.lane.b32.xlu0 %v4932_v42, %s4254_s3 }
 0x517   : > { %1589 = vrot.lane.b32.xlu1 %v4913_v11, %s4255_s28 }
 0x519   : > { %1585 = vrot.lane.b32.xlu0 %v4935_v43, %s4255_s28 }
 0x51b   : > { %1591 = vrot.lane.b32.xlu1 %v4923_v23, %s4255_s28 }
 0x51f   : > { %1587 = vrot.lane.b32.xlu1 %v4932_v42, %s4255_s28 }
 0x523   : > { %1694 = vrot.lane.b32.xlu1 %v4929_v33, %s4255_s28 }
 0x584   : > { %v1293_v51 = vpop.xlane.xlu0 %1292 }
 0x585   : > { %v1299_v52 = vsub.f32 %v3136_v44, %v1293_v51 }
 0x587   : > { %v1290_v53 = vpop.xlane.xlu1 %1289  ;;  %v1305_v56 = vmul.f32 1.442695, %v1299_v52 }
 0x588   : > { %v1298_v54 = vsub.f32 %v1273_v48, %v1290_v53  ;;  %v1287_v20 = vpop.xlane.xlu0 %1286 }
 0x589   : > { %v1297_v55 = vsub.f32 %v1270_v45, %v1287_v20 }
 0x58a   : > { %v1303_v14 = vmul.f32 1.442695, %v1298_v54 }
 0x58b   : > { %v1301_v57 = vmul.f32 1.442695, %v1297_v55  ;;  %v1296_v58 = vpop.xlane.xlu1 %1295 }
 0x58c   : > { %3550 = vpow2.f32 %v1303_v14  ;;  %v1300_v60 = vsub.f32 %v3137_v47, %v1296_v58  ;;  %v1399_v21 = vpop.permute.xlu0 %1398 }
 0x58d   : > { %3552 = vpow2.f32 %v1301_v57  ;;  %3216 = vmatprep.subr.msk.bf16.mxu1 %vm1223_vm0, %v1399_v21  ;;  %v1409_v7 = vsel %vm1223_vm0, %v1399_v21, 0 }
 0x58e   : > { %v1307_v61 = vmul.f32 1.442695, %v1300_v60  ;;  %3554 = vpow2.f32 %v1305_v56 }
 0x58f   : > { %v1401_v63 = vpop.permute.xlu1 %1400 }
 0x590   : > { %3556 = vpow2.f32 %v1307_v61  ;;  %v1412_v36 = vsel %vm1223_vm0, %v1401_v63, 0  ;;  %v1395_v10 = vpop.permute.xlu0 %1394 }
 0x593   : > { %v1393_v8 = vpop.permute.xlu1 %1392 }
 0x594   : > { %v1586_v12 = vpop.permute.xlu0 %1585 }
 0x596   : > { %v4964_v28 = vpop.eup %3550 }
 0x597   : > { %v4966_v62 = vpop.eup %3552  ;;  %v1590_v9 = vpop.permute.xlu1 %1589 }
 0x598   : > { %v1321_v0 = vpack.c.bf16 %v4964_v28, %v4966_v62  ;;  %v4970_v1 = vpop.eup %3554  ;;  %v1600_v15 = vsel %vm1223_vm0, %v1590_v9, 0 }
 0x59a   : > { %v4972_v29 = vpop.eup %3556  ;;  %3142 = vmatprep.mubr.msk.bf16.mxu1 %vm1223_vm0, %v1321_v0 }
 0x59b   : > { %v1322_v6 = vpack.c.bf16 %v4972_v29, %v4970_v1  ;;  %v1592_v37 = vpop.permute.xlu1 %1591 }
 0x59c   : > { %v1603_v16 = vsel %vm1223_vm0, %v1592_v37, 0 }
 0x59d   : > { %3143 = vmatmul.mubr.msk.bf16.vlgmr.msra.gmra.mrb[4].mxu1 %vm1223_vm0, %v1322_v6 }
 0x59e   : > { %3147 = vmatpush3.bf16.xpose.msra.mxu1 %v1409_v7  ;;  %3150 = vmatprep.mubr.msk.bf16.mxu1 %vm1223_vm0, %v1393_v8 }
 0x59f   : > { %3217 = vmatprep.subr.msk.bf16.mxu1 %vm1223_vm0, %v1401_v63  ;;  %v1588_v18 = vpop.permute.xlu1 %1587 }
 0x5a6   : > { %3149 = vmatpush3.bf16.xpose.msra.mxu1 %v1412_v36 }
 0x5a7   : > { %3218 = vmatprep.subr.msk.bf16.mxu1 %vm1223_vm0, %v1590_v9 }
 0x5ad   : > { %3151 = vmatmul.mubr.msk.bf16.vlgmr.msra.gmra.mrb[8].mxu1 %vm1223_vm0, %v1395_v10 }
 0x5ae   : > { %3163 = vmatpush3.bf16.xpose.msra.mxu1 %v1600_v15  ;;  %3166 = vmatprep.mubr.msk.bf16.mxu1 %vm1223_vm0, %v1586_v12 }
 0x5af   : > { %3219 = vmatprep.subr.msk.bf16.mxu1 %vm1223_vm0, %v1592_v37 }
 0x5b6   : > { %3165 = vmatpush3.bf16.xpose.msra.mxu1 %v1603_v16 }
 0x5bd   : > { %3167 = vmatmul.mubr.msk.bf16.vlgmr.msra.gmra.mrb[12].mxu1 %vm1223_vm0, %v1588_v18 }
 0x670   : > { %v4989_v19 = vpop.f32.mrb[4].mxu1 }
 0x671   : > { %v4991_v22 = vpop.f32.mrb[5].mxu1 }
 0x672   : > { %v4993_v24 = vpop.f32.mrb[6].mxu1 }
 0x673   : > { %v4995_v25 = vpop.f32.mrb[7].mxu1 }
 0x680   : > { %v4997_v26 = vpop.f32.mrb[8].mxu1 }
 0x681   : > { %v4999_v27 = vpop.f32.mrb[9].mxu1 }
 0x682   : > { %v5001_v30 = vpop.f32.mrb[10].mxu1  ;;  %v1463_v46 = vsel %vm1223_vm0, %v4999_v27, -inf }
 0x683   : > { %v5003_v31 = vpop.f32.mrb[11].mxu1 }
 0x684   : > { %v1466_v45 = vsel %vm1223_vm0, %v5003_v31, -inf }
 0x690   : > { %v3168_v32 = vpop.f32.mrb[12].mxu1 }
 0x691   : > { %v1639_v34 = vpop.f32.mrb[13].mxu1  ;;  %v1660_v35 = vsel %vm1223_vm0, %v3168_v32, -inf }
 0x692   : > { %1661 = vmax.xlane.f32.xlu0 %v1660_v35  ;;  %v3169_v38 = vpop.f32.mrb[14].mxu1  ;;  %v1654_v41 = vsel %vm1223_vm0, %v1639_v34, -inf }
 0x693   : > { %v1642_v39 = vpop.f32.mrb[15].mxu1  ;;  %v1663_v44 = vsel %vm1223_vm0, %v3169_v38, -inf }
 0x694   : > { %v1657_v40 = vsel %vm1223_vm0, %v1642_v39, -inf }
 0x695   : > { %1658 = vmax.xlane.f32.xlu1 %v1657_v40 }
 0x696   : > { %1655 = vmax.xlane.f32.xlu0 %v1654_v41 }
 0x69a   : > { %1664 = vmax.xlane.f32.xlu0 %v1663_v44 }
 0x6a6   : > { %1778 = vrot.lane.b32.xlu1 %v4913_v11, %s4256_s18  ;;  %v1469_v11 = vsel %vm1223_vm0, %v4997_v26, -inf }
 0x6aa   : > { %1780 = vrot.lane.b32.xlu1 %v4923_v23, %s4256_s18  ;;  %v1472_v23 = vsel %vm1223_vm0, %v5001_v30, -inf }
 0x6ae   : > { %1776 = vrot.lane.b32.xlu1 %v4932_v42, %s4256_s18  ;;  %v1695_v42 = vpop.permute.xlu1 %1694 }
 0x6b0   : > { %1692 = vrot.lane.b32.xlu0 %v4919_v17, %s4255_s28 }
 0x6b4   : > { %1774 = vrot.lane.b32.xlu0 %v4935_v43, %s4256_s18 }
 0x6d2   : > { %1467 = vmax.xlane.f32.xlu1 %v1466_v45 }
 0x6d3   : > { %1464 = vmax.xlane.f32.xlu0 %v1463_v46 }
 0x6d7   : > { %1470 = vmax.xlane.f32.xlu0 %v1469_v11 }
 0x6db   : > { %1473 = vmax.xlane.f32.xlu0 %v1472_v23 }
 0x6e3   : > { %1505 = vrot.lane.b32.xlu1 %v4929_v33, %s4254_s3 }
 0x6e7   : > { %1881 = vrot.lane.b32.xlu1 %v4919_v17, %s4256_s18 }
 0x71f   : > { %v1662_v43 = vpop.xlane.xlu0 %1661 }
 0x720   : > { %v1668_v48 = vsub.f32 %v3168_v32, %v1662_v43 }
 0x722   : > { %v1659_v47 = vpop.xlane.xlu1 %1658  ;;  %v1674_v53 = vmul.f32 1.442695, %v1668_v48 }
 0x723   : > { %v1667_v13 = vsub.f32 %v1642_v39, %v1659_v47  ;;  %v1656_v49 = vpop.xlane.xlu0 %1655 }
 0x724   : > { %v1666_v50 = vsub.f32 %v1639_v34, %v1656_v49 }
 0x725   : > { %v1672_v51 = vmul.f32 1.442695, %v1667_v13 }
 0x726   : > { %v1670_v52 = vmul.f32 1.442695, %v1666_v50  ;;  %v1779_v57 = vpop.permute.xlu1 %1778 }
 0x727   : > { %3558 = vpow2.f32 %v1672_v51  ;;  %v1665_v54 = vpop.xlane.xlu0 %1664  ;;  %v1789_v0 = vsel %vm1223_vm0, %v1779_v57, 0 }
 0x728   : > { %3560 = vpow2.f32 %v1670_v52  ;;  %v1669_v20 = vsub.f32 %v3169_v38, %v1665_v54 }
 0x729   : > { %3562 = vpow2.f32 %v1674_v53 }
 0x72a   : > { %v1676_v55 = vmul.f32 1.442695, %v1669_v20  ;;  %v1781_v7 = vpop.permute.xlu1 %1780 }
 0x72b   : > { %v1693_v14 = vpop.permute.xlu0 %1692  ;;  %v1792_v8 = vsel %vm1223_vm0, %v1781_v7, 0 }
 0x72c   : > { %3564 = vpow2.f32 %v1676_v55  ;;  %3170 = vmatprep.subr.bf16.mxu1 %v1693_v14 }
 0x72d   : > { %3171 = vmatpush3.bf16.msra.mxu1 %v1693_v14 }
 0x72e   : > { %3172 = vmatprep.subr.bf16.mxu1 %v1695_v42  ;;  %v1777_v36 = vpop.permute.xlu1 %1776 }
 0x72f   : > { %v1775_v6 = vpop.permute.xlu0 %1774 }
 0x731   : > { %v5031_v56 = vpop.eup %3558  ;;  %3173 = vmatpush3.bf16.msra.mxu1 %v1695_v42 }
 0x732   : > { %v5033_v58 = vpop.eup %3560  ;;  %3220 = vmatprep.subr.msk.bf16.mxu1 %vm1223_vm0, %v1779_v57  ;;  %v1681_v54 = vsel %vm1223_vm0, %v5031_v56, 0.0 }
 0x733   : > { %v1690_v60 = vpack.c.bf16 %v5031_v56, %v5033_v58  ;;  %v5038_v21 = vpop.eup %3562  ;;  %v1678_v20 = vsel %vm1223_vm0, %v5033_v58, 0.0 }
 0x734   : > { %v1684_v55 = vsel %vm1223_vm0, %v5038_v21, 0.0 }
 0x735   : > { %3174 = vmatprep.mubr.msk.bf16.mxu1 %vm1223_vm0, %v1690_v60 }
 0x736   : > { %v5041_v61 = vpop.eup %3564 }
 0x737   : > { %v1691_v63 = vpack.c.bf16 %v5041_v61, %v5038_v21 }
 0x739   : > { %3175 = vmatmul.mubr.msk.bf16.vlgmr.msra.gmra.mrb[16].mxu1 %vm1223_vm0, %v1691_v63 }
 0x73a   : > { %3179 = vmatpush3.bf16.xpose.msra.mxu1 %v1789_v0  ;;  %3182 = vmatprep.mubr.msk.bf16.mxu1 %vm1223_vm0, %v1775_v6 }
 0x73b   : > { %3221 = vmatprep.subr.msk.bf16.mxu1 %vm1223_vm0, %v1781_v7 }
 0x742   : > { %3181 = vmatpush3.bf16.xpose.msra.mxu1 %v1792_v8 }
 0x749   : > { %3183 = vmatmul.mubr.msk.bf16.vlgmr.msra.gmra.mrb[20].mxu1 %vm1223_vm0, %v1777_v36 }
 0x74a   : > { %2297 = vmatprep.mubr.bf16.mxu1 %v4253_v59 }
 0x75f   : > { %v1468_v9 = vpop.xlane.xlu1 %1467 }
 0x760   : > { %v1476_v10 = vsub.f32 %v5003_v31, %v1468_v9  ;;  %v1465_v12 = vpop.xlane.xlu0 %1464 }
 0x761   : > { %v1475_v15 = vsub.f32 %v4999_v27, %v1465_v12 }
 0x762   : > { %v1481_v37 = vmul.f32 1.442695, %v1476_v10 }
 0x763   : > { %v1479_v16 = vmul.f32 1.442695, %v1475_v15  ;;  %v1506_v14 = vpop.permute.xlu1 %1505 }
 0x764   : > { %3566 = vpow2.f32 %v1481_v37  ;;  %v1471_v18 = vpop.xlane.xlu0 %1470 }
 0x765   : > { %3568 = vpow2.f32 %v1479_v16  ;;  %v1477_v32 = vsub.f32 %v4997_v26, %v1471_v18 }
 0x767   : > { %v1483_v34 = vmul.f32 1.442695, %v1477_v32  ;;  %v1882_v57 = vpop.permute.xlu1 %1881 }
 0x768   : > { %v1474_v35 = vpop.xlane.xlu0 %1473 }
 0x769   : > { %v1478_v38 = vsub.f32 %v5001_v30, %v1474_v35  ;;  %3570 = vpow2.f32 %v1483_v34 }
 0x76b   : > { %v1485_v39 = vmul.f32 1.442695, %v1478_v38 }
 0x76d   : > { %3572 = vpow2.f32 %v1485_v39 }
 0x76e   : > { %v3567_v40 = vpop.eup %3566 }
 0x76f   : > { %v3569_v41 = vpop.eup %3568  ;;  %v1490_v52 = vsel %vm1223_vm0, %v3567_v40, 0.0 }
 0x770   : > { %v1499_v31 = vpack.c.bf16 %v3567_v40, %v3569_v41  ;;  %v1487_v51 = vsel %vm1223_vm0, %v3569_v41, 0.0  ;;  %v1309_v41 = vsel %vm1223_vm0, %v4966_v62, 0.0 }
 0x772   : > { %3158 = vmatprep.mubr.msk.bf16.mxu0 %vm1223_vm0, %v1499_v31  ;;  %v1312_v31 = vsel %vm1223_vm0, %v4964_v28, 0.0 }
 0x773   : > { %v5057_v27 = vpop.eup %3570 }
 0x774   : > { %v1493_v53 = vsel %vm1223_vm0, %v5057_v27, 0.0 }
 0x777   : > { %v5059_v44 = vpop.eup %3572 }
 0x778   : > { %v1500_v45 = vpack.c.bf16 %v5059_v44, %v5057_v27  ;;  %v1315_v27 = vsel %vm1223_vm0, %v4970_v1, 0.0 }
 0x80c   : > { %v5063_v26 = vpop.f32.mrb[16].mxu1 }
 0x80d   : > { %v5065_v46 = vpop.f32.mrb[17].mxu1 }
 0x80e   : > { %v5067_v30 = vpop.f32.mrb[18].mxu1 }
 0x80f   : > { %v5069_v11 = vpop.f32.mrb[19].mxu1 }
 0x81c   : > { %v3184_v23 = vpop.f32.mrb[20].mxu1 }
 0x81d   : > { %v1828_v42 = vpop.f32.mrb[21].mxu1  ;;  %v1849_v43 = vsel %vm1223_vm0, %v3184_v23, -inf }
 0x81e   : > { %1850 = vmax.xlane.f32.xlu0 %v1849_v43  ;;  %v3185_v47 = vpop.f32.mrb[22].mxu1  ;;  %v1843_v49 = vsel %vm1223_vm0, %v1828_v42, -inf }
 0x81f   : > { %v1831_v48 = vpop.f32.mrb[23].mxu1  ;;  %v1852_v13 = vsel %vm1223_vm0, %v3185_v47, -inf }
 0x820   : > { %1853 = vmax.xlane.f32.xlu1 %v1852_v13  ;;  %v1846_v50 = vsel %vm1223_vm0, %v1831_v48, -inf }
 0x822   : > { %1844 = vmax.xlane.f32.xlu0 %v1843_v49 }
 0x824   : > { %1847 = vmax.xlane.f32.xlu1 %v1846_v50 }
 0x835   : > { %1883 = vrot.lane.b32.xlu1 %v4929_v33, %s4256_s18  ;;  %v1496_v33 = vsel %vm1223_vm0, %v5059_v44, 0.0  ;;  %v1318_v44 = vsel %vm1223_vm0, %v4972_v29, 0.0 }
 0x838   : > { %1503 = vrot.lane.b32.xlu0 %v4919_v17, %s4254_s3  ;;  %v1687_v17 = vsel %vm1223_vm0, %v5041_v61, 0.0 }
 0x857   : > { %1488 = vadd.xlane.f32.xlu0 %v1487_v51 }
 0x859   : > { %1491 = vadd.xlane.f32.xlu1 %v1490_v52 }
 0x85b   : > { %1494 = vadd.xlane.f32.xlu0 %v1493_v53 }
 0x85d   : > { %1682 = vadd.xlane.f32.xlu1 %v1681_v54 }
 0x85f   : > { %1497 = vadd.xlane.f32.xlu0 %v1496_v33 }
 0x861   : > { %1688 = vadd.xlane.f32.xlu1 %v1687_v17  ;;  %v3487_v17 = vld [vmem:[#allocation15 + $0x8] sm:$0xff]  }
 0x863   : > { %1679 = vadd.xlane.f32.xlu0 %v1678_v20 }
 0x867   : > { %1685 = vadd.xlane.f32.xlu0 %v1684_v55 }
 0x8ab   : > { %v1851_v56 = vpop.xlane.xlu0 %1850 }
 0x8ac   : > { %v1857_v60 = vsub.f32 %v3184_v23, %v1851_v56 }
 0x8ad   : > { %v1854_v63 = vpop.xlane.xlu1 %1853 }
 0x8ae   : > { %v1863_v0 = vmul.f32 1.442695, %v1857_v60  ;;  %v1858_v6 = vsub.f32 %v3185_v47, %v1854_v63 }
 0x8af   : > { %v1845_v7 = vpop.xlane.xlu0 %1844 }
 0x8b0   : > { %v1865_v8 = vmul.f32 1.442695, %v1858_v6  ;;  %v1855_v36 = vsub.f32 %v1828_v42, %v1845_v7  ;;  %3574 = vpow2.f32 %v1863_v0 }
 0x8b1   : > { %v1848_v61 = vpop.xlane.xlu1 %1847 }
 0x8b2   : > { %3576 = vpow2.f32 %v1865_v8  ;;  %v1859_v9 = vmul.f32 1.442695, %v1855_v36  ;;  %v1856_v58 = vsub.f32 %v1831_v48, %v1848_v61 }
 0x8b3   : > { %v1504_v10 = vpop.permute.xlu0 %1503 }
 0x8b4   : > { %3578 = vpow2.f32 %v1859_v9  ;;  %v1861_v12 = vmul.f32 1.442695, %v1856_v58  ;;  %3154 = vmatprep.subr.bf16.mxu0 %v1504_v10 }
 0x8b5   : > { %3155 = vmatpush3.bf16.msra.mxu0 %v1504_v10  ;;  %v1884_v37 = vpop.permute.xlu1 %1883 }
 0x8b6   : > { %3580 = vpow2.f32 %v1861_v12  ;;  %3156 = vmatprep.subr.bf16.mxu0 %v1506_v14  ;;  %v3489_v12 = vld [vmem:[#allocation15 + $0x18] sm:$0xff]  }
 0x8b9   : > { %3157 = vmatpush3.bf16.msra.mxu0 %v1506_v14 }
 0x8ba   : > { %3186 = vmatprep.subr.bf16.mxu0 %v1882_v57  ;;  %v3575_v21 = vpop.eup %3574 }
 0x8bb   : > { %v1873_v39 = vsel %vm1223_vm0, %v3575_v21, 0.0 }
 0x8bc   : > { %v3577_v15 = vpop.eup %3576  ;;  %3159 = vmatmul.mubr.msk.bf16.vlgmr.msra.gmra.mrb[12].mxu0 %vm1223_vm0, %v1500_v45 }
 0x8bd   : > { %3187 = vmatpush3.bf16.msra.mxu0 %v1882_v57  ;;  %v1880_v16 = vpack.c.bf16 %v3577_v15, %v3575_v21  ;;  %v1876_v40 = vsel %vm1223_vm0, %v3577_v15, 0.0 }
 0x8be   : > { %v3579_v18 = vpop.eup %3578  ;;  %3188 = vmatprep.subr.bf16.mxu0 %v1884_v37 }
 0x8bf   : > { %v1867_v32 = vsel %vm1223_vm0, %v3579_v18, 0.0 }
 0x8c0   : > { %v3581_v34 = vpop.eup %3580  ;;  %1868 = vadd.xlane.f32.xlu0 %v1867_v32 }
 0x8c1   : > { %3189 = vmatpush3.bf16.msra.mxu0 %v1884_v37  ;;  %v1870_v35 = vsel %vm1223_vm0, %v3581_v34, 0.0  ;;  %v1879_v38 = vpack.c.bf16 %v3581_v34, %v3579_v18 }
 0x8c2   : > { %1871 = vadd.xlane.f32.xlu1 %v1870_v35 }
 0x8c3   : > { %3190 = vmatprep.mubr.msk.bf16.mxu0 %vm1223_vm0, %v1879_v38 }
 0x8c4   : > { %1874 = vadd.xlane.f32.xlu0 %v1873_v39  ;;  %3191 = vmatmul.mubr.msk.bf16.vlgmr.msra.gmra.mrb[16].mxu0 %vm1223_vm0, %v1880_v16 }
 0x8c6   : > { %1877 = vadd.xlane.f32.xlu1 %v1876_v40  ;;  %v3492_v40 = vld [vmem:[#allocation15 + $0x30] sm:$0xff]  }
 0x8c8   : > { %1310 = vadd.xlane.f32.xlu0 %v1309_v41 }
 0x8ca   : > { %1313 = vadd.xlane.f32.xlu1 %v1312_v31 }
 0x8cc   : > { %1316 = vadd.xlane.f32.xlu0 %v1315_v27  ;;  %v3493_v27 = vld [vmem:[#allocation15 + $0x38] sm:$0xff]  }
 0x8ce   : > { %1319 = vadd.xlane.f32.xlu1 %v1318_v44 }
 0x8e4   : > { %v1489_v45 = vpop.xlane.xlu0 %1488 }
 0x8e6   : > { %v1492_v23 = vpop.xlane.xlu1 %1491 }
 0x8e8   : > { %v1495_v42 = vpop.xlane.xlu0 %1494 }
 0x8ea   : > { %v1683_v43 = vpop.xlane.xlu1 %1682 }
 0x8eb   : > { %3582 = vrcp.f32 %v1683_v43 }
 0x8ec   : > { %v1498_v47 = vpop.xlane.xlu0 %1497 }
 0x8ee   : > { %v1689_v62 = vpop.xlane.xlu1 %1688 }
 0x8ef   : > { %3584 = vrcp.f32 %v1689_v62 }
 0x8f0   : > { %v1680_v48 = vpop.xlane.xlu0 %1679 }
 0x8f1   : > { %3586 = vrcp.f32 %v1680_v48 }
 0x8f4   : > { %v1686_v28 = vpop.xlane.xlu0 %1685 }
 0x8f5   : > { %v3583_v13 = vpop.eup %3582  ;;  %3588 = vrcp.f32 %v1686_v28 }
 0x8f6   : > { %v5109_v1 = vmul.f32 %v3583_v13, %v5069_v11  ;;  %v3486_v11 = vld [vmem:[#allocation15] sm:$0xff]  }
 0x8f7   : > { %3194 = vmatprep.subr.bf16.mxu0 %v3486_v11 }
 0x8f8   : > { %3195 = vmatpush3.bf16.msra.mxu0 %v3486_v11 }
 0x8f9   : > { %v3585_v49 = vpop.eup %3584  ;;  %3196 = vmatprep.subr.bf16.mxu0 %v3487_v17 }
 0x8fa   : > { %v5112_v29 = vmul.f32 %v3585_v49, %v5067_v30  ;;  %v3488_v30 = vld [vmem:[#allocation15 + $0x10] sm:$0xff]  }
 0x8fb   : > { %v3587_v50 = vpop.eup %3586 }
 0x8fc   : > { %v5115_v51 = vmul.f32 %v3587_v50, %v5065_v46  ;;  %3197 = vmatpush3.bf16.msra.mxu0 %v3487_v17 }
 0x8fd   : > { %3198 = vmatprep.subr.bf16.mxu0 %v3488_v30 }
 0x8fe   : > { %v1761_v52 = vpack.c.bf16 %v5109_v1, %v5115_v51 }
 0x8ff   : > { %v3589_v53 = vpop.eup %3588 }
 0x900   : > { %v5120_v54 = vmul.f32 %v3589_v53, %v5063_v26  ;;  %3199 = vmatpush3.bf16.msra.mxu0 %v3488_v30 }
 0x901   : > { %3200 = vmatprep.subr.bf16.mxu0 %v3489_v12 }
 0x902   : > { %v1762_v33 = vpack.c.bf16 %v5112_v29, %v5120_v54 }
 0x904   : > { %3201 = vmatpush3.bf16.msra.mxu0 %v3489_v12 }
 0x94d   : > { %v1869_v46 = vpop.xlane.xlu0 %1868 }
 0x94f   : > { %v1872_v20 = vpop.xlane.xlu1 %1871 }
 0x951   : > { %v1875_v55 = vpop.xlane.xlu0 %1874 }
 0x953   : > { %v1878_v14 = vpop.xlane.xlu1 %1877 }
 0x955   : > { %v1311_v57 = vpop.xlane.xlu0 %1310 }
 0x956   : > { %3590 = vrcp.f32 %v1311_v57 }
 0x957   : > { %v1314_v26 = vpop.xlane.xlu1 %1313 }
 0x958   : > { %3592 = vrcp.f32 %v1314_v26 }
 0x959   : > { %v1317_v56 = vpop.xlane.xlu0 %1316 }
 0x95a   : > { %3594 = vrcp.f32 %v1317_v56 }
 0x95b   : > { %v1320_v60 = vpop.xlane.xlu1 %1319 }
 0x95c   : > { %3596 = vrcp.f32 %v1320_v60 }
 0x95d   : > { %3598 = vrcp.f32 %v1495_v42 }
 0x95e   : > { %3600 = vrcp.f32 %v1489_v45 }
 0x95f   : > { %3602 = vrcp.f32 %v1498_v47 }
 0x960   : > { %v3591_v63 = vpop.eup %3590  ;;  %3604 = vrcp.f32 %v1492_v23 }
 0x961   : > { %v1382_v6 = vmul.f32 %v3591_v63, %v4991_v22  ;;  %v3490_v22 = vld [vmem:[#allocation15 + $0x20] sm:$0xff]   ;;  %3606 = vrcp.f32 %v1869_v46 }
 0x962   : > { %v3593_v0 = vpop.eup %3592  ;;  %3202 = vmatprep.subr.bf16.mxu0 %v3490_v22  ;;  %3608 = vrcp.f32 %v1875_v55 }
 0x963   : > { %v1383_v7 = vmul.f32 %v3593_v0, %v4995_v25  ;;  %3203 = vmatpush3.bf16.msra.mxu0 %v3490_v22  ;;  %3610 = vrcp.f32 %v1878_v14  ;;  %v3491_v25 = vld [vmem:[#allocation15 + $0x28] sm:$0xff]  }
 0x964   : > { %v3595_v8 = vpop.eup %3594  ;;  %3612 = vrcp.f32 %v1872_v20  ;;  %3204 = vmatprep.subr.bf16.mxu0 %v3491_v25 }
 0x965   : > { %v1386_v36 = vpack.c.bf16 %v1383_v7, %v1382_v6  ;;  %v1384_v9 = vmul.f32 %v3595_v8, %v4989_v19 }
 0x966   : > { %v3597_v61 = vpop.eup %3596 }
 0x967   : > { %v1385_v58 = vmul.f32 %v3597_v61, %v4993_v24  ;;  %1388 = vst.msk [vmem:[#allocation2] sm:$0xff] %vm1223_vm0, %v1386_v36  ;;  %v3599_v19 = vpop.eup %3598  ;;  %3205 = vmatpush3.bf16.msra.mxu0 %v3491_v25  ;;  %v3496_v36 = vld [vmem:[#allocation21 + $0x4] ss:$8 sps:$4 sm:$0xff]   ;;  %v3499_v61 = vld [vmem:[#allocation21 + $0x14] ss:$8 sps:$4 sm:$0xff]  }
 0x968   : > { %v3601_v21 = vpop.eup %3600  ;;  %3206 = vmatprep.subr.bf16.mxu0 %v3492_v40  ;;  %2265 = vmatprep.subr.bf16.mxu1 %v3496_v36 }
 0x969   : > { %v1387_v10 = vpack.c.bf16 %v1385_v58, %v1384_v9  ;;  %v3603_v16 = vpop.eup %3602 }
 0x96a   : > { %v3605_v34 = vpop.eup %3604 }
 0x96b   : > { %1389 = vst.msk [vmem:[#allocation2 + $0x8] sm:$0xff] %vm1223_vm0, %v1387_v10  ;;  %3207 = vmatpush3.bf16.msra.mxu0 %v3492_v40  ;;  %v3607_v44 = vpop.eup %3606  ;;  %v3508_v40 = vld [vmem:[#allocation21 + $0x44] ss:$8 sps:$4 sm:$0xff]  }
 0x96c   : > { %3208 = vmatprep.subr.bf16.mxu0 %v3493_v27  ;;  %v3609_v23 = vpop.eup %3608 }
 0x96d   : > { %v3611_v43 = vpop.eup %3610 }
 0x96e   : > { %v3613_v48 = vpop.eup %3612 }
 0x96f   : > { %3209 = vmatpush3.bf16.msra.mxu0 %v3493_v27  ;;  %v3509_v27 = vld [vmem:[#allocation21 + $0x50] ss:$8 sps:$4 sm:$0xff]  }
 0x98f   : > { %v3160_v24 = vpop.f32.mrb[12].mxu0 }
 0x990   : > { %v1570_v15 = vmul.f32 %v3599_v19, %v3160_v24  ;;  %v1549_v37 = vpop.f32.mrb[13].mxu0 }
 0x991   : > { %v1568_v18 = vmul.f32 %v3601_v21, %v1549_v37  ;;  %v3161_v32 = vpop.f32.mrb[14].mxu0 }
 0x992   : > { %v1571_v35 = vmul.f32 %v3603_v16, %v3161_v32  ;;  %v1552_v38 = vpop.f32.mrb[15].mxu0 }
 0x993   : > { %v1569_v39 = vmul.f32 %v3605_v34, %v1552_v38  ;;  %v3502_v34 = vld [vmem:[#allocation21 + $0x24] ss:$8 sps:$4 sm:$0xff]   ;;  %v3505_v38 = vld [vmem:[#allocation21 + $0x34] ss:$8 sps:$4 sm:$0xff]  }
 0x994   : > { %v1573_v41 = vpack.c.bf16 %v1571_v35, %v1570_v15  ;;  %v3500_v35 = vld [vmem:[#allocation21 + $0x20] ss:$8 sps:$4 sm:$0xff]  }
 0x995   : > { %v1572_v31 = vpack.c.bf16 %v1569_v39, %v1568_v18  ;;  %v3503_v39 = vld [vmem:[#allocation21 + $0x30] ss:$8 sps:$4 sm:$0xff]  }
 0x996   : > { %1578 = vrot.lane.b32.xlu1 %v1573_v41, %s4256_s18  ;;  %v3506_v41 = vld [vmem:[#allocation21 + $0x40] ss:$8 sps:$4 sm:$0xff]  }
 0x997   : > { %v3192_v45 = vpop.f32.mrb[16].mxu0  ;;  %1576 = vrot.lane.b32.xlu0 %v1572_v31, %s4256_s18  ;;  %v3511_v31 = vld [vmem:[#allocation21 + $0x54] ss:$8 sps:$4 sm:$0xff]  }
 0x998   : > { %v1927_v42 = vpop.f32.mrb[17].mxu0  ;;  %v1948_v28 = vmul.f32 %v3609_v23, %v3192_v45  ;;  %v3512_v45 = vld [vmem:[#allocation21 + $0x60] ss:$8 sps:$4 sm:$0xff]   ;;  %v3517_v23 = vld [vmem:[#allocation21 + $0x74] ss:$8 sps:$4 sm:$0xff]  }
 0x999   : > { %v1946_v47 = vmul.f32 %v3607_v44, %v1927_v42  ;;  %v3193_v62 = vpop.f32.mrb[18].mxu0  ;;  %v3514_v44 = vld [vmem:[#allocation21 + $0x64] ss:$8 sps:$4 sm:$0xff]   ;;  %v3515_v42 = vld [vmem:[#allocation21 + $0x70] ss:$8 sps:$4 sm:$0xff]  }
 0x99a   : > { %v1949_v13 = vmul.f32 %v3611_v43, %v3193_v62  ;;  %v1930_v49 = vpop.f32.mrb[19].mxu0  ;;  %1765 = vrot.lane.b32.xlu1 %v1761_v52, %s4255_s28 }
 0x99b   : > { %v1947_v50 = vmul.f32 %v3613_v48, %v1930_v49 }
 0x99c   : > { %v1951_v53 = vpack.c.bf16 %v1949_v13, %v1948_v28 }
 0x99d   : > { %v1950_v11 = vpack.c.bf16 %v1947_v50, %v1946_v47 }
 0x99e   : > { %1767 = vrot.lane.b32.xlu1 %v1762_v33, %s4255_s28  ;;  %v2942_v33 = vld [vmem:[#allocation17] ss:$0 sm:$0xff] }
 0x99f   : > { %1954 = vrot.lane.b32.xlu0 %v1950_v11, %s4254_s3 }
 0x9a2   : > { %1956 = vrot.lane.b32.xlu1 %v1951_v53, %s4254_s3  ;;  %s4122_s3 = scalar_lea.vmem %s4121_s4, 512 }
 0x9a3   : > { %p4124_p13 = scmp.lt.s32.totalorder %s4122_s3, %s4116_s16 }
 0x9a5   : > { %p4125_p2 = por %p4124_p13, %p4123_p10 }
 0x9a7   : > { %p4126_p8 = pnand %p4125_p2, %p4119_p1 }
 0xa08   : > { %v1579_v17 = vpop.permute.xlu1 %1578 }
 0xa09   : > { %1584 = vst.msk [vmem:[#allocation2 + $0x8] sm:$0xff] %vm1582_vm1, %v1579_v17  ;;  %v1577_v30 = vpop.permute.xlu0 %1576 }
 0xa0a   : > { %1583 = vst.msk [vmem:[#allocation2] sm:$0xff] %vm1582_vm1, %v1577_v30 }
 0xa0c   : > { %v1766_v1 = vpop.permute.xlu1 %1765 }
 0xa0d   : > { %1772 = vst.msk [vmem:[#allocation2] sm:$0xff] %vm1771_vm2, %v1766_v1 }
 0xa10   : > { %v1768_v51 = vpop.permute.xlu1 %1767 }
 0xa11   : > { %1773 = vst.msk [vmem:[#allocation2 + $0x8] sm:$0xff] %vm1771_vm2, %v1768_v51  ;;  %v1955_v52 = vpop.permute.xlu0 %1954  ;;  %v2951_v51 = vld [vmem:[#allocation18] ss:$0 sm:$0xff] }
 0xa12   : > { %1961 = vst.msk [vmem:[#allocation2] sm:$0xff] %vm1960_vm3, %v1955_v52 }
 0xa14   : > { %v1957_v46 = vpop.permute.xlu1 %1956 }
 0xa15   : > { %1962 = vst.msk [vmem:[#allocation2 + $0x8] sm:$0xff] %vm1960_vm3, %v1957_v46 }
 0xa19   : > { %v1963_v29 = vld [vmem:[#allocation2] sm:$0xff] }
 0xa1a   : > { %3210 = vmatprep.mubr.bf16.mxu0 %v1963_v29 }
 0xa1c   : > { %v1964_v54 = vld [vmem:[#allocation2 + $0x8] sm:$0xff] }
 0xa1d   : > { %3211 = vmatmul.mubr.bf16.vlgmr.msra.gmra.mrb[20].mxu0 %v1964_v54 }
 0xaf0   : > { %v3212_v20 = vpop.f32.mrb[20].mxu0 }
 0xaf1   : > { %v2070_v55 = vpop.f32.mrb[21].mxu0  ;;  %v2079_v56 = vadd.f32 %v3212_v20, %v2942_v33  ;;  %v2952_v20 = vld [vmem:[#allocation20] ss:$0 sm:$0xff] }
 0xaf2   : > { %v2071_v14 = vadd.f32 %v2942_v33, %v2070_v55  ;;  %v3213_v57 = vpop.f32.mrb[22].mxu0 }
 0xaf3   : > { %v2073_v26 = vpop.f32.mrb[23].mxu0  ;;  %v5150_v6 = vadd.f32 %v4849_v3, %v2079_v56  ;;  %v2082_v7 = vadd.f32 %v3213_v57, %v2942_v33 }
 0xaf4   : > { %v5143_v60 = vadd.f32 %v4847_v2, %v2071_v14  ;;  %v2074_v63 = vadd.f32 %v2942_v33, %v2073_v26  ;;  %v3494_v2 = vld [vmem:[#allocation21] ss:$8 sps:$4 sm:$0xff]  }
 0xaf5   : > { %v5155_v8 = vadd.f32 %v4855_v5, %v2082_v7  ;;  %2266 = vmatpush1.bf16.msra.mxu1 %v3494_v2 }
 0xaf6   : > { %v5146_v0 = vadd.f32 %v4853_v4, %v2074_v63  ;;  %2091 = vadd.xlane.f32.xlu0 %v5143_v60  ;;  %v3497_v4 = vld [vmem:[#allocation21 + $0x10] ss:$8 sps:$4 sm:$0xff]   ;;  %2267 = vmatprep.subr.bf16.mxu1 %v3499_v61 }
 0xaf8   : > { %2093 = vadd.xlane.f32.xlu1 %v5146_v0 }
 0xaf9   : > { %2268 = vmatpush1.bf16.msra.mxu1 %v3497_v4 }
 0xafa   : > { %2095 = vadd.xlane.f32.xlu0 %v5150_v6  ;;  %2269 = vmatprep.subr.bf16.mxu1 %v3502_v34  ;;  %v2175_v34 = vlaneseq }
 0xafd   : > { %2270 = vmatpush1.bf16.msra.mxu1 %v3500_v35  ;;  %v2176_v35 = vshrl.u32 %v2175_v34, 7 }
 0xafe   : > { %2097 = vadd.xlane.f32.xlu0 %v5155_v8  ;;  %2271 = vmatprep.subr.bf16.mxu1 %v3505_v38 }
 0xaff   : > { %v2177_v38 = vsub.s32 0, %v2176_v35 }
 0xb01   : > { %2272 = vmatpush1.bf16.msra.mxu1 %v3503_v39  ;;  %v2173_v39 = vld [vmem:[#allocation23] sm:$0x3] }
 0xb02   : > { %2273 = vmatprep.subr.bf16.mxu1 %v3508_v40  ;;  %v2181_v40 = vsub.s32 1, %v2176_v35 }
 0xb05   : > { %2274 = vmatpush1.bf16.msra.mxu1 %v3506_v41  ;;  %v2178_v41 = vrot.slane %v2173_v39, %v2177_v38 }
 0xb06   : > { %2275 = vmatprep.subr.bf16.mxu1 %v3511_v31  ;;  %v2182_v31 = vrot.slane %v2173_v39, %v2181_v40 }
 0xb09   : > { %2276 = vmatpush1.bf16.msra.mxu1 %v3509_v27 }
 0xb0a   : > { %2277 = vmatprep.subr.bf16.mxu1 %v3514_v44 }
 0xb0d   : > { %2278 = vmatpush1.bf16.msra.mxu1 %v3512_v45 }
 0xb0e   : > { %2279 = vmatprep.subr.bf16.mxu1 %v3517_v23 }
 0xb11   : > { %2280 = vmatpush1.bf16.msra.mxu1 %v3515_v42 }
 0xb83   : > { %v2092_v3 = vpop.xlane.xlu0 %2091 }
 0xb84   : > { %v2099_v9 = vmul.f32 0.0078125, %v2092_v3 }
 0xb85   : > { %v2094_v58 = vpop.xlane.xlu1 %2093 }
 0xb86   : > { %v2103_v10 = vsub.f32 %v5143_v60, %v2099_v9  ;;  %v2100_v12 = vmul.f32 0.0078125, %v2094_v58  ;;  %v3518_v9 = vld [vmem:[#allocation24 + $0x40] sm:$0xff]  }
 0xb87   : > { %v2096_v22 = vpop.xlane.xlu0 %2095  ;;  %v3519_v58 = vld [vmem:[#allocation24] sm:$0xff]   ;;  %3082 = vmatprep.subr.bf16.mxu0 %v3518_v9 }
 0xb88   : > { %v2104_v5 = vsub.f32 %v5146_v0, %v2100_v12  ;;  %v2101_v19 = vmul.f32 0.0078125, %v2096_v22  ;;  %v2107_v24 = vmul.f32 %v2103_v10, %v2103_v10  ;;  %3083 = vmatpush3.bf16.msra.mxu0 %v3519_v58  ;;  %v3521_v12 = vld [vmem:[#allocation24 + $0x8] sm:$0xff]   ;;  %v3522_v22 = vld [vmem:[#allocation24 + $0x50] sm:$0xff]  }
 0xb8a   : > { %v2105_v25 = vsub.f32 %v5150_v6, %v2101_v19  ;;  %2111 = vadd.xlane.f32.xlu0 %v2107_v24  ;;  %v2108_v21 = vmul.f32 %v2104_v5, %v2104_v5  ;;  %v3524_v19 = vld [vmem:[#allocation24 + $0x58] sm:$0xff]  }
 0xb8b   : > { %v2098_v15 = vpop.xlane.xlu0 %2097  ;;  %v3525_v24 = vld [vmem:[#allocation24 + $0x18] sm:$0xff]  }
 0xb8c   : > { %v2102_v37 = vmul.f32 0.0078125, %v2098_v15  ;;  %2113 = vadd.xlane.f32.xlu1 %v2108_v21  ;;  %v2109_v16 = vmul.f32 %v2105_v25, %v2105_v25  ;;  %v3528_v21 = vld [vmem:[#allocation24 + $0x68] sm:$0xff]  }
 0xb8d   : > { %v3529_v15 = vld [vmem:[#allocation24 + $0x28] sm:$0xff]  }
 0xb8e   : > { %v2106_v18 = vsub.f32 %v5155_v8, %v2102_v37  ;;  %2115 = vadd.xlane.f32.xlu0 %v2109_v16  ;;  %v3530_v37 = vld [vmem:[#allocation24 + $0x70] sm:$0xff]  }
 0xb8f   : > { %v3531_v16 = vld [vmem:[#allocation24 + $0x30] sm:$0xff]  }
 0xb90   : > { %v2110_v32 = vmul.f32 %v2106_v18, %v2106_v18 }
 0xb92   : > { %2117 = vadd.xlane.f32.xlu1 %v2110_v32  ;;  %v3533_v32 = vld [vmem:[#allocation24 + $0x38] sm:$0xff]  }
 0xc17   : > { %v2112_v43 = vpop.xlane.xlu0 %2111 }
 0xc18   : > { %v2119_v47 = vmul.f32 0.0078125, %v2112_v43 }
 0xc19   : > { %v2114_v62 = vpop.xlane.xlu1 %2113 }
 0xc1a   : > { %v2123_v48 = vadd.f32 1e-05, %v2119_v47  ;;  %v2120_v28 = vmul.f32 0.0078125, %v2114_v62 }
 0xc1b   : > { %v2116_v13 = vpop.xlane.xlu0 %2115 }
 0xc1c   : > { %3614 = vrsqrt.f32 %v2123_v48  ;;  %v2124_v49 = vadd.f32 1e-05, %v2120_v28  ;;  %v2121_v50 = vmul.f32 0.0078125, %v2116_v13 }
 0xc1e   : > { %3616 = vrsqrt.f32 %v2124_v49  ;;  %v2125_v53 = vadd.f32 1e-05, %v2121_v50 }
 0xc1f   : > { %v2118_v11 = vpop.xlane.xlu1 %2117 }
 0xc20   : > { %3618 = vrsqrt.f32 %v2125_v53  ;;  %v2122_v17 = vmul.f32 0.0078125, %v2118_v11 }
 0xc22   : > { %v2126_v30 = vadd.f32 1e-05, %v2122_v17 }
 0xc24   : > { %3620 = vrsqrt.f32 %v2126_v30 }
 0xc26   : > { %v3615_v1 = vpop.eup %3614 }
 0xc27   : > { %v2131_v52 = vmul.f32 %v3615_v1, %v2103_v10  ;;  %v3520_v10 = vld [vmem:[#allocation24 + $0x48] sm:$0xff]  }
 0xc28   : > { %v3617_v46 = vpop.eup %3616  ;;  %3084 = vmatprep.subr.bf16.mxu0 %v3520_v10 }
 0xc29   : > { %v2132_v29 = vmul.f32 %v3617_v46, %v2104_v5  ;;  %v2141_v54 = vmul.f32 %v2951_v51, %v2131_v52  ;;  %3085 = vmatpush3.bf16.msra.mxu0 %v3521_v12  ;;  %v3523_v5 = vld [vmem:[#allocation24 + $0x10] sm:$0xff]  }
 0xc2a   : > { %v3619_v33 = vpop.eup %3618  ;;  %3086 = vmatprep.subr.bf16.mxu0 %v3522_v22 }
 0xc2b   : > { %v2142_v55 = vmul.f32 %v2951_v51, %v2132_v29  ;;  %v2151_v14 = vadd.f32 %v2952_v20, %v2141_v54  ;;  %v2133_v26 = vmul.f32 %v3619_v33, %v2105_v25  ;;  %v3527_v25 = vld [vmem:[#allocation24 + $0x20] sm:$0xff]  }
 0xc2d   : > { %v2152_v57 = vadd.f32 %v2952_v20, %v2142_v55  ;;  %v2143_v2 = vmul.f32 %v2951_v51, %v2133_v26  ;;  %3087 = vmatpush3.bf16.msra.mxu0 %v3523_v5 }
 0xc2e   : > { %v3621_v56 = vpop.eup %3620  ;;  %3088 = vmatprep.subr.bf16.mxu0 %v3524_v19 }
 0xc2f   : > { %v2155_v63 = vpack.c.bf16 %v2152_v57, %v2151_v14  ;;  %v2134_v7 = vmul.f32 %v3621_v56, %v2106_v18  ;;  %v2153_v4 = vadd.f32 %v2952_v20, %v2143_v2  ;;  %v3532_v18 = vld [vmem:[#allocation24 + $0x78] sm:$0xff]  }
 0xc31   : > { %2298 = vmatmul.mubr.bf16.vlgmr.msra.gmra.mrb[24].mxu1 %v2155_v63  ;;  %v2144_v36 = vmul.f32 %v2951_v51, %v2134_v7  ;;  %3089 = vmatpush3.bf16.msra.mxu0 %v3525_v24 }
 0xc32   : > { %2307 = vmatprep.mubr.bf16.mxu1 %v4253_v59  ;;  %v3526_v59 = vld [vmem:[#allocation24 + $0x60] sm:$0xff]  }
 0xc33   : > { %v2154_v61 = vadd.f32 %v2952_v20, %v2144_v36  ;;  %3090 = vmatprep.subr.bf16.mxu0 %v3526_v59 }
 0xc35   : > { %v2156_v3 = vpack.c.bf16 %v2154_v61, %v2153_v4  ;;  %3091 = vmatpush3.bf16.msra.mxu0 %v3527_v25 }
 0xc36   : > { %3092 = vmatprep.subr.bf16.mxu0 %v3528_v21 }
 0xc39   : > { %2308 = vmatmul.mubr.bf16.gmra.mrb[28].mxu1 %v2156_v3  ;;  %3093 = vmatpush3.bf16.msra.mxu0 %v3529_v15 }
 0xc3a   : > { %3094 = vmatprep.subr.bf16.mxu0 %v3530_v37 }
 0xc3d   : > { %3095 = vmatpush3.bf16.msra.mxu0 %v3531_v16 }
 0xc3e   : > { %3096 = vmatprep.subr.bf16.mxu0 %v3532_v18 }
 0xc41   : > { %3097 = vmatpush3.bf16.msra.mxu0 %v3533_v32 }
 0xd04   : > { %v2299_v27 = vpop.f32.mrb[24].mxu1 }
 0xd05   : > { %v5163_v44 = vadd.f32 %v2299_v27, %v2178_v41  ;;  %v2301_v45 = vpop.f32.mrb[25].mxu1 }
 0xd06   : > { %v5165_v23 = vadd.f32 %v2301_v45, %v2182_v31  ;;  %v2303_v42 = vpop.f32.mrb[26].mxu1 }
 0xd07   : > { %v2318_v43 = vmul.f32 %v5163_v44, %v5163_v44  ;;  %v5169_v47 = vadd.f32 %v2303_v42, %v2178_v41  ;;  %v2305_v62 = vpop.f32.mrb[27].mxu1 }
 0xd08   : > { %v2319_v48 = vmul.f32 %v5165_v23, %v5165_v23  ;;  %v5173_v28 = vadd.f32 %v2305_v62, %v2182_v31 }
 0xd09   : > { %v2326_v13 = vmul.f32 %v2318_v43, %v5163_v44  ;;  %v2320_v49 = vmul.f32 %v5169_v47, %v5169_v47 }
 0xd0a   : > { %v2327_v50 = vmul.f32 %v2319_v48, %v5165_v23  ;;  %v2321_v53 = vmul.f32 %v5173_v28, %v5173_v28 }
 0xd0b   : > { %v2334_v11 = vmul.f32 0.044715, %v2326_v13  ;;  %v2328_v17 = vmul.f32 %v2320_v49, %v5169_v47 }
 0xd0c   : > { %v2335_v30 = vmul.f32 0.044715, %v2327_v50  ;;  %v2329_v1 = vmul.f32 %v2321_v53, %v5173_v28  ;;  %v2309_v51 = vpop.f32.mrb[28].mxu1 }
 0xd0d   : > { %v2342_v52 = vadd.f32 %v2334_v11, %v5163_v44  ;;  %v2336_v46 = vmul.f32 0.044715, %v2328_v17  ;;  %v5184_v29 = vadd.f32 %v2309_v51, %v2178_v41  ;;  %v2311_v54 = vpop.f32.mrb[29].mxu1 }
 0xd0e   : > { %v2343_v33 = vadd.f32 %v2335_v30, %v5165_v23  ;;  %v2337_v20 = vmul.f32 0.044715, %v2329_v1  ;;  %v5187_v55 = vadd.f32 %v2311_v54, %v2182_v31  ;;  %v2313_v14 = vpop.f32.mrb[30].mxu1 }
 0xd0f   : > { %v2350_v57 = vmul.f32 0.7978846, %v2342_v52  ;;  %v2344_v26 = vadd.f32 %v2336_v46, %v5169_v47  ;;  %v2322_v56 = vmul.f32 %v5184_v29, %v5184_v29  ;;  %v5192_v63 = vadd.f32 %v2313_v14, %v2178_v41  ;;  %v2315_v7 = vpop.f32.mrb[31].mxu1 }
 0xd10   : > { %v2351_v2 = vmul.f32 0.7978846, %v2343_v33  ;;  %v2345_v36 = vadd.f32 %v2337_v20, %v5173_v28  ;;  %v2323_v61 = vmul.f32 %v5187_v55, %v5187_v55  ;;  %v5197_v4 = vadd.f32 %v2315_v7, %v2182_v31 }
 0xd11   : > { %3622 = vtanh.f32 %v2350_v57  ;;  %v2352_v3 = vmul.f32 0.7978846, %v2344_v26  ;;  %v2330_v9 = vmul.f32 %v2322_v56, %v5184_v29  ;;  %v2324_v58 = vmul.f32 %v5192_v63, %v5192_v63 }
 0xd12   : > { %3624 = vtanh.f32 %v2351_v2  ;;  %v2353_v10 = vmul.f32 0.7978846, %v2345_v36  ;;  %v2331_v12 = vmul.f32 %v2323_v61, %v5187_v55  ;;  %v2325_v22 = vmul.f32 %v5197_v4, %v5197_v4 }
 0xd13   : > { %3626 = vtanh.f32 %v2352_v3  ;;  %v2338_v5 = vmul.f32 0.044715, %v2330_v9  ;;  %v2332_v19 = vmul.f32 %v2324_v58, %v5192_v63  ;;  %v2969_v9 = vld [vmem:[#allocation26] ss:$0 sm:$0xff] }
 0xd14   : > { %3628 = vtanh.f32 %v2353_v10  ;;  %v2339_v24 = vmul.f32 0.044715, %v2331_v12  ;;  %v2333_v59 = vmul.f32 %v2325_v22, %v5197_v4 }
 0xd15   : > { %v2346_v25 = vadd.f32 %v2338_v5, %v5184_v29  ;;  %v2340_v21 = vmul.f32 0.044715, %v2332_v19 }
 0xd16   : > { %v2347_v15 = vadd.f32 %v2339_v24, %v5187_v55  ;;  %v2341_v37 = vmul.f32 0.044715, %v2333_v59 }
 0xd17   : > { %v2354_v16 = vmul.f32 0.7978846, %v2346_v25  ;;  %v2348_v18 = vadd.f32 %v2340_v21, %v5192_v63 }
 0xd18   : > { %v2355_v32 = vmul.f32 0.7978846, %v2347_v15  ;;  %v2349_v34 = vadd.f32 %v2341_v37, %v5197_v4 }
 0xd19   : > { %3630 = vtanh.f32 %v2354_v16  ;;  %v2356_v35 = vmul.f32 0.7978846, %v2348_v18 }
 0xd1a   : > { %3632 = vtanh.f32 %v2355_v32  ;;  %v2357_v38 = vmul.f32 0.7978846, %v2349_v34 }
 0xd1b   : > { %v3623_v39 = vpop.eup %3622  ;;  %3634 = vtanh.f32 %v2356_v35 }
 0xd1c   : > { %v3625_v40 = vpop.eup %3624  ;;  %v2366_v41 = vadd.f32 1.0, %v3623_v39  ;;  %3636 = vtanh.f32 %v2357_v38 }
 0xd1d   : > { %v3627_v31 = vpop.eup %3626  ;;  %v2367_v27 = vadd.f32 1.0, %v3625_v40 }
 0xd1e   : > { %v3629_v45 = vpop.eup %3628  ;;  %v2374_v42 = vmul.f32 0.5, %v2366_v41  ;;  %v2368_v43 = vadd.f32 1.0, %v3627_v31 }
 0xd1f   : > { %v2369_v62 = vadd.f32 1.0, %v3629_v45  ;;  %v2375_v48 = vmul.f32 0.5, %v2367_v27 }
 0xd20   : > { %v2376_v13 = vmul.f32 0.5, %v2368_v43  ;;  %v2382_v50 = vmul.f32 %v2374_v42, %v5163_v44 }
 0xd21   : > { %v2377_v49 = vmul.f32 0.5, %v2369_v62  ;;  %v2383_v17 = vmul.f32 %v2375_v48, %v5165_v23 }
 0xd22   : > { %v2384_v53 = vmul.f32 %v2376_v13, %v5169_v47 }
 0xd23   : > { %v3631_v11 = vpop.eup %3630  ;;  %v2385_v30 = vmul.f32 %v2377_v49, %v5173_v28 }
 0xd24   : > { %v3633_v1 = vpop.eup %3632  ;;  %v2390_v51 = vpack.c.bf16 %v2384_v53, %v2382_v50  ;;  %v2370_v52 = vadd.f32 1.0, %v3631_v11 }
 0xd25   : > { %v3635_v46 = vpop.eup %3634  ;;  %v2391_v54 = vpack.c.bf16 %v2385_v30, %v2383_v17  ;;  %v2371_v33 = vadd.f32 1.0, %v3633_v1 }
 0xd26   : > { %v3637_v20 = vpop.eup %3636  ;;  %v2372_v14 = vadd.f32 1.0, %v3635_v46  ;;  %v2378_v57 = vmul.f32 0.5, %v2370_v52 }
 0xd27   : > { %2561 = vmatprep.mubr.bf16.mxu0 %v2391_v54  ;;  %v2373_v26 = vadd.f32 1.0, %v3637_v20  ;;  %v2379_v56 = vmul.f32 0.5, %v2371_v33 }
 0xd28   : > { %2562 = vmatmul.mubr.bf16.vlgmr.msra.gmra.mrb[24].mxu0 %v2390_v51  ;;  %v2380_v44 = vmul.f32 0.5, %v2372_v14  ;;  %v2386_v7 = vmul.f32 %v2378_v57, %v5184_v29 }
 0xd29   : > { %v2381_v47 = vmul.f32 0.5, %v2373_v26  ;;  %v2387_v28 = vmul.f32 %v2379_v56, %v5187_v55 }
 0xd2a   : > { %v2388_v23 = vmul.f32 %v2380_v44, %v5192_v63 }
 0xd2b   : > { %v2389_v2 = vmul.f32 %v2381_v47, %v5197_v4 }
 0xd2c   : > { %v2392_v36 = vpack.c.bf16 %v2388_v23, %v2386_v7 }
 0xd2d   : > { %v2393_v61 = vpack.c.bf16 %v2389_v2, %v2387_v28 }
 0xd2f   : > { %2569 = vmatprep.mubr.bf16.mxu0 %v2393_v61 }
 0xd30   : > { %2570 = vmatmul.mubr.bf16.gmra.mrb[28].mxu0 %v2392_v36 }
 0xdfb   : > { %v3098_v3 = vpop.f32.mrb[24].mxu0 }
 0xdfc   : > { %v3099_v58 = vpop.f32.mrb[25].mxu0 }
 0xdfd   : > { %v3100_v10 = vadd.f32 %v3099_v58, %v3098_v3  ;;  %v3101_v12 = vpop.f32.mrb[26].mxu0 }
 0xdfe   : > { %v3102_v22 = vpop.f32.mrb[27].mxu0 }
 0xdff   : > { %v2564_v5 = vadd.f32 %v3100_v10, %v2969_v9  ;;  %v3103_v29 = vadd.f32 %v3102_v22, %v3101_v12 }
 0xe01   : > { %v2567_v19 = vadd.f32 %v3103_v29, %v2969_v9  ;;  %v2578_v63 = vadd.f32 %v2564_v5, %v5143_v60 }
 0xe03   : > { %v2579_v55 = vadd.f32 %v2567_v19, %v5146_v0  ;;  %v3104_v4 = vpop.f32.mrb[28].mxu0 }
 0xe04   : > { %v3105_v24 = vpop.f32.mrb[29].mxu0 }
 0xe05   : > { %v3020_v59 = vpack.c.bf16 %v2579_v55, %v2578_v63  ;;  %v3106_v25 = vadd.f32 %v3105_v24, %v3104_v4  ;;  %v3107_v21 = vpop.f32.mrb[30].mxu0 }
 0xe06   : > { %v3108_v15 = vpop.f32.mrb[31].mxu0 }
 0xe07   : > { %3021 = vst [vmem:[%s790_s17] sm:$0xff] %v3020_v59   ;;  %v2572_v37 = vadd.f32 %v3106_v25, %v2969_v9  ;;  %v3109_v16 = vadd.f32 %v3108_v15, %v3107_v21 }
 0xe09   : > { %v2575_v18 = vadd.f32 %v3109_v16, %v2969_v9  ;;  %v2580_v60 = vadd.f32 %v2572_v37, %v5150_v6 }
 0xe0b   : > { %v2581_v0 = vadd.f32 %v2575_v18, %v5155_v8 }
 0xe0d   : > { %v3025_v32 = vpack.c.bf16 %v2581_v0, %v2580_v60 }
 0xe0f   : > { %3029 = vst [vmem:[%s790_s17 + $0x8] sm:$0xff] %v3025_v32  }
 0xe10   : > { %4129 = shalt.err (!%p4126_p8)
}
 0xe11   : > { %s4130_s18 = scalar_lea.hbm %s5229_s29, 256  ;;  %s4134_s23 = scalar_lea.hbm %s5374_s30, 512 }
 0xe12   : > { %p4131_p9 = scmp.ne.s32.totalorder %s5229_s29, %s4130_s18  ;;  %p4135_p3 = scmp.lt.u32.totalorder %s5229_s29, %s5374_s30 }
 0xe13   : > { %p4136_p7 = scmp.lt.u32.totalorder %s4134_s23, %s4130_s18  ;;  %p4138_p11 = scmp.lt.u32.totalorder %s4130_s18, %s5229_s29 }
 0xe14   : > { %p4132_p4 = pnand %p4131_p9, %p5375_p0 }
 0xe15   : > { %p4137_p12 = por %p4136_p7, %p4135_p3 }
 0xe16   : > { %p4133_p6 = pneg %p4132_p4 }
 0xe17   : > { %p4139_p5 = por %p4138_p11, %p4137_p12 }
 0xe19   : > { %p4140_p1 = pnand %p4139_p5, %p4133_p6 }
 0xe1b   : > { %4143 = shalt.err (!%p4140_p1)
}
 0xe1c   : > { %s4258_s16 = smov 4  }
 0xe1d   : > { %3288 = dma.vmem_to_hbm [thread:$0]  (%p5375_p0), %s5231_s27, 256, %s5229_s29, %s2603_s24, %s4255_s28, %s4255_s28, %s4258_s16  }
 0xe1e PF: > { %s5376_s5 = sld [smem:[#allocation41_spill]]  ;;  %s5377_s4 = sld [smem:[#allocation46_spill]] }
 0xe1f   : > { %p5378_p10 = scmp.ne.s32.totalorder %s5365_s0, 0 }
 0xe24   : > { %s2633_s3 = sand.u32 1, %s5376_s5   ;;  %p5379_p13 = scmp.ge.s32.totalorder %s5377_s4, 2 }
 0xe25   : > { %s2634_s18 = scalar_lea.sflag [#allocation5], %s2633_s3 }
 0xe26   : > { %p3344_p2 = pnand %p5379_p13, %p5378_p10 }
 0xe28   : > { %4205 = dma.done.wait (!%p3344_p2), %s2634_s18, 256  }
 0xe29   : > { %4207 = vsyncadd (!%p3344_p2), %s2634_s18, 4294967040  ;;  %s41_s29 = sadd.s32 1, %s5377_s4   ;;  %s5380_s24 = sld [smem:[#allocation42_spill]] }
 0xe2a   : > { %p38_p8 = scmp.ge.s32.totalorder %s41_s29, 4   ;;  %s5381_s25 = sld [smem:[#allocation43_spill]] }
 0xe2b   : > { %s5382_s27 = sld [smem:[#allocation45_spill]]  ;;  %s5383_s26 = smov %s4749_s1 }
 0xe2c   : > { %s5384_s28 = smov %s5386_s21  ;;  %40 = sbr.rel (!%p38_p8) target bundleno = 23 (0x17), region = 198 }
 0xe33   :  { %2639 = vsyncpa [#allocation4], 1 }
 0xe34   :  { %2641 = vsyncpa [#allocation4 + $0x1], 1 }
 0xe35   :  { %2642 = vsyncpa [#allocation7], 1 }
 0xe36   :  { %2643 = vsyncpa [#allocation10], 1 }
 0xe37   :  { %2644 = vsyncpa [#allocation13], 1 }
 0xe38   :  { %2645 = vsyncpa [#allocation16], 1 }
 0xe39   :  { %2646 = vsyncpa [#allocation19], 1 }
 0xe3a   :  { %2647 = vsyncpa [#allocation22], 1 }
 0xe3b   :  { %2648 = vsyncpa [#allocation25], 1 }
 0xe3c   :  { %2649 = vsyncpa [#allocation28], 1 }
 0xe3d   :  { %2650 = vsyncpa [#allocation5], 1 }
 0xe3e   :  { %2652 = vsyncpa [#allocation5 + $0x1], 1 }

// kernel: forward.6
= control target key start
LH: loop header
LB: loop body
LE: loop exit
PB: predicated region body
PF: predicated region fallthrough
CT: control target
= control target key end

     0   :  { %s5358_s0 = inlined_call_operand.hbm [shape: bf16[2,32,128], index: 0, kind: input, shape index: {}]   ;;  %s5359_s1 = inlined_call_operand.hbm [shape: f32[1,128], index: 1, kind: input, shape index: {}]   ;;  %s5360_s2 = inlined_call_operand.hbm [shape: f32[1,128], index: 2, kind: input, shape index: {}]   ;;  %s5361_s3 = inlined_call_operand.hbm [shape: bf16[128,128], index: 3, kind: input, shape index: {}]   ;;  %s5362_s4 = inlined_call_operand.hbm [shape: f32[1,128], index: 4, kind: input, shape index: {}]   ;;  %s5363_s5 = inlined_call_operand.hbm [shape: bf16[128,256], index: 5, kind: input, shape index: {}]   ;;  %s5364_s6 = inlined_call_operand.hbm [shape: f32[1,128], index: 6, kind: input, shape index: {}]   ;;  %s5365_s7 = inlined_call_operand.hbm [shape: bf16[128,128], index: 7, kind: input, shape index: {}]   ;;  %s5366_s8 = inlined_call_operand.hbm [shape: f32[1,128], index: 8, kind: input, shape index: {}]   ;;  %s5367_s9 = inlined_call_operand.hbm [shape: f32[1,128], index: 9, kind: input, shape index: {}]   ;;  %s5368_s10 = inlined_call_operand.hbm [shape: f32[1,128], index: 10, kind: input, shape index: {}]   ;;  %s5369_s11 = inlined_call_operand.hbm [shape: bf16[128,256], index: 11, kind: input, shape index: {}]   ;;  %s5370_s12 = inlined_call_operand.hbm [shape: f32[1,256], index: 12, kind: input, shape index: {}]   ;;  %s5371_s13 = inlined_call_operand.hbm [shape: bf16[256,128], index: 13, kind: input, shape index: {}]   ;;  %s5372_s14 = inlined_call_operand.hbm [shape: f32[1,128], index: 14, kind: input, shape index: {}]   ;;  %s5373_s15 = inlined_call_operand.hbm [shape: f32[1,128], index: 15, kind: input, shape index: {}]   ;;  %s5374_s16 = inlined_call_operand.hbm [shape: f32[1,128], index: 16, kind: input, shape index: {}]   ;;  %s5375_s17 = inlined_call_operand.hbm [shape: bf16[2,32,128], index: 17, kind: output, shape index: {}]  }
   0x1   :  { %5401 = sst [smem:[#allocation49_spill]] %s5358_s0 }
   0x2   :  { %5402 = sst [smem:[#allocation50_spill]] %s5359_s1 }
   0x3   :  { %5403 = sst [smem:[#allocation51_spill]] %s5360_s2 }
   0x4   :  { %5404 = sst [smem:[#allocation52_spill]] %s5361_s3 }
   0x5   :  { %5405 = sst [smem:[#allocation53_spill]] %s5362_s4 }
   0x6   :  { %5406 = sst [smem:[#allocation54_spill]] %s5363_s5 }
   0x7   :  { %5407 = sst [smem:[#allocation55_spill]] %s5374_s16 }
   0x8   :  { %5408 = sst [smem:[#allocation56_spill]] %s5375_s17 }
   0x9   :  { %22 = vsyncpa [#allocation4], 0 }
   0xa   :  { %24 = vsyncpa [#allocation4 + $0x1], 0 }
   0xb   :  { %25 = vsyncpa [#allocation7], 0 }
   0xc   :  { %26 = vsyncpa [#allocation10], 0 }
   0xd   :  { %27 = vsyncpa [#allocation13], 0 }
   0xe   :  { %28 = vsyncpa [#allocation16], 0 }
   0xf   :  { %29 = vsyncpa [#allocation19], 0 }
  0x10   :  { %30 = vsyncpa [#allocation22], 0 }
  0x11   :  { %31 = vsyncpa [#allocation25], 0 }
  0x12   :  { %32 = vsyncpa [#allocation28], 0 }
  0x13   :  { %33 = vsyncpa [#allocation5], 0 }
  0x14   :  { %35 = vsyncpa [#allocation5 + $0x1], 0  ;;  %s4425_s24 = smov 0   ;;  %s4427_s25 = smov 0  }
  0x15   :  { %s4429_s26 = smov 0   ;;  %s4431_s27 = smov 0  }
  0x16   :  { %s4433_s28 = smov 0   ;;  %s4435_s29 = smov 0  }
  0x17 LB: > { %5409 = sst [smem:[#allocation41_spill]] %s4286_s24  ;;  %s5378_s0 = sadd.s32 4294967295, %s4306_s29   ;;  %s4306_s29 = sphi %s4435_s29, %s41_s29   ;;  %s4302_s28 = sphi %s4433_s28, %s5460_s28   ;;  %s4298_s27 = sphi %s4431_s27, %s5458_s27   ;;  %s4294_s26 = sphi %s4429_s26, %s5459_s26   ;;  %s4290_s25 = sphi %s4427_s25, %s5457_s25   ;;  %s4286_s24 = sphi %s4425_s24, %s5456_s24  }
  0x18   : > { %5410 = sst [smem:[#allocation42_spill]] %s4290_s25  ;;  %p2924_p0 = scmp.ge.s32.totalorder %s4306_s29, 1 }
  0x19   : > { %5411 = sst [smem:[#allocation43_spill]] %s4294_s26  ;;  %p4459_p1 = scmp.eq.s32.totalorder %s5378_s0, 0 }
  0x1a   : > { %5412 = sst [smem:[#allocation44_spill]] %s4298_s27  ;;  %p448_p2 = scmp.lt.s32.totalorder %s4306_s29, 3 }
  0x1b   : > { %5413 = sst [smem:[#allocation45_spill]] %s4302_s28  ;;  %s4308_s19 = smov [#allocation6]  }
  0x1c   : > { %5414 = sst [smem:[#allocation46_spill]] %s4306_s29  ;;  %p4464_p3 = pnand %p2924_p0, %p448_p2 }
  0x1d   : > { %s5415_s30 = scalar_select %p4459_p1, 1, 0 }
  0x1e   : > { %s5417_s18 = scalar_select %p4464_p3, 1, 0 }
  0x1f   : > { %5416 = sst [smem:[#allocation47_spill]] %s5415_s30  ;;  %s461_s1 = sshll.u32 %s4308_s19, 4  ;;  %s462_s1 = int_to_ptr.vmem [resolvable:$true] %s461_s1 }
  0x20   : > { %5418 = sst [smem:[#allocation48_spill]] %s5417_s18  ;;  %p3358_p5 = pneg %p4464_p3 }
  0x21   : > { %s4309_s20 = smov [#allocation9]   ;;  %s4310_s23 = smov [#allocation12]  }
  0x22   : > { %s482_s21 = sshll.u32 %s4309_s20, 4  ;;  %p4473_p6 = pnand %p3358_p5, %p4459_p1  ;;  %s4477_s21 = int_to_ptr.vmem [resolvable:$true] %s482_s21 }
  0x23   : > { %s4479_s0 = sshll.u32 %s4310_s23, 4  ;;  %s5420_s19 = sld [smem:[#allocation50_spill]]  ;;  %s507_s0 = int_to_ptr.vmem [resolvable:$true] %s4479_s0 }
  0x24   : > { %p4489_p8 = pneg %p4473_p6 }
  0x29   : > { %s3714_s24 = scalar_lea.hbm %s5420_s19, 16 }
  0x2a   : > { %p3715_p7 = scmp.ne.s32.totalorder %s5420_s19, %s3714_s24  ;;  %p3721_p11 = scmp.lt.u32.totalorder %s3714_s24, %s5420_s19 }
  0x2c   : > { %p3717_p9 = pnand %p4489_p8, %p3715_p7 }
  0x2e   : > { %p3718_p10 = pneg %p3717_p9 }
  0x30   : > { %p3723_p12 = pnand %p3721_p11, %p3718_p10 }
  0x32   : > { %3726 = shalt.err (!%p3723_p12)
}
  0x33   : > { %s3727_s17 = scalar_lea.vmem %s462_s1, 16  ;;  %s3734_s25 = scalar_lea.vmem %s462_s1, 32 }
  0x34   : > { %p3728_p13 = scmp.ne.s32.totalorder %s462_s1, %s3727_s17  ;;  %p3735_p5 = scmp.lt.s32.totalorder %s462_s1, %s462_s1 }
  0x35   : > { %p3736_p4 = scmp.lt.s32.totalorder %s3734_s25, %s3727_s17 }
  0x36   : > { %p3730_p0 = pnand %p3728_p13, %p4489_p8 }
  0x37   : > { %p3737_p3 = por %p3736_p4, %p3735_p5 }
  0x38   : > { %p3731_p2 = pneg %p3730_p0 }
  0x3a   : > { %p3738_p1 = pnand %p3737_p3, %p3731_p2 }
  0x3c   : > { %3741 = shalt.err (!%p3738_p1)
}
  0x3d   : > { %3361 = dma.hbm_to_vmem [thread:$0]  (!%p4473_p6), %s5420_s19, 16, %s462_s1, [#allocation7]  }
  0x3e   : > { %s5422_s3 = sld [smem:[#allocation52_spill]] }
  0x44   : > { %s3742_s23 = scalar_lea.hbm %s5422_s3, 1024 }
  0x45   : > { %p3743_p7 = scmp.ne.s32.totalorder %s5422_s3, %s3742_s23  ;;  %p3749_p1 = scmp.lt.u32.totalorder %s3742_s23, %s5422_s3 }
  0x47   : > { %p3745_p9 = pnand %p3743_p7, %p4489_p8 }
  0x49   : > { %p3746_p4 = pneg %p3745_p9 }
  0x4b   : > { %p3751_p3 = pnand %p3749_p1, %p3746_p4 }
  0x4d   : > { %3754 = shalt.err (!%p3751_p3)
}
  0x4e   : > { %s3755_s1 = scalar_lea.vmem %s4477_s21, 1024  ;;  %p3763_p13 = scmp.lt.s32.totalorder %s4477_s21, %s4477_s21 }
  0x4f   : > { %p3756_p10 = scmp.ne.s32.totalorder %s4477_s21, %s3755_s1  ;;  %p3764_p0 = scmp.lt.s32.totalorder %s3755_s1, %s3755_s1 }
  0x51   : > { %p3758_p11 = pnand %p3756_p10, %p4489_p8  ;;  %p3765_p2 = por %p3764_p0, %p3763_p13 }
  0x53   : > { %p3759_p12 = pneg %p3758_p11 }
  0x55   : > { %p3766_p5 = pnand %p3765_p2, %p3759_p12 }
  0x57   : > { %3769 = shalt.err (!%p3766_p5)
}
  0x58   : > { %s5390_s26 = smov 64   ;;  %s5392_s28 = smov 4  }
  0x59   : > { %3367 = dma.hbm_to_vmem [thread:$0]  (!%p4473_p6), %s5422_s3, 1024, %s4477_s21, [#allocation10], %s5390_s26, %s5390_s26, %s5392_s28  }
  0x5a   : > { %s5423_s5 = sld [smem:[#allocation54_spill]] }
  0x60   : > { %s3770_s23 = scalar_lea.hbm %s5423_s5, 2048 }
  0x61   : > { %p3771_p7 = scmp.ne.s32.totalorder %s5423_s5, %s3770_s23  ;;  %p3777_p1 = scmp.lt.u32.totalorder %s3770_s23, %s5423_s5 }
  0x63   : > { %p3773_p9 = pnand %p3771_p7, %p4489_p8 }
  0x65   : > { %p3774_p4 = pneg %p3773_p9 }
  0x67   : > { %p3779_p3 = pnand %p3777_p1, %p3774_p4 }
  0x69   : > { %3782 = shalt.err (!%p3779_p3)
}
  0x6a   : > { %s3783_s27 = scalar_lea.vmem %s507_s0, 2048  ;;  %p3791_p13 = scmp.lt.s32.totalorder %s507_s0, %s507_s0 }
  0x6b   : > { %p3784_p10 = scmp.ne.s32.totalorder %s507_s0, %s3783_s27  ;;  %p3792_p0 = scmp.lt.s32.totalorder %s3783_s27, %s3783_s27 }
  0x6d   : > { %p3786_p11 = pnand %p3784_p10, %p4489_p8  ;;  %p3793_p2 = por %p3792_p0, %p3791_p13 }
  0x6f   : > { %p3787_p12 = pneg %p3786_p11 }
  0x71   : > { %p3794_p5 = pnand %p3793_p2, %p3787_p12 }
  0x73   : > { %3797 = shalt.err (!%p3794_p5)
}
  0x74   : > { %s5398_s21 = smov 128   ;;  %s4314_s18 = smov 8  }
  0x75   : > { %3373 = dma.hbm_to_vmem [thread:$0]  (!%p4473_p6), %s5423_s5, 2048, %s507_s0, [#allocation13], %s5398_s21, %s5398_s21, %s4314_s18  }
  0x76   : > { %s4315_s30 = smov [#allocation15]   ;;  %s4316_s17 = smov [#allocation18]  }
  0x77   : > { %s530_s23 = sshll.u32 %s4315_s30, 4  ;;  %s555_s25 = sshll.u32 %s4316_s17, 4  ;;  %s531_s23 = int_to_ptr.vmem [resolvable:$true] %s530_s23  ;;  %s556_s25 = int_to_ptr.vmem [resolvable:$true] %s555_s25 }
  0x78   : > { %s3798_s26 = scalar_lea.hbm %s5365_s7, 1024 }
  0x79   : > { %p3799_p7 = scmp.ne.s32.totalorder %s5365_s7, %s3798_s26  ;;  %p3805_p1 = scmp.lt.u32.totalorder %s3798_s26, %s5365_s7 }
  0x7b   : > { %p3801_p9 = pnand %p3799_p7, %p4489_p8 }
  0x7d   : > { %p3802_p4 = pneg %p3801_p9 }
  0x7f   : > { %p3807_p3 = pnand %p3805_p1, %p3802_p4 }
  0x81   : > { %3810 = shalt.err (!%p3807_p3)
}
  0x82   : > { %s3811_s0 = scalar_lea.vmem %s531_s23, 1024  ;;  %p3819_p13 = scmp.lt.s32.totalorder %s531_s23, %s531_s23 }
  0x83   : > { %p3812_p10 = scmp.ne.s32.totalorder %s531_s23, %s3811_s0  ;;  %p3820_p0 = scmp.lt.s32.totalorder %s3811_s0, %s3811_s0 }
  0x85   : > { %p3814_p11 = pnand %p3812_p10, %p4489_p8  ;;  %p3821_p2 = por %p3820_p0, %p3819_p13 }
  0x87   : > { %p3815_p12 = pneg %p3814_p11 }
  0x89   : > { %p3822_p5 = pnand %p3821_p2, %p3815_p12 }
  0x8b   : > { %3825 = shalt.err (!%p3822_p5)
}
  0x8c   : > { %s5424_s3 = smov 4   ;;  %s5425_s28 = smov 64  }
  0x8d   : > { %3379 = dma.hbm_to_vmem [thread:$0]  (!%p4473_p6), %s5365_s7, 1024, %s531_s23, [#allocation16], %s5425_s28, %s5425_s28, %s5424_s3  }
  0x8e   : > { %s3826_s24 = scalar_lea.hbm %s5367_s9, 16 }
  0x8f   : > { %p3827_p7 = scmp.ne.s32.totalorder %s5367_s9, %s3826_s24  ;;  %p3833_p1 = scmp.lt.u32.totalorder %s3826_s24, %s5367_s9 }
  0x91   : > { %p3829_p9 = pnand %p3827_p7, %p4489_p8 }
  0x93   : > { %p3830_p4 = pneg %p3829_p9 }
  0x95   : > { %p3835_p3 = pnand %p3833_p1, %p3830_p4 }
  0x97   : > { %3838 = shalt.err (!%p3835_p3)
}
  0x98   : > { %s3839_s0 = scalar_lea.vmem %s556_s25, 16  ;;  %s3846_s23 = scalar_lea.vmem %s556_s25, 32 }
  0x99   : > { %p3840_p10 = scmp.ne.s32.totalorder %s556_s25, %s3839_s0  ;;  %p3847_p13 = scmp.lt.s32.totalorder %s556_s25, %s556_s25 }
  0x9a   : > { %p3848_p0 = scmp.lt.s32.totalorder %s3846_s23, %s3839_s0 }
  0x9b   : > { %p3842_p11 = pnand %p3840_p10, %p4489_p8 }
  0x9c   : > { %p3849_p2 = por %p3848_p0, %p3847_p13 }
  0x9d   : > { %p3843_p12 = pneg %p3842_p11 }
  0x9f   : > { %p3850_p5 = pnand %p3849_p2, %p3843_p12 }
  0xa1   : > { %3853 = shalt.err (!%p3850_p5)
}
  0xa2   : > { %3385 = dma.hbm_to_vmem [thread:$0]  (!%p4473_p6), %s5367_s9, 16, %s556_s25, [#allocation19]  }
  0xa3   : > { %s4317_s26 = smov [#allocation21]   ;;  %s4318_s24 = smov [#allocation24]  }
  0xa4   : > { %s576_s19 = sshll.u32 %s4317_s26, 4  ;;  %s600_s30 = sshll.u32 %s4318_s24, 4  ;;  %s577_s19 = int_to_ptr.vmem [resolvable:$true] %s576_s19  ;;  %s601_s30 = int_to_ptr.vmem [resolvable:$true] %s600_s30 }
  0xa5   : > { %s3854_s27 = scalar_lea.hbm %s5369_s11, 2048 }
  0xa6   : > { %p3855_p7 = scmp.ne.s32.totalorder %s5369_s11, %s3854_s27  ;;  %p3861_p1 = scmp.lt.u32.totalorder %s3854_s27, %s5369_s11 }
  0xa8   : > { %p3857_p9 = pnand %p3855_p7, %p4489_p8 }
  0xaa   : > { %p3858_p4 = pneg %p3857_p9 }
  0xac   : > { %p3863_p3 = pnand %p3861_p1, %p3858_p4 }
  0xae   : > { %3866 = shalt.err (!%p3863_p3)
}
  0xaf   : > { %s3867_s25 = scalar_lea.vmem %s577_s19, 2048  ;;  %p3875_p13 = scmp.lt.s32.totalorder %s577_s19, %s577_s19 }
  0xb0   : > { %p3868_p10 = scmp.ne.s32.totalorder %s577_s19, %s3867_s25  ;;  %p3876_p0 = scmp.lt.s32.totalorder %s3867_s25, %s3867_s25 }
  0xb2   : > { %p3870_p11 = pnand %p3868_p10, %p4489_p8  ;;  %p3877_p2 = por %p3876_p0, %p3875_p13 }
  0xb4   : > { %p3871_p12 = pneg %p3870_p11 }
  0xb6   : > { %p3878_p5 = pnand %p3877_p2, %p3871_p12 }
  0xb8   : > { %3881 = shalt.err (!%p3878_p5)
}
  0xb9   : > { %s5426_s29 = smov 128   ;;  %s3882_s1 = scalar_lea.hbm %s5371_s13, 2048 }
  0xba   : > { %3391 = dma.hbm_to_vmem [thread:$0]  (!%p4473_p6), %s5369_s11, 2048, %s577_s19, [#allocation22], %s5426_s29, %s5426_s29, %s4314_s18  }
  0xbb   : > { %p3883_p7 = scmp.ne.s32.totalorder %s5371_s13, %s3882_s1  ;;  %p3889_p1 = scmp.lt.u32.totalorder %s3882_s1, %s5371_s13 }
  0xbd   : > { %p3885_p9 = pnand %p3883_p7, %p4489_p8 }
  0xbf   : > { %p3886_p4 = pneg %p3885_p9 }
  0xc1   : > { %p3891_p3 = pnand %p3889_p1, %p3886_p4 }
  0xc3   : > { %3894 = shalt.err (!%p3891_p3)
}
  0xc4   : > { %s3895_s25 = scalar_lea.vmem %s601_s30, 2048  ;;  %p3903_p13 = scmp.lt.s32.totalorder %s601_s30, %s601_s30 }
  0xc5   : > { %p3896_p10 = scmp.ne.s32.totalorder %s601_s30, %s3895_s25  ;;  %p3904_p0 = scmp.lt.s32.totalorder %s3895_s25, %s3895_s25 }
  0xc7   : > { %p3898_p11 = pnand %p3896_p10, %p4489_p8  ;;  %p3905_p2 = por %p3904_p0, %p3903_p13 }
  0xc9   : > { %p3899_p12 = pneg %p3898_p11 }
  0xcb   : > { %p3906_p5 = pnand %p3905_p2, %p3899_p12 }
  0xcd   : > { %3909 = shalt.err (!%p3906_p5)
}
  0xce   : > { %3397 = dma.hbm_to_vmem [thread:$0]  (!%p4473_p6), %s5371_s13, 2048, %s601_s30, [#allocation25], %s5425_s28, %s5425_s28, %s5424_s3  }
  0xcf   : > { %s4319_s29 = smov [#allocation27]   ;;  %s4320_s26 = smov [#allocation8]  }
  0xd0   : > { %s625_s21 = sshll.u32 %s4319_s29, 4  ;;  %s472_s24 = sshll.u32 %s4320_s26, 4  ;;  %s626_s21 = int_to_ptr.vmem [resolvable:$true] %s625_s21  ;;  %s473_s24 = int_to_ptr.vmem [resolvable:$true] %s472_s24 }
  0xd1   : > { %s3910_s27 = scalar_lea.hbm %s5373_s15, 16 }
  0xd2   : > { %p3911_p7 = scmp.ne.s32.totalorder %s5373_s15, %s3910_s27  ;;  %p3917_p1 = scmp.lt.u32.totalorder %s3910_s27, %s5373_s15 }
  0xd4   : > { %p3913_p9 = pnand %p3911_p7, %p4489_p8 }
  0xd6   : > { %p3914_p4 = pneg %p3913_p9 }
  0xd8   : > { %p3919_p3 = pnand %p3917_p1, %p3914_p4 }
  0xda   : > { %3922 = shalt.err (!%p3919_p3)
}
  0xdb   : > { %s3923_s30 = scalar_lea.vmem %s626_s21, 16  ;;  %s3930_s18 = scalar_lea.vmem %s626_s21, 32 }
  0xdc   : > { %p3924_p10 = scmp.ne.s32.totalorder %s626_s21, %s3923_s30  ;;  %p3931_p13 = scmp.lt.s32.totalorder %s626_s21, %s626_s21 }
  0xdd   : > { %p3932_p0 = scmp.lt.s32.totalorder %s3930_s18, %s3923_s30 }
  0xde   : > { %p3926_p11 = pnand %p3924_p10, %p4489_p8 }
  0xdf   : > { %p3933_p2 = por %p3932_p0, %p3931_p13 }
  0xe0   : > { %p3927_p12 = pneg %p3926_p11 }
  0xe2   : > { %p3934_p5 = pnand %p3933_p2, %p3927_p12 }
  0xe4   : > { %3937 = shalt.err (!%p3934_p5)
}
  0xe5   : > { %3403 = dma.hbm_to_vmem [thread:$0]  (!%p4473_p6), %s5373_s15, 16, %s626_s21, [#allocation28]  }
  0xe6   : > { %s5427_s2 = sld [smem:[#allocation51_spill]] }
  0xec   : > { %s3938_s1 = scalar_lea.hbm %s5427_s2, 16 }
  0xed   : > { %p3939_p7 = scmp.ne.s32.totalorder %s5427_s2, %s3938_s1  ;;  %p3945_p1 = scmp.lt.u32.totalorder %s3938_s1, %s5427_s2 }
  0xef   : > { %p3941_p9 = pnand %p3939_p7, %p4489_p8 }
  0xf1   : > { %p3942_p4 = pneg %p3941_p9 }
  0xf3   : > { %p3947_p3 = pnand %p3945_p1, %p3942_p4 }
  0xf5   : > { %3950 = shalt.err (!%p3947_p3)
}
  0xf6   : > { %s3951_s25 = scalar_lea.vmem %s473_s24, 16  ;;  %s3958_s21 = scalar_lea.vmem %s473_s24, 32 }
  0xf7   : > { %p3952_p10 = scmp.ne.s32.totalorder %s473_s24, %s3951_s25  ;;  %p3959_p13 = scmp.lt.s32.totalorder %s473_s24, %s473_s24 }
  0xf8   : > { %p3960_p0 = scmp.lt.s32.totalorder %s3958_s21, %s3951_s25 }
  0xf9   : > { %p3954_p11 = pnand %p3952_p10, %p4489_p8 }
  0xfa   : > { %p3961_p2 = por %p3960_p0, %p3959_p13 }
  0xfb   : > { %p3955_p12 = pneg %p3954_p11 }
  0xfd   : > { %p3962_p5 = pnand %p3961_p2, %p3955_p12 }
  0xff   : > { %3965 = shalt.err (!%p3962_p5)
}
 0x100   : > { %3364 = dma.hbm_to_vmem [thread:$0]  (!%p4473_p6), %s5427_s2, 16, %s473_s24, [#allocation7]  }
 0x101   : > { %s4321_s19 = smov [#allocation11]   ;;  %s4322_s26 = smov [#allocation14]  }
 0x102   : > { %s496_s29 = sshll.u32 %s4321_s19, 4  ;;  %s520_s17 = sshll.u32 %s4322_s26, 4  ;;  %s497_s29 = int_to_ptr.vmem [resolvable:$true] %s496_s29  ;;  %s521_s17 = int_to_ptr.vmem [resolvable:$true] %s520_s17 }
 0x103   : > { %s5428_s4 = sld [smem:[#allocation53_spill]] }
 0x109   : > { %s3966_s0 = scalar_lea.hbm %s5428_s4, 16 }
 0x10a   : > { %p3967_p7 = scmp.ne.s32.totalorder %s5428_s4, %s3966_s0  ;;  %p3973_p1 = scmp.lt.u32.totalorder %s3966_s0, %s5428_s4 }
 0x10c   : > { %p3969_p9 = pnand %p3967_p7, %p4489_p8 }
 0x10e   : > { %p3970_p4 = pneg %p3969_p9 }
 0x110   : > { %p3975_p3 = pnand %p3973_p1, %p3970_p4 }
 0x112   : > { %3978 = shalt.err (!%p3975_p3)
}
 0x113   : > { %s3979_s24 = scalar_lea.vmem %s497_s29, 16  ;;  %s3986_s30 = scalar_lea.vmem %s497_s29, 32 }
 0x114   : > { %p3980_p10 = scmp.ne.s32.totalorder %s497_s29, %s3979_s24  ;;  %p3987_p13 = scmp.lt.s32.totalorder %s497_s29, %s497_s29 }
 0x115   : > { %p3988_p0 = scmp.lt.s32.totalorder %s3986_s30, %s3979_s24 }
 0x116   : > { %p3982_p11 = pnand %p3980_p10, %p4489_p8 }
 0x117   : > { %p3989_p2 = por %p3988_p0, %p3987_p13 }
 0x118   : > { %p3983_p12 = pneg %p3982_p11 }
 0x11a   : > { %p3990_p5 = pnand %p3989_p2, %p3983_p12 }
 0x11c   : > { %3993 = shalt.err (!%p3990_p5)
}
 0x11d   : > { %3370 = dma.hbm_to_vmem [thread:$0]  (!%p4473_p6), %s5428_s4, 16, %s497_s29, [#allocation10]  }
 0x11e   : > { %s3994_s27 = scalar_lea.hbm %s5364_s6, 16 }
 0x11f   : > { %p3995_p7 = scmp.ne.s32.totalorder %s5364_s6, %s3994_s27  ;;  %p4001_p1 = scmp.lt.u32.totalorder %s3994_s27, %s5364_s6 }
 0x121   : > { %p3997_p9 = pnand %p3995_p7, %p4489_p8 }
 0x123   : > { %p3998_p4 = pneg %p3997_p9 }
 0x125   : > { %p4003_p3 = pnand %p4001_p1, %p3998_p4 }
 0x127   : > { %4006 = shalt.err (!%p4003_p3)
}
 0x128   : > { %s4007_s21 = scalar_lea.vmem %s521_s17, 16  ;;  %s4014_s29 = scalar_lea.vmem %s521_s17, 32 }
 0x129   : > { %p4008_p10 = scmp.ne.s32.totalorder %s521_s17, %s4007_s21  ;;  %p4015_p13 = scmp.lt.s32.totalorder %s521_s17, %s521_s17 }
 0x12a   : > { %p4016_p0 = scmp.lt.s32.totalorder %s4014_s29, %s4007_s21 }
 0x12b   : > { %p4010_p11 = pnand %p4008_p10, %p4489_p8 }
 0x12c   : > { %p4017_p2 = por %p4016_p0, %p4015_p13 }
 0x12d   : > { %p4011_p12 = pneg %p4010_p11 }
 0x12f   : > { %p4018_p5 = pnand %p4017_p2, %p4011_p12 }
 0x131   : > { %4021 = shalt.err (!%p4018_p5)
}
 0x132   : > { %3376 = dma.hbm_to_vmem [thread:$0]  (!%p4473_p6), %s5364_s6, 16, %s521_s17, [#allocation13]  }
 0x133   : > { %s4323_s18 = smov [#allocation17]   ;;  %s4324_s26 = smov [#allocation20]  }
 0x134   : > { %s544_s19 = sshll.u32 %s4323_s18, 4  ;;  %s566_s1 = sshll.u32 %s4324_s26, 4  ;;  %s545_s19 = int_to_ptr.vmem [resolvable:$true] %s544_s19  ;;  %s567_s1 = int_to_ptr.vmem [resolvable:$true] %s566_s1 }
 0x135   : > { %s4022_s23 = scalar_lea.hbm %s5366_s8, 16 }
 0x136   : > { %p4023_p7 = scmp.ne.s32.totalorder %s5366_s8, %s4022_s23  ;;  %p4029_p1 = scmp.lt.u32.totalorder %s4022_s23, %s5366_s8 }
 0x138   : > { %p4025_p9 = pnand %p4023_p7, %p4489_p8 }
 0x13a   : > { %p4026_p4 = pneg %p4025_p9 }
 0x13c   : > { %p4031_p3 = pnand %p4029_p1, %p4026_p4 }
 0x13e   : > { %4034 = shalt.err (!%p4031_p3)
}
 0x13f   : > { %s4035_s17 = scalar_lea.vmem %s545_s19, 16  ;;  %s4042_s24 = scalar_lea.vmem %s545_s19, 32 }
 0x140   : > { %p4036_p10 = scmp.ne.s32.totalorder %s545_s19, %s4035_s17  ;;  %p4043_p13 = scmp.lt.s32.totalorder %s545_s19, %s545_s19 }
 0x141   : > { %p4044_p0 = scmp.lt.s32.totalorder %s4042_s24, %s4035_s17 }
 0x142   : > { %p4038_p11 = pnand %p4036_p10, %p4489_p8 }
 0x143   : > { %p4045_p2 = por %p4044_p0, %p4043_p13 }
 0x144   : > { %p4039_p12 = pneg %p4038_p11 }
 0x146   : > { %p4046_p5 = pnand %p4045_p2, %p4039_p12 }
 0x148   : > { %4049 = shalt.err (!%p4046_p5)
}
 0x149   : > { %3382 = dma.hbm_to_vmem [thread:$0]  (!%p4473_p6), %s5366_s8, 16, %s545_s19, [#allocation16]  }
 0x14a   : > { %s4050_s0 = scalar_lea.hbm %s5368_s10, 16 }
 0x14b   : > { %p4051_p7 = scmp.ne.s32.totalorder %s5368_s10, %s4050_s0  ;;  %p4057_p1 = scmp.lt.u32.totalorder %s4050_s0, %s5368_s10 }
 0x14d   : > { %p4053_p9 = pnand %p4051_p7, %p4489_p8 }
 0x14f   : > { %p4054_p4 = pneg %p4053_p9 }
 0x151   : > { %p4059_p3 = pnand %p4057_p1, %p4054_p4 }
 0x153   : > { %4062 = shalt.err (!%p4059_p3)
}
 0x154   : > { %s4063_s29 = scalar_lea.vmem %s567_s1, 16  ;;  %s4070_s19 = scalar_lea.vmem %s567_s1, 32 }
 0x155   : > { %p4064_p10 = scmp.ne.s32.totalorder %s567_s1, %s4063_s29  ;;  %p4071_p13 = scmp.lt.s32.totalorder %s567_s1, %s567_s1 }
 0x156   : > { %p4072_p0 = scmp.lt.s32.totalorder %s4070_s19, %s4063_s29 }
 0x157   : > { %p4066_p11 = pnand %p4064_p10, %p4489_p8 }
 0x158   : > { %p4073_p2 = por %p4072_p0, %p4071_p13 }
 0x159   : > { %p4067_p12 = pneg %p4066_p11 }
 0x15b   : > { %p4074_p5 = pnand %p4073_p2, %p4067_p12 }
 0x15d   : > { %4077 = shalt.err (!%p4074_p5)
}
 0x15e   : > { %3388 = dma.hbm_to_vmem [thread:$0]  (!%p4473_p6), %s5368_s10, 16, %s567_s1, [#allocation19]  }
 0x15f   : > { %s4325_s30 = smov [#allocation23]   ;;  %s4326_s26 = smov [#allocation26]  }
 0x160   : > { %s590_s18 = sshll.u32 %s4325_s30, 4  ;;  %s614_s27 = sshll.u32 %s4326_s26, 4  ;;  %s591_s18 = int_to_ptr.vmem [resolvable:$true] %s590_s18  ;;  %s615_s27 = int_to_ptr.vmem [resolvable:$true] %s614_s27 }
 0x161   : > { %s4078_s16 = scalar_lea.hbm %s5370_s12, 32 }
 0x162   : > { %p4079_p7 = scmp.ne.s32.totalorder %s5370_s12, %s4078_s16  ;;  %p4085_p1 = scmp.lt.u32.totalorder %s4078_s16, %s5370_s12 }
 0x164   : > { %p4081_p9 = pnand %p4079_p7, %p4489_p8 }
 0x166   : > { %p4082_p4 = pneg %p4081_p9 }
 0x168   : > { %p4087_p3 = pnand %p4085_p1, %p4082_p4 }
 0x16a   : > { %4090 = shalt.err (!%p4087_p3)
}
 0x16b   : > { %s4091_s1 = scalar_lea.vmem %s591_s18, 32  ;;  %p4099_p13 = scmp.lt.s32.totalorder %s591_s18, %s591_s18 }
 0x16c   : > { %p4092_p10 = scmp.ne.s32.totalorder %s591_s18, %s4091_s1  ;;  %p4100_p0 = scmp.lt.s32.totalorder %s4091_s1, %s4091_s1 }
 0x16e   : > { %p4094_p11 = pnand %p4092_p10, %p4489_p8  ;;  %p4101_p2 = por %p4100_p0, %p4099_p13 }
 0x170   : > { %p4095_p12 = pneg %p4094_p11 }
 0x172   : > { %p4102_p5 = pnand %p4101_p2, %p4095_p12 }
 0x174   : > { %4105 = shalt.err (!%p4102_p5)
}
 0x175   : > { %3394 = dma.hbm_to_vmem [thread:$0]  (!%p4473_p6), %s5370_s12, 32, %s591_s18, [#allocation22]  }
 0x176   : > { %s4106_s0 = scalar_lea.hbm %s5372_s14, 16 }
 0x177   : > { %p4107_p7 = scmp.ne.s32.totalorder %s5372_s14, %s4106_s0  ;;  %p4113_p1 = scmp.lt.u32.totalorder %s4106_s0, %s5372_s14 }
 0x179   : > { %p4109_p9 = pnand %p4107_p7, %p4489_p8 }
 0x17b   : > { %p4110_p4 = pneg %p4109_p9 }
 0x17d   : > { %p4115_p3 = pnand %p4113_p1, %p4110_p4 }
 0x17f   : > { %4118 = shalt.err (!%p4115_p3)
}
 0x180   : > { %s4119_s29 = scalar_lea.vmem %s615_s27, 16  ;;  %s4126_s18 = scalar_lea.vmem %s615_s27, 32 }
 0x181   : > { %p4120_p10 = scmp.ne.s32.totalorder %s615_s27, %s4119_s29  ;;  %p4127_p13 = scmp.lt.s32.totalorder %s615_s27, %s615_s27 }
 0x182   : > { %p4128_p0 = scmp.lt.s32.totalorder %s4126_s18, %s4119_s29 }
 0x183   : > { %p4122_p11 = pnand %p4120_p10, %p4489_p8 }
 0x184   : > { %p4129_p2 = por %p4128_p0, %p4127_p13 }
 0x185   : > { %p4123_p12 = pneg %p4122_p11 }
 0x187   : > { %p4130_p5 = pnand %p4129_p2, %p4123_p12 }
 0x189   : > { %4133 = shalt.err (!%p4130_p5)
}
 0x18a   : > { %3400 = dma.hbm_to_vmem [thread:$0]  (!%p4473_p6), %s5372_s14, 16, %s615_s27, [#allocation25]  }
 0x18b   : > { %s4327_s17 = smov [#allocation29]   ;;  %s5429_s0 = sld [smem:[#allocation55_spill]] }
 0x18c   : > { %s636_s24 = sshll.u32 %s4327_s17, 4  ;;  %s637_s24 = int_to_ptr.vmem [resolvable:$true] %s636_s24 }
 0x191   : > { %s4134_s23 = scalar_lea.hbm %s5429_s0, 16 }
 0x192   : > { %p4135_p7 = scmp.ne.s32.totalorder %s5429_s0, %s4134_s23  ;;  %p4141_p1 = scmp.lt.u32.totalorder %s4134_s23, %s5429_s0 }
 0x194   : > { %p4137_p9 = pnand %p4135_p7, %p4489_p8 }
 0x196   : > { %p4138_p4 = pneg %p4137_p9 }
 0x198   : > { %p4143_p3 = pnand %p4141_p1, %p4138_p4 }
 0x19a   : > { %4146 = shalt.err (!%p4143_p3)
}
 0x19b   : > { %s4147_s27 = scalar_lea.vmem %s637_s24, 16  ;;  %s4154_s18 = scalar_lea.vmem %s637_s24, 32 }
 0x19c   : > { %p4148_p10 = scmp.ne.s32.totalorder %s637_s24, %s4147_s27  ;;  %p4155_p13 = scmp.lt.s32.totalorder %s637_s24, %s637_s24 }
 0x19d   : > { %p4156_p0 = scmp.lt.s32.totalorder %s4154_s18, %s4147_s27 }
 0x19e   : > { %p4150_p11 = pnand %p4148_p10, %p4489_p8 }
 0x19f   : > { %p4157_p2 = por %p4156_p0, %p4155_p13 }
 0x1a0   : > { %p4151_p12 = pneg %p4150_p11 }
 0x1a2   : > { %p4158_p5 = pnand %p4157_p2, %p4151_p12 }
 0x1a4   : > { %4161 = shalt.err (!%p4158_p5)
}
 0x1a5   : > { %s5430_s17 = sld [smem:[#allocation46_spill]]  ;;  %s5431_s30 = sld [smem:[#allocation45_spill]] }
 0x1a6   : > { %s5432_s26 = sld [smem:[#allocation43_spill]]  ;;  %s5433_s23 = sld [smem:[#allocation42_spill]] }
 0x1a7   : > { %s5434_s20 = sld [smem:[#allocation41_spill]]  ;;  %s5435_s16 = sld [smem:[#allocation47_spill]] }
 0x1a8   : > { %3406 = dma.hbm_to_vmem [thread:$0]  (!%p4473_p6), %s5429_s0, 16, %s637_s24, [#allocation28]  }
 0x1a9   : > { %s5442_s2 = sld [smem:[#allocation49_spill]] }
 0x1ab   : > { %s2923_s25 = sadd.s32 4294967294, %s5430_s17   ;;  %s53_s21 = sadd.s32 1, %s5431_s30 }
 0x1ac   : > { %p55_p8 = scmp.ge.s32.totalorder %s53_s21, 2  ;;  %s60_s22 = sadd.s32 1, %s5432_s26 }
 0x1ad   : > { %p67_p7 = scmp.ne.s32.totalorder %s5432_s26, %s5433_s23  ;;  %p68_p9 = scmp.eq.s32.totalorder %s5430_s17, 0 }
 0x1ae   : > { %s5462_s21 = smov (%p55_p8, %s53_s21), 0  ;;  %p73_p1 = scmp.ne.s32.totalorder %s5433_s23, %s5434_s20 }
 0x1af   : > { %p4804_p4 = por %p68_p9, %p67_p7  ;;  %s57_s24 = ssub.s32 %s5431_s30, %s5462_s21 }
 0x1b0   : > { %s5437_s27 = sadd.s32 4294967295, %s5430_s17   ;;  %p58_p3 = scmp.eq.s32.totalorder %s57_s24, 0 }
 0x1b1   : > { %p435_p6 = scmp.eq.s32.totalorder %s5437_s27, 1  ;;  %p5438_p10 = scmp.ne.s32.totalorder %s5435_s16, 0 }
 0x1b2   : > { %p441_p13 = scmp.eq.s32.totalorder %s2923_s25, 1  ;;  %p3431_p2 = scmp.lt.s32.totalorder %s5430_s17, 2 }
 0x1b3   : > { %p4816_p11 = por %p5438_p10, %p73_p1  ;;  %p4820_p12 = por %p435_p6, %p67_p7 }
 0x1b4   : > { %s4825_s1 = scalar_select %p58_p3, %s5432_s26, %s60_s22  }
 0x1b5   : > { %s5440_s19 = scalar_select %p4820_p12, 1, 0 }
 0x1b6   : > { %p4827_p0 = por %p441_p13, %p73_p1  ;;  %s647_s23 = sand.u32 1, %s5432_s26  }
 0x1b7   : > { %s3063_s20 = sshll.u32 %s5431_s30, 8  ;;  %s2942_s24 = sshll.u32 %s647_s23, 4 }
 0x1b8   : > { %s5441_s0 = scalar_select %p4827_p0, 1, 0 }
 0x1b9   : > { %s4837_s4 = scalar_lea.hbm %s5442_s2, %s3063_s20  ;;  %s651_s25 = scalar_lea.vmem [#allocation3], %s2942_s24 }
 0x1ba   : > { %s658_s22 = sshll.u32 %s651_s25, 4  ;;  %p4841_p5 = pnand %p3431_p2, %p4804_p4  ;;  %s4845_s22 = int_to_ptr.vmem [resolvable:$true] %s658_s22 }
 0x1bb   : > { %s4847_s17 = scalar_lea.sflag [#allocation4], %s647_s23  ;;  %s4162_s30 = scalar_lea.hbm %s4837_s4, 256 }
 0x1bc   : > { %p4163_p8 = scmp.ne.s32.totalorder %s4837_s4, %s4162_s30  ;;  %p4164_p7 = pneg %p4841_p5 }
 0x1bd   : > { %s4167_s20 = scalar_lea.hbm %s5442_s2, 512  ;;  %p4168_p4 = scmp.lt.u32.totalorder %s4837_s4, %s5442_s2 }
 0x1be   : > { %p4165_p9 = pnand %p4164_p7, %p4163_p8  ;;  %p4169_p6 = scmp.lt.u32.totalorder %s4167_s20, %s4162_s30 }
 0x1bf   : > { %p4171_p10 = scmp.lt.u32.totalorder %s4162_s30, %s4837_s4 }
 0x1c0   : > { %p4166_p1 = pneg %p4165_p9  ;;  %p4170_p3 = por %p4169_p6, %p4168_p4 }
 0x1c2   : > { %p4172_p13 = por %p4171_p10, %p4170_p3 }
 0x1c4   : > { %p4173_p2 = pnand %p4172_p13, %p4166_p1 }
 0x1c6   : > { %4176 = shalt.err (!%p4173_p2)
}
 0x1c7   : > { %s4177_s23 = scalar_lea.vmem %s4845_s22, 256  ;;  %s4328_s27 = smov [#allocation3]  }
 0x1c8   : > { %p4178_p8 = scmp.ne.s32.totalorder %s4845_s22, %s4177_s23  ;;  %s4182_s25 = sshll.u32 %s4328_s27, 4  ;;  %s4183_s25 = int_to_ptr.vmem [resolvable:$false] %s4182_s25 }
 0x1c9   : > { %s4184_s26 = scalar_lea.vmem %s4183_s25, 512  ;;  %p4185_p12 = scmp.lt.s32.totalorder %s4845_s22, %s4183_s25 }
 0x1ca   : > { %p4180_p9 = pnand %p4178_p8, %p4164_p7  ;;  %p4186_p4 = scmp.lt.s32.totalorder %s4184_s26, %s4177_s23 }
 0x1cc   : > { %p4181_p0 = pneg %p4180_p9  ;;  %p4187_p6 = por %p4186_p4, %p4185_p12 }
 0x1ce   : > { %p4188_p3 = pnand %p4187_p6, %p4181_p0 }
 0x1d0   : > { %4191 = shalt.err (!%p4188_p3)
}
 0x1d1   : > { %3410 = dma.hbm_to_vmem [thread:$0]  (!%p4841_p5), %s4837_s4, 256, %s4845_s22, %s4847_s17, %s5425_s28, %s5425_s28, %s5424_s3  }
 0x1d2   : > { %s5444_s30 = sld [smem:[#allocation48_spill]] }
 0x1d8   : > { %p5445_p7 = scmp.ne.s32.totalorder %s5444_s30, 0 }
 0x1d9   : > { %s5446_s29 = sld [smem:[#allocation42_spill]] (!%p5445_p7) }
 0x1da   : > { %670 = sbr.rel (%p5445_p7) target bundleno = 3925 (0xf55), region = 88 }
 0x1df   : > { %s4881_s20 = sand.u32 (!%p5445_p7), 1, %s5446_s29  }
 0x1e0   : > { %s2946_s24 = sshll.u32 (!%p5445_p7), %s4881_s20, 4  ;;  %s673_s16 = scalar_lea.sflag (!%p5445_p7), [#allocation4], %s4881_s20 }
 0x1e1   : > { %s676_s5 = scalar_lea.vmem [#allocation3], %s2946_s24 }
 0x1e2   : > { %4245 = dma.done.wait (%p4816_p11), %s673_s16, 256  }
 0x1e3   : > { %4247 = vsyncadd (%p4816_p11), %s673_s16, 4294967040  ;;  %s5447_s4 = sld [smem:[#allocation47_spill]] }
 0x1e9   : > { %p5448_p12 = scmp.ne.s32.totalorder %s5447_s4, 0 }
 0x1eb   : > { %4249 = dma.done.wait (%p5448_p12), [#allocation7], 32  }
 0x1ec   : > { %4251 = vsyncadd (%p5448_p12), [#allocation7], 4294967264 }
 0x1ed   : > { %4253 = dma.done.wait (%p5448_p12), [#allocation10], 1040  }
 0x1ee   : > { %4255 = vsyncadd (%p5448_p12), [#allocation10], 4294966256 }
 0x1ef   : > { %4257 = dma.done.wait (%p5448_p12), [#allocation13], 2064  }
 0x1f0   : > { %4259 = vsyncadd (%p5448_p12), [#allocation13], 4294965232 }
 0x1f1   : > { %4261 = dma.done.wait (%p5448_p12), [#allocation16], 1040  }
 0x1f2   : > { %4263 = vsyncadd (%p5448_p12), [#allocation16], 4294966256 }
 0x1f3   : > { %4265 = dma.done.wait (%p5448_p12), [#allocation19], 32  }
 0x1f4   : > { %4267 = vsyncadd (%p5448_p12), [#allocation19], 4294967264 }
 0x1f5   : > { %4269 = dma.done.wait (%p5448_p12), [#allocation22], 2080  }
 0x1f6   : > { %4271 = vsyncadd (%p5448_p12), [#allocation22], 4294965216 }
 0x1f7   : > { %4273 = dma.done.wait (%p5448_p12), [#allocation25], 2064  }
 0x1f8   : > { %4275 = vsyncadd (%p5448_p12), [#allocation25], 4294965232 }
 0x1f9   : > { %4277 = dma.done.wait (%p5448_p12), [#allocation28], 32  }
 0x1fa   : > { %4279 = vsyncadd (%p5448_p12), [#allocation28], 4294967264  ;;  %v3070_v0 = vld [vmem:[%s676_s5] sm:$0xff]   ;;  %v3095_v1 = vld [vmem:[%s676_s5 + $0x8] sm:$0xff]   ;;  %v4329_v59 = vmov 0   ;;  %vm1223_vm0 = vcmask 261120  }
 0x1fb   : > { %v4923_v2 = vunpack.c.l.bf16 %v3070_v0  ;;  %v4925_v3 = vunpack.c.l.bf16 %v3095_v1  ;;  %v4929_v4 = vunpack.c.h.bf16 %v3070_v0  ;;  %v4931_v5 = vunpack.c.h.bf16 %v3095_v1  ;;  %v3522_v6 = vld [vmem:[#allocation12 + $0x4] ss:$8 sps:$4 sm:$0xff]   ;;  %v3524_v7 = vld [vmem:[#allocation12] ss:$8 sps:$4 sm:$0xff]   ;;  %v3525_v8 = vld [vmem:[#allocation12 + $0x14] ss:$8 sps:$4 sm:$0xff]   ;;  %999 = vmatprep.mubr.bf16.mxu0 %v4329_v59 }
 0x1fc   : > { %967 = vmatprep.subr.bf16.mxu0 %v3522_v6  ;;  %v3527_v41 = vld [vmem:[#allocation12 + $0x10] ss:$8 sps:$4 sm:$0xff]   ;;  %v3528_v42 = vld [vmem:[#allocation12 + $0x24] ss:$8 sps:$4 sm:$0xff]   ;;  %v3530_v43 = vld [vmem:[#allocation12 + $0x20] ss:$8 sps:$4 sm:$0xff]  }
 0x1fd   : > { %804 = vadd.xlane.f32.xlu0 %v4923_v2  ;;  %808 = vadd.xlane.f32.xlu1 %v4925_v3  ;;  %v3531_v44 = vld [vmem:[#allocation12 + $0x34] ss:$8 sps:$4 sm:$0xff]   ;;  %v3534_v46 = vld [vmem:[#allocation12 + $0x30] ss:$8 sps:$4 sm:$0xff]   ;;  %v3535_v47 = vld [vmem:[#allocation12 + $0x44] ss:$8 sps:$4 sm:$0xff]  }
 0x1fe   : > { %968 = vmatpush1.bf16.msra.mxu0 %v3524_v7  ;;  %v3533_v45 = vld [vmem:[#allocation9] sm:$0xff]   ;;  %v3537_v48 = vld [vmem:[#allocation9 + $0x8] sm:$0xff]   ;;  %v3541_v51 = vld [vmem:[#allocation9 + $0x10] sm:$0xff]   ;;  %s4330_s3 = smov 96   ;;  %s4331_s28 = smov 64   ;;  %vm1582_vm1 = vcmask 523520  }
 0x1ff   : > { %969 = vmatprep.subr.bf16.mxu0 %v3525_v8  ;;  %3178 = vmatprep.subr.bf16.mxu1 %v3533_v45  ;;  %v3538_v49 = vld [vmem:[#allocation12 + $0x40] ss:$8 sps:$4 sm:$0xff]   ;;  %v3539_v50 = vld [vmem:[#allocation12 + $0x54] ss:$8 sps:$4 sm:$0xff]   ;;  %v3542_v52 = vld [vmem:[#allocation12 + $0x50] ss:$8 sps:$4 sm:$0xff]  }
 0x200   : > { %3179 = vmatpush3.bf16.msra.mxu1 %v3533_v45  ;;  %v3543_v53 = vld [vmem:[#allocation12 + $0x64] ss:$8 sps:$4 sm:$0xff]   ;;  %v3545_v54 = vld [vmem:[#allocation9 + $0x18] sm:$0xff]   ;;  %v3546_v55 = vld [vmem:[#allocation12 + $0x60] ss:$8 sps:$4 sm:$0xff]   ;;  %s4332_s18 = smov 32  }
 0x201   : > { %806 = vadd.xlane.f32.xlu0 %v4929_v4  ;;  %810 = vadd.xlane.f32.xlu1 %v4931_v5  ;;  %v3547_v56 = vld [vmem:[#allocation12 + $0x74] ss:$8 sps:$4 sm:$0xff]   ;;  %v3550_v58 = vld [vmem:[#allocation12 + $0x70] ss:$8 sps:$4 sm:$0xff]   ;;  %v3551_v60 = vld [vmem:[#allocation9 + $0x28] sm:$0xff]   ;;  %vm1771_vm2 = vcmask 785920  }
 0x202   : > { %970 = vmatpush1.bf16.msra.mxu0 %v3527_v41  ;;  %3180 = vmatprep.subr.bf16.mxu1 %v3537_v48  ;;  %v3549_v57 = vld [vmem:[#allocation9 + $0x20] sm:$0xff]   ;;  %v3552_v61 = vld [vmem:[#allocation9 + $0x30] sm:$0xff]   ;;  %v3553_v62 = vld [vmem:[#allocation9 + $0x38] sm:$0xff]   ;;  %vm1960_vm3 = vcmask 1048320   ;;  %s5449_s22 = sld [smem:[#allocation44_spill]]  ;;  %s790_s17 = scalar_lea.vmem [#allocation30], %s2946_s24 }
 0x203   : > { %971 = vmatprep.subr.bf16.mxu0 %v3528_v42  ;;  %v2965_v42 = vld [vmem:[#allocation8] ss:$0 sm:$0xff]  ;;  %s2684_s27 = sshll.u32 %s790_s17, 4  ;;  %s5450_s30 = sld [smem:[#allocation56_spill]]  ;;  %s5307_s27 = int_to_ptr.vmem [resolvable:$true] %s2684_s27 }
 0x204   : > { %3181 = vmatpush3.bf16.msra.mxu1 %v3537_v48  ;;  %s2669_s16 = scalar_lea.sflag [#allocation5], %s4881_s20  ;;  %s4192_s24 = scalar_lea.vmem %s5307_s27, 256 }
 0x205   : > { %1047 = vadd.xlane.f32.xlu0 %v4923_v2  ;;  %1049 = vadd.xlane.f32.xlu1 %v4929_v4  ;;  %p4193_p11 = scmp.ne.s32.totalorder %s5307_s27, %s4192_s24  ;;  %p5451_p0 = scmp.ne.s32.totalorder %s5440_s19, 0 }
 0x206   : > { %972 = vmatpush1.bf16.msra.mxu0 %v3530_v43  ;;  %3182 = vmatprep.subr.bf16.mxu1 %v3541_v51  ;;  %s4333_s5 = smov [#allocation30]  }
 0x207   : > { %973 = vmatprep.subr.bf16.mxu0 %v3531_v44  ;;  %p4194_p5 = pnand %p4193_p11, %p5451_p0  ;;  %s4196_s4 = sshll.u32 %s4333_s5, 4  ;;  %s4197_s4 = int_to_ptr.vmem [resolvable:$false] %s4196_s4 }
 0x208   : > { %3183 = vmatpush3.bf16.msra.mxu1 %v3541_v51  ;;  %s3068_s23 = sshll.u32 %s5449_s22, 8  ;;  %p4199_p10 = scmp.lt.s32.totalorder %s5307_s27, %s4197_s4 }
 0x209   : > { %1051 = vadd.xlane.f32.xlu0 %v4925_v3  ;;  %1053 = vadd.xlane.f32.xlu1 %v4931_v5  ;;  %s5305_s29 = scalar_lea.hbm %s5450_s30, %s3068_s23  ;;  %p4195_p1 = pneg %p4194_p5 }
 0x20a   : > { %974 = vmatpush1.bf16.msra.mxu0 %v3534_v46  ;;  %3184 = vmatprep.subr.bf16.mxu1 %v3545_v54 }
 0x20b   : > { %975 = vmatprep.subr.bf16.mxu0 %v3535_v47 }
 0x20c   : > { %3185 = vmatpush3.bf16.msra.mxu1 %v3545_v54 }
 0x20d   : > { %3186 = vmatprep.subr.bf16.mxu1 %v3549_v57 }
 0x20e   : > { %976 = vmatpush1.bf16.msra.mxu0 %v3538_v49 }
 0x20f   : > { %977 = vmatprep.subr.bf16.mxu0 %v3539_v50 }
 0x210   : > { %3187 = vmatpush3.bf16.msra.mxu1 %v3549_v57 }
 0x211   : > { %3188 = vmatprep.subr.bf16.mxu1 %v3551_v60 }
 0x212   : > { %978 = vmatpush1.bf16.msra.mxu0 %v3542_v52 }
 0x213   : > { %979 = vmatprep.subr.bf16.mxu0 %v3543_v53 }
 0x214   : > { %3189 = vmatpush3.bf16.msra.mxu1 %v3551_v60 }
 0x215   : > { %3190 = vmatprep.subr.bf16.mxu1 %v3552_v61 }
 0x216   : > { %980 = vmatpush1.bf16.msra.mxu0 %v3546_v55 }
 0x217   : > { %981 = vmatprep.subr.bf16.mxu0 %v3547_v56 }
 0x218   : > { %3191 = vmatpush3.bf16.msra.mxu1 %v3552_v61 }
 0x219   : > { %3192 = vmatprep.subr.bf16.mxu1 %v3553_v62 }
 0x21a   : > { %982 = vmatpush1.bf16.msra.mxu0 %v3550_v58 }
 0x21c   : > { %3193 = vmatpush3.bf16.msra.mxu1 %v3553_v62 }
 0x28a   : > { %v805_v9 = vpop.xlane.xlu0 %804  ;;  %v809_v10 = vpop.xlane.xlu1 %808 }
 0x28b   : > { %v813_v11 = vmul.f32 0.0078125, %v805_v9  ;;  %v815_v12 = vmul.f32 0.0078125, %v809_v10 }
 0x28d   : > { %v4940_v13 = vsub.f32 %v4923_v2, %v813_v11  ;;  %v4943_v14 = vsub.f32 %v4925_v3, %v815_v12 }
 0x28e   : > { %v807_v15 = vpop.xlane.xlu0 %806  ;;  %v811_v16 = vpop.xlane.xlu1 %810 }
 0x28f   : > { %v814_v17 = vmul.f32 0.0078125, %v807_v15  ;;  %v821_v18 = vmul.f32 %v4940_v13, %v4940_v13  ;;  %v816_v19 = vmul.f32 0.0078125, %v811_v16  ;;  %v823_v22 = vmul.f32 %v4943_v14, %v4943_v14 }
 0x291   : > { %v4948_v20 = vsub.f32 %v4929_v4, %v814_v17  ;;  %825 = vadd.xlane.f32.xlu0 %v821_v18  ;;  %v4951_v21 = vsub.f32 %v4931_v5, %v816_v19 }
 0x292   : > { %v1048_v23 = vpop.xlane.xlu0 %1047  ;;  %v1050_v24 = vpop.xlane.xlu1 %1049 }
 0x293   : > { %v1055_v25 = vmul.f32 0.0078125, %v1048_v23  ;;  %v822_v26 = vmul.f32 %v4948_v20, %v4948_v20  ;;  %v1056_v27 = vmul.f32 0.0078125, %v1050_v24  ;;  %v824_v30 = vmul.f32 %v4951_v21, %v4951_v21 }
 0x295   : > { %v4958_v28 = vsub.f32 %v4923_v2, %v1055_v25  ;;  %829 = vadd.xlane.f32.xlu0 %v823_v22  ;;  %827 = vadd.xlane.f32.xlu1 %v822_v26  ;;  %v4961_v29 = vsub.f32 %v4929_v4, %v1056_v27 }
 0x296   : > { %v1052_v31 = vpop.xlane.xlu0 %1051  ;;  %v1054_v32 = vpop.xlane.xlu1 %1053 }
 0x297   : > { %v1057_v33 = vmul.f32 0.0078125, %v1052_v31  ;;  %v1063_v34 = vmul.f32 %v4958_v28, %v4958_v28  ;;  %v1058_v35 = vmul.f32 0.0078125, %v1054_v32  ;;  %v1064_v38 = vmul.f32 %v4961_v29, %v4961_v29 }
 0x299   : > { %v4968_v36 = vsub.f32 %v4925_v3, %v1057_v33  ;;  %831 = vadd.xlane.f32.xlu1 %v824_v30  ;;  %1067 = vadd.xlane.f32.xlu0 %v1063_v34  ;;  %v4971_v37 = vsub.f32 %v4931_v5, %v1058_v35  ;;  %v2964_v34 = vld [vmem:[#allocation6] ss:$0 sm:$0xff] }
 0x29b   : > { %v1065_v39 = vmul.f32 %v4968_v36, %v4968_v36  ;;  %v1066_v40 = vmul.f32 %v4971_v37, %v4971_v37 }
 0x29d   : > { %1069 = vadd.xlane.f32.xlu1 %v1064_v38  ;;  %1071 = vadd.xlane.f32.xlu0 %v1065_v39 }
 0x2a1   : > { %1073 = vadd.xlane.f32.xlu1 %v1066_v40 }
 0x31e   : > { %v826_v63 = vpop.xlane.xlu0 %825 }
 0x31f   : > { %v833_v0 = vmul.f32 0.0078125, %v826_v63 }
 0x321   : > { %v837_v1 = vadd.f32 1e-05, %v833_v0 }
 0x322   : > { %v828_v6 = vpop.xlane.xlu1 %827  ;;  %v830_v7 = vpop.xlane.xlu0 %829 }
 0x323   : > { %3602 = vrsqrt.f32 %v837_v1  ;;  %v834_v8 = vmul.f32 0.0078125, %v828_v6  ;;  %v835_v9 = vmul.f32 0.0078125, %v830_v7 }
 0x325   : > { %v838_v10 = vadd.f32 1e-05, %v834_v8  ;;  %v839_v11 = vadd.f32 1e-05, %v835_v9  ;;  %v2982_v9 = vld [vmem:[#allocation14] ss:$0 sm:$0xff] }
 0x326   : > { %v832_v12 = vpop.xlane.xlu1 %831  ;;  %v1068_v15 = vpop.xlane.xlu0 %1067 }
 0x327   : > { %3604 = vrsqrt.f32 %v838_v10  ;;  %v836_v16 = vmul.f32 0.0078125, %v832_v12  ;;  %v1075_v17 = vmul.f32 0.0078125, %v1068_v15 }
 0x328   : > { %3606 = vrsqrt.f32 %v839_v11 }
 0x329   : > { %v840_v18 = vadd.f32 1e-05, %v836_v16  ;;  %v1079_v19 = vadd.f32 1e-05, %v1075_v17 }
 0x32a   : > { %v1070_v22 = vpop.xlane.xlu1 %1069  ;;  %v1072_v23 = vpop.xlane.xlu0 %1071 }
 0x32b   : > { %3608 = vrsqrt.f32 %v840_v18  ;;  %v1076_v24 = vmul.f32 0.0078125, %v1070_v22  ;;  %v1077_v25 = vmul.f32 0.0078125, %v1072_v23 }
 0x32c   : > { %3610 = vrsqrt.f32 %v1079_v19 }
 0x32d   : > { %v3603_v26 = vpop.eup %3602  ;;  %v1080_v27 = vadd.f32 1e-05, %v1076_v24  ;;  %v1081_v30 = vadd.f32 1e-05, %v1077_v25 }
 0x32e   : > { %v1074_v31 = vpop.xlane.xlu1 %1073  ;;  %v845_v32 = vmul.f32 %v3603_v26, %v4940_v13 }
 0x32f   : > { %3612 = vrsqrt.f32 %v1080_v27  ;;  %v1078_v33 = vmul.f32 0.0078125, %v1074_v31 }
 0x330   : > { %3614 = vrsqrt.f32 %v1081_v30  ;;  %v855_v41 = vmul.f32 %v2964_v34, %v845_v32  ;;  %v2983_v30 = vld [vmem:[#allocation11] ss:$0 sm:$0xff] }
 0x331   : > { %v3605_v35 = vpop.eup %3604  ;;  %v1082_v38 = vadd.f32 1e-05, %v1078_v33 }
 0x332   : > { %v3607_v39 = vpop.eup %3606  ;;  %v846_v40 = vmul.f32 %v3605_v35, %v4948_v20  ;;  %v865_v47 = vadd.f32 %v2965_v42, %v855_v41 }
 0x333   : > { %3616 = vrsqrt.f32 %v1082_v38  ;;  %v847_v45 = vmul.f32 %v3607_v39, %v4943_v14 }
 0x334   : > { %v856_v43 = vmul.f32 %v2964_v34, %v846_v40 }
 0x335   : > { %v3609_v44 = vpop.eup %3608  ;;  %v857_v53 = vmul.f32 %v2964_v34, %v847_v45 }
 0x336   : > { %v3611_v46 = vpop.eup %3610  ;;  %v866_v48 = vadd.f32 %v2965_v42, %v856_v43  ;;  %v848_v13 = vmul.f32 %v3609_v44, %v4951_v21 }
 0x337   : > { %v1087_v49 = vmul.f32 %v3611_v46, %v4958_v28  ;;  %v867_v60 = vadd.f32 %v2965_v42, %v857_v53 }
 0x338   : > { %v869_v50 = vpack.c.bf16 %v866_v48, %v865_v47  ;;  %v858_v51 = vmul.f32 %v2964_v34, %v848_v13 }
 0x339   : > { %v3613_v52 = vpop.eup %3612  ;;  %v1091_v55 = vmul.f32 %v2964_v34, %v1087_v49 }
 0x33a   : > { %v3615_v54 = vpop.eup %3614  ;;  %1000 = vmatmul.mubr.bf16.vlgmr.msra.gmra.mrb[0].mxu0 %v869_v50  ;;  %v1088_v20 = vmul.f32 %v3613_v52, %v4961_v29  ;;  %v868_v56 = vadd.f32 %v2965_v42, %v858_v51 }
 0x33b   : > { %1009 = vmatprep.mubr.bf16.mxu0 %v4329_v59  ;;  %v1089_v14 = vmul.f32 %v3615_v54, %v4968_v36  ;;  %v1095_v21 = vadd.f32 %v2965_v42, %v1091_v55 }
 0x33c   : > { %v1092_v57 = vmul.f32 %v2964_v34, %v1088_v20  ;;  %v870_v63 = vpack.c.bf16 %v868_v56, %v867_v60 }
 0x33d   : > { %v3617_v58 = vpop.eup %3616  ;;  %v1093_v62 = vmul.f32 %v2964_v34, %v1089_v14 }
 0x33e   : > { %v1096_v61 = vadd.f32 %v2965_v42, %v1092_v57  ;;  %v1090_v28 = vmul.f32 %v3617_v58, %v4971_v37 }
 0x33f   : > { %v1097_v29 = vadd.f32 %v2965_v42, %v1093_v62 }
 0x340   : > { %v1099_v0 = vpack.c.bf16 %v1096_v61, %v1095_v21  ;;  %v1094_v1 = vmul.f32 %v2964_v34, %v1090_v28 }
 0x342   : > { %1010 = vmatmul.mubr.bf16.gmra.mrb[4].mxu0 %v870_v63  ;;  %3194 = vmatprep.mubr.bf16.mxu1 %v1099_v0  ;;  %v1098_v6 = vadd.f32 %v2965_v42, %v1094_v1 }
 0x344   : > { %v1100_v7 = vpack.c.bf16 %v1098_v6, %v1097_v29 }
 0x346   : > { %3195 = vmatmul.mubr.bf16.vlgmr.msra.gmra.mrb[0].mxu1 %v1100_v7 }
 0x40d   : > { %v1001_v8 = vpop.f32.mrb[0].mxu0 }
 0x40e   : > { %v1003_v36 = vpop.f32.mrb[1].mxu0 }
 0x40f   : > { %v1005_v10 = vpop.f32.mrb[2].mxu0  ;;  %v1029_v15 = vadd.f32 %v2982_v9, %v1003_v36 }
 0x410   : > { %v4989_v11 = vpack.c.bf16 %v1005_v10, %v1001_v8  ;;  %v1007_v12 = vpop.f32.mrb[3].mxu0 }
 0x411   : > { %v1030_v37 = vadd.f32 %v2982_v9, %v1007_v12 }
 0x412   : > { %3282 = vmatprep.subr.msk.bf16.mxu0 %vm1223_vm0, %v4989_v11  ;;  %v1231_v16 = vsel %vm1223_vm0, %v4989_v11, 0 }
 0x413   : > { %v4995_v17 = vpack.c.bf16 %v1030_v37, %v1029_v15  ;;  %3199 = vmatpush3.bf16.xpose.msra.mxu0 %v1231_v16 }
 0x415   : > { %v1011_v18 = vpop.f32.mrb[4].mxu0  ;;  %3206 = vmatprep.subr.bf16.mxu1 %v4995_v17 }
 0x416   : > { %v1013_v19 = vpop.f32.mrb[5].mxu0  ;;  %3207 = vmatpush3.bf16.msra.mxu1 %v4995_v17 }
 0x417   : > { %v1015_v22 = vpop.f32.mrb[6].mxu0  ;;  %v1031_v25 = vadd.f32 %v2982_v9, %v1013_v19 }
 0x418   : > { %v4999_v23 = vpack.c.bf16 %v1015_v22, %v1011_v18  ;;  %v1017_v24 = vpop.f32.mrb[7].mxu0 }
 0x419   : > { %v1032_v26 = vadd.f32 %v2982_v9, %v1017_v24  ;;  %v3196_v27 = vpop.f32.mrb[0].mxu1 }
 0x41a   : > { %v1206_v31 = vpop.f32.mrb[1].mxu1  ;;  %3283 = vmatprep.subr.msk.bf16.mxu0 %vm1223_vm0, %v4999_v23  ;;  %v1234_v32 = vsel %vm1223_vm0, %v4999_v23, 0  ;;  %v1215_v35 = vadd.f32 %v3196_v27, %v2983_v30 }
 0x41b   : > { %v5005_v33 = vpack.c.bf16 %v1032_v26, %v1031_v25  ;;  %v3197_v34 = vpop.f32.mrb[2].mxu1  ;;  %3201 = vmatpush3.bf16.xpose.msra.mxu0 %v1234_v32  ;;  %v1207_v40 = vadd.f32 %v2983_v30, %v1206_v31 }
 0x41c   : > { %v1218_v38 = vadd.f32 %v3197_v34, %v2983_v30  ;;  %v1209_v39 = vpop.f32.mrb[3].mxu1 }
 0x41d   : > { %v1210_v41 = vadd.f32 %v2983_v30, %v1209_v39  ;;  %3208 = vmatprep.subr.bf16.mxu1 %v5005_v33 }
 0x41e   : > { %v5008_v42 = vpack.c.bf16 %v1218_v38, %v1215_v35  ;;  %3209 = vmatpush3.bf16.msra.mxu1 %v5005_v33 }
 0x41f   : > { %v5011_v43 = vpack.c.bf16 %v1210_v41, %v1207_v40 }
 0x421   : > { %3202 = vmatprep.mubr.msk.bf16.mxu0 %vm1223_vm0, %v5011_v43 }
 0x422   : > { %3203 = vmatmul.mubr.msk.bf16.vlgmr.msra.gmra.mrb[8].mxu0 %vm1223_vm0, %v5008_v42 }
 0x4f5   : > { %v3204_v44 = vpop.f32.mrb[8].mxu0 }
 0x4f6   : > { %v1270_v45 = vpop.f32.mrb[9].mxu0  ;;  %v1291_v46 = vsel %vm1223_vm0, %v3204_v44, -inf }
 0x4f7   : > { %1292 = vmax.xlane.f32.xlu0 %v1291_v46  ;;  %v3205_v47 = vpop.f32.mrb[10].mxu0  ;;  %v1285_v49 = vsel %vm1223_vm0, %v1270_v45, -inf }
 0x4f8   : > { %v1273_v48 = vpop.f32.mrb[11].mxu0  ;;  %v1294_v50 = vsel %vm1223_vm0, %v3205_v47, -inf }
 0x4f9   : > { %v1288_v13 = vsel %vm1223_vm0, %v1273_v48, -inf }
 0x4fa   : > { %1289 = vmax.xlane.f32.xlu1 %v1288_v13 }
 0x4fb   : > { %1286 = vmax.xlane.f32.xlu0 %v1285_v49 }
 0x4fe   : > { %1295 = vmax.xlane.f32.xlu1 %v1294_v50 }
 0x50f   : > { %1400 = vrot.lane.b32.xlu1 %v4999_v23, %s4330_s3 }
 0x511   : > { %1398 = vrot.lane.b32.xlu0 %v4989_v11, %s4330_s3 }
 0x513   : > { %1392 = vrot.lane.b32.xlu1 %v5011_v43, %s4330_s3 }
 0x515   : > { %1394 = vrot.lane.b32.xlu0 %v5008_v42, %s4330_s3 }
 0x517   : > { %1589 = vrot.lane.b32.xlu1 %v4989_v11, %s4331_s28 }
 0x519   : > { %1585 = vrot.lane.b32.xlu0 %v5011_v43, %s4331_s28 }
 0x51b   : > { %1591 = vrot.lane.b32.xlu1 %v4999_v23, %s4331_s28 }
 0x51f   : > { %1587 = vrot.lane.b32.xlu1 %v5008_v42, %s4331_s28 }
 0x523   : > { %1694 = vrot.lane.b32.xlu1 %v5005_v33, %s4331_s28 }
 0x584   : > { %v1293_v51 = vpop.xlane.xlu0 %1292 }
 0x585   : > { %v1299_v52 = vsub.f32 %v3204_v44, %v1293_v51 }
 0x587   : > { %v1290_v53 = vpop.xlane.xlu1 %1289  ;;  %v1305_v56 = vmul.f32 1.442695, %v1299_v52 }
 0x588   : > { %v1298_v54 = vsub.f32 %v1273_v48, %v1290_v53  ;;  %v1287_v20 = vpop.xlane.xlu0 %1286 }
 0x589   : > { %v1297_v55 = vsub.f32 %v1270_v45, %v1287_v20 }
 0x58a   : > { %v1303_v14 = vmul.f32 1.442695, %v1298_v54 }
 0x58b   : > { %v1301_v57 = vmul.f32 1.442695, %v1297_v55  ;;  %v1296_v58 = vpop.xlane.xlu1 %1295 }
 0x58c   : > { %3618 = vpow2.f32 %v1303_v14  ;;  %v1300_v60 = vsub.f32 %v3205_v47, %v1296_v58  ;;  %v1399_v21 = vpop.permute.xlu0 %1398 }
 0x58d   : > { %3620 = vpow2.f32 %v1301_v57  ;;  %3284 = vmatprep.subr.msk.bf16.mxu1 %vm1223_vm0, %v1399_v21  ;;  %v1409_v7 = vsel %vm1223_vm0, %v1399_v21, 0 }
 0x58e   : > { %v1307_v61 = vmul.f32 1.442695, %v1300_v60  ;;  %3622 = vpow2.f32 %v1305_v56 }
 0x58f   : > { %v1401_v63 = vpop.permute.xlu1 %1400 }
 0x590   : > { %3624 = vpow2.f32 %v1307_v61  ;;  %v1412_v36 = vsel %vm1223_vm0, %v1401_v63, 0  ;;  %v1395_v10 = vpop.permute.xlu0 %1394 }
 0x593   : > { %v1393_v8 = vpop.permute.xlu1 %1392 }
 0x594   : > { %v1586_v12 = vpop.permute.xlu0 %1585 }
 0x596   : > { %v5040_v28 = vpop.eup %3618 }
 0x597   : > { %v5042_v62 = vpop.eup %3620  ;;  %v1590_v9 = vpop.permute.xlu1 %1589 }
 0x598   : > { %v1321_v0 = vpack.c.bf16 %v5040_v28, %v5042_v62  ;;  %v5046_v1 = vpop.eup %3622  ;;  %v1600_v15 = vsel %vm1223_vm0, %v1590_v9, 0 }
 0x59a   : > { %v5048_v29 = vpop.eup %3624  ;;  %3210 = vmatprep.mubr.msk.bf16.mxu1 %vm1223_vm0, %v1321_v0 }
 0x59b   : > { %v1322_v6 = vpack.c.bf16 %v5048_v29, %v5046_v1  ;;  %v1592_v37 = vpop.permute.xlu1 %1591 }
 0x59c   : > { %v1603_v16 = vsel %vm1223_vm0, %v1592_v37, 0 }
 0x59d   : > { %3211 = vmatmul.mubr.msk.bf16.vlgmr.msra.gmra.mrb[4].mxu1 %vm1223_vm0, %v1322_v6 }
 0x59e   : > { %3215 = vmatpush3.bf16.xpose.msra.mxu1 %v1409_v7  ;;  %3218 = vmatprep.mubr.msk.bf16.mxu1 %vm1223_vm0, %v1393_v8 }
 0x59f   : > { %3285 = vmatprep.subr.msk.bf16.mxu1 %vm1223_vm0, %v1401_v63  ;;  %v1588_v18 = vpop.permute.xlu1 %1587 }
 0x5a6   : > { %3217 = vmatpush3.bf16.xpose.msra.mxu1 %v1412_v36 }
 0x5a7   : > { %3286 = vmatprep.subr.msk.bf16.mxu1 %vm1223_vm0, %v1590_v9 }
 0x5ad   : > { %3219 = vmatmul.mubr.msk.bf16.vlgmr.msra.gmra.mrb[8].mxu1 %vm1223_vm0, %v1395_v10 }
 0x5ae   : > { %3231 = vmatpush3.bf16.xpose.msra.mxu1 %v1600_v15  ;;  %3234 = vmatprep.mubr.msk.bf16.mxu1 %vm1223_vm0, %v1586_v12 }
 0x5af   : > { %3287 = vmatprep.subr.msk.bf16.mxu1 %vm1223_vm0, %v1592_v37 }
 0x5b6   : > { %3233 = vmatpush3.bf16.xpose.msra.mxu1 %v1603_v16 }
 0x5bd   : > { %3235 = vmatmul.mubr.msk.bf16.vlgmr.msra.gmra.mrb[12].mxu1 %vm1223_vm0, %v1588_v18 }
 0x670   : > { %v5065_v19 = vpop.f32.mrb[4].mxu1 }
 0x671   : > { %v5067_v22 = vpop.f32.mrb[5].mxu1 }
 0x672   : > { %v5069_v24 = vpop.f32.mrb[6].mxu1 }
 0x673   : > { %v5071_v25 = vpop.f32.mrb[7].mxu1 }
 0x680   : > { %v5073_v26 = vpop.f32.mrb[8].mxu1 }
 0x681   : > { %v5075_v27 = vpop.f32.mrb[9].mxu1 }
 0x682   : > { %v5077_v30 = vpop.f32.mrb[10].mxu1  ;;  %v1463_v46 = vsel %vm1223_vm0, %v5075_v27, -inf }
 0x683   : > { %v5079_v31 = vpop.f32.mrb[11].mxu1 }
 0x684   : > { %v1466_v45 = vsel %vm1223_vm0, %v5079_v31, -inf }
 0x690   : > { %v3236_v32 = vpop.f32.mrb[12].mxu1 }
 0x691   : > { %v1639_v34 = vpop.f32.mrb[13].mxu1  ;;  %v1660_v35 = vsel %vm1223_vm0, %v3236_v32, -inf }
 0x692   : > { %1661 = vmax.xlane.f32.xlu0 %v1660_v35  ;;  %v3237_v38 = vpop.f32.mrb[14].mxu1  ;;  %v1654_v41 = vsel %vm1223_vm0, %v1639_v34, -inf }
 0x693   : > { %v1642_v39 = vpop.f32.mrb[15].mxu1  ;;  %v1663_v44 = vsel %vm1223_vm0, %v3237_v38, -inf }
 0x694   : > { %v1657_v40 = vsel %vm1223_vm0, %v1642_v39, -inf }
 0x695   : > { %1658 = vmax.xlane.f32.xlu1 %v1657_v40 }
 0x696   : > { %1655 = vmax.xlane.f32.xlu0 %v1654_v41 }
 0x69a   : > { %1664 = vmax.xlane.f32.xlu0 %v1663_v44 }
 0x6a6   : > { %1778 = vrot.lane.b32.xlu1 %v4989_v11, %s4332_s18  ;;  %v1469_v11 = vsel %vm1223_vm0, %v5073_v26, -inf }
 0x6aa   : > { %1780 = vrot.lane.b32.xlu1 %v4999_v23, %s4332_s18  ;;  %v1472_v23 = vsel %vm1223_vm0, %v5077_v30, -inf }
 0x6ae   : > { %1776 = vrot.lane.b32.xlu1 %v5008_v42, %s4332_s18  ;;  %v1695_v42 = vpop.permute.xlu1 %1694 }
 0x6b0   : > { %1692 = vrot.lane.b32.xlu0 %v4995_v17, %s4331_s28 }
 0x6b4   : > { %1774 = vrot.lane.b32.xlu0 %v5011_v43, %s4332_s18 }
 0x6d2   : > { %1467 = vmax.xlane.f32.xlu1 %v1466_v45 }
 0x6d3   : > { %1464 = vmax.xlane.f32.xlu0 %v1463_v46 }
 0x6d7   : > { %1470 = vmax.xlane.f32.xlu0 %v1469_v11 }
 0x6db   : > { %1473 = vmax.xlane.f32.xlu0 %v1472_v23 }
 0x6e3   : > { %1505 = vrot.lane.b32.xlu1 %v5005_v33, %s4330_s3 }
 0x6e7   : > { %1881 = vrot.lane.b32.xlu1 %v4995_v17, %s4332_s18 }
 0x71f   : > { %v1662_v43 = vpop.xlane.xlu0 %1661 }
 0x720   : > { %v1668_v48 = vsub.f32 %v3236_v32, %v1662_v43 }
 0x722   : > { %v1659_v47 = vpop.xlane.xlu1 %1658  ;;  %v1674_v53 = vmul.f32 1.442695, %v1668_v48 }
 0x723   : > { %v1667_v13 = vsub.f32 %v1642_v39, %v1659_v47  ;;  %v1656_v49 = vpop.xlane.xlu0 %1655 }
 0x724   : > { %v1666_v50 = vsub.f32 %v1639_v34, %v1656_v49 }
 0x725   : > { %v1672_v51 = vmul.f32 1.442695, %v1667_v13 }
 0x726   : > { %v1670_v52 = vmul.f32 1.442695, %v1666_v50  ;;  %v1779_v57 = vpop.permute.xlu1 %1778 }
 0x727   : > { %3626 = vpow2.f32 %v1672_v51  ;;  %v1665_v54 = vpop.xlane.xlu0 %1664  ;;  %v1789_v0 = vsel %vm1223_vm0, %v1779_v57, 0 }
 0x728   : > { %3628 = vpow2.f32 %v1670_v52  ;;  %v1669_v20 = vsub.f32 %v3237_v38, %v1665_v54 }
 0x729   : > { %3630 = vpow2.f32 %v1674_v53 }
 0x72a   : > { %v1676_v55 = vmul.f32 1.442695, %v1669_v20  ;;  %v1781_v7 = vpop.permute.xlu1 %1780 }
 0x72b   : > { %v1693_v14 = vpop.permute.xlu0 %1692  ;;  %v1792_v8 = vsel %vm1223_vm0, %v1781_v7, 0 }
 0x72c   : > { %3632 = vpow2.f32 %v1676_v55  ;;  %3238 = vmatprep.subr.bf16.mxu1 %v1693_v14 }
 0x72d   : > { %3239 = vmatpush3.bf16.msra.mxu1 %v1693_v14 }
 0x72e   : > { %3240 = vmatprep.subr.bf16.mxu1 %v1695_v42  ;;  %v1777_v36 = vpop.permute.xlu1 %1776 }
 0x72f   : > { %v1775_v6 = vpop.permute.xlu0 %1774 }
 0x731   : > { %v5107_v56 = vpop.eup %3626  ;;  %3241 = vmatpush3.bf16.msra.mxu1 %v1695_v42 }
 0x732   : > { %v5109_v58 = vpop.eup %3628  ;;  %3288 = vmatprep.subr.msk.bf16.mxu1 %vm1223_vm0, %v1779_v57  ;;  %v1681_v54 = vsel %vm1223_vm0, %v5107_v56, 0.0 }
 0x733   : > { %v1690_v60 = vpack.c.bf16 %v5107_v56, %v5109_v58  ;;  %v5114_v21 = vpop.eup %3630  ;;  %v1678_v20 = vsel %vm1223_vm0, %v5109_v58, 0.0 }
 0x734   : > { %v1684_v55 = vsel %vm1223_vm0, %v5114_v21, 0.0 }
 0x735   : > { %3242 = vmatprep.mubr.msk.bf16.mxu1 %vm1223_vm0, %v1690_v60 }
 0x736   : > { %v5117_v61 = vpop.eup %3632 }
 0x737   : > { %v1691_v63 = vpack.c.bf16 %v5117_v61, %v5114_v21 }
 0x739   : > { %3243 = vmatmul.mubr.msk.bf16.vlgmr.msra.gmra.mrb[16].mxu1 %vm1223_vm0, %v1691_v63 }
 0x73a   : > { %3247 = vmatpush3.bf16.xpose.msra.mxu1 %v1789_v0  ;;  %3250 = vmatprep.mubr.msk.bf16.mxu1 %vm1223_vm0, %v1775_v6 }
 0x73b   : > { %3289 = vmatprep.subr.msk.bf16.mxu1 %vm1223_vm0, %v1781_v7 }
 0x742   : > { %3249 = vmatpush3.bf16.xpose.msra.mxu1 %v1792_v8 }
 0x749   : > { %3251 = vmatmul.mubr.msk.bf16.vlgmr.msra.gmra.mrb[20].mxu1 %vm1223_vm0, %v1777_v36 }
 0x74a   : > { %2297 = vmatprep.mubr.bf16.mxu1 %v4329_v59 }
 0x75f   : > { %v1468_v9 = vpop.xlane.xlu1 %1467 }
 0x760   : > { %v1476_v10 = vsub.f32 %v5079_v31, %v1468_v9  ;;  %v1465_v12 = vpop.xlane.xlu0 %1464 }
 0x761   : > { %v1475_v15 = vsub.f32 %v5075_v27, %v1465_v12 }
 0x762   : > { %v1481_v37 = vmul.f32 1.442695, %v1476_v10 }
 0x763   : > { %v1479_v16 = vmul.f32 1.442695, %v1475_v15  ;;  %v1506_v14 = vpop.permute.xlu1 %1505 }
 0x764   : > { %3634 = vpow2.f32 %v1481_v37  ;;  %v1471_v18 = vpop.xlane.xlu0 %1470 }
 0x765   : > { %3636 = vpow2.f32 %v1479_v16  ;;  %v1477_v32 = vsub.f32 %v5073_v26, %v1471_v18 }
 0x767   : > { %v1483_v34 = vmul.f32 1.442695, %v1477_v32  ;;  %v1882_v57 = vpop.permute.xlu1 %1881 }
 0x768   : > { %v1474_v35 = vpop.xlane.xlu0 %1473 }
 0x769   : > { %v1478_v38 = vsub.f32 %v5077_v30, %v1474_v35  ;;  %3638 = vpow2.f32 %v1483_v34 }
 0x76b   : > { %v1485_v39 = vmul.f32 1.442695, %v1478_v38 }
 0x76d   : > { %3640 = vpow2.f32 %v1485_v39 }
 0x76e   : > { %v3635_v40 = vpop.eup %3634 }
 0x76f   : > { %v3637_v41 = vpop.eup %3636  ;;  %v1490_v52 = vsel %vm1223_vm0, %v3635_v40, 0.0 }
 0x770   : > { %v1499_v31 = vpack.c.bf16 %v3635_v40, %v3637_v41  ;;  %v1487_v51 = vsel %vm1223_vm0, %v3637_v41, 0.0  ;;  %v1309_v41 = vsel %vm1223_vm0, %v5042_v62, 0.0 }
 0x772   : > { %3226 = vmatprep.mubr.msk.bf16.mxu0 %vm1223_vm0, %v1499_v31  ;;  %v1312_v31 = vsel %vm1223_vm0, %v5040_v28, 0.0 }
 0x773   : > { %v5133_v27 = vpop.eup %3638 }
 0x774   : > { %v1493_v53 = vsel %vm1223_vm0, %v5133_v27, 0.0 }
 0x777   : > { %v5135_v44 = vpop.eup %3640 }
 0x778   : > { %v1500_v45 = vpack.c.bf16 %v5135_v44, %v5133_v27  ;;  %v1315_v27 = vsel %vm1223_vm0, %v5046_v1, 0.0 }
 0x80c   : > { %v5139_v26 = vpop.f32.mrb[16].mxu1 }
 0x80d   : > { %v5141_v46 = vpop.f32.mrb[17].mxu1 }
 0x80e   : > { %v5143_v30 = vpop.f32.mrb[18].mxu1 }
 0x80f   : > { %v5145_v11 = vpop.f32.mrb[19].mxu1 }
 0x81c   : > { %v3252_v23 = vpop.f32.mrb[20].mxu1 }
 0x81d   : > { %v1828_v42 = vpop.f32.mrb[21].mxu1  ;;  %v1849_v43 = vsel %vm1223_vm0, %v3252_v23, -inf }
 0x81e   : > { %1850 = vmax.xlane.f32.xlu0 %v1849_v43  ;;  %v3253_v47 = vpop.f32.mrb[22].mxu1  ;;  %v1843_v49 = vsel %vm1223_vm0, %v1828_v42, -inf }
 0x81f   : > { %v1831_v48 = vpop.f32.mrb[23].mxu1  ;;  %v1852_v13 = vsel %vm1223_vm0, %v3253_v47, -inf }
 0x820   : > { %1853 = vmax.xlane.f32.xlu1 %v1852_v13  ;;  %v1846_v50 = vsel %vm1223_vm0, %v1831_v48, -inf }
 0x822   : > { %1844 = vmax.xlane.f32.xlu0 %v1843_v49 }
 0x824   : > { %1847 = vmax.xlane.f32.xlu1 %v1846_v50 }
 0x835   : > { %1883 = vrot.lane.b32.xlu1 %v5005_v33, %s4332_s18  ;;  %v1496_v33 = vsel %vm1223_vm0, %v5135_v44, 0.0  ;;  %v1318_v44 = vsel %vm1223_vm0, %v5048_v29, 0.0 }
 0x838   : > { %1503 = vrot.lane.b32.xlu0 %v4995_v17, %s4330_s3  ;;  %v1687_v17 = vsel %vm1223_vm0, %v5117_v61, 0.0 }
 0x857   : > { %1488 = vadd.xlane.f32.xlu0 %v1487_v51 }
 0x859   : > { %1491 = vadd.xlane.f32.xlu1 %v1490_v52 }
 0x85b   : > { %1494 = vadd.xlane.f32.xlu0 %v1493_v53 }
 0x85d   : > { %1682 = vadd.xlane.f32.xlu1 %v1681_v54 }
 0x85f   : > { %1497 = vadd.xlane.f32.xlu0 %v1496_v33 }
 0x861   : > { %1688 = vadd.xlane.f32.xlu1 %v1687_v17  ;;  %v3555_v17 = vld [vmem:[#allocation15 + $0x8] sm:$0xff]  }
 0x863   : > { %1679 = vadd.xlane.f32.xlu0 %v1678_v20 }
 0x867   : > { %1685 = vadd.xlane.f32.xlu0 %v1684_v55 }
 0x8ab   : > { %v1851_v56 = vpop.xlane.xlu0 %1850 }
 0x8ac   : > { %v1857_v60 = vsub.f32 %v3252_v23, %v1851_v56 }
 0x8ad   : > { %v1854_v63 = vpop.xlane.xlu1 %1853 }
 0x8ae   : > { %v1863_v0 = vmul.f32 1.442695, %v1857_v60  ;;  %v1858_v6 = vsub.f32 %v3253_v47, %v1854_v63 }
 0x8af   : > { %v1845_v7 = vpop.xlane.xlu0 %1844 }
 0x8b0   : > { %v1865_v8 = vmul.f32 1.442695, %v1858_v6  ;;  %v1855_v36 = vsub.f32 %v1828_v42, %v1845_v7  ;;  %3642 = vpow2.f32 %v1863_v0 }
 0x8b1   : > { %v1848_v61 = vpop.xlane.xlu1 %1847 }
 0x8b2   : > { %3644 = vpow2.f32 %v1865_v8  ;;  %v1859_v9 = vmul.f32 1.442695, %v1855_v36  ;;  %v1856_v58 = vsub.f32 %v1831_v48, %v1848_v61 }
 0x8b3   : > { %v1504_v10 = vpop.permute.xlu0 %1503 }
 0x8b4   : > { %3646 = vpow2.f32 %v1859_v9  ;;  %v1861_v12 = vmul.f32 1.442695, %v1856_v58  ;;  %3222 = vmatprep.subr.bf16.mxu0 %v1504_v10 }
 0x8b5   : > { %3223 = vmatpush3.bf16.msra.mxu0 %v1504_v10  ;;  %v1884_v37 = vpop.permute.xlu1 %1883 }
 0x8b6   : > { %3648 = vpow2.f32 %v1861_v12  ;;  %3224 = vmatprep.subr.bf16.mxu0 %v1506_v14  ;;  %v3557_v12 = vld [vmem:[#allocation15 + $0x18] sm:$0xff]  }
 0x8b9   : > { %3225 = vmatpush3.bf16.msra.mxu0 %v1506_v14 }
 0x8ba   : > { %3254 = vmatprep.subr.bf16.mxu0 %v1882_v57  ;;  %v3643_v21 = vpop.eup %3642 }
 0x8bb   : > { %v1873_v39 = vsel %vm1223_vm0, %v3643_v21, 0.0 }
 0x8bc   : > { %v3645_v15 = vpop.eup %3644  ;;  %3227 = vmatmul.mubr.msk.bf16.vlgmr.msra.gmra.mrb[12].mxu0 %vm1223_vm0, %v1500_v45 }
 0x8bd   : > { %3255 = vmatpush3.bf16.msra.mxu0 %v1882_v57  ;;  %v1880_v16 = vpack.c.bf16 %v3645_v15, %v3643_v21  ;;  %v1876_v40 = vsel %vm1223_vm0, %v3645_v15, 0.0 }
 0x8be   : > { %v3647_v18 = vpop.eup %3646  ;;  %3256 = vmatprep.subr.bf16.mxu0 %v1884_v37 }
 0x8bf   : > { %v1867_v32 = vsel %vm1223_vm0, %v3647_v18, 0.0 }
 0x8c0   : > { %v3649_v34 = vpop.eup %3648  ;;  %1868 = vadd.xlane.f32.xlu0 %v1867_v32 }
 0x8c1   : > { %3257 = vmatpush3.bf16.msra.mxu0 %v1884_v37  ;;  %v1870_v35 = vsel %vm1223_vm0, %v3649_v34, 0.0  ;;  %v1879_v38 = vpack.c.bf16 %v3649_v34, %v3647_v18 }
 0x8c2   : > { %1871 = vadd.xlane.f32.xlu1 %v1870_v35 }
 0x8c3   : > { %3258 = vmatprep.mubr.msk.bf16.mxu0 %vm1223_vm0, %v1879_v38 }
 0x8c4   : > { %1874 = vadd.xlane.f32.xlu0 %v1873_v39  ;;  %3259 = vmatmul.mubr.msk.bf16.vlgmr.msra.gmra.mrb[16].mxu0 %vm1223_vm0, %v1880_v16 }
 0x8c6   : > { %1877 = vadd.xlane.f32.xlu1 %v1876_v40  ;;  %v3560_v40 = vld [vmem:[#allocation15 + $0x30] sm:$0xff]  }
 0x8c8   : > { %1310 = vadd.xlane.f32.xlu0 %v1309_v41 }
 0x8ca   : > { %1313 = vadd.xlane.f32.xlu1 %v1312_v31 }
 0x8cc   : > { %1316 = vadd.xlane.f32.xlu0 %v1315_v27  ;;  %v3561_v27 = vld [vmem:[#allocation15 + $0x38] sm:$0xff]  }
 0x8ce   : > { %1319 = vadd.xlane.f32.xlu1 %v1318_v44 }
 0x8e4   : > { %v1489_v45 = vpop.xlane.xlu0 %1488 }
 0x8e6   : > { %v1492_v23 = vpop.xlane.xlu1 %1491 }
 0x8e8   : > { %v1495_v42 = vpop.xlane.xlu0 %1494 }
 0x8ea   : > { %v1683_v43 = vpop.xlane.xlu1 %1682 }
 0x8eb   : > { %3650 = vrcp.f32 %v1683_v43 }
 0x8ec   : > { %v1498_v47 = vpop.xlane.xlu0 %1497 }
 0x8ee   : > { %v1689_v62 = vpop.xlane.xlu1 %1688 }
 0x8ef   : > { %3652 = vrcp.f32 %v1689_v62 }
 0x8f0   : > { %v1680_v48 = vpop.xlane.xlu0 %1679 }
 0x8f1   : > { %3654 = vrcp.f32 %v1680_v48 }
 0x8f4   : > { %v1686_v28 = vpop.xlane.xlu0 %1685 }
 0x8f5   : > { %v3651_v13 = vpop.eup %3650  ;;  %3656 = vrcp.f32 %v1686_v28 }
 0x8f6   : > { %v5185_v1 = vmul.f32 %v3651_v13, %v5145_v11  ;;  %v3554_v11 = vld [vmem:[#allocation15] sm:$0xff]  }
 0x8f7   : > { %3262 = vmatprep.subr.bf16.mxu0 %v3554_v11 }
 0x8f8   : > { %3263 = vmatpush3.bf16.msra.mxu0 %v3554_v11 }
 0x8f9   : > { %v3653_v49 = vpop.eup %3652  ;;  %3264 = vmatprep.subr.bf16.mxu0 %v3555_v17 }
 0x8fa   : > { %v5188_v29 = vmul.f32 %v3653_v49, %v5143_v30  ;;  %v3556_v30 = vld [vmem:[#allocation15 + $0x10] sm:$0xff]  }
 0x8fb   : > { %v3655_v50 = vpop.eup %3654 }
 0x8fc   : > { %v5191_v51 = vmul.f32 %v3655_v50, %v5141_v46  ;;  %3265 = vmatpush3.bf16.msra.mxu0 %v3555_v17 }
 0x8fd   : > { %3266 = vmatprep.subr.bf16.mxu0 %v3556_v30 }
 0x8fe   : > { %v1761_v52 = vpack.c.bf16 %v5185_v1, %v5191_v51 }
 0x8ff   : > { %v3657_v53 = vpop.eup %3656 }
 0x900   : > { %v5196_v54 = vmul.f32 %v3657_v53, %v5139_v26  ;;  %3267 = vmatpush3.bf16.msra.mxu0 %v3556_v30 }
 0x901   : > { %3268 = vmatprep.subr.bf16.mxu0 %v3557_v12 }
 0x902   : > { %v1762_v33 = vpack.c.bf16 %v5188_v29, %v5196_v54 }
 0x904   : > { %3269 = vmatpush3.bf16.msra.mxu0 %v3557_v12 }
 0x94d   : > { %v1869_v46 = vpop.xlane.xlu0 %1868 }
 0x94f   : > { %v1872_v20 = vpop.xlane.xlu1 %1871 }
 0x951   : > { %v1875_v55 = vpop.xlane.xlu0 %1874 }
 0x953   : > { %v1878_v14 = vpop.xlane.xlu1 %1877 }
 0x955   : > { %v1311_v57 = vpop.xlane.xlu0 %1310 }
 0x956   : > { %3658 = vrcp.f32 %v1311_v57 }
 0x957   : > { %v1314_v26 = vpop.xlane.xlu1 %1313 }
 0x958   : > { %3660 = vrcp.f32 %v1314_v26 }
 0x959   : > { %v1317_v56 = vpop.xlane.xlu0 %1316 }
 0x95a   : > { %3662 = vrcp.f32 %v1317_v56 }
 0x95b   : > { %v1320_v60 = vpop.xlane.xlu1 %1319 }
 0x95c   : > { %3664 = vrcp.f32 %v1320_v60 }
 0x95d   : > { %3666 = vrcp.f32 %v1495_v42 }
 0x95e   : > { %3668 = vrcp.f32 %v1489_v45 }
 0x95f   : > { %3670 = vrcp.f32 %v1498_v47 }
 0x960   : > { %v3659_v63 = vpop.eup %3658  ;;  %3672 = vrcp.f32 %v1492_v23 }
 0x961   : > { %v1382_v6 = vmul.f32 %v3659_v63, %v5067_v22  ;;  %v3558_v22 = vld [vmem:[#allocation15 + $0x20] sm:$0xff]   ;;  %3674 = vrcp.f32 %v1869_v46 }
 0x962   : > { %v3661_v0 = vpop.eup %3660  ;;  %3270 = vmatprep.subr.bf16.mxu0 %v3558_v22  ;;  %3676 = vrcp.f32 %v1875_v55 }
 0x963   : > { %v1383_v7 = vmul.f32 %v3661_v0, %v5071_v25  ;;  %3271 = vmatpush3.bf16.msra.mxu0 %v3558_v22  ;;  %3678 = vrcp.f32 %v1878_v14  ;;  %v3559_v25 = vld [vmem:[#allocation15 + $0x28] sm:$0xff]  }
 0x964   : > { %v3663_v8 = vpop.eup %3662  ;;  %3680 = vrcp.f32 %v1872_v20  ;;  %3272 = vmatprep.subr.bf16.mxu0 %v3559_v25 }
 0x965   : > { %v1386_v36 = vpack.c.bf16 %v1383_v7, %v1382_v6  ;;  %v1384_v9 = vmul.f32 %v3663_v8, %v5065_v19 }
 0x966   : > { %v3665_v61 = vpop.eup %3664 }
 0x967   : > { %v1385_v58 = vmul.f32 %v3665_v61, %v5069_v24  ;;  %1388 = vst.msk [vmem:[#allocation2] sm:$0xff] %vm1223_vm0, %v1386_v36  ;;  %v3667_v19 = vpop.eup %3666  ;;  %3273 = vmatpush3.bf16.msra.mxu0 %v3559_v25  ;;  %v3564_v36 = vld [vmem:[#allocation21 + $0x4] ss:$8 sps:$4 sm:$0xff]   ;;  %v3567_v61 = vld [vmem:[#allocation21 + $0x14] ss:$8 sps:$4 sm:$0xff]  }
 0x968   : > { %v3669_v21 = vpop.eup %3668  ;;  %3274 = vmatprep.subr.bf16.mxu0 %v3560_v40  ;;  %2265 = vmatprep.subr.bf16.mxu1 %v3564_v36 }
 0x969   : > { %v1387_v10 = vpack.c.bf16 %v1385_v58, %v1384_v9  ;;  %v3671_v16 = vpop.eup %3670 }
 0x96a   : > { %v3673_v34 = vpop.eup %3672 }
 0x96b   : > { %1389 = vst.msk [vmem:[#allocation2 + $0x8] sm:$0xff] %vm1223_vm0, %v1387_v10  ;;  %3275 = vmatpush3.bf16.msra.mxu0 %v3560_v40  ;;  %v3675_v44 = vpop.eup %3674  ;;  %v3576_v40 = vld [vmem:[#allocation21 + $0x44] ss:$8 sps:$4 sm:$0xff]  }
 0x96c   : > { %3276 = vmatprep.subr.bf16.mxu0 %v3561_v27  ;;  %v3677_v23 = vpop.eup %3676 }
 0x96d   : > { %v3679_v43 = vpop.eup %3678 }
 0x96e   : > { %v3681_v48 = vpop.eup %3680 }
 0x96f   : > { %3277 = vmatpush3.bf16.msra.mxu0 %v3561_v27  ;;  %v3577_v27 = vld [vmem:[#allocation21 + $0x50] ss:$8 sps:$4 sm:$0xff]  }
 0x98f   : > { %v3228_v24 = vpop.f32.mrb[12].mxu0 }
 0x990   : > { %v1570_v15 = vmul.f32 %v3667_v19, %v3228_v24  ;;  %v1549_v37 = vpop.f32.mrb[13].mxu0 }
 0x991   : > { %v1568_v18 = vmul.f32 %v3669_v21, %v1549_v37  ;;  %v3229_v32 = vpop.f32.mrb[14].mxu0 }
 0x992   : > { %v1571_v35 = vmul.f32 %v3671_v16, %v3229_v32  ;;  %v1552_v38 = vpop.f32.mrb[15].mxu0 }
 0x993   : > { %v1569_v39 = vmul.f32 %v3673_v34, %v1552_v38  ;;  %v3570_v34 = vld [vmem:[#allocation21 + $0x24] ss:$8 sps:$4 sm:$0xff]   ;;  %v3573_v38 = vld [vmem:[#allocation21 + $0x34] ss:$8 sps:$4 sm:$0xff]  }
 0x994   : > { %v1573_v41 = vpack.c.bf16 %v1571_v35, %v1570_v15  ;;  %v3568_v35 = vld [vmem:[#allocation21 + $0x20] ss:$8 sps:$4 sm:$0xff]  }
 0x995   : > { %v1572_v31 = vpack.c.bf16 %v1569_v39, %v1568_v18  ;;  %v3571_v39 = vld [vmem:[#allocation21 + $0x30] ss:$8 sps:$4 sm:$0xff]  }
 0x996   : > { %1578 = vrot.lane.b32.xlu1 %v1573_v41, %s4332_s18  ;;  %v3574_v41 = vld [vmem:[#allocation21 + $0x40] ss:$8 sps:$4 sm:$0xff]  }
 0x997   : > { %v3260_v45 = vpop.f32.mrb[16].mxu0  ;;  %1576 = vrot.lane.b32.xlu0 %v1572_v31, %s4332_s18  ;;  %v3579_v31 = vld [vmem:[#allocation21 + $0x54] ss:$8 sps:$4 sm:$0xff]  }
 0x998   : > { %v1927_v42 = vpop.f32.mrb[17].mxu0  ;;  %v1948_v28 = vmul.f32 %v3677_v23, %v3260_v45  ;;  %v3580_v45 = vld [vmem:[#allocation21 + $0x60] ss:$8 sps:$4 sm:$0xff]   ;;  %v3585_v23 = vld [vmem:[#allocation21 + $0x74] ss:$8 sps:$4 sm:$0xff]  }
 0x999   : > { %v1946_v47 = vmul.f32 %v3675_v44, %v1927_v42  ;;  %v3261_v62 = vpop.f32.mrb[18].mxu0  ;;  %v3582_v44 = vld [vmem:[#allocation21 + $0x64] ss:$8 sps:$4 sm:$0xff]   ;;  %v3583_v42 = vld [vmem:[#allocation21 + $0x70] ss:$8 sps:$4 sm:$0xff]  }
 0x99a   : > { %v1949_v13 = vmul.f32 %v3679_v43, %v3261_v62  ;;  %v1930_v49 = vpop.f32.mrb[19].mxu0  ;;  %1765 = vrot.lane.b32.xlu1 %v1761_v52, %s4331_s28 }
 0x99b   : > { %v1947_v50 = vmul.f32 %v3681_v48, %v1930_v49 }
 0x99c   : > { %v1951_v53 = vpack.c.bf16 %v1949_v13, %v1948_v28 }
 0x99d   : > { %v1950_v11 = vpack.c.bf16 %v1947_v50, %v1946_v47 }
 0x99e   : > { %1767 = vrot.lane.b32.xlu1 %v1762_v33, %s4331_s28  ;;  %v3008_v33 = vld [vmem:[#allocation17] ss:$0 sm:$0xff] }
 0x99f   : > { %1954 = vrot.lane.b32.xlu0 %v1950_v11, %s4330_s3 }
 0x9a2   : > { %1956 = vrot.lane.b32.xlu1 %v1951_v53, %s4330_s3  ;;  %s4198_s3 = scalar_lea.vmem %s4197_s4, 512 }
 0x9a3   : > { %p4200_p13 = scmp.lt.s32.totalorder %s4198_s3, %s4192_s24 }
 0x9a5   : > { %p4201_p2 = por %p4200_p13, %p4199_p10 }
 0x9a7   : > { %p4202_p8 = pnand %p4201_p2, %p4195_p1 }
 0xa08   : > { %v1579_v17 = vpop.permute.xlu1 %1578 }
 0xa09   : > { %1584 = vst.msk [vmem:[#allocation2 + $0x8] sm:$0xff] %vm1582_vm1, %v1579_v17  ;;  %v1577_v30 = vpop.permute.xlu0 %1576 }
 0xa0a   : > { %1583 = vst.msk [vmem:[#allocation2] sm:$0xff] %vm1582_vm1, %v1577_v30 }
 0xa0c   : > { %v1766_v1 = vpop.permute.xlu1 %1765 }
 0xa0d   : > { %1772 = vst.msk [vmem:[#allocation2] sm:$0xff] %vm1771_vm2, %v1766_v1 }
 0xa10   : > { %v1768_v51 = vpop.permute.xlu1 %1767 }
 0xa11   : > { %1773 = vst.msk [vmem:[#allocation2 + $0x8] sm:$0xff] %vm1771_vm2, %v1768_v51  ;;  %v1955_v52 = vpop.permute.xlu0 %1954  ;;  %v3017_v51 = vld [vmem:[#allocation18] ss:$0 sm:$0xff] }
 0xa12   : > { %1961 = vst.msk [vmem:[#allocation2] sm:$0xff] %vm1960_vm3, %v1955_v52 }
 0xa14   : > { %v1957_v46 = vpop.permute.xlu1 %1956 }
 0xa15   : > { %1962 = vst.msk [vmem:[#allocation2 + $0x8] sm:$0xff] %vm1960_vm3, %v1957_v46 }
 0xa19   : > { %v1963_v29 = vld [vmem:[#allocation2] sm:$0xff] }
 0xa1a   : > { %3278 = vmatprep.mubr.bf16.mxu0 %v1963_v29 }
 0xa1c   : > { %v1964_v54 = vld [vmem:[#allocation2 + $0x8] sm:$0xff] }
 0xa1d   : > { %3279 = vmatmul.mubr.bf16.vlgmr.msra.gmra.mrb[20].mxu0 %v1964_v54 }
 0xaf0   : > { %v3280_v20 = vpop.f32.mrb[20].mxu0 }
 0xaf1   : > { %v2070_v55 = vpop.f32.mrb[21].mxu0  ;;  %v2079_v56 = vadd.f32 %v3280_v20, %v3008_v33  ;;  %v3018_v20 = vld [vmem:[#allocation20] ss:$0 sm:$0xff] }
 0xaf2   : > { %v2071_v14 = vadd.f32 %v3008_v33, %v2070_v55  ;;  %v3281_v57 = vpop.f32.mrb[22].mxu0 }
 0xaf3   : > { %v2073_v26 = vpop.f32.mrb[23].mxu0  ;;  %v5226_v6 = vadd.f32 %v4925_v3, %v2079_v56  ;;  %v2082_v7 = vadd.f32 %v3281_v57, %v3008_v33 }
 0xaf4   : > { %v5219_v60 = vadd.f32 %v4923_v2, %v2071_v14  ;;  %v2074_v63 = vadd.f32 %v3008_v33, %v2073_v26  ;;  %v3562_v2 = vld [vmem:[#allocation21] ss:$8 sps:$4 sm:$0xff]  }
 0xaf5   : > { %v5231_v8 = vadd.f32 %v4931_v5, %v2082_v7  ;;  %2266 = vmatpush1.bf16.msra.mxu1 %v3562_v2 }
 0xaf6   : > { %v5222_v0 = vadd.f32 %v4929_v4, %v2074_v63  ;;  %2091 = vadd.xlane.f32.xlu0 %v5219_v60  ;;  %v3565_v4 = vld [vmem:[#allocation21 + $0x10] ss:$8 sps:$4 sm:$0xff]   ;;  %2267 = vmatprep.subr.bf16.mxu1 %v3567_v61 }
 0xaf8   : > { %2093 = vadd.xlane.f32.xlu1 %v5222_v0 }
 0xaf9   : > { %2268 = vmatpush1.bf16.msra.mxu1 %v3565_v4 }
 0xafa   : > { %2095 = vadd.xlane.f32.xlu0 %v5226_v6  ;;  %2269 = vmatprep.subr.bf16.mxu1 %v3570_v34  ;;  %v2175_v34 = vlaneseq }
 0xafd   : > { %2270 = vmatpush1.bf16.msra.mxu1 %v3568_v35  ;;  %v2176_v35 = vshrl.u32 %v2175_v34, 7 }
 0xafe   : > { %2097 = vadd.xlane.f32.xlu0 %v5231_v8  ;;  %2271 = vmatprep.subr.bf16.mxu1 %v3573_v38 }
 0xaff   : > { %v2177_v38 = vsub.s32 0, %v2176_v35 }
 0xb01   : > { %2272 = vmatpush1.bf16.msra.mxu1 %v3571_v39  ;;  %v2173_v39 = vld [vmem:[#allocation23] sm:$0x3] }
 0xb02   : > { %2273 = vmatprep.subr.bf16.mxu1 %v3576_v40  ;;  %v2181_v40 = vsub.s32 1, %v2176_v35 }
 0xb05   : > { %2274 = vmatpush1.bf16.msra.mxu1 %v3574_v41  ;;  %v2178_v41 = vrot.slane %v2173_v39, %v2177_v38 }
 0xb06   : > { %2275 = vmatprep.subr.bf16.mxu1 %v3579_v31  ;;  %v2182_v31 = vrot.slane %v2173_v39, %v2181_v40 }
 0xb09   : > { %2276 = vmatpush1.bf16.msra.mxu1 %v3577_v27 }
 0xb0a   : > { %2277 = vmatprep.subr.bf16.mxu1 %v3582_v44 }
 0xb0d   : > { %2278 = vmatpush1.bf16.msra.mxu1 %v3580_v45 }
 0xb0e   : > { %2279 = vmatprep.subr.bf16.mxu1 %v3585_v23 }
 0xb11   : > { %2280 = vmatpush1.bf16.msra.mxu1 %v3583_v42 }
 0xb83   : > { %v2092_v3 = vpop.xlane.xlu0 %2091 }
 0xb84   : > { %v2099_v9 = vmul.f32 0.0078125, %v2092_v3 }
 0xb85   : > { %v2094_v58 = vpop.xlane.xlu1 %2093 }
 0xb86   : > { %v2103_v10 = vsub.f32 %v5219_v60, %v2099_v9  ;;  %v2100_v12 = vmul.f32 0.0078125, %v2094_v58  ;;  %v3586_v9 = vld [vmem:[#allocation24 + $0x40] sm:$0xff]  }
 0xb87   : > { %v2096_v22 = vpop.xlane.xlu0 %2095  ;;  %v3587_v58 = vld [vmem:[#allocation24] sm:$0xff]   ;;  %3150 = vmatprep.subr.bf16.mxu0 %v3586_v9 }
 0xb88   : > { %v2104_v5 = vsub.f32 %v5222_v0, %v2100_v12  ;;  %v2101_v19 = vmul.f32 0.0078125, %v2096_v22  ;;  %v2107_v24 = vmul.f32 %v2103_v10, %v2103_v10  ;;  %3151 = vmatpush3.bf16.msra.mxu0 %v3587_v58  ;;  %v3589_v12 = vld [vmem:[#allocation24 + $0x8] sm:$0xff]   ;;  %v3590_v22 = vld [vmem:[#allocation24 + $0x50] sm:$0xff]  }
 0xb8a   : > { %v2105_v25 = vsub.f32 %v5226_v6, %v2101_v19  ;;  %2111 = vadd.xlane.f32.xlu0 %v2107_v24  ;;  %v2108_v21 = vmul.f32 %v2104_v5, %v2104_v5  ;;  %v3592_v19 = vld [vmem:[#allocation24 + $0x58] sm:$0xff]  }
 0xb8b   : > { %v2098_v15 = vpop.xlane.xlu0 %2097  ;;  %v3593_v24 = vld [vmem:[#allocation24 + $0x18] sm:$0xff]  }
 0xb8c   : > { %v2102_v37 = vmul.f32 0.0078125, %v2098_v15  ;;  %2113 = vadd.xlane.f32.xlu1 %v2108_v21  ;;  %v2109_v16 = vmul.f32 %v2105_v25, %v2105_v25  ;;  %v3596_v21 = vld [vmem:[#allocation24 + $0x68] sm:$0xff]  }
 0xb8d   : > { %v3597_v15 = vld [vmem:[#allocation24 + $0x28] sm:$0xff]  }
 0xb8e   : > { %v2106_v18 = vsub.f32 %v5231_v8, %v2102_v37  ;;  %2115 = vadd.xlane.f32.xlu0 %v2109_v16  ;;  %v3598_v37 = vld [vmem:[#allocation24 + $0x70] sm:$0xff]  }
 0xb8f   : > { %v3599_v16 = vld [vmem:[#allocation24 + $0x30] sm:$0xff]  }
 0xb90   : > { %v2110_v32 = vmul.f32 %v2106_v18, %v2106_v18 }
 0xb92   : > { %2117 = vadd.xlane.f32.xlu1 %v2110_v32  ;;  %v3601_v32 = vld [vmem:[#allocation24 + $0x38] sm:$0xff]  }
 0xc17   : > { %v2112_v43 = vpop.xlane.xlu0 %2111 }
 0xc18   : > { %v2119_v47 = vmul.f32 0.0078125, %v2112_v43 }
 0xc19   : > { %v2114_v62 = vpop.xlane.xlu1 %2113 }
 0xc1a   : > { %v2123_v48 = vadd.f32 1e-05, %v2119_v47  ;;  %v2120_v28 = vmul.f32 0.0078125, %v2114_v62 }
 0xc1b   : > { %v2116_v13 = vpop.xlane.xlu0 %2115 }
 0xc1c   : > { %3682 = vrsqrt.f32 %v2123_v48  ;;  %v2124_v49 = vadd.f32 1e-05, %v2120_v28  ;;  %v2121_v50 = vmul.f32 0.0078125, %v2116_v13 }
 0xc1e   : > { %3684 = vrsqrt.f32 %v2124_v49  ;;  %v2125_v53 = vadd.f32 1e-05, %v2121_v50 }
 0xc1f   : > { %v2118_v11 = vpop.xlane.xlu1 %2117 }
 0xc20   : > { %3686 = vrsqrt.f32 %v2125_v53  ;;  %v2122_v17 = vmul.f32 0.0078125, %v2118_v11 }
 0xc22   : > { %v2126_v30 = vadd.f32 1e-05, %v2122_v17 }
 0xc24   : > { %3688 = vrsqrt.f32 %v2126_v30 }
 0xc26   : > { %v3683_v1 = vpop.eup %3682 }
 0xc27   : > { %v2131_v52 = vmul.f32 %v3683_v1, %v2103_v10  ;;  %v3588_v10 = vld [vmem:[#allocation24 + $0x48] sm:$0xff]  }
 0xc28   : > { %v3685_v46 = vpop.eup %3684  ;;  %3152 = vmatprep.subr.bf16.mxu0 %v3588_v10 }
 0xc29   : > { %v2132_v29 = vmul.f32 %v3685_v46, %v2104_v5  ;;  %v2141_v54 = vmul.f32 %v3017_v51, %v2131_v52  ;;  %3153 = vmatpush3.bf16.msra.mxu0 %v3589_v12  ;;  %v3591_v5 = vld [vmem:[#allocation24 + $0x10] sm:$0xff]  }
 0xc2a   : > { %v3687_v33 = vpop.eup %3686  ;;  %3154 = vmatprep.subr.bf16.mxu0 %v3590_v22 }
 0xc2b   : > { %v2142_v55 = vmul.f32 %v3017_v51, %v2132_v29  ;;  %v2151_v14 = vadd.f32 %v3018_v20, %v2141_v54  ;;  %v2133_v26 = vmul.f32 %v3687_v33, %v2105_v25  ;;  %v3595_v25 = vld [vmem:[#allocation24 + $0x20] sm:$0xff]  }
 0xc2d   : > { %v2152_v57 = vadd.f32 %v3018_v20, %v2142_v55  ;;  %v2143_v2 = vmul.f32 %v3017_v51, %v2133_v26  ;;  %3155 = vmatpush3.bf16.msra.mxu0 %v3591_v5 }
 0xc2e   : > { %v3689_v56 = vpop.eup %3688  ;;  %3156 = vmatprep.subr.bf16.mxu0 %v3592_v19 }
 0xc2f   : > { %v2155_v63 = vpack.c.bf16 %v2152_v57, %v2151_v14  ;;  %v2134_v7 = vmul.f32 %v3689_v56, %v2106_v18  ;;  %v2153_v4 = vadd.f32 %v3018_v20, %v2143_v2  ;;  %v3600_v18 = vld [vmem:[#allocation24 + $0x78] sm:$0xff]  }
 0xc31   : > { %2298 = vmatmul.mubr.bf16.vlgmr.msra.gmra.mrb[24].mxu1 %v2155_v63  ;;  %v2144_v36 = vmul.f32 %v3017_v51, %v2134_v7  ;;  %3157 = vmatpush3.bf16.msra.mxu0 %v3593_v24 }
 0xc32   : > { %2307 = vmatprep.mubr.bf16.mxu1 %v4329_v59  ;;  %v3594_v59 = vld [vmem:[#allocation24 + $0x60] sm:$0xff]  }
 0xc33   : > { %v2154_v61 = vadd.f32 %v3018_v20, %v2144_v36  ;;  %3158 = vmatprep.subr.bf16.mxu0 %v3594_v59 }
 0xc35   : > { %v2156_v3 = vpack.c.bf16 %v2154_v61, %v2153_v4  ;;  %3159 = vmatpush3.bf16.msra.mxu0 %v3595_v25 }
 0xc36   : > { %3160 = vmatprep.subr.bf16.mxu0 %v3596_v21 }
 0xc39   : > { %2308 = vmatmul.mubr.bf16.gmra.mrb[28].mxu1 %v2156_v3  ;;  %3161 = vmatpush3.bf16.msra.mxu0 %v3597_v15 }
 0xc3a   : > { %3162 = vmatprep.subr.bf16.mxu0 %v3598_v37 }
 0xc3d   : > { %3163 = vmatpush3.bf16.msra.mxu0 %v3599_v16 }
 0xc3e   : > { %3164 = vmatprep.subr.bf16.mxu0 %v3600_v18 }
 0xc41   : > { %3165 = vmatpush3.bf16.msra.mxu0 %v3601_v32 }
 0xd04   : > { %v2299_v27 = vpop.f32.mrb[24].mxu1 }
 0xd05   : > { %v5239_v44 = vadd.f32 %v2299_v27, %v2178_v41  ;;  %v2301_v45 = vpop.f32.mrb[25].mxu1 }
 0xd06   : > { %v5241_v23 = vadd.f32 %v2301_v45, %v2182_v31  ;;  %v2303_v42 = vpop.f32.mrb[26].mxu1 }
 0xd07   : > { %v2318_v43 = vmul.f32 %v5239_v44, %v5239_v44  ;;  %v5245_v47 = vadd.f32 %v2303_v42, %v2178_v41  ;;  %v2305_v62 = vpop.f32.mrb[27].mxu1 }
 0xd08   : > { %v2319_v48 = vmul.f32 %v5241_v23, %v5241_v23  ;;  %v5249_v28 = vadd.f32 %v2305_v62, %v2182_v31 }
 0xd09   : > { %v2326_v13 = vmul.f32 %v2318_v43, %v5239_v44  ;;  %v2320_v49 = vmul.f32 %v5245_v47, %v5245_v47 }
 0xd0a   : > { %v2327_v50 = vmul.f32 %v2319_v48, %v5241_v23  ;;  %v2321_v53 = vmul.f32 %v5249_v28, %v5249_v28 }
 0xd0b   : > { %v2334_v11 = vmul.f32 0.044715, %v2326_v13  ;;  %v2328_v17 = vmul.f32 %v2320_v49, %v5245_v47 }
 0xd0c   : > { %v2335_v30 = vmul.f32 0.044715, %v2327_v50  ;;  %v2329_v1 = vmul.f32 %v2321_v53, %v5249_v28  ;;  %v2309_v51 = vpop.f32.mrb[28].mxu1 }
 0xd0d   : > { %v2342_v52 = vadd.f32 %v2334_v11, %v5239_v44  ;;  %v2336_v46 = vmul.f32 0.044715, %v2328_v17  ;;  %v5260_v29 = vadd.f32 %v2309_v51, %v2178_v41  ;;  %v2311_v54 = vpop.f32.mrb[29].mxu1 }
 0xd0e   : > { %v2343_v33 = vadd.f32 %v2335_v30, %v5241_v23  ;;  %v2337_v20 = vmul.f32 0.044715, %v2329_v1  ;;  %v5263_v55 = vadd.f32 %v2311_v54, %v2182_v31  ;;  %v2313_v14 = vpop.f32.mrb[30].mxu1 }
 0xd0f   : > { %v2350_v57 = vmul.f32 0.7978846, %v2342_v52  ;;  %v2344_v26 = vadd.f32 %v2336_v46, %v5245_v47  ;;  %v2322_v56 = vmul.f32 %v5260_v29, %v5260_v29  ;;  %v5268_v63 = vadd.f32 %v2313_v14, %v2178_v41  ;;  %v2315_v7 = vpop.f32.mrb[31].mxu1 }
 0xd10   : > { %v2351_v2 = vmul.f32 0.7978846, %v2343_v33  ;;  %v2345_v36 = vadd.f32 %v2337_v20, %v5249_v28  ;;  %v2323_v61 = vmul.f32 %v5263_v55, %v5263_v55  ;;  %v5273_v4 = vadd.f32 %v2315_v7, %v2182_v31 }
 0xd11   : > { %3690 = vtanh.f32 %v2350_v57  ;;  %v2352_v3 = vmul.f32 0.7978846, %v2344_v26  ;;  %v2330_v9 = vmul.f32 %v2322_v56, %v5260_v29  ;;  %v2324_v58 = vmul.f32 %v5268_v63, %v5268_v63 }
 0xd12   : > { %3692 = vtanh.f32 %v2351_v2  ;;  %v2353_v10 = vmul.f32 0.7978846, %v2345_v36  ;;  %v2331_v12 = vmul.f32 %v2323_v61, %v5263_v55  ;;  %v2325_v22 = vmul.f32 %v5273_v4, %v5273_v4 }
 0xd13   : > { %3694 = vtanh.f32 %v2352_v3  ;;  %v2338_v5 = vmul.f32 0.044715, %v2330_v9  ;;  %v2332_v19 = vmul.f32 %v2324_v58, %v5268_v63  ;;  %v3035_v9 = vld [vmem:[#allocation26] ss:$0 sm:$0xff] }
 0xd14   : > { %3696 = vtanh.f32 %v2353_v10  ;;  %v2339_v24 = vmul.f32 0.044715, %v2331_v12  ;;  %v2333_v59 = vmul.f32 %v2325_v22, %v5273_v4 }
 0xd15   : > { %v2346_v25 = vadd.f32 %v2338_v5, %v5260_v29  ;;  %v2340_v21 = vmul.f32 0.044715, %v2332_v19 }
 0xd16   : > { %v2347_v15 = vadd.f32 %v2339_v24, %v5263_v55  ;;  %v2341_v37 = vmul.f32 0.044715, %v2333_v59 }
 0xd17   : > { %v2354_v16 = vmul.f32 0.7978846, %v2346_v25  ;;  %v2348_v18 = vadd.f32 %v2340_v21, %v5268_v63 }
 0xd18   : > { %v2355_v32 = vmul.f32 0.7978846, %v2347_v15  ;;  %v2349_v34 = vadd.f32 %v2341_v37, %v5273_v4 }
 0xd19   : > { %3698 = vtanh.f32 %v2354_v16  ;;  %v2356_v35 = vmul.f32 0.7978846, %v2348_v18 }
 0xd1a   : > { %3700 = vtanh.f32 %v2355_v32  ;;  %v2357_v38 = vmul.f32 0.7978846, %v2349_v34 }
 0xd1b   : > { %v3691_v39 = vpop.eup %3690  ;;  %3702 = vtanh.f32 %v2356_v35 }
 0xd1c   : > { %v3693_v40 = vpop.eup %3692  ;;  %v2366_v41 = vadd.f32 1.0, %v3691_v39  ;;  %3704 = vtanh.f32 %v2357_v38 }
 0xd1d   : > { %v3695_v31 = vpop.eup %3694  ;;  %v2367_v27 = vadd.f32 1.0, %v3693_v40 }
 0xd1e   : > { %v3697_v45 = vpop.eup %3696  ;;  %v2374_v42 = vmul.f32 0.5, %v2366_v41  ;;  %v2368_v43 = vadd.f32 1.0, %v3695_v31 }
 0xd1f   : > { %v2369_v62 = vadd.f32 1.0, %v3697_v45  ;;  %v2375_v48 = vmul.f32 0.5, %v2367_v27 }
 0xd20   : > { %v2376_v13 = vmul.f32 0.5, %v2368_v43  ;;  %v2382_v50 = vmul.f32 %v2374_v42, %v5239_v44 }
 0xd21   : > { %v2377_v49 = vmul.f32 0.5, %v2369_v62  ;;  %v2383_v17 = vmul.f32 %v2375_v48, %v5241_v23 }
 0xd22   : > { %v2384_v53 = vmul.f32 %v2376_v13, %v5245_v47 }
 0xd23   : > { %v3699_v11 = vpop.eup %3698  ;;  %v2385_v30 = vmul.f32 %v2377_v49, %v5249_v28 }
 0xd24   : > { %v3701_v1 = vpop.eup %3700  ;;  %v2390_v51 = vpack.c.bf16 %v2384_v53, %v2382_v50  ;;  %v2370_v52 = vadd.f32 1.0, %v3699_v11 }
 0xd25   : > { %v3703_v46 = vpop.eup %3702  ;;  %v2391_v54 = vpack.c.bf16 %v2385_v30, %v2383_v17  ;;  %v2371_v33 = vadd.f32 1.0, %v3701_v1 }
 0xd26   : > { %v3705_v20 = vpop.eup %3704  ;;  %v2372_v14 = vadd.f32 1.0, %v3703_v46  ;;  %v2378_v57 = vmul.f32 0.5, %v2370_v52 }
 0xd27   : > { %2561 = vmatprep.mubr.bf16.mxu0 %v2391_v54  ;;  %v2373_v26 = vadd.f32 1.0, %v3705_v20  ;;  %v2379_v56 = vmul.f32 0.5, %v2371_v33  ;;  %v3052_v33 = vld [vmem:[#allocation27] ss:$0 sm:$0xff] }
 0xd28   : > { %2562 = vmatmul.mubr.bf16.vlgmr.msra.gmra.mrb[24].mxu0 %v2390_v51  ;;  %v2380_v44 = vmul.f32 0.5, %v2372_v14  ;;  %v2386_v7 = vmul.f32 %v2378_v57, %v5260_v29 }
 0xd29   : > { %v2381_v47 = vmul.f32 0.5, %v2373_v26  ;;  %v2387_v28 = vmul.f32 %v2379_v56, %v5263_v55  ;;  %v3053_v56 = vld [vmem:[#allocation29] ss:$0 sm:$0xff] }
 0xd2a   : > { %v2388_v23 = vmul.f32 %v2380_v44, %v5268_v63 }
 0xd2b   : > { %v2389_v2 = vmul.f32 %v2381_v47, %v5273_v4 }
 0xd2c   : > { %v2392_v36 = vpack.c.bf16 %v2388_v23, %v2386_v7 }
 0xd2d   : > { %v2393_v61 = vpack.c.bf16 %v2389_v2, %v2387_v28 }
 0xd2f   : > { %2569 = vmatprep.mubr.bf16.mxu0 %v2393_v61 }
 0xd30   : > { %2570 = vmatmul.mubr.bf16.gmra.mrb[28].mxu0 %v2392_v36 }
 0xdfb   : > { %v3166_v3 = vpop.f32.mrb[24].mxu0 }
 0xdfc   : > { %v3167_v58 = vpop.f32.mrb[25].mxu0 }
 0xdfd   : > { %v3168_v10 = vadd.f32 %v3167_v58, %v3166_v3  ;;  %v3169_v12 = vpop.f32.mrb[26].mxu0 }
 0xdfe   : > { %v3170_v22 = vpop.f32.mrb[27].mxu0 }
 0xdff   : > { %v2564_v5 = vadd.f32 %v3168_v10, %v3035_v9  ;;  %v3171_v19 = vadd.f32 %v3170_v22, %v3169_v12 }
 0xe01   : > { %v2567_v24 = vadd.f32 %v3171_v19, %v3035_v9  ;;  %v2578_v29 = vadd.f32 %v2564_v5, %v5219_v60 }
 0xe03   : > { %2584 = vadd.xlane.f32.xlu0 %v2578_v29  ;;  %v3172_v63 = vpop.f32.mrb[28].mxu0  ;;  %v2579_v55 = vadd.f32 %v2567_v24, %v5222_v0 }
 0xe04   : > { %v3173_v4 = vpop.f32.mrb[29].mxu0 }
 0xe05   : > { %v3174_v59 = vadd.f32 %v3173_v4, %v3172_v63  ;;  %2586 = vadd.xlane.f32.xlu1 %v2579_v55  ;;  %v3175_v25 = vpop.f32.mrb[30].mxu0 }
 0xe06   : > { %v3176_v21 = vpop.f32.mrb[31].mxu0 }
 0xe07   : > { %v2572_v15 = vadd.f32 %v3174_v59, %v3035_v9  ;;  %v3177_v37 = vadd.f32 %v3176_v21, %v3175_v25 }
 0xe09   : > { %v2575_v16 = vadd.f32 %v3177_v37, %v3035_v9  ;;  %v2580_v18 = vadd.f32 %v2572_v15, %v5226_v6 }
 0xe0b   : > { %2588 = vadd.xlane.f32.xlu0 %v2580_v18  ;;  %v2581_v32 = vadd.f32 %v2575_v16, %v5231_v8 }
 0xe0d   : > { %2590 = vadd.xlane.f32.xlu1 %v2581_v32 }
 0xe90   : > { %v2585_v34 = vpop.xlane.xlu0 %2584 }
 0xe91   : > { %v2592_v60 = vmul.f32 0.0078125, %v2585_v34 }
 0xe92   : > { %v2587_v35 = vpop.xlane.xlu1 %2586 }
 0xe93   : > { %v2596_v38 = vsub.f32 %v2578_v29, %v2592_v60  ;;  %v2593_v39 = vmul.f32 0.0078125, %v2587_v35 }
 0xe95   : > { %v2597_v0 = vsub.f32 %v2579_v55, %v2593_v39  ;;  %v2600_v40 = vmul.f32 %v2596_v38, %v2596_v38 }
 0xe97   : > { %2604 = vadd.xlane.f32.xlu0 %v2600_v40  ;;  %v2601_v41 = vmul.f32 %v2597_v0, %v2597_v0 }
 0xe98   : > { %v2589_v31 = vpop.xlane.xlu0 %2588 }
 0xe99   : > { %v2594_v27 = vmul.f32 0.0078125, %v2589_v31  ;;  %2606 = vadd.xlane.f32.xlu1 %v2601_v41 }
 0xe9a   : > { %v2591_v45 = vpop.xlane.xlu1 %2590 }
 0xe9b   : > { %v2598_v42 = vsub.f32 %v2580_v18, %v2594_v27  ;;  %v2595_v43 = vmul.f32 0.0078125, %v2591_v45 }
 0xe9d   : > { %v2599_v6 = vsub.f32 %v2581_v32, %v2595_v43  ;;  %v2602_v62 = vmul.f32 %v2598_v42, %v2598_v42 }
 0xe9f   : > { %2608 = vadd.xlane.f32.xlu0 %v2602_v62  ;;  %v2603_v8 = vmul.f32 %v2599_v6, %v2599_v6 }
 0xea1   : > { %2610 = vadd.xlane.f32.xlu1 %v2603_v8 }
 0xf24   : > { %v2605_v48 = vpop.xlane.xlu0 %2604 }
 0xf25   : > { %v2612_v13 = vmul.f32 0.0078125, %v2605_v48 }
 0xf26   : > { %v2607_v49 = vpop.xlane.xlu1 %2606 }
 0xf27   : > { %v2616_v50 = vadd.f32 1e-05, %v2612_v13  ;;  %v2613_v53 = vmul.f32 0.0078125, %v2607_v49 }
 0xf29   : > { %3706 = vrsqrt.f32 %v2616_v50  ;;  %v2617_v11 = vadd.f32 1e-05, %v2613_v53 }
 0xf2b   : > { %3708 = vrsqrt.f32 %v2617_v11 }
 0xf2c   : > { %v2609_v17 = vpop.xlane.xlu0 %2608 }
 0xf2d   : > { %v2614_v30 = vmul.f32 0.0078125, %v2609_v17 }
 0xf2e   : > { %v2611_v1 = vpop.xlane.xlu1 %2610 }
 0xf2f   : > { %v2618_v51 = vadd.f32 1e-05, %v2614_v30  ;;  %v2615_v52 = vmul.f32 0.0078125, %v2611_v1 }
 0xf31   : > { %3710 = vrsqrt.f32 %v2618_v51  ;;  %v2619_v46 = vadd.f32 1e-05, %v2615_v52 }
 0xf33   : > { %v3707_v54 = vpop.eup %3706  ;;  %3712 = vrsqrt.f32 %v2619_v46 }
 0xf34   : > { %v2624_v20 = vmul.f32 %v3707_v54, %v2596_v38 }
 0xf35   : > { %v3709_v14 = vpop.eup %3708 }
 0xf36   : > { %v2634_v57 = vmul.f32 %v3052_v33, %v2624_v20  ;;  %v2625_v26 = vmul.f32 %v3709_v14, %v2597_v0 }
 0xf38   : > { %v2635_v44 = vmul.f32 %v3052_v33, %v2625_v26  ;;  %v2644_v47 = vadd.f32 %v3053_v56, %v2634_v57 }
 0xf3a   : > { %v2645_v7 = vadd.f32 %v3053_v56, %v2635_v44 }
 0xf3b   : > { %v3711_v23 = vpop.eup %3710 }
 0xf3c   : > { %v3088_v28 = vpack.c.bf16 %v2645_v7, %v2644_v47  ;;  %v2626_v2 = vmul.f32 %v3711_v23, %v2598_v42 }
 0xf3d   : > { %v3713_v36 = vpop.eup %3712 }
 0xf3e   : > { %v2636_v61 = vmul.f32 %v3052_v33, %v2626_v2  ;;  %v2627_v3 = vmul.f32 %v3713_v36, %v2599_v6  ;;  %3089 = vst [vmem:[%s790_s17] sm:$0xff] %v3088_v28  }
 0xf40   : > { %v2637_v9 = vmul.f32 %v3052_v33, %v2627_v3  ;;  %v2646_v58 = vadd.f32 %v3053_v56, %v2636_v61 }
 0xf42   : > { %v2647_v10 = vadd.f32 %v3053_v56, %v2637_v9 }
 0xf44   : > { %v3093_v12 = vpack.c.bf16 %v2647_v10, %v2646_v58 }
 0xf46   : > { %3097 = vst [vmem:[%s790_s17 + $0x8] sm:$0xff] %v3093_v12  }
 0xf47   : > { %4205 = shalt.err (!%p4202_p8)
}
 0xf48   : > { %s4206_s18 = scalar_lea.hbm %s5305_s29, 256  ;;  %s4210_s23 = scalar_lea.hbm %s5450_s30, 512 }
 0xf49   : > { %p4207_p9 = scmp.ne.s32.totalorder %s5305_s29, %s4206_s18  ;;  %p4211_p3 = scmp.lt.u32.totalorder %s5305_s29, %s5450_s30 }
 0xf4a   : > { %p4212_p7 = scmp.lt.u32.totalorder %s4210_s23, %s4206_s18  ;;  %p4214_p11 = scmp.lt.u32.totalorder %s4206_s18, %s5305_s29 }
 0xf4b   : > { %p4208_p4 = pnand %p4207_p9, %p5451_p0 }
 0xf4c   : > { %p4213_p12 = por %p4212_p7, %p4211_p3 }
 0xf4d   : > { %p4209_p6 = pneg %p4208_p4 }
 0xf4e   : > { %p4215_p5 = por %p4214_p11, %p4213_p12 }
 0xf50   : > { %p4216_p1 = pnand %p4215_p5, %p4209_p6 }
 0xf52   : > { %4219 = shalt.err (!%p4216_p1)
}
 0xf53   : > { %s4334_s24 = smov 4  }
 0xf54   : > { %3356 = dma.vmem_to_hbm [thread:$0]  (%p5451_p0), %s5307_s27, 256, %s5305_s29, %s2669_s16, %s4331_s28, %s4331_s28, %s4334_s24  }
 0xf55 PF: > { %s5452_s5 = sld [smem:[#allocation41_spill]]  ;;  %s5453_s4 = sld [smem:[#allocation46_spill]] }
 0xf56   : > { %p5454_p10 = scmp.ne.s32.totalorder %s5441_s0, 0 }
 0xf5b   : > { %s2699_s3 = sand.u32 1, %s5452_s5   ;;  %p5455_p13 = scmp.ge.s32.totalorder %s5453_s4, 2 }
 0xf5c   : > { %s2700_s18 = scalar_lea.sflag [#allocation5], %s2699_s3 }
 0xf5d   : > { %p3412_p2 = pnand %p5455_p13, %p5454_p10 }
 0xf5f   : > { %4281 = dma.done.wait (!%p3412_p2), %s2700_s18, 256  }
 0xf60   : > { %4283 = vsyncadd (!%p3412_p2), %s2700_s18, 4294967040  ;;  %s41_s29 = sadd.s32 1, %s5453_s4   ;;  %s5456_s24 = sld [smem:[#allocation42_spill]] }
 0xf61   : > { %p38_p8 = scmp.ge.s32.totalorder %s41_s29, 4   ;;  %s5457_s25 = sld [smem:[#allocation43_spill]] }
 0xf62   : > { %s5458_s27 = sld [smem:[#allocation45_spill]]  ;;  %s5459_s26 = smov %s4825_s1 }
 0xf63   : > { %s5460_s28 = smov %s5462_s21  ;;  %40 = sbr.rel (!%p38_p8) target bundleno = 23 (0x17), region = 198 }
 0xf6a   :  { %2705 = vsyncpa [#allocation4], 1 }
 0xf6b   :  { %2707 = vsyncpa [#allocation4 + $0x1], 1 }
 0xf6c   :  { %2708 = vsyncpa [#allocation7], 1 }
 0xf6d   :  { %2709 = vsyncpa [#allocation10], 1 }
 0xf6e   :  { %2710 = vsyncpa [#allocation13], 1 }
 0xf6f   :  { %2711 = vsyncpa [#allocation16], 1 }
 0xf70   :  { %2712 = vsyncpa [#allocation19], 1 }
 0xf71   :  { %2713 = vsyncpa [#allocation22], 1 }
 0xf72   :  { %2714 = vsyncpa [#allocation25], 1 }
 0xf73   :  { %2715 = vsyncpa [#allocation28], 1 }
 0xf74   :  { %2716 = vsyncpa [#allocation5], 1 }
 0xf75   :  { %2718 = vsyncpa [#allocation5 + $0x1], 1 }

</bundles_post_ra>
